<compile_context>
chip_gen: v7x
topology: tpu7x:2x2x1
jax: 0.10.0
libtpu: 0.0.40
codegen_flags: <defaults>
</compile_context>

<pallas_src>
import functools
import math

import jax
import jax.numpy as jnp
from jax.experimental import pallas as pl
from jax.experimental.pallas import tpu as pltpu


# ----------------------------- config ---------------------------------------
class Config:
    NUM_SYMBOL_TYPES = 16
    MAX_SEQ_LENGTH = 32
    NUM_HEADS = 4
    NUM_DECODER_LAYERS = 2
    NUM_ENCODER_LAYERS = 2
    DROPOUT = 0.0          # eval semantics: dropout is a no-op
    EMBED_DIM = 32         # encoder.embed_dim
    PATCH = 8
    IMG = 16
    IN_CH = 3


_VMEM = pl.BlockSpec(memory_space=pltpu.MemorySpace.VMEM)


# ------------------------- the single fused kernel ---------------------------
def _forward_kernel(*refs, treedef, B, S, P, D, NH, NSYM):
    """Whole forward pass on VMEM-resident refs. Output: [B*S, NSYM+4+11]."""
    *in_refs, out_ref = refs
    prm = jax.tree_util.tree_unflatten(treedef, list(in_refs))
    f32 = jnp.float32
    DH = D // NH
    scale = 1.0 / math.sqrt(DH)

    def dense(x, layer, relu=False):
        y = jnp.dot(x, layer["w"][...], preferred_element_type=f32) + layer["b"][...]
        return jnp.maximum(y, 0.0) if relu else y

    def ln(x, layer, eps=1e-5):
        mu = jnp.mean(x, axis=-1, keepdims=True)
        xc = x - mu
        var = jnp.mean(xc * xc, axis=-1, keepdims=True)
        return xc * jax.lax.rsqrt(var + eps) * layer["g"][...] + layer["b"][...]

    # head-column mask base: keeps D=32 as the lane dim for every matmul
    col = jax.lax.broadcasted_iota(jnp.int32, (1, D), 1)

    def mha(x_q, x_kv, ap, Sq, Sk, self_attn):
        wqkv = ap["wqkv"][...]
        bqkv = ap["bqkv"][...]
        if self_attn:
            qkv = jnp.dot(x_q, wqkv, preferred_element_type=f32) + bqkv
            q, k, v = qkv[:, :D], qkv[:, D:2 * D], qkv[:, 2 * D:]
        else:
            q = jnp.dot(x_q, wqkv[:, :D], preferred_element_type=f32) + bqkv[:, :D]
            kv = jnp.dot(x_kv, wqkv[:, D:], preferred_element_type=f32) + bqkv[:, D:]
            k, v = kv[:, :D], kv[:, D:]
        outs = []
        for b in range(B):
            qb = q[b * Sq:(b + 1) * Sq, :]
            kb = k[b * Sk:(b + 1) * Sk, :]
            vb = v[b * Sk:(b + 1) * Sk, :]
            ob = jnp.zeros((Sq, D), f32)
            for h in range(NH):
                hm = ((col >= h * DH) & (col < (h + 1) * DH)).astype(f32)
                # masked full-width contraction == per-head q_h @ k_h^T
                s = jax.lax.dot_general(qb * hm, kb, (((1,), (1,)), ((), ())),
                                        preferred_element_type=f32) * scale
                s = s - jnp.max(s, axis=-1, keepdims=True)
                p = jnp.exp(s)
                l = jnp.sum(p, axis=-1, keepdims=True)
                p = p * pl.reciprocal(l, approx=True)
                # masked V keeps only head h's output columns
                ob = ob + jnp.dot(p, vb * hm, preferred_element_type=f32)
            outs.append(ob)
        o = jnp.concatenate(outs, axis=0)                       # [B*Sq, D]
        return jnp.dot(o, ap["wo"][...], preferred_element_type=f32) + ap["bo"][...]

    # ---------------- ViT-style encoder ----------------
    x = dense(prm["patches"][...], prm["enc"]["patch"])          # [B*P, D]
    pos_e = prm["enc"]["pos"][...]                               # [P, D]
    x = x + jnp.concatenate([pos_e] * B, axis=0)                 # per-patch pos, tiled over batch
    for lp in prm["enc"]["layers"]:
        x = ln(x + mha(x, x, lp["attn"], P, P, True), lp["ln1"])
        h = dense(x, lp["ff1"], relu=True)
        h = dense(h, lp["ff2"])
        x = ln(x + h, lp["ln2"])
    memory = x                                                   # [B*P, D]

    # ---------------- decoder (teacher forcing) ----------------
    ids = prm["ids"][...]                                        # [B*S, 1] int32
    onehot = (jax.lax.broadcasted_iota(jnp.int32, (B * S, NSYM), 1) == ids).astype(f32)
    y = jnp.dot(onehot, prm["sym_table"][...], preferred_element_type=f32)   # [B*S, D]
    pos_d = prm["pos_table"][...][:S, :]                         # [S, D]
    y = y + jnp.concatenate([pos_d] * B, axis=0)
    for lp in prm["dec_layers"]:
        y = ln(y + mha(y, y, lp["self_attn"], S, S, True), lp["ln1"])
        y = ln(y + mha(y, memory, lp["cross_attn"], S, P, False), lp["ln2"])
        h = dense(y, lp["ff1"], relu=True)
        h = dense(h, lp["ff2"])
        y = ln(y + h, lp["ln3"])

    # fused heads: [symbol(16) | position(4) | staff(11)]
    out_ref[...] = dense(y, prm["heads"]).astype(out_ref.dtype)


# ------------------------------ wrapper --------------------------------------
def music_notation_transformer_forward(params, images, target_symbols, cfg):
    """Teacher-forcing branch (target_symbols is [B, S] int)."""
    B, C, H, W = images.shape
    ps = cfg.PATCH
    nph, npw = H // ps, W // ps
    P = nph * npw
    D = cfg.EMBED_DIM
    S = target_symbols.shape[1]
    n_sym = cfg.NUM_SYMBOL_TYPES
    n_out = n_sym + 4 + 11

    # layout prep only (no compute): patch extraction matches Conv2d(stride=patch)
    patches = images.reshape(B, C, nph, ps, npw, ps)
    patches = patches.transpose(0, 2, 4, 1, 3, 5).reshape(B * P, C * ps * ps)
    ids = target_symbols.reshape(B * S, 1).astype(jnp.int32)

    inputs = {
        "ids": ids,
        "patches": patches,
        "enc": params["encoder"],
        "sym_table": params["symbol_embedding"],
        "pos_table": params["position_embedding"],
        "dec_layers": params["decoder"]["layers"],
        "heads": params["heads"],
    }
    leaves, treedef = jax.tree_util.tree_flatten(inputs)

    kernel = functools.partial(
        _forward_kernel, treedef=treedef, B=B, S=S, P=P, D=D,
        NH=cfg.NUM_HEADS, NSYM=n_sym)

    out = pl.pallas_call(
        kernel,
        out_shape=jax.ShapeDtypeStruct((B * S, n_out), jnp.float32),
        in_specs=[_VMEM] * len(leaves),
        out_specs=_VMEM,
    )(*leaves)

    symbol_logits = out[:, :n_sym].reshape(B, S, n_sym)
    position_preds = out[:, n_sym:n_sym + 4].reshape(B, S, 4)
    staff_position_logits = out[:, n_sym + 4:].reshape(B, S, 11)

    # TODO(synk): autoregressive branch (target_symbols=None, greedy max_length=10
    # decode loop) not implemented; it would re-invoke this same fused kernel
    # step-by-step from a Python loop.
    return {
        "symbol_logits": symbol_logits,
        "position_preds": position_preds,
        "staff_position_logits": staff_position_logits,
    }


# --------------------------- parameter init -----------------------------------
def init_params(key, cfg):
    keys = iter(jax.random.split(key, 64))
    D = cfg.EMBED_DIM
    FF = 4 * D

    def dense_p(i_dim, o_dim):
        return {"w": jax.random.normal(next(keys), (i_dim, o_dim), jnp.float32) * 0.02,
                "b": jnp.zeros((1, o_dim), jnp.float32)}

    def ln_p(d):
        return {"g": jnp.ones((1, d), jnp.float32), "b": jnp.zeros((1, d), jnp.float32)}

    def attn_p(d):
        # fused in-projection [D, 3D] (q|k|v), matching nn.MultiheadAttention layout
        return {"wqkv": jax.random.normal(next(keys), (d, 3 * d), jnp.float32) * 0.02,
                "bqkv": jnp.zeros((1, 3 * d), jnp.float32),
                "wo": jax.random.normal(next(keys), (d, d), jnp.float32) * 0.02,
                "bo": jnp.zeros((1, d), jnp.float32)}

    num_patches = (cfg.IMG // cfg.PATCH) ** 2

    encoder = {
        "patch": dense_p(cfg.IN_CH * cfg.PATCH * cfg.PATCH, D),
        "pos": jax.random.normal(next(keys), (num_patches, D), jnp.float32) * 0.02,
        "layers": [
            {"attn": attn_p(D), "ln1": ln_p(D),
             "ff1": dense_p(D, FF), "ff2": dense_p(FF, D), "ln2": ln_p(D)}
            for _ in range(cfg.NUM_ENCODER_LAYERS)
        ],
    }
    decoder_layers = [
        {"self_attn": attn_p(D), "ln1": ln_p(D),
         "cross_attn": attn_p(D), "ln2": ln_p(D),
         "ff1": dense_p(D, FF), "ff2": dense_p(FF, D), "ln3": ln_p(D)}
        for _ in range(cfg.NUM_DECODER_LAYERS)
    ]

    n_out = cfg.NUM_SYMBOL_TYPES + 4 + 11   # fused heads: symbol | position | staff
    return {
        "encoder": encoder,
        "decoder": {"layers": decoder_layers},
        "symbol_embedding": jax.random.normal(
            next(keys), (cfg.NUM_SYMBOL_TYPES, D), jnp.float32) * 0.02,
        "position_embedding": jax.random.normal(
            next(keys), (cfg.MAX_SEQ_LENGTH, D), jnp.float32) * 0.02,
        "heads": dense_p(D, n_out),
    }


# ------------------------------- main -----------------------------------------
if __name__ == "__main__":
    cfg = Config
    root = jax.random.PRNGKey(0)
    k_params, k_img, k_sym = jax.random.split(root, 3)

    params = init_params(k_params, cfg)
    images = jax.random.normal(k_img, (2, cfg.IN_CH, cfg.IMG, cfg.IMG), jnp.float32)
    target_symbols = jax.random.randint(k_sym, (2, 8), 0, cfg.NUM_SYMBOL_TYPES)

    fwd = jax.jit(functools.partial(music_notation_transformer_forward, cfg=cfg))
    out = fwd(params, images, target_symbols)
    jax.block_until_ready(out)

    assert out["symbol_logits"].shape == (2, 8, cfg.NUM_SYMBOL_TYPES)
    assert out["position_preds"].shape == (2, 8, 4)
    assert out["staff_position_logits"].shape == (2, 8, 11)
    print("KERNEL_OK")
</pallas_src>

<mosaic_0001>
module attributes {stable_mosaic.version = 11 : i64} {
  func.func @_forward_kernel(%arg0: memref<1x32xf32, #tpu.memory_space<vmem>>, %arg1: memref<1x96xf32, #tpu.memory_space<vmem>>, %arg2: memref<32x32xf32, #tpu.memory_space<vmem>>, %arg3: memref<32x96xf32, #tpu.memory_space<vmem>>, %arg4: memref<1x128xf32, #tpu.memory_space<vmem>>, %arg5: memref<32x128xf32, #tpu.memory_space<vmem>>, %arg6: memref<1x32xf32, #tpu.memory_space<vmem>>, %arg7: memref<128x32xf32, #tpu.memory_space<vmem>>, %arg8: memref<1x32xf32, #tpu.memory_space<vmem>>, %arg9: memref<1x32xf32, #tpu.memory_space<vmem>>, %arg10: memref<1x32xf32, #tpu.memory_space<vmem>>, %arg11: memref<1x32xf32, #tpu.memory_space<vmem>>, %arg12: memref<1x32xf32, #tpu.memory_space<vmem>>, %arg13: memref<1x32xf32, #tpu.memory_space<vmem>>, %arg14: memref<1x32xf32, #tpu.memory_space<vmem>>, %arg15: memref<1x96xf32, #tpu.memory_space<vmem>>, %arg16: memref<32x32xf32, #tpu.memory_space<vmem>>, %arg17: memref<32x96xf32, #tpu.memory_space<vmem>>, %arg18: memref<1x32xf32, #tpu.memory_space<vmem>>, %arg19: memref<1x96xf32, #tpu.memory_space<vmem>>, %arg20: memref<32x32xf32, #tpu.memory_space<vmem>>, %arg21: memref<32x96xf32, #tpu.memory_space<vmem>>, %arg22: memref<1x128xf32, #tpu.memory_space<vmem>>, %arg23: memref<32x128xf32, #tpu.memory_space<vmem>>, %arg24: memref<1x32xf32, #tpu.memory_space<vmem>>, %arg25: memref<128x32xf32, #tpu.memory_space<vmem>>, %arg26: memref<1x32xf32, #tpu.memory_space<vmem>>, %arg27: memref<1x32xf32, #tpu.memory_space<vmem>>, %arg28: memref<1x32xf32, #tpu.memory_space<vmem>>, %arg29: memref<1x32xf32, #tpu.memory_space<vmem>>, %arg30: memref<1x32xf32, #tpu.memory_space<vmem>>, %arg31: memref<1x32xf32, #tpu.memory_space<vmem>>, %arg32: memref<1x32xf32, #tpu.memory_space<vmem>>, %arg33: memref<1x96xf32, #tpu.memory_space<vmem>>, %arg34: memref<32x32xf32, #tpu.memory_space<vmem>>, %arg35: memref<32x96xf32, #tpu.memory_space<vmem>>, %arg36: memref<1x32xf32, #tpu.memory_space<vmem>>, %arg37: memref<1x96xf32, #tpu.memory_space<vmem>>, %arg38: memref<32x32xf32, #tpu.memory_space<vmem>>, %arg39: memref<32x96xf32, #tpu.memory_space<vmem>>, %arg40: memref<1x128xf32, #tpu.memory_space<vmem>>, %arg41: memref<32x128xf32, #tpu.memory_space<vmem>>, %arg42: memref<1x32xf32, #tpu.memory_space<vmem>>, %arg43: memref<128x32xf32, #tpu.memory_space<vmem>>, %arg44: memref<1x32xf32, #tpu.memory_space<vmem>>, %arg45: memref<1x32xf32, #tpu.memory_space<vmem>>, %arg46: memref<1x32xf32, #tpu.memory_space<vmem>>, %arg47: memref<1x32xf32, #tpu.memory_space<vmem>>, %arg48: memref<1x32xf32, #tpu.memory_space<vmem>>, %arg49: memref<1x96xf32, #tpu.memory_space<vmem>>, %arg50: memref<32x32xf32, #tpu.memory_space<vmem>>, %arg51: memref<32x96xf32, #tpu.memory_space<vmem>>, %arg52: memref<1x128xf32, #tpu.memory_space<vmem>>, %arg53: memref<32x128xf32, #tpu.memory_space<vmem>>, %arg54: memref<1x32xf32, #tpu.memory_space<vmem>>, %arg55: memref<128x32xf32, #tpu.memory_space<vmem>>, %arg56: memref<1x32xf32, #tpu.memory_space<vmem>>, %arg57: memref<1x32xf32, #tpu.memory_space<vmem>>, %arg58: memref<1x32xf32, #tpu.memory_space<vmem>>, %arg59: memref<1x32xf32, #tpu.memory_space<vmem>>, %arg60: memref<1x32xf32, #tpu.memory_space<vmem>>, %arg61: memref<192x32xf32, #tpu.memory_space<vmem>>, %arg62: memref<4x32xf32, #tpu.memory_space<vmem>>, %arg63: memref<1x31xf32, #tpu.memory_space<vmem>>, %arg64: memref<32x31xf32, #tpu.memory_space<vmem>>, %arg65: memref<16x1xi32, #tpu.memory_space<vmem>>, %arg66: memref<8x192xf32, #tpu.memory_space<vmem>>, %arg67: memref<32x32xf32, #tpu.memory_space<vmem>>, %arg68: memref<16x32xf32, #tpu.memory_space<vmem>>, %arg69: memref<16x31xf32, #tpu.memory_space<vmem>>) attributes {dimension_semantics = [], scalar_prefetch = 0 : i64, scratch_operands = 0 : i64, tpu.core_type = #tpu.core_type<tc>} {
    %0 = tpu.iota {dimensions = array<i32: 1>} : vector<1x32xi32>
    %c0 = arith.constant 0 : index
    %c0_0 = arith.constant 0 : index
    %1 = vector.load %arg66[%c0, %c0_0] : memref<8x192xf32, #tpu.memory_space<vmem>>, vector<8x192xf32>
    %c0_1 = arith.constant 0 : index
    %c0_2 = arith.constant 0 : index
    %2 = vector.load %arg61[%c0_1, %c0_2] : memref<192x32xf32, #tpu.memory_space<vmem>>, vector<192x32xf32>
    %cst = arith.constant dense<0.000000e+00> : vector<8x32xf32>
    %3 = tpu.matmul %1, %2, %cst {dimension_numbers = #tpu.dot_dimension_numbers<[1], [0], [0], [1], [0, 0, 1, 1], [], []>} : vector<8x192xf32>, vector<192x32xf32>, vector<8x32xf32> -> vector<8x32xf32>
    %c0_3 = arith.constant 0 : index
    %c0_4 = arith.constant 0 : index
    %4 = vector.load %arg60[%c0_3, %c0_4] : memref<1x32xf32, #tpu.memory_space<vmem>>, vector<1x32xf32>
    %5 = vector.broadcast %4 : vector<1x32xf32> to vector<8x32xf32>
    %6 = arith.addf %3, %5 : vector<8x32xf32>
    %c0_5 = arith.constant 0 : index
    %c0_6 = arith.constant 0 : index
    %7 = vector.load %arg62[%c0_5, %c0_6] : memref<4x32xf32, #tpu.memory_space<vmem>>, vector<4x32xf32>
    %8 = tpu.concatenate %7, %7 in 0 : vector<4x32xf32>, vector<4x32xf32> -> vector<8x32xf32>
    %9 = arith.addf %6, %8 : vector<8x32xf32>
    %c0_7 = arith.constant 0 : index
    %c0_8 = arith.constant 0 : index
    %10 = vector.load %arg39[%c0_7, %c0_8] : memref<32x96xf32, #tpu.memory_space<vmem>>, vector<32x96xf32>
    %c0_9 = arith.constant 0 : index
    %c0_10 = arith.constant 0 : index
    %11 = vector.load %arg37[%c0_9, %c0_10] : memref<1x96xf32, #tpu.memory_space<vmem>>, vector<1x96xf32>
    %cst_11 = arith.constant dense<0.000000e+00> : vector<8x96xf32>
    %12 = tpu.matmul %9, %10, %cst_11 {dimension_numbers = #tpu.dot_dimension_numbers<[1], [0], [0], [1], [0, 0, 1, 1], [], []>} : vector<8x32xf32>, vector<32x96xf32>, vector<8x96xf32> -> vector<8x96xf32>
    %13 = vector.broadcast %11 : vector<1x96xf32> to vector<8x96xf32>
    %14 = arith.addf %12, %13 : vector<8x96xf32>
    %15 = vector.extract_strided_slice %14 {offsets = [0, 0], sizes = [8, 32], strides = [1, 1]} : vector<8x96xf32> to vector<8x32xf32>
    %16 = vector.extract_strided_slice %14 {offsets = [0, 32], sizes = [8, 32], strides = [1, 1]} : vector<8x96xf32> to vector<8x32xf32>
    %17 = vector.extract_strided_slice %14 {offsets = [0, 64], sizes = [8, 32], strides = [1, 1]} : vector<8x96xf32> to vector<8x32xf32>
    %18 = vector.extract_strided_slice %15 {offsets = [0, 0], sizes = [4, 32], strides = [1, 1]} : vector<8x32xf32> to vector<4x32xf32>
    %19 = vector.extract_strided_slice %16 {offsets = [0, 0], sizes = [4, 32], strides = [1, 1]} : vector<8x32xf32> to vector<4x32xf32>
    %20 = vector.extract_strided_slice %17 {offsets = [0, 0], sizes = [4, 32], strides = [1, 1]} : vector<8x32xf32> to vector<4x32xf32>
    %cst_12 = arith.constant 0.000000e+00 : f32
    %21 = vector.broadcast %cst_12 : f32 to vector<4x32xf32>
    %c0_i32 = arith.constant 0 : i32
    %22 = vector.broadcast %c0_i32 : i32 to vector<1x32xi32>
    %23 = arith.cmpi sge, %0, %22 : vector<1x32xi32>
    %c8_i32 = arith.constant 8 : i32
    %24 = vector.broadcast %c8_i32 : i32 to vector<1x32xi32>
    %25 = arith.cmpi slt, %0, %24 : vector<1x32xi32>
    %26 = arith.andi %23, %25 : vector<1x32xi1>
    %27 = arith.extui %26 : vector<1x32xi1> to vector<1x32xi32>
    %28 = arith.sitofp %27 : vector<1x32xi32> to vector<1x32xf32>
    %29 = vector.broadcast %28 : vector<1x32xf32> to vector<4x32xf32>
    %30 = arith.mulf %18, %29 : vector<4x32xf32>
    %cst_13 = arith.constant dense<0.000000e+00> : vector<4x4xf32>
    %31 = tpu.matmul %30, %19, %cst_13 {dimension_numbers = #tpu.dot_dimension_numbers<[1], [1], [0], [0], [0, 0, 1, 0], [], []>} : vector<4x32xf32>, vector<4x32xf32>, vector<4x4xf32> -> vector<4x4xf32>
    %cst_14 = arith.constant 0.353553385 : f32
    %32 = vector.broadcast %cst_14 : f32 to vector<4x4xf32>
    %33 = arith.mulf %31, %32 : vector<4x4xf32>
    %cst_15 = arith.constant dense<0xFF800000> : vector<4xf32>
    %34 = vector.multi_reduction <maximumf>, %33, %cst_15 [1] : vector<4x4xf32> to vector<4xf32>
    %35 = vector.shape_cast %34 : vector<4xf32> to vector<4x1xf32>
    %36 = vector.broadcast %35 : vector<4x1xf32> to vector<4x4xf32>
    %37 = arith.subf %33, %36 : vector<4x4xf32>
    %38 = math.exp %37 : vector<4x4xf32>
    %cst_16 = arith.constant dense<0.000000e+00> : vector<4xf32>
    %39 = vector.multi_reduction <add>, %38, %cst_16 [1] : vector<4x4xf32> to vector<4xf32>
    %40 = vector.shape_cast %39 : vector<4xf32> to vector<4x1xf32>
    %41 = tpu.reciprocal %40 {approx = true} : vector<4x1xf32> -> vector<4x1xf32>
    %42 = vector.broadcast %41 : vector<4x1xf32> to vector<4x4xf32>
    %43 = arith.mulf %38, %42 : vector<4x4xf32>
    %44 = vector.broadcast %28 : vector<1x32xf32> to vector<4x32xf32>
    %45 = arith.mulf %20, %44 : vector<4x32xf32>
    %cst_17 = arith.constant dense<0.000000e+00> : vector<4x32xf32>
    %46 = tpu.matmul %43, %45, %cst_17 {dimension_numbers = #tpu.dot_dimension_numbers<[1], [0], [0], [1], [0, 0, 1, 1], [], []>} : vector<4x4xf32>, vector<4x32xf32>, vector<4x32xf32> -> vector<4x32xf32>
    %47 = arith.addf %21, %46 : vector<4x32xf32>
    %c8_i32_18 = arith.constant 8 : i32
    %48 = vector.broadcast %c8_i32_18 : i32 to vector<1x32xi32>
    %49 = arith.cmpi sge, %0, %48 : vector<1x32xi32>
    %c16_i32 = arith.constant 16 : i32
    %50 = vector.broadcast %c16_i32 : i32 to vector<1x32xi32>
    %51 = arith.cmpi slt, %0, %50 : vector<1x32xi32>
    %52 = arith.andi %49, %51 : vector<1x32xi1>
    %53 = arith.extui %52 : vector<1x32xi1> to vector<1x32xi32>
    %54 = arith.sitofp %53 : vector<1x32xi32> to vector<1x32xf32>
    %55 = vector.broadcast %54 : vector<1x32xf32> to vector<4x32xf32>
    %56 = arith.mulf %18, %55 : vector<4x32xf32>
    %cst_19 = arith.constant dense<0.000000e+00> : vector<4x4xf32>
    %57 = tpu.matmul %56, %19, %cst_19 {dimension_numbers = #tpu.dot_dimension_numbers<[1], [1], [0], [0], [0, 0, 1, 0], [], []>} : vector<4x32xf32>, vector<4x32xf32>, vector<4x4xf32> -> vector<4x4xf32>
    %cst_20 = arith.constant 0.353553385 : f32
    %58 = vector.broadcast %cst_20 : f32 to vector<4x4xf32>
    %59 = arith.mulf %57, %58 : vector<4x4xf32>
    %cst_21 = arith.constant dense<0xFF800000> : vector<4xf32>
    %60 = vector.multi_reduction <maximumf>, %59, %cst_21 [1] : vector<4x4xf32> to vector<4xf32>
    %61 = vector.shape_cast %60 : vector<4xf32> to vector<4x1xf32>
    %62 = vector.broadcast %61 : vector<4x1xf32> to vector<4x4xf32>
    %63 = arith.subf %59, %62 : vector<4x4xf32>
    %64 = math.exp %63 : vector<4x4xf32>
    %cst_22 = arith.constant dense<0.000000e+00> : vector<4xf32>
    %65 = vector.multi_reduction <add>, %64, %cst_22 [1] : vector<4x4xf32> to vector<4xf32>
    %66 = vector.shape_cast %65 : vector<4xf32> to vector<4x1xf32>
    %67 = tpu.reciprocal %66 {approx = true} : vector<4x1xf32> -> vector<4x1xf32>
    %68 = vector.broadcast %67 : vector<4x1xf32> to vector<4x4xf32>
    %69 = arith.mulf %64, %68 : vector<4x4xf32>
    %70 = vector.broadcast %54 : vector<1x32xf32> to vector<4x32xf32>
    %71 = arith.mulf %20, %70 : vector<4x32xf32>
    %cst_23 = arith.constant dense<0.000000e+00> : vector<4x32xf32>
    %72 = tpu.matmul %69, %71, %cst_23 {dimension_numbers = #tpu.dot_dimension_numbers<[1], [0], [0], [1], [0, 0, 1, 1], [], []>} : vector<4x4xf32>, vector<4x32xf32>, vector<4x32xf32> -> vector<4x32xf32>
    %73 = arith.addf %47, %72 : vector<4x32xf32>
    %c16_i32_24 = arith.constant 16 : i32
    %74 = vector.broadcast %c16_i32_24 : i32 to vector<1x32xi32>
    %75 = arith.cmpi sge, %0, %74 : vector<1x32xi32>
    %c24_i32 = arith.constant 24 : i32
    %76 = vector.broadcast %c24_i32 : i32 to vector<1x32xi32>
    %77 = arith.cmpi slt, %0, %76 : vector<1x32xi32>
    %78 = arith.andi %75, %77 : vector<1x32xi1>
    %79 = arith.extui %78 : vector<1x32xi1> to vector<1x32xi32>
    %80 = arith.sitofp %79 : vector<1x32xi32> to vector<1x32xf32>
    %81 = vector.broadcast %80 : vector<1x32xf32> to vector<4x32xf32>
    %82 = arith.mulf %18, %81 : vector<4x32xf32>
    %cst_25 = arith.constant dense<0.000000e+00> : vector<4x4xf32>
    %83 = tpu.matmul %82, %19, %cst_25 {dimension_numbers = #tpu.dot_dimension_numbers<[1], [1], [0], [0], [0, 0, 1, 0], [], []>} : vector<4x32xf32>, vector<4x32xf32>, vector<4x4xf32> -> vector<4x4xf32>
    %cst_26 = arith.constant 0.353553385 : f32
    %84 = vector.broadcast %cst_26 : f32 to vector<4x4xf32>
    %85 = arith.mulf %83, %84 : vector<4x4xf32>
    %cst_27 = arith.constant dense<0xFF800000> : vector<4xf32>
    %86 = vector.multi_reduction <maximumf>, %85, %cst_27 [1] : vector<4x4xf32> to vector<4xf32>
    %87 = vector.shape_cast %86 : vector<4xf32> to vector<4x1xf32>
    %88 = vector.broadcast %87 : vector<4x1xf32> to vector<4x4xf32>
    %89 = arith.subf %85, %88 : vector<4x4xf32>
    %90 = math.exp %89 : vector<4x4xf32>
    %cst_28 = arith.constant dense<0.000000e+00> : vector<4xf32>
    %91 = vector.multi_reduction <add>, %90, %cst_28 [1] : vector<4x4xf32> to vector<4xf32>
    %92 = vector.shape_cast %91 : vector<4xf32> to vector<4x1xf32>
    %93 = tpu.reciprocal %92 {approx = true} : vector<4x1xf32> -> vector<4x1xf32>
    %94 = vector.broadcast %93 : vector<4x1xf32> to vector<4x4xf32>
    %95 = arith.mulf %90, %94 : vector<4x4xf32>
    %96 = vector.broadcast %80 : vector<1x32xf32> to vector<4x32xf32>
    %97 = arith.mulf %20, %96 : vector<4x32xf32>
    %cst_29 = arith.constant dense<0.000000e+00> : vector<4x32xf32>
    %98 = tpu.matmul %95, %97, %cst_29 {dimension_numbers = #tpu.dot_dimension_numbers<[1], [0], [0], [1], [0, 0, 1, 1], [], []>} : vector<4x4xf32>, vector<4x32xf32>, vector<4x32xf32> -> vector<4x32xf32>
    %99 = arith.addf %73, %98 : vector<4x32xf32>
    %c24_i32_30 = arith.constant 24 : i32
    %100 = vector.broadcast %c24_i32_30 : i32 to vector<1x32xi32>
    %101 = arith.cmpi sge, %0, %100 : vector<1x32xi32>
    %c32_i32 = arith.constant 32 : i32
    %102 = vector.broadcast %c32_i32 : i32 to vector<1x32xi32>
    %103 = arith.cmpi slt, %0, %102 : vector<1x32xi32>
    %104 = arith.andi %101, %103 : vector<1x32xi1>
    %105 = arith.extui %104 : vector<1x32xi1> to vector<1x32xi32>
    %106 = arith.sitofp %105 : vector<1x32xi32> to vector<1x32xf32>
    %107 = vector.broadcast %106 : vector<1x32xf32> to vector<4x32xf32>
    %108 = arith.mulf %18, %107 : vector<4x32xf32>
    %cst_31 = arith.constant dense<0.000000e+00> : vector<4x4xf32>
    %109 = tpu.matmul %108, %19, %cst_31 {dimension_numbers = #tpu.dot_dimension_numbers<[1], [1], [0], [0], [0, 0, 1, 0], [], []>} : vector<4x32xf32>, vector<4x32xf32>, vector<4x4xf32> -> vector<4x4xf32>
    %cst_32 = arith.constant 0.353553385 : f32
    %110 = vector.broadcast %cst_32 : f32 to vector<4x4xf32>
    %111 = arith.mulf %109, %110 : vector<4x4xf32>
    %cst_33 = arith.constant dense<0xFF800000> : vector<4xf32>
    %112 = vector.multi_reduction <maximumf>, %111, %cst_33 [1] : vector<4x4xf32> to vector<4xf32>
    %113 = vector.shape_cast %112 : vector<4xf32> to vector<4x1xf32>
    %114 = vector.broadcast %113 : vector<4x1xf32> to vector<4x4xf32>
    %115 = arith.subf %111, %114 : vector<4x4xf32>
    %116 = math.exp %115 : vector<4x4xf32>
    %cst_34 = arith.constant dense<0.000000e+00> : vector<4xf32>
    %117 = vector.multi_reduction <add>, %116, %cst_34 [1] : vector<4x4xf32> to vector<4xf32>
    %118 = vector.shape_cast %117 : vector<4xf32> to vector<4x1xf32>
    %119 = tpu.reciprocal %118 {approx = true} : vector<4x1xf32> -> vector<4x1xf32>
    %120 = vector.broadcast %119 : vector<4x1xf32> to vector<4x4xf32>
    %121 = arith.mulf %116, %120 : vector<4x4xf32>
    %122 = vector.broadcast %106 : vector<1x32xf32> to vector<4x32xf32>
    %123 = arith.mulf %20, %122 : vector<4x32xf32>
    %cst_35 = arith.constant dense<0.000000e+00> : vector<4x32xf32>
    %124 = tpu.matmul %121, %123, %cst_35 {dimension_numbers = #tpu.dot_dimension_numbers<[1], [0], [0], [1], [0, 0, 1, 1], [], []>} : vector<4x4xf32>, vector<4x32xf32>, vector<4x32xf32> -> vector<4x32xf32>
    %125 = arith.addf %99, %124 : vector<4x32xf32>
    %126 = vector.extract_strided_slice %15 {offsets = [4, 0], sizes = [4, 32], strides = [1, 1]} : vector<8x32xf32> to vector<4x32xf32>
    %127 = vector.extract_strided_slice %16 {offsets = [4, 0], sizes = [4, 32], strides = [1, 1]} : vector<8x32xf32> to vector<4x32xf32>
    %128 = vector.extract_strided_slice %17 {offsets = [4, 0], sizes = [4, 32], strides = [1, 1]} : vector<8x32xf32> to vector<4x32xf32>
    %cst_36 = arith.constant 0.000000e+00 : f32
    %129 = vector.broadcast %cst_36 : f32 to vector<4x32xf32>
    %c0_i32_37 = arith.constant 0 : i32
    %130 = vector.broadcast %c0_i32_37 : i32 to vector<1x32xi32>
    %131 = arith.cmpi sge, %0, %130 : vector<1x32xi32>
    %c8_i32_38 = arith.constant 8 : i32
    %132 = vector.broadcast %c8_i32_38 : i32 to vector<1x32xi32>
    %133 = arith.cmpi slt, %0, %132 : vector<1x32xi32>
    %134 = arith.andi %131, %133 : vector<1x32xi1>
    %135 = arith.extui %134 : vector<1x32xi1> to vector<1x32xi32>
    %136 = arith.sitofp %135 : vector<1x32xi32> to vector<1x32xf32>
    %137 = vector.broadcast %136 : vector<1x32xf32> to vector<4x32xf32>
    %138 = arith.mulf %126, %137 : vector<4x32xf32>
    %cst_39 = arith.constant dense<0.000000e+00> : vector<4x4xf32>
    %139 = tpu.matmul %138, %127, %cst_39 {dimension_numbers = #tpu.dot_dimension_numbers<[1], [1], [0], [0], [0, 0, 1, 0], [], []>} : vector<4x32xf32>, vector<4x32xf32>, vector<4x4xf32> -> vector<4x4xf32>
    %cst_40 = arith.constant 0.353553385 : f32
    %140 = vector.broadcast %cst_40 : f32 to vector<4x4xf32>
    %141 = arith.mulf %139, %140 : vector<4x4xf32>
    %cst_41 = arith.constant dense<0xFF800000> : vector<4xf32>
    %142 = vector.multi_reduction <maximumf>, %141, %cst_41 [1] : vector<4x4xf32> to vector<4xf32>
    %143 = vector.shape_cast %142 : vector<4xf32> to vector<4x1xf32>
    %144 = vector.broadcast %143 : vector<4x1xf32> to vector<4x4xf32>
    %145 = arith.subf %141, %144 : vector<4x4xf32>
    %146 = math.exp %145 : vector<4x4xf32>
    %cst_42 = arith.constant dense<0.000000e+00> : vector<4xf32>
    %147 = vector.multi_reduction <add>, %146, %cst_42 [1] : vector<4x4xf32> to vector<4xf32>
    %148 = vector.shape_cast %147 : vector<4xf32> to vector<4x1xf32>
    %149 = tpu.reciprocal %148 {approx = true} : vector<4x1xf32> -> vector<4x1xf32>
    %150 = vector.broadcast %149 : vector<4x1xf32> to vector<4x4xf32>
    %151 = arith.mulf %146, %150 : vector<4x4xf32>
    %152 = vector.broadcast %136 : vector<1x32xf32> to vector<4x32xf32>
    %153 = arith.mulf %128, %152 : vector<4x32xf32>
    %cst_43 = arith.constant dense<0.000000e+00> : vector<4x32xf32>
    %154 = tpu.matmul %151, %153, %cst_43 {dimension_numbers = #tpu.dot_dimension_numbers<[1], [0], [0], [1], [0, 0, 1, 1], [], []>} : vector<4x4xf32>, vector<4x32xf32>, vector<4x32xf32> -> vector<4x32xf32>
    %155 = arith.addf %129, %154 : vector<4x32xf32>
    %c8_i32_44 = arith.constant 8 : i32
    %156 = vector.broadcast %c8_i32_44 : i32 to vector<1x32xi32>
    %157 = arith.cmpi sge, %0, %156 : vector<1x32xi32>
    %c16_i32_45 = arith.constant 16 : i32
    %158 = vector.broadcast %c16_i32_45 : i32 to vector<1x32xi32>
    %159 = arith.cmpi slt, %0, %158 : vector<1x32xi32>
    %160 = arith.andi %157, %159 : vector<1x32xi1>
    %161 = arith.extui %160 : vector<1x32xi1> to vector<1x32xi32>
    %162 = arith.sitofp %161 : vector<1x32xi32> to vector<1x32xf32>
    %163 = vector.broadcast %162 : vector<1x32xf32> to vector<4x32xf32>
    %164 = arith.mulf %126, %163 : vector<4x32xf32>
    %cst_46 = arith.constant dense<0.000000e+00> : vector<4x4xf32>
    %165 = tpu.matmul %164, %127, %cst_46 {dimension_numbers = #tpu.dot_dimension_numbers<[1], [1], [0], [0], [0, 0, 1, 0], [], []>} : vector<4x32xf32>, vector<4x32xf32>, vector<4x4xf32> -> vector<4x4xf32>
    %cst_47 = arith.constant 0.353553385 : f32
    %166 = vector.broadcast %cst_47 : f32 to vector<4x4xf32>
    %167 = arith.mulf %165, %166 : vector<4x4xf32>
    %cst_48 = arith.constant dense<0xFF800000> : vector<4xf32>
    %168 = vector.multi_reduction <maximumf>, %167, %cst_48 [1] : vector<4x4xf32> to vector<4xf32>
    %169 = vector.shape_cast %168 : vector<4xf32> to vector<4x1xf32>
    %170 = vector.broadcast %169 : vector<4x1xf32> to vector<4x4xf32>
    %171 = arith.subf %167, %170 : vector<4x4xf32>
    %172 = math.exp %171 : vector<4x4xf32>
    %cst_49 = arith.constant dense<0.000000e+00> : vector<4xf32>
    %173 = vector.multi_reduction <add>, %172, %cst_49 [1] : vector<4x4xf32> to vector<4xf32>
    %174 = vector.shape_cast %173 : vector<4xf32> to vector<4x1xf32>
    %175 = tpu.reciprocal %174 {approx = true} : vector<4x1xf32> -> vector<4x1xf32>
    %176 = vector.broadcast %175 : vector<4x1xf32> to vector<4x4xf32>
    %177 = arith.mulf %172, %176 : vector<4x4xf32>
    %178 = vector.broadcast %162 : vector<1x32xf32> to vector<4x32xf32>
    %179 = arith.mulf %128, %178 : vector<4x32xf32>
    %cst_50 = arith.constant dense<0.000000e+00> : vector<4x32xf32>
    %180 = tpu.matmul %177, %179, %cst_50 {dimension_numbers = #tpu.dot_dimension_numbers<[1], [0], [0], [1], [0, 0, 1, 1], [], []>} : vector<4x4xf32>, vector<4x32xf32>, vector<4x32xf32> -> vector<4x32xf32>
    %181 = arith.addf %155, %180 : vector<4x32xf32>
    %c16_i32_51 = arith.constant 16 : i32
    %182 = vector.broadcast %c16_i32_51 : i32 to vector<1x32xi32>
    %183 = arith.cmpi sge, %0, %182 : vector<1x32xi32>
    %c24_i32_52 = arith.constant 24 : i32
    %184 = vector.broadcast %c24_i32_52 : i32 to vector<1x32xi32>
    %185 = arith.cmpi slt, %0, %184 : vector<1x32xi32>
    %186 = arith.andi %183, %185 : vector<1x32xi1>
    %187 = arith.extui %186 : vector<1x32xi1> to vector<1x32xi32>
    %188 = arith.sitofp %187 : vector<1x32xi32> to vector<1x32xf32>
    %189 = vector.broadcast %188 : vector<1x32xf32> to vector<4x32xf32>
    %190 = arith.mulf %126, %189 : vector<4x32xf32>
    %cst_53 = arith.constant dense<0.000000e+00> : vector<4x4xf32>
    %191 = tpu.matmul %190, %127, %cst_53 {dimension_numbers = #tpu.dot_dimension_numbers<[1], [1], [0], [0], [0, 0, 1, 0], [], []>} : vector<4x32xf32>, vector<4x32xf32>, vector<4x4xf32> -> vector<4x4xf32>
    %cst_54 = arith.constant 0.353553385 : f32
    %192 = vector.broadcast %cst_54 : f32 to vector<4x4xf32>
    %193 = arith.mulf %191, %192 : vector<4x4xf32>
    %cst_55 = arith.constant dense<0xFF800000> : vector<4xf32>
    %194 = vector.multi_reduction <maximumf>, %193, %cst_55 [1] : vector<4x4xf32> to vector<4xf32>
    %195 = vector.shape_cast %194 : vector<4xf32> to vector<4x1xf32>
    %196 = vector.broadcast %195 : vector<4x1xf32> to vector<4x4xf32>
    %197 = arith.subf %193, %196 : vector<4x4xf32>
    %198 = math.exp %197 : vector<4x4xf32>
    %cst_56 = arith.constant dense<0.000000e+00> : vector<4xf32>
    %199 = vector.multi_reduction <add>, %198, %cst_56 [1] : vector<4x4xf32> to vector<4xf32>
    %200 = vector.shape_cast %199 : vector<4xf32> to vector<4x1xf32>
    %201 = tpu.reciprocal %200 {approx = true} : vector<4x1xf32> -> vector<4x1xf32>
    %202 = vector.broadcast %201 : vector<4x1xf32> to vector<4x4xf32>
    %203 = arith.mulf %198, %202 : vector<4x4xf32>
    %204 = vector.broadcast %188 : vector<1x32xf32> to vector<4x32xf32>
    %205 = arith.mulf %128, %204 : vector<4x32xf32>
    %cst_57 = arith.constant dense<0.000000e+00> : vector<4x32xf32>
    %206 = tpu.matmul %203, %205, %cst_57 {dimension_numbers = #tpu.dot_dimension_numbers<[1], [0], [0], [1], [0, 0, 1, 1], [], []>} : vector<4x4xf32>, vector<4x32xf32>, vector<4x32xf32> -> vector<4x32xf32>
    %207 = arith.addf %181, %206 : vector<4x32xf32>
    %c24_i32_58 = arith.constant 24 : i32
    %208 = vector.broadcast %c24_i32_58 : i32 to vector<1x32xi32>
    %209 = arith.cmpi sge, %0, %208 : vector<1x32xi32>
    %c32_i32_59 = arith.constant 32 : i32
    %210 = vector.broadcast %c32_i32_59 : i32 to vector<1x32xi32>
    %211 = arith.cmpi slt, %0, %210 : vector<1x32xi32>
    %212 = arith.andi %209, %211 : vector<1x32xi1>
    %213 = arith.extui %212 : vector<1x32xi1> to vector<1x32xi32>
    %214 = arith.sitofp %213 : vector<1x32xi32> to vector<1x32xf32>
    %215 = vector.broadcast %214 : vector<1x32xf32> to vector<4x32xf32>
    %216 = arith.mulf %126, %215 : vector<4x32xf32>
    %cst_60 = arith.constant dense<0.000000e+00> : vector<4x4xf32>
    %217 = tpu.matmul %216, %127, %cst_60 {dimension_numbers = #tpu.dot_dimension_numbers<[1], [1], [0], [0], [0, 0, 1, 0], [], []>} : vector<4x32xf32>, vector<4x32xf32>, vector<4x4xf32> -> vector<4x4xf32>
    %cst_61 = arith.constant 0.353553385 : f32
    %218 = vector.broadcast %cst_61 : f32 to vector<4x4xf32>
    %219 = arith.mulf %217, %218 : vector<4x4xf32>
    %cst_62 = arith.constant dense<0xFF800000> : vector<4xf32>
    %220 = vector.multi_reduction <maximumf>, %219, %cst_62 [1] : vector<4x4xf32> to vector<4xf32>
    %221 = vector.shape_cast %220 : vector<4xf32> to vector<4x1xf32>
    %222 = vector.broadcast %221 : vector<4x1xf32> to vector<4x4xf32>
    %223 = arith.subf %219, %222 : vector<4x4xf32>
    %224 = math.exp %223 : vector<4x4xf32>
    %cst_63 = arith.constant dense<0.000000e+00> : vector<4xf32>
    %225 = vector.multi_reduction <add>, %224, %cst_63 [1] : vector<4x4xf32> to vector<4xf32>
    %226 = vector.shape_cast %225 : vector<4xf32> to vector<4x1xf32>
    %227 = tpu.reciprocal %226 {approx = true} : vector<4x1xf32> -> vector<4x1xf32>
    %228 = vector.broadcast %227 : vector<4x1xf32> to vector<4x4xf32>
    %229 = arith.mulf %224, %228 : vector<4x4xf32>
    %230 = vector.broadcast %214 : vector<1x32xf32> to vector<4x32xf32>
    %231 = arith.mulf %128, %230 : vector<4x32xf32>
    %cst_64 = arith.constant dense<0.000000e+00> : vector<4x32xf32>
    %232 = tpu.matmul %229, %231, %cst_64 {dimension_numbers = #tpu.dot_dimension_numbers<[1], [0], [0], [1], [0, 0, 1, 1], [], []>} : vector<4x4xf32>, vector<4x32xf32>, vector<4x32xf32> -> vector<4x32xf32>
    %233 = arith.addf %207, %232 : vector<4x32xf32>
    %234 = tpu.concatenate %125, %233 in 0 : vector<4x32xf32>, vector<4x32xf32> -> vector<8x32xf32>
    %c0_65 = arith.constant 0 : index
    %c0_66 = arith.constant 0 : index
    %235 = vector.load %arg38[%c0_65, %c0_66] : memref<32x32xf32, #tpu.memory_space<vmem>>, vector<32x32xf32>
    %cst_67 = arith.constant dense<0.000000e+00> : vector<8x32xf32>
    %236 = tpu.matmul %234, %235, %cst_67 {dimension_numbers = #tpu.dot_dimension_numbers<[1], [0], [0], [1], [0, 0, 1, 1], [], []>} : vector<8x32xf32>, vector<32x32xf32>, vector<8x32xf32> -> vector<8x32xf32>
    %c0_68 = arith.constant 0 : index
    %c0_69 = arith.constant 0 : index
    %237 = vector.load %arg36[%c0_68, %c0_69] : memref<1x32xf32, #tpu.memory_space<vmem>>, vector<1x32xf32>
    %238 = vector.broadcast %237 : vector<1x32xf32> to vector<8x32xf32>
    %239 = arith.addf %236, %238 : vector<8x32xf32>
    %240 = arith.addf %9, %239 : vector<8x32xf32>
    %cst_70 = arith.constant dense<0.000000e+00> : vector<8xf32>
    %241 = vector.multi_reduction <add>, %240, %cst_70 [1] : vector<8x32xf32> to vector<8xf32>
    %242 = vector.shape_cast %241 : vector<8xf32> to vector<8x1xf32>
    %cst_71 = arith.constant 3.200000e+01 : f32
    %243 = vector.broadcast %cst_71 : f32 to vector<8x1xf32>
    %244 = arith.divf %242, %243 : vector<8x1xf32>
    %245 = vector.broadcast %244 : vector<8x1xf32> to vector<8x32xf32>
    %246 = arith.subf %240, %245 : vector<8x32xf32>
    %247 = arith.mulf %246, %246 : vector<8x32xf32>
    %cst_72 = arith.constant dense<0.000000e+00> : vector<8xf32>
    %248 = vector.multi_reduction <add>, %247, %cst_72 [1] : vector<8x32xf32> to vector<8xf32>
    %249 = vector.shape_cast %248 : vector<8xf32> to vector<8x1xf32>
    %cst_73 = arith.constant 3.200000e+01 : f32
    %250 = vector.broadcast %cst_73 : f32 to vector<8x1xf32>
    %251 = arith.divf %249, %250 : vector<8x1xf32>
    %cst_74 = arith.constant 9.99999974E-6 : f32
    %252 = vector.broadcast %cst_74 : f32 to vector<8x1xf32>
    %253 = arith.addf %251, %252 : vector<8x1xf32>
    %254 = math.rsqrt %253 : vector<8x1xf32>
    %255 = vector.broadcast %254 : vector<8x1xf32> to vector<8x32xf32>
    %256 = arith.mulf %246, %255 : vector<8x32xf32>
    %c0_75 = arith.constant 0 : index
    %c0_76 = arith.constant 0 : index
    %257 = vector.load %arg45[%c0_75, %c0_76] : memref<1x32xf32, #tpu.memory_space<vmem>>, vector<1x32xf32>
    %258 = vector.broadcast %257 : vector<1x32xf32> to vector<8x32xf32>
    %259 = arith.mulf %256, %258 : vector<8x32xf32>
    %c0_77 = arith.constant 0 : index
    %c0_78 = arith.constant 0 : index
    %260 = vector.load %arg44[%c0_77, %c0_78] : memref<1x32xf32, #tpu.memory_space<vmem>>, vector<1x32xf32>
    %261 = vector.broadcast %260 : vector<1x32xf32> to vector<8x32xf32>
    %262 = arith.addf %259, %261 : vector<8x32xf32>
    %c0_79 = arith.constant 0 : index
    %c0_80 = arith.constant 0 : index
    %263 = vector.load %arg41[%c0_79, %c0_80] : memref<32x128xf32, #tpu.memory_space<vmem>>, vector<32x128xf32>
    %cst_81 = arith.constant dense<0.000000e+00> : vector<8x128xf32>
    %264 = tpu.matmul %262, %263, %cst_81 {dimension_numbers = #tpu.dot_dimension_numbers<[1], [0], [0], [1], [0, 0, 1, 1], [], []>} : vector<8x32xf32>, vector<32x128xf32>, vector<8x128xf32> -> vector<8x128xf32>
    %c0_82 = arith.constant 0 : index
    %c0_83 = arith.constant 0 : index
    %265 = vector.load %arg40[%c0_82, %c0_83] : memref<1x128xf32, #tpu.memory_space<vmem>>, vector<1x128xf32>
    %266 = vector.broadcast %265 : vector<1x128xf32> to vector<8x128xf32>
    %267 = arith.addf %264, %266 : vector<8x128xf32>
    %cst_84 = arith.constant 0.000000e+00 : f32
    %268 = vector.broadcast %cst_84 : f32 to vector<8x128xf32>
    %269 = arith.maximumf %267, %268 : vector<8x128xf32>
    %c0_85 = arith.constant 0 : index
    %c0_86 = arith.constant 0 : index
    %270 = vector.load %arg43[%c0_85, %c0_86] : memref<128x32xf32, #tpu.memory_space<vmem>>, vector<128x32xf32>
    %cst_87 = arith.constant dense<0.000000e+00> : vector<8x32xf32>
    %271 = tpu.matmul %269, %270, %cst_87 {dimension_numbers = #tpu.dot_dimension_numbers<[1], [0], [0], [1], [0, 0, 1, 1], [], []>} : vector<8x128xf32>, vector<128x32xf32>, vector<8x32xf32> -> vector<8x32xf32>
    %c0_88 = arith.constant 0 : index
    %c0_89 = arith.constant 0 : index
    %272 = vector.load %arg42[%c0_88, %c0_89] : memref<1x32xf32, #tpu.memory_space<vmem>>, vector<1x32xf32>
    %273 = vector.broadcast %272 : vector<1x32xf32> to vector<8x32xf32>
    %274 = arith.addf %271, %273 : vector<8x32xf32>
    %275 = arith.addf %262, %274 : vector<8x32xf32>
    %cst_90 = arith.constant dense<0.000000e+00> : vector<8xf32>
    %276 = vector.multi_reduction <add>, %275, %cst_90 [1] : vector<8x32xf32> to vector<8xf32>
    %277 = vector.shape_cast %276 : vector<8xf32> to vector<8x1xf32>
    %cst_91 = arith.constant 3.200000e+01 : f32
    %278 = vector.broadcast %cst_91 : f32 to vector<8x1xf32>
    %279 = arith.divf %277, %278 : vector<8x1xf32>
    %280 = vector.broadcast %279 : vector<8x1xf32> to vector<8x32xf32>
    %281 = arith.subf %275, %280 : vector<8x32xf32>
    %282 = arith.mulf %281, %281 : vector<8x32xf32>
    %cst_92 = arith.constant dense<0.000000e+00> : vector<8xf32>
    %283 = vector.multi_reduction <add>, %282, %cst_92 [1] : vector<8x32xf32> to vector<8xf32>
    %284 = vector.shape_cast %283 : vector<8xf32> to vector<8x1xf32>
    %cst_93 = arith.constant 3.200000e+01 : f32
    %285 = vector.broadcast %cst_93 : f32 to vector<8x1xf32>
    %286 = arith.divf %284, %285 : vector<8x1xf32>
    %cst_94 = arith.constant 9.99999974E-6 : f32
    %287 = vector.broadcast %cst_94 : f32 to vector<8x1xf32>
    %288 = arith.addf %286, %287 : vector<8x1xf32>
    %289 = math.rsqrt %288 : vector<8x1xf32>
    %290 = vector.broadcast %289 : vector<8x1xf32> to vector<8x32xf32>
    %291 = arith.mulf %281, %290 : vector<8x32xf32>
    %c0_95 = arith.constant 0 : index
    %c0_96 = arith.constant 0 : index
    %292 = vector.load %arg47[%c0_95, %c0_96] : memref<1x32xf32, #tpu.memory_space<vmem>>, vector<1x32xf32>
    %293 = vector.broadcast %292 : vector<1x32xf32> to vector<8x32xf32>
    %294 = arith.mulf %291, %293 : vector<8x32xf32>
    %c0_97 = arith.constant 0 : index
    %c0_98 = arith.constant 0 : index
    %295 = vector.load %arg46[%c0_97, %c0_98] : memref<1x32xf32, #tpu.memory_space<vmem>>, vector<1x32xf32>
    %296 = vector.broadcast %295 : vector<1x32xf32> to vector<8x32xf32>
    %297 = arith.addf %294, %296 : vector<8x32xf32>
    %c0_99 = arith.constant 0 : index
    %c0_100 = arith.constant 0 : index
    %298 = vector.load %arg51[%c0_99, %c0_100] : memref<32x96xf32, #tpu.memory_space<vmem>>, vector<32x96xf32>
    %c0_101 = arith.constant 0 : index
    %c0_102 = arith.constant 0 : index
    %299 = vector.load %arg49[%c0_101, %c0_102] : memref<1x96xf32, #tpu.memory_space<vmem>>, vector<1x96xf32>
    %cst_103 = arith.constant dense<0.000000e+00> : vector<8x96xf32>
    %300 = tpu.matmul %297, %298, %cst_103 {dimension_numbers = #tpu.dot_dimension_numbers<[1], [0], [0], [1], [0, 0, 1, 1], [], []>} : vector<8x32xf32>, vector<32x96xf32>, vector<8x96xf32> -> vector<8x96xf32>
    %301 = vector.broadcast %299 : vector<1x96xf32> to vector<8x96xf32>
    %302 = arith.addf %300, %301 : vector<8x96xf32>
    %303 = vector.extract_strided_slice %302 {offsets = [0, 0], sizes = [8, 32], strides = [1, 1]} : vector<8x96xf32> to vector<8x32xf32>
    %304 = vector.extract_strided_slice %302 {offsets = [0, 32], sizes = [8, 32], strides = [1, 1]} : vector<8x96xf32> to vector<8x32xf32>
    %305 = vector.extract_strided_slice %302 {offsets = [0, 64], sizes = [8, 32], strides = [1, 1]} : vector<8x96xf32> to vector<8x32xf32>
    %306 = vector.extract_strided_slice %303 {offsets = [0, 0], sizes = [4, 32], strides = [1, 1]} : vector<8x32xf32> to vector<4x32xf32>
    %307 = vector.extract_strided_slice %304 {offsets = [0, 0], sizes = [4, 32], strides = [1, 1]} : vector<8x32xf32> to vector<4x32xf32>
    %308 = vector.extract_strided_slice %305 {offsets = [0, 0], sizes = [4, 32], strides = [1, 1]} : vector<8x32xf32> to vector<4x32xf32>
    %cst_104 = arith.constant 0.000000e+00 : f32
    %309 = vector.broadcast %cst_104 : f32 to vector<4x32xf32>
    %c0_i32_105 = arith.constant 0 : i32
    %310 = vector.broadcast %c0_i32_105 : i32 to vector<1x32xi32>
    %311 = arith.cmpi sge, %0, %310 : vector<1x32xi32>
    %c8_i32_106 = arith.constant 8 : i32
    %312 = vector.broadcast %c8_i32_106 : i32 to vector<1x32xi32>
    %313 = arith.cmpi slt, %0, %312 : vector<1x32xi32>
    %314 = arith.andi %311, %313 : vector<1x32xi1>
    %315 = arith.extui %314 : vector<1x32xi1> to vector<1x32xi32>
    %316 = arith.sitofp %315 : vector<1x32xi32> to vector<1x32xf32>
    %317 = vector.broadcast %316 : vector<1x32xf32> to vector<4x32xf32>
    %318 = arith.mulf %306, %317 : vector<4x32xf32>
    %cst_107 = arith.constant dense<0.000000e+00> : vector<4x4xf32>
    %319 = tpu.matmul %318, %307, %cst_107 {dimension_numbers = #tpu.dot_dimension_numbers<[1], [1], [0], [0], [0, 0, 1, 0], [], []>} : vector<4x32xf32>, vector<4x32xf32>, vector<4x4xf32> -> vector<4x4xf32>
    %cst_108 = arith.constant 0.353553385 : f32
    %320 = vector.broadcast %cst_108 : f32 to vector<4x4xf32>
    %321 = arith.mulf %319, %320 : vector<4x4xf32>
    %cst_109 = arith.constant dense<0xFF800000> : vector<4xf32>
    %322 = vector.multi_reduction <maximumf>, %321, %cst_109 [1] : vector<4x4xf32> to vector<4xf32>
    %323 = vector.shape_cast %322 : vector<4xf32> to vector<4x1xf32>
    %324 = vector.broadcast %323 : vector<4x1xf32> to vector<4x4xf32>
    %325 = arith.subf %321, %324 : vector<4x4xf32>
    %326 = math.exp %325 : vector<4x4xf32>
    %cst_110 = arith.constant dense<0.000000e+00> : vector<4xf32>
    %327 = vector.multi_reduction <add>, %326, %cst_110 [1] : vector<4x4xf32> to vector<4xf32>
    %328 = vector.shape_cast %327 : vector<4xf32> to vector<4x1xf32>
    %329 = tpu.reciprocal %328 {approx = true} : vector<4x1xf32> -> vector<4x1xf32>
    %330 = vector.broadcast %329 : vector<4x1xf32> to vector<4x4xf32>
    %331 = arith.mulf %326, %330 : vector<4x4xf32>
    %332 = vector.broadcast %316 : vector<1x32xf32> to vector<4x32xf32>
    %333 = arith.mulf %308, %332 : vector<4x32xf32>
    %cst_111 = arith.constant dense<0.000000e+00> : vector<4x32xf32>
    %334 = tpu.matmul %331, %333, %cst_111 {dimension_numbers = #tpu.dot_dimension_numbers<[1], [0], [0], [1], [0, 0, 1, 1], [], []>} : vector<4x4xf32>, vector<4x32xf32>, vector<4x32xf32> -> vector<4x32xf32>
    %335 = arith.addf %309, %334 : vector<4x32xf32>
    %c8_i32_112 = arith.constant 8 : i32
    %336 = vector.broadcast %c8_i32_112 : i32 to vector<1x32xi32>
    %337 = arith.cmpi sge, %0, %336 : vector<1x32xi32>
    %c16_i32_113 = arith.constant 16 : i32
    %338 = vector.broadcast %c16_i32_113 : i32 to vector<1x32xi32>
    %339 = arith.cmpi slt, %0, %338 : vector<1x32xi32>
    %340 = arith.andi %337, %339 : vector<1x32xi1>
    %341 = arith.extui %340 : vector<1x32xi1> to vector<1x32xi32>
    %342 = arith.sitofp %341 : vector<1x32xi32> to vector<1x32xf32>
    %343 = vector.broadcast %342 : vector<1x32xf32> to vector<4x32xf32>
    %344 = arith.mulf %306, %343 : vector<4x32xf32>
    %cst_114 = arith.constant dense<0.000000e+00> : vector<4x4xf32>
    %345 = tpu.matmul %344, %307, %cst_114 {dimension_numbers = #tpu.dot_dimension_numbers<[1], [1], [0], [0], [0, 0, 1, 0], [], []>} : vector<4x32xf32>, vector<4x32xf32>, vector<4x4xf32> -> vector<4x4xf32>
    %cst_115 = arith.constant 0.353553385 : f32
    %346 = vector.broadcast %cst_115 : f32 to vector<4x4xf32>
    %347 = arith.mulf %345, %346 : vector<4x4xf32>
    %cst_116 = arith.constant dense<0xFF800000> : vector<4xf32>
    %348 = vector.multi_reduction <maximumf>, %347, %cst_116 [1] : vector<4x4xf32> to vector<4xf32>
    %349 = vector.shape_cast %348 : vector<4xf32> to vector<4x1xf32>
    %350 = vector.broadcast %349 : vector<4x1xf32> to vector<4x4xf32>
    %351 = arith.subf %347, %350 : vector<4x4xf32>
    %352 = math.exp %351 : vector<4x4xf32>
    %cst_117 = arith.constant dense<0.000000e+00> : vector<4xf32>
    %353 = vector.multi_reduction <add>, %352, %cst_117 [1] : vector<4x4xf32> to vector<4xf32>
    %354 = vector.shape_cast %353 : vector<4xf32> to vector<4x1xf32>
    %355 = tpu.reciprocal %354 {approx = true} : vector<4x1xf32> -> vector<4x1xf32>
    %356 = vector.broadcast %355 : vector<4x1xf32> to vector<4x4xf32>
    %357 = arith.mulf %352, %356 : vector<4x4xf32>
    %358 = vector.broadcast %342 : vector<1x32xf32> to vector<4x32xf32>
    %359 = arith.mulf %308, %358 : vector<4x32xf32>
    %cst_118 = arith.constant dense<0.000000e+00> : vector<4x32xf32>
    %360 = tpu.matmul %357, %359, %cst_118 {dimension_numbers = #tpu.dot_dimension_numbers<[1], [0], [0], [1], [0, 0, 1, 1], [], []>} : vector<4x4xf32>, vector<4x32xf32>, vector<4x32xf32> -> vector<4x32xf32>
    %361 = arith.addf %335, %360 : vector<4x32xf32>
    %c16_i32_119 = arith.constant 16 : i32
    %362 = vector.broadcast %c16_i32_119 : i32 to vector<1x32xi32>
    %363 = arith.cmpi sge, %0, %362 : vector<1x32xi32>
    %c24_i32_120 = arith.constant 24 : i32
    %364 = vector.broadcast %c24_i32_120 : i32 to vector<1x32xi32>
    %365 = arith.cmpi slt, %0, %364 : vector<1x32xi32>
    %366 = arith.andi %363, %365 : vector<1x32xi1>
    %367 = arith.extui %366 : vector<1x32xi1> to vector<1x32xi32>
    %368 = arith.sitofp %367 : vector<1x32xi32> to vector<1x32xf32>
    %369 = vector.broadcast %368 : vector<1x32xf32> to vector<4x32xf32>
    %370 = arith.mulf %306, %369 : vector<4x32xf32>
    %cst_121 = arith.constant dense<0.000000e+00> : vector<4x4xf32>
    %371 = tpu.matmul %370, %307, %cst_121 {dimension_numbers = #tpu.dot_dimension_numbers<[1], [1], [0], [0], [0, 0, 1, 0], [], []>} : vector<4x32xf32>, vector<4x32xf32>, vector<4x4xf32> -> vector<4x4xf32>
    %cst_122 = arith.constant 0.353553385 : f32
    %372 = vector.broadcast %cst_122 : f32 to vector<4x4xf32>
    %373 = arith.mulf %371, %372 : vector<4x4xf32>
    %cst_123 = arith.constant dense<0xFF800000> : vector<4xf32>
    %374 = vector.multi_reduction <maximumf>, %373, %cst_123 [1] : vector<4x4xf32> to vector<4xf32>
    %375 = vector.shape_cast %374 : vector<4xf32> to vector<4x1xf32>
    %376 = vector.broadcast %375 : vector<4x1xf32> to vector<4x4xf32>
    %377 = arith.subf %373, %376 : vector<4x4xf32>
    %378 = math.exp %377 : vector<4x4xf32>
    %cst_124 = arith.constant dense<0.000000e+00> : vector<4xf32>
    %379 = vector.multi_reduction <add>, %378, %cst_124 [1] : vector<4x4xf32> to vector<4xf32>
    %380 = vector.shape_cast %379 : vector<4xf32> to vector<4x1xf32>
    %381 = tpu.reciprocal %380 {approx = true} : vector<4x1xf32> -> vector<4x1xf32>
    %382 = vector.broadcast %381 : vector<4x1xf32> to vector<4x4xf32>
    %383 = arith.mulf %378, %382 : vector<4x4xf32>
    %384 = vector.broadcast %368 : vector<1x32xf32> to vector<4x32xf32>
    %385 = arith.mulf %308, %384 : vector<4x32xf32>
    %cst_125 = arith.constant dense<0.000000e+00> : vector<4x32xf32>
    %386 = tpu.matmul %383, %385, %cst_125 {dimension_numbers = #tpu.dot_dimension_numbers<[1], [0], [0], [1], [0, 0, 1, 1], [], []>} : vector<4x4xf32>, vector<4x32xf32>, vector<4x32xf32> -> vector<4x32xf32>
    %387 = arith.addf %361, %386 : vector<4x32xf32>
    %c24_i32_126 = arith.constant 24 : i32
    %388 = vector.broadcast %c24_i32_126 : i32 to vector<1x32xi32>
    %389 = arith.cmpi sge, %0, %388 : vector<1x32xi32>
    %c32_i32_127 = arith.constant 32 : i32
    %390 = vector.broadcast %c32_i32_127 : i32 to vector<1x32xi32>
    %391 = arith.cmpi slt, %0, %390 : vector<1x32xi32>
    %392 = arith.andi %389, %391 : vector<1x32xi1>
    %393 = arith.extui %392 : vector<1x32xi1> to vector<1x32xi32>
    %394 = arith.sitofp %393 : vector<1x32xi32> to vector<1x32xf32>
    %395 = vector.broadcast %394 : vector<1x32xf32> to vector<4x32xf32>
    %396 = arith.mulf %306, %395 : vector<4x32xf32>
    %cst_128 = arith.constant dense<0.000000e+00> : vector<4x4xf32>
    %397 = tpu.matmul %396, %307, %cst_128 {dimension_numbers = #tpu.dot_dimension_numbers<[1], [1], [0], [0], [0, 0, 1, 0], [], []>} : vector<4x32xf32>, vector<4x32xf32>, vector<4x4xf32> -> vector<4x4xf32>
    %cst_129 = arith.constant 0.353553385 : f32
    %398 = vector.broadcast %cst_129 : f32 to vector<4x4xf32>
    %399 = arith.mulf %397, %398 : vector<4x4xf32>
    %cst_130 = arith.constant dense<0xFF800000> : vector<4xf32>
    %400 = vector.multi_reduction <maximumf>, %399, %cst_130 [1] : vector<4x4xf32> to vector<4xf32>
    %401 = vector.shape_cast %400 : vector<4xf32> to vector<4x1xf32>
    %402 = vector.broadcast %401 : vector<4x1xf32> to vector<4x4xf32>
    %403 = arith.subf %399, %402 : vector<4x4xf32>
    %404 = math.exp %403 : vector<4x4xf32>
    %cst_131 = arith.constant dense<0.000000e+00> : vector<4xf32>
    %405 = vector.multi_reduction <add>, %404, %cst_131 [1] : vector<4x4xf32> to vector<4xf32>
    %406 = vector.shape_cast %405 : vector<4xf32> to vector<4x1xf32>
    %407 = tpu.reciprocal %406 {approx = true} : vector<4x1xf32> -> vector<4x1xf32>
    %408 = vector.broadcast %407 : vector<4x1xf32> to vector<4x4xf32>
    %409 = arith.mulf %404, %408 : vector<4x4xf32>
    %410 = vector.broadcast %394 : vector<1x32xf32> to vector<4x32xf32>
    %411 = arith.mulf %308, %410 : vector<4x32xf32>
    %cst_132 = arith.constant dense<0.000000e+00> : vector<4x32xf32>
    %412 = tpu.matmul %409, %411, %cst_132 {dimension_numbers = #tpu.dot_dimension_numbers<[1], [0], [0], [1], [0, 0, 1, 1], [], []>} : vector<4x4xf32>, vector<4x32xf32>, vector<4x32xf32> -> vector<4x32xf32>
    %413 = arith.addf %387, %412 : vector<4x32xf32>
    %414 = vector.extract_strided_slice %303 {offsets = [4, 0], sizes = [4, 32], strides = [1, 1]} : vector<8x32xf32> to vector<4x32xf32>
    %415 = vector.extract_strided_slice %304 {offsets = [4, 0], sizes = [4, 32], strides = [1, 1]} : vector<8x32xf32> to vector<4x32xf32>
    %416 = vector.extract_strided_slice %305 {offsets = [4, 0], sizes = [4, 32], strides = [1, 1]} : vector<8x32xf32> to vector<4x32xf32>
    %cst_133 = arith.constant 0.000000e+00 : f32
    %417 = vector.broadcast %cst_133 : f32 to vector<4x32xf32>
    %c0_i32_134 = arith.constant 0 : i32
    %418 = vector.broadcast %c0_i32_134 : i32 to vector<1x32xi32>
    %419 = arith.cmpi sge, %0, %418 : vector<1x32xi32>
    %c8_i32_135 = arith.constant 8 : i32
    %420 = vector.broadcast %c8_i32_135 : i32 to vector<1x32xi32>
    %421 = arith.cmpi slt, %0, %420 : vector<1x32xi32>
    %422 = arith.andi %419, %421 : vector<1x32xi1>
    %423 = arith.extui %422 : vector<1x32xi1> to vector<1x32xi32>
    %424 = arith.sitofp %423 : vector<1x32xi32> to vector<1x32xf32>
    %425 = vector.broadcast %424 : vector<1x32xf32> to vector<4x32xf32>
    %426 = arith.mulf %414, %425 : vector<4x32xf32>
    %cst_136 = arith.constant dense<0.000000e+00> : vector<4x4xf32>
    %427 = tpu.matmul %426, %415, %cst_136 {dimension_numbers = #tpu.dot_dimension_numbers<[1], [1], [0], [0], [0, 0, 1, 0], [], []>} : vector<4x32xf32>, vector<4x32xf32>, vector<4x4xf32> -> vector<4x4xf32>
    %cst_137 = arith.constant 0.353553385 : f32
    %428 = vector.broadcast %cst_137 : f32 to vector<4x4xf32>
    %429 = arith.mulf %427, %428 : vector<4x4xf32>
    %cst_138 = arith.constant dense<0xFF800000> : vector<4xf32>
    %430 = vector.multi_reduction <maximumf>, %429, %cst_138 [1] : vector<4x4xf32> to vector<4xf32>
    %431 = vector.shape_cast %430 : vector<4xf32> to vector<4x1xf32>
    %432 = vector.broadcast %431 : vector<4x1xf32> to vector<4x4xf32>
    %433 = arith.subf %429, %432 : vector<4x4xf32>
    %434 = math.exp %433 : vector<4x4xf32>
    %cst_139 = arith.constant dense<0.000000e+00> : vector<4xf32>
    %435 = vector.multi_reduction <add>, %434, %cst_139 [1] : vector<4x4xf32> to vector<4xf32>
    %436 = vector.shape_cast %435 : vector<4xf32> to vector<4x1xf32>
    %437 = tpu.reciprocal %436 {approx = true} : vector<4x1xf32> -> vector<4x1xf32>
    %438 = vector.broadcast %437 : vector<4x1xf32> to vector<4x4xf32>
    %439 = arith.mulf %434, %438 : vector<4x4xf32>
    %440 = vector.broadcast %424 : vector<1x32xf32> to vector<4x32xf32>
    %441 = arith.mulf %416, %440 : vector<4x32xf32>
    %cst_140 = arith.constant dense<0.000000e+00> : vector<4x32xf32>
    %442 = tpu.matmul %439, %441, %cst_140 {dimension_numbers = #tpu.dot_dimension_numbers<[1], [0], [0], [1], [0, 0, 1, 1], [], []>} : vector<4x4xf32>, vector<4x32xf32>, vector<4x32xf32> -> vector<4x32xf32>
    %443 = arith.addf %417, %442 : vector<4x32xf32>
    %c8_i32_141 = arith.constant 8 : i32
    %444 = vector.broadcast %c8_i32_141 : i32 to vector<1x32xi32>
    %445 = arith.cmpi sge, %0, %444 : vector<1x32xi32>
    %c16_i32_142 = arith.constant 16 : i32
    %446 = vector.broadcast %c16_i32_142 : i32 to vector<1x32xi32>
    %447 = arith.cmpi slt, %0, %446 : vector<1x32xi32>
    %448 = arith.andi %445, %447 : vector<1x32xi1>
    %449 = arith.extui %448 : vector<1x32xi1> to vector<1x32xi32>
    %450 = arith.sitofp %449 : vector<1x32xi32> to vector<1x32xf32>
    %451 = vector.broadcast %450 : vector<1x32xf32> to vector<4x32xf32>
    %452 = arith.mulf %414, %451 : vector<4x32xf32>
    %cst_143 = arith.constant dense<0.000000e+00> : vector<4x4xf32>
    %453 = tpu.matmul %452, %415, %cst_143 {dimension_numbers = #tpu.dot_dimension_numbers<[1], [1], [0], [0], [0, 0, 1, 0], [], []>} : vector<4x32xf32>, vector<4x32xf32>, vector<4x4xf32> -> vector<4x4xf32>
    %cst_144 = arith.constant 0.353553385 : f32
    %454 = vector.broadcast %cst_144 : f32 to vector<4x4xf32>
    %455 = arith.mulf %453, %454 : vector<4x4xf32>
    %cst_145 = arith.constant dense<0xFF800000> : vector<4xf32>
    %456 = vector.multi_reduction <maximumf>, %455, %cst_145 [1] : vector<4x4xf32> to vector<4xf32>
    %457 = vector.shape_cast %456 : vector<4xf32> to vector<4x1xf32>
    %458 = vector.broadcast %457 : vector<4x1xf32> to vector<4x4xf32>
    %459 = arith.subf %455, %458 : vector<4x4xf32>
    %460 = math.exp %459 : vector<4x4xf32>
    %cst_146 = arith.constant dense<0.000000e+00> : vector<4xf32>
    %461 = vector.multi_reduction <add>, %460, %cst_146 [1] : vector<4x4xf32> to vector<4xf32>
    %462 = vector.shape_cast %461 : vector<4xf32> to vector<4x1xf32>
    %463 = tpu.reciprocal %462 {approx = true} : vector<4x1xf32> -> vector<4x1xf32>
    %464 = vector.broadcast %463 : vector<4x1xf32> to vector<4x4xf32>
    %465 = arith.mulf %460, %464 : vector<4x4xf32>
    %466 = vector.broadcast %450 : vector<1x32xf32> to vector<4x32xf32>
    %467 = arith.mulf %416, %466 : vector<4x32xf32>
    %cst_147 = arith.constant dense<0.000000e+00> : vector<4x32xf32>
    %468 = tpu.matmul %465, %467, %cst_147 {dimension_numbers = #tpu.dot_dimension_numbers<[1], [0], [0], [1], [0, 0, 1, 1], [], []>} : vector<4x4xf32>, vector<4x32xf32>, vector<4x32xf32> -> vector<4x32xf32>
    %469 = arith.addf %443, %468 : vector<4x32xf32>
    %c16_i32_148 = arith.constant 16 : i32
    %470 = vector.broadcast %c16_i32_148 : i32 to vector<1x32xi32>
    %471 = arith.cmpi sge, %0, %470 : vector<1x32xi32>
    %c24_i32_149 = arith.constant 24 : i32
    %472 = vector.broadcast %c24_i32_149 : i32 to vector<1x32xi32>
    %473 = arith.cmpi slt, %0, %472 : vector<1x32xi32>
    %474 = arith.andi %471, %473 : vector<1x32xi1>
    %475 = arith.extui %474 : vector<1x32xi1> to vector<1x32xi32>
    %476 = arith.sitofp %475 : vector<1x32xi32> to vector<1x32xf32>
    %477 = vector.broadcast %476 : vector<1x32xf32> to vector<4x32xf32>
    %478 = arith.mulf %414, %477 : vector<4x32xf32>
    %cst_150 = arith.constant dense<0.000000e+00> : vector<4x4xf32>
    %479 = tpu.matmul %478, %415, %cst_150 {dimension_numbers = #tpu.dot_dimension_numbers<[1], [1], [0], [0], [0, 0, 1, 0], [], []>} : vector<4x32xf32>, vector<4x32xf32>, vector<4x4xf32> -> vector<4x4xf32>
    %cst_151 = arith.constant 0.353553385 : f32
    %480 = vector.broadcast %cst_151 : f32 to vector<4x4xf32>
    %481 = arith.mulf %479, %480 : vector<4x4xf32>
    %cst_152 = arith.constant dense<0xFF800000> : vector<4xf32>
    %482 = vector.multi_reduction <maximumf>, %481, %cst_152 [1] : vector<4x4xf32> to vector<4xf32>
    %483 = vector.shape_cast %482 : vector<4xf32> to vector<4x1xf32>
    %484 = vector.broadcast %483 : vector<4x1xf32> to vector<4x4xf32>
    %485 = arith.subf %481, %484 : vector<4x4xf32>
    %486 = math.exp %485 : vector<4x4xf32>
    %cst_153 = arith.constant dense<0.000000e+00> : vector<4xf32>
    %487 = vector.multi_reduction <add>, %486, %cst_153 [1] : vector<4x4xf32> to vector<4xf32>
    %488 = vector.shape_cast %487 : vector<4xf32> to vector<4x1xf32>
    %489 = tpu.reciprocal %488 {approx = true} : vector<4x1xf32> -> vector<4x1xf32>
    %490 = vector.broadcast %489 : vector<4x1xf32> to vector<4x4xf32>
    %491 = arith.mulf %486, %490 : vector<4x4xf32>
    %492 = vector.broadcast %476 : vector<1x32xf32> to vector<4x32xf32>
    %493 = arith.mulf %416, %492 : vector<4x32xf32>
    %cst_154 = arith.constant dense<0.000000e+00> : vector<4x32xf32>
    %494 = tpu.matmul %491, %493, %cst_154 {dimension_numbers = #tpu.dot_dimension_numbers<[1], [0], [0], [1], [0, 0, 1, 1], [], []>} : vector<4x4xf32>, vector<4x32xf32>, vector<4x32xf32> -> vector<4x32xf32>
    %495 = arith.addf %469, %494 : vector<4x32xf32>
    %c24_i32_155 = arith.constant 24 : i32
    %496 = vector.broadcast %c24_i32_155 : i32 to vector<1x32xi32>
    %497 = arith.cmpi sge, %0, %496 : vector<1x32xi32>
    %c32_i32_156 = arith.constant 32 : i32
    %498 = vector.broadcast %c32_i32_156 : i32 to vector<1x32xi32>
    %499 = arith.cmpi slt, %0, %498 : vector<1x32xi32>
    %500 = arith.andi %497, %499 : vector<1x32xi1>
    %501 = arith.extui %500 : vector<1x32xi1> to vector<1x32xi32>
    %502 = arith.sitofp %501 : vector<1x32xi32> to vector<1x32xf32>
    %503 = vector.broadcast %502 : vector<1x32xf32> to vector<4x32xf32>
    %504 = arith.mulf %414, %503 : vector<4x32xf32>
    %cst_157 = arith.constant dense<0.000000e+00> : vector<4x4xf32>
    %505 = tpu.matmul %504, %415, %cst_157 {dimension_numbers = #tpu.dot_dimension_numbers<[1], [1], [0], [0], [0, 0, 1, 0], [], []>} : vector<4x32xf32>, vector<4x32xf32>, vector<4x4xf32> -> vector<4x4xf32>
    %cst_158 = arith.constant 0.353553385 : f32
    %506 = vector.broadcast %cst_158 : f32 to vector<4x4xf32>
    %507 = arith.mulf %505, %506 : vector<4x4xf32>
    %cst_159 = arith.constant dense<0xFF800000> : vector<4xf32>
    %508 = vector.multi_reduction <maximumf>, %507, %cst_159 [1] : vector<4x4xf32> to vector<4xf32>
    %509 = vector.shape_cast %508 : vector<4xf32> to vector<4x1xf32>
    %510 = vector.broadcast %509 : vector<4x1xf32> to vector<4x4xf32>
    %511 = arith.subf %507, %510 : vector<4x4xf32>
    %512 = math.exp %511 : vector<4x4xf32>
    %cst_160 = arith.constant dense<0.000000e+00> : vector<4xf32>
    %513 = vector.multi_reduction <add>, %512, %cst_160 [1] : vector<4x4xf32> to vector<4xf32>
    %514 = vector.shape_cast %513 : vector<4xf32> to vector<4x1xf32>
    %515 = tpu.reciprocal %514 {approx = true} : vector<4x1xf32> -> vector<4x1xf32>
    %516 = vector.broadcast %515 : vector<4x1xf32> to vector<4x4xf32>
    %517 = arith.mulf %512, %516 : vector<4x4xf32>
    %518 = vector.broadcast %502 : vector<1x32xf32> to vector<4x32xf32>
    %519 = arith.mulf %416, %518 : vector<4x32xf32>
    %cst_161 = arith.constant dense<0.000000e+00> : vector<4x32xf32>
    %520 = tpu.matmul %517, %519, %cst_161 {dimension_numbers = #tpu.dot_dimension_numbers<[1], [0], [0], [1], [0, 0, 1, 1], [], []>} : vector<4x4xf32>, vector<4x32xf32>, vector<4x32xf32> -> vector<4x32xf32>
    %521 = arith.addf %495, %520 : vector<4x32xf32>
    %522 = tpu.concatenate %413, %521 in 0 : vector<4x32xf32>, vector<4x32xf32> -> vector<8x32xf32>
    %c0_162 = arith.constant 0 : index
    %c0_163 = arith.constant 0 : index
    %523 = vector.load %arg50[%c0_162, %c0_163] : memref<32x32xf32, #tpu.memory_space<vmem>>, vector<32x32xf32>
    %cst_164 = arith.constant dense<0.000000e+00> : vector<8x32xf32>
    %524 = tpu.matmul %522, %523, %cst_164 {dimension_numbers = #tpu.dot_dimension_numbers<[1], [0], [0], [1], [0, 0, 1, 1], [], []>} : vector<8x32xf32>, vector<32x32xf32>, vector<8x32xf32> -> vector<8x32xf32>
    %c0_165 = arith.constant 0 : index
    %c0_166 = arith.constant 0 : index
    %525 = vector.load %arg48[%c0_165, %c0_166] : memref<1x32xf32, #tpu.memory_space<vmem>>, vector<1x32xf32>
    %526 = vector.broadcast %525 : vector<1x32xf32> to vector<8x32xf32>
    %527 = arith.addf %524, %526 : vector<8x32xf32>
    %528 = arith.addf %297, %527 : vector<8x32xf32>
    %cst_167 = arith.constant dense<0.000000e+00> : vector<8xf32>
    %529 = vector.multi_reduction <add>, %528, %cst_167 [1] : vector<8x32xf32> to vector<8xf32>
    %530 = vector.shape_cast %529 : vector<8xf32> to vector<8x1xf32>
    %cst_168 = arith.constant 3.200000e+01 : f32
    %531 = vector.broadcast %cst_168 : f32 to vector<8x1xf32>
    %532 = arith.divf %530, %531 : vector<8x1xf32>
    %533 = vector.broadcast %532 : vector<8x1xf32> to vector<8x32xf32>
    %534 = arith.subf %528, %533 : vector<8x32xf32>
    %535 = arith.mulf %534, %534 : vector<8x32xf32>
    %cst_169 = arith.constant dense<0.000000e+00> : vector<8xf32>
    %536 = vector.multi_reduction <add>, %535, %cst_169 [1] : vector<8x32xf32> to vector<8xf32>
    %537 = vector.shape_cast %536 : vector<8xf32> to vector<8x1xf32>
    %cst_170 = arith.constant 3.200000e+01 : f32
    %538 = vector.broadcast %cst_170 : f32 to vector<8x1xf32>
    %539 = arith.divf %537, %538 : vector<8x1xf32>
    %cst_171 = arith.constant 9.99999974E-6 : f32
    %540 = vector.broadcast %cst_171 : f32 to vector<8x1xf32>
    %541 = arith.addf %539, %540 : vector<8x1xf32>
    %542 = math.rsqrt %541 : vector<8x1xf32>
    %543 = vector.broadcast %542 : vector<8x1xf32> to vector<8x32xf32>
    %544 = arith.mulf %534, %543 : vector<8x32xf32>
    %c0_172 = arith.constant 0 : index
    %c0_173 = arith.constant 0 : index
    %545 = vector.load %arg57[%c0_172, %c0_173] : memref<1x32xf32, #tpu.memory_space<vmem>>, vector<1x32xf32>
    %546 = vector.broadcast %545 : vector<1x32xf32> to vector<8x32xf32>
    %547 = arith.mulf %544, %546 : vector<8x32xf32>
    %c0_174 = arith.constant 0 : index
    %c0_175 = arith.constant 0 : index
    %548 = vector.load %arg56[%c0_174, %c0_175] : memref<1x32xf32, #tpu.memory_space<vmem>>, vector<1x32xf32>
    %549 = vector.broadcast %548 : vector<1x32xf32> to vector<8x32xf32>
    %550 = arith.addf %547, %549 : vector<8x32xf32>
    %c0_176 = arith.constant 0 : index
    %c0_177 = arith.constant 0 : index
    %551 = vector.load %arg53[%c0_176, %c0_177] : memref<32x128xf32, #tpu.memory_space<vmem>>, vector<32x128xf32>
    %cst_178 = arith.constant dense<0.000000e+00> : vector<8x128xf32>
    %552 = tpu.matmul %550, %551, %cst_178 {dimension_numbers = #tpu.dot_dimension_numbers<[1], [0], [0], [1], [0, 0, 1, 1], [], []>} : vector<8x32xf32>, vector<32x128xf32>, vector<8x128xf32> -> vector<8x128xf32>
    %c0_179 = arith.constant 0 : index
    %c0_180 = arith.constant 0 : index
    %553 = vector.load %arg52[%c0_179, %c0_180] : memref<1x128xf32, #tpu.memory_space<vmem>>, vector<1x128xf32>
    %554 = vector.broadcast %553 : vector<1x128xf32> to vector<8x128xf32>
    %555 = arith.addf %552, %554 : vector<8x128xf32>
    %cst_181 = arith.constant 0.000000e+00 : f32
    %556 = vector.broadcast %cst_181 : f32 to vector<8x128xf32>
    %557 = arith.maximumf %555, %556 : vector<8x128xf32>
    %c0_182 = arith.constant 0 : index
    %c0_183 = arith.constant 0 : index
    %558 = vector.load %arg55[%c0_182, %c0_183] : memref<128x32xf32, #tpu.memory_space<vmem>>, vector<128x32xf32>
    %cst_184 = arith.constant dense<0.000000e+00> : vector<8x32xf32>
    %559 = tpu.matmul %557, %558, %cst_184 {dimension_numbers = #tpu.dot_dimension_numbers<[1], [0], [0], [1], [0, 0, 1, 1], [], []>} : vector<8x128xf32>, vector<128x32xf32>, vector<8x32xf32> -> vector<8x32xf32>
    %c0_185 = arith.constant 0 : index
    %c0_186 = arith.constant 0 : index
    %560 = vector.load %arg54[%c0_185, %c0_186] : memref<1x32xf32, #tpu.memory_space<vmem>>, vector<1x32xf32>
    %561 = vector.broadcast %560 : vector<1x32xf32> to vector<8x32xf32>
    %562 = arith.addf %559, %561 : vector<8x32xf32>
    %563 = arith.addf %550, %562 : vector<8x32xf32>
    %cst_187 = arith.constant dense<0.000000e+00> : vector<8xf32>
    %564 = vector.multi_reduction <add>, %563, %cst_187 [1] : vector<8x32xf32> to vector<8xf32>
    %565 = vector.shape_cast %564 : vector<8xf32> to vector<8x1xf32>
    %cst_188 = arith.constant 3.200000e+01 : f32
    %566 = vector.broadcast %cst_188 : f32 to vector<8x1xf32>
    %567 = arith.divf %565, %566 : vector<8x1xf32>
    %568 = vector.broadcast %567 : vector<8x1xf32> to vector<8x32xf32>
    %569 = arith.subf %563, %568 : vector<8x32xf32>
    %570 = arith.mulf %569, %569 : vector<8x32xf32>
    %cst_189 = arith.constant dense<0.000000e+00> : vector<8xf32>
    %571 = vector.multi_reduction <add>, %570, %cst_189 [1] : vector<8x32xf32> to vector<8xf32>
    %572 = vector.shape_cast %571 : vector<8xf32> to vector<8x1xf32>
    %cst_190 = arith.constant 3.200000e+01 : f32
    %573 = vector.broadcast %cst_190 : f32 to vector<8x1xf32>
    %574 = arith.divf %572, %573 : vector<8x1xf32>
    %cst_191 = arith.constant 9.99999974E-6 : f32
    %575 = vector.broadcast %cst_191 : f32 to vector<8x1xf32>
    %576 = arith.addf %574, %575 : vector<8x1xf32>
    %577 = math.rsqrt %576 : vector<8x1xf32>
    %578 = vector.broadcast %577 : vector<8x1xf32> to vector<8x32xf32>
    %579 = arith.mulf %569, %578 : vector<8x32xf32>
    %c0_192 = arith.constant 0 : index
    %c0_193 = arith.constant 0 : index
    %580 = vector.load %arg59[%c0_192, %c0_193] : memref<1x32xf32, #tpu.memory_space<vmem>>, vector<1x32xf32>
    %581 = vector.broadcast %580 : vector<1x32xf32> to vector<8x32xf32>
    %582 = arith.mulf %579, %581 : vector<8x32xf32>
    %c0_194 = arith.constant 0 : index
    %c0_195 = arith.constant 0 : index
    %583 = vector.load %arg58[%c0_194, %c0_195] : memref<1x32xf32, #tpu.memory_space<vmem>>, vector<1x32xf32>
    %584 = vector.broadcast %583 : vector<1x32xf32> to vector<8x32xf32>
    %585 = arith.addf %582, %584 : vector<8x32xf32>
    %c0_196 = arith.constant 0 : index
    %c0_197 = arith.constant 0 : index
    %586 = vector.load %arg65[%c0_196, %c0_197] : memref<16x1xi32, #tpu.memory_space<vmem>>, vector<16x1xi32>
    %587 = tpu.iota {dimensions = array<i32: 1>} : vector<16x16xi32>
    %588 = vector.broadcast %586 : vector<16x1xi32> to vector<16x16xi32>
    %589 = arith.cmpi eq, %587, %588 : vector<16x16xi32>
    %590 = arith.extui %589 : vector<16x16xi1> to vector<16x16xi32>
    %591 = arith.sitofp %590 : vector<16x16xi32> to vector<16x16xf32>
    %c0_198 = arith.constant 0 : index
    %c0_199 = arith.constant 0 : index
    %592 = vector.load %arg68[%c0_198, %c0_199] : memref<16x32xf32, #tpu.memory_space<vmem>>, vector<16x32xf32>
    %cst_200 = arith.constant dense<0.000000e+00> : vector<16x32xf32>
    %593 = tpu.matmul %591, %592, %cst_200 {dimension_numbers = #tpu.dot_dimension_numbers<[1], [0], [0], [1], [0, 0, 1, 1], [], []>} : vector<16x16xf32>, vector<16x32xf32>, vector<16x32xf32> -> vector<16x32xf32>
    %c0_201 = arith.constant 0 : index
    %c0_202 = arith.constant 0 : index
    %594 = vector.load %arg67[%c0_201, %c0_202] : memref<32x32xf32, #tpu.memory_space<vmem>>, vector<32x32xf32>
    %595 = vector.extract_strided_slice %594 {offsets = [0, 0], sizes = [8, 32], strides = [1, 1]} : vector<32x32xf32> to vector<8x32xf32>
    %596 = tpu.concatenate %595, %595 in 0 : vector<8x32xf32>, vector<8x32xf32> -> vector<16x32xf32>
    %597 = arith.addf %593, %596 : vector<16x32xf32>
    %c0_203 = arith.constant 0 : index
    %c0_204 = arith.constant 0 : index
    %598 = vector.load %arg17[%c0_203, %c0_204] : memref<32x96xf32, #tpu.memory_space<vmem>>, vector<32x96xf32>
    %c0_205 = arith.constant 0 : index
    %c0_206 = arith.constant 0 : index
    %599 = vector.load %arg15[%c0_205, %c0_206] : memref<1x96xf32, #tpu.memory_space<vmem>>, vector<1x96xf32>
    %cst_207 = arith.constant dense<0.000000e+00> : vector<16x96xf32>
    %600 = tpu.matmul %597, %598, %cst_207 {dimension_numbers = #tpu.dot_dimension_numbers<[1], [0], [0], [1], [0, 0, 1, 1], [], []>} : vector<16x32xf32>, vector<32x96xf32>, vector<16x96xf32> -> vector<16x96xf32>
    %601 = vector.broadcast %599 : vector<1x96xf32> to vector<16x96xf32>
    %602 = arith.addf %600, %601 : vector<16x96xf32>
    %603 = vector.extract_strided_slice %602 {offsets = [0, 0], sizes = [16, 32], strides = [1, 1]} : vector<16x96xf32> to vector<16x32xf32>
    %604 = vector.extract_strided_slice %602 {offsets = [0, 32], sizes = [16, 32], strides = [1, 1]} : vector<16x96xf32> to vector<16x32xf32>
    %605 = vector.extract_strided_slice %602 {offsets = [0, 64], sizes = [16, 32], strides = [1, 1]} : vector<16x96xf32> to vector<16x32xf32>
    %606 = vector.extract_strided_slice %603 {offsets = [0, 0], sizes = [8, 32], strides = [1, 1]} : vector<16x32xf32> to vector<8x32xf32>
    %607 = vector.extract_strided_slice %604 {offsets = [0, 0], sizes = [8, 32], strides = [1, 1]} : vector<16x32xf32> to vector<8x32xf32>
    %608 = vector.extract_strided_slice %605 {offsets = [0, 0], sizes = [8, 32], strides = [1, 1]} : vector<16x32xf32> to vector<8x32xf32>
    %cst_208 = arith.constant 0.000000e+00 : f32
    %609 = vector.broadcast %cst_208 : f32 to vector<8x32xf32>
    %c0_i32_209 = arith.constant 0 : i32
    %610 = vector.broadcast %c0_i32_209 : i32 to vector<1x32xi32>
    %611 = arith.cmpi sge, %0, %610 : vector<1x32xi32>
    %c8_i32_210 = arith.constant 8 : i32
    %612 = vector.broadcast %c8_i32_210 : i32 to vector<1x32xi32>
    %613 = arith.cmpi slt, %0, %612 : vector<1x32xi32>
    %614 = arith.andi %611, %613 : vector<1x32xi1>
    %615 = arith.extui %614 : vector<1x32xi1> to vector<1x32xi32>
    %616 = arith.sitofp %615 : vector<1x32xi32> to vector<1x32xf32>
    %617 = vector.broadcast %616 : vector<1x32xf32> to vector<8x32xf32>
    %618 = arith.mulf %606, %617 : vector<8x32xf32>
    %cst_211 = arith.constant dense<0.000000e+00> : vector<8x8xf32>
    %619 = tpu.matmul %618, %607, %cst_211 {dimension_numbers = #tpu.dot_dimension_numbers<[1], [1], [0], [0], [0, 0, 1, 0], [], []>} : vector<8x32xf32>, vector<8x32xf32>, vector<8x8xf32> -> vector<8x8xf32>
    %cst_212 = arith.constant 0.353553385 : f32
    %620 = vector.broadcast %cst_212 : f32 to vector<8x8xf32>
    %621 = arith.mulf %619, %620 : vector<8x8xf32>
    %cst_213 = arith.constant dense<0xFF800000> : vector<8xf32>
    %622 = vector.multi_reduction <maximumf>, %621, %cst_213 [1] : vector<8x8xf32> to vector<8xf32>
    %623 = vector.shape_cast %622 : vector<8xf32> to vector<8x1xf32>
    %624 = vector.broadcast %623 : vector<8x1xf32> to vector<8x8xf32>
    %625 = arith.subf %621, %624 : vector<8x8xf32>
    %626 = math.exp %625 : vector<8x8xf32>
    %cst_214 = arith.constant dense<0.000000e+00> : vector<8xf32>
    %627 = vector.multi_reduction <add>, %626, %cst_214 [1] : vector<8x8xf32> to vector<8xf32>
    %628 = vector.shape_cast %627 : vector<8xf32> to vector<8x1xf32>
    %629 = tpu.reciprocal %628 {approx = true} : vector<8x1xf32> -> vector<8x1xf32>
    %630 = vector.broadcast %629 : vector<8x1xf32> to vector<8x8xf32>
    %631 = arith.mulf %626, %630 : vector<8x8xf32>
    %632 = vector.broadcast %616 : vector<1x32xf32> to vector<8x32xf32>
    %633 = arith.mulf %608, %632 : vector<8x32xf32>
    %cst_215 = arith.constant dense<0.000000e+00> : vector<8x32xf32>
    %634 = tpu.matmul %631, %633, %cst_215 {dimension_numbers = #tpu.dot_dimension_numbers<[1], [0], [0], [1], [0, 0, 1, 1], [], []>} : vector<8x8xf32>, vector<8x32xf32>, vector<8x32xf32> -> vector<8x32xf32>
    %635 = arith.addf %609, %634 : vector<8x32xf32>
    %c8_i32_216 = arith.constant 8 : i32
    %636 = vector.broadcast %c8_i32_216 : i32 to vector<1x32xi32>
    %637 = arith.cmpi sge, %0, %636 : vector<1x32xi32>
    %c16_i32_217 = arith.constant 16 : i32
    %638 = vector.broadcast %c16_i32_217 : i32 to vector<1x32xi32>
    %639 = arith.cmpi slt, %0, %638 : vector<1x32xi32>
    %640 = arith.andi %637, %639 : vector<1x32xi1>
    %641 = arith.extui %640 : vector<1x32xi1> to vector<1x32xi32>
    %642 = arith.sitofp %641 : vector<1x32xi32> to vector<1x32xf32>
    %643 = vector.broadcast %642 : vector<1x32xf32> to vector<8x32xf32>
    %644 = arith.mulf %606, %643 : vector<8x32xf32>
    %cst_218 = arith.constant dense<0.000000e+00> : vector<8x8xf32>
    %645 = tpu.matmul %644, %607, %cst_218 {dimension_numbers = #tpu.dot_dimension_numbers<[1], [1], [0], [0], [0, 0, 1, 0], [], []>} : vector<8x32xf32>, vector<8x32xf32>, vector<8x8xf32> -> vector<8x8xf32>
    %cst_219 = arith.constant 0.353553385 : f32
    %646 = vector.broadcast %cst_219 : f32 to vector<8x8xf32>
    %647 = arith.mulf %645, %646 : vector<8x8xf32>
    %cst_220 = arith.constant dense<0xFF800000> : vector<8xf32>
    %648 = vector.multi_reduction <maximumf>, %647, %cst_220 [1] : vector<8x8xf32> to vector<8xf32>
    %649 = vector.shape_cast %648 : vector<8xf32> to vector<8x1xf32>
    %650 = vector.broadcast %649 : vector<8x1xf32> to vector<8x8xf32>
    %651 = arith.subf %647, %650 : vector<8x8xf32>
    %652 = math.exp %651 : vector<8x8xf32>
    %cst_221 = arith.constant dense<0.000000e+00> : vector<8xf32>
    %653 = vector.multi_reduction <add>, %652, %cst_221 [1] : vector<8x8xf32> to vector<8xf32>
    %654 = vector.shape_cast %653 : vector<8xf32> to vector<8x1xf32>
    %655 = tpu.reciprocal %654 {approx = true} : vector<8x1xf32> -> vector<8x1xf32>
    %656 = vector.broadcast %655 : vector<8x1xf32> to vector<8x8xf32>
    %657 = arith.mulf %652, %656 : vector<8x8xf32>
    %658 = vector.broadcast %642 : vector<1x32xf32> to vector<8x32xf32>
    %659 = arith.mulf %608, %658 : vector<8x32xf32>
    %cst_222 = arith.constant dense<0.000000e+00> : vector<8x32xf32>
    %660 = tpu.matmul %657, %659, %cst_222 {dimension_numbers = #tpu.dot_dimension_numbers<[1], [0], [0], [1], [0, 0, 1, 1], [], []>} : vector<8x8xf32>, vector<8x32xf32>, vector<8x32xf32> -> vector<8x32xf32>
    %661 = arith.addf %635, %660 : vector<8x32xf32>
    %c16_i32_223 = arith.constant 16 : i32
    %662 = vector.broadcast %c16_i32_223 : i32 to vector<1x32xi32>
    %663 = arith.cmpi sge, %0, %662 : vector<1x32xi32>
    %c24_i32_224 = arith.constant 24 : i32
    %664 = vector.broadcast %c24_i32_224 : i32 to vector<1x32xi32>
    %665 = arith.cmpi slt, %0, %664 : vector<1x32xi32>
    %666 = arith.andi %663, %665 : vector<1x32xi1>
    %667 = arith.extui %666 : vector<1x32xi1> to vector<1x32xi32>
    %668 = arith.sitofp %667 : vector<1x32xi32> to vector<1x32xf32>
    %669 = vector.broadcast %668 : vector<1x32xf32> to vector<8x32xf32>
    %670 = arith.mulf %606, %669 : vector<8x32xf32>
    %cst_225 = arith.constant dense<0.000000e+00> : vector<8x8xf32>
    %671 = tpu.matmul %670, %607, %cst_225 {dimension_numbers = #tpu.dot_dimension_numbers<[1], [1], [0], [0], [0, 0, 1, 0], [], []>} : vector<8x32xf32>, vector<8x32xf32>, vector<8x8xf32> -> vector<8x8xf32>
    %cst_226 = arith.constant 0.353553385 : f32
    %672 = vector.broadcast %cst_226 : f32 to vector<8x8xf32>
    %673 = arith.mulf %671, %672 : vector<8x8xf32>
    %cst_227 = arith.constant dense<0xFF800000> : vector<8xf32>
    %674 = vector.multi_reduction <maximumf>, %673, %cst_227 [1] : vector<8x8xf32> to vector<8xf32>
    %675 = vector.shape_cast %674 : vector<8xf32> to vector<8x1xf32>
    %676 = vector.broadcast %675 : vector<8x1xf32> to vector<8x8xf32>
    %677 = arith.subf %673, %676 : vector<8x8xf32>
    %678 = math.exp %677 : vector<8x8xf32>
    %cst_228 = arith.constant dense<0.000000e+00> : vector<8xf32>
    %679 = vector.multi_reduction <add>, %678, %cst_228 [1] : vector<8x8xf32> to vector<8xf32>
    %680 = vector.shape_cast %679 : vector<8xf32> to vector<8x1xf32>
    %681 = tpu.reciprocal %680 {approx = true} : vector<8x1xf32> -> vector<8x1xf32>
    %682 = vector.broadcast %681 : vector<8x1xf32> to vector<8x8xf32>
    %683 = arith.mulf %678, %682 : vector<8x8xf32>
    %684 = vector.broadcast %668 : vector<1x32xf32> to vector<8x32xf32>
    %685 = arith.mulf %608, %684 : vector<8x32xf32>
    %cst_229 = arith.constant dense<0.000000e+00> : vector<8x32xf32>
    %686 = tpu.matmul %683, %685, %cst_229 {dimension_numbers = #tpu.dot_dimension_numbers<[1], [0], [0], [1], [0, 0, 1, 1], [], []>} : vector<8x8xf32>, vector<8x32xf32>, vector<8x32xf32> -> vector<8x32xf32>
    %687 = arith.addf %661, %686 : vector<8x32xf32>
    %c24_i32_230 = arith.constant 24 : i32
    %688 = vector.broadcast %c24_i32_230 : i32 to vector<1x32xi32>
    %689 = arith.cmpi sge, %0, %688 : vector<1x32xi32>
    %c32_i32_231 = arith.constant 32 : i32
    %690 = vector.broadcast %c32_i32_231 : i32 to vector<1x32xi32>
    %691 = arith.cmpi slt, %0, %690 : vector<1x32xi32>
    %692 = arith.andi %689, %691 : vector<1x32xi1>
    %693 = arith.extui %692 : vector<1x32xi1> to vector<1x32xi32>
    %694 = arith.sitofp %693 : vector<1x32xi32> to vector<1x32xf32>
    %695 = vector.broadcast %694 : vector<1x32xf32> to vector<8x32xf32>
    %696 = arith.mulf %606, %695 : vector<8x32xf32>
    %cst_232 = arith.constant dense<0.000000e+00> : vector<8x8xf32>
    %697 = tpu.matmul %696, %607, %cst_232 {dimension_numbers = #tpu.dot_dimension_numbers<[1], [1], [0], [0], [0, 0, 1, 0], [], []>} : vector<8x32xf32>, vector<8x32xf32>, vector<8x8xf32> -> vector<8x8xf32>
    %cst_233 = arith.constant 0.353553385 : f32
    %698 = vector.broadcast %cst_233 : f32 to vector<8x8xf32>
    %699 = arith.mulf %697, %698 : vector<8x8xf32>
    %cst_234 = arith.constant dense<0xFF800000> : vector<8xf32>
    %700 = vector.multi_reduction <maximumf>, %699, %cst_234 [1] : vector<8x8xf32> to vector<8xf32>
    %701 = vector.shape_cast %700 : vector<8xf32> to vector<8x1xf32>
    %702 = vector.broadcast %701 : vector<8x1xf32> to vector<8x8xf32>
    %703 = arith.subf %699, %702 : vector<8x8xf32>
    %704 = math.exp %703 : vector<8x8xf32>
    %cst_235 = arith.constant dense<0.000000e+00> : vector<8xf32>
    %705 = vector.multi_reduction <add>, %704, %cst_235 [1] : vector<8x8xf32> to vector<8xf32>
    %706 = vector.shape_cast %705 : vector<8xf32> to vector<8x1xf32>
    %707 = tpu.reciprocal %706 {approx = true} : vector<8x1xf32> -> vector<8x1xf32>
    %708 = vector.broadcast %707 : vector<8x1xf32> to vector<8x8xf32>
    %709 = arith.mulf %704, %708 : vector<8x8xf32>
    %710 = vector.broadcast %694 : vector<1x32xf32> to vector<8x32xf32>
    %711 = arith.mulf %608, %710 : vector<8x32xf32>
    %cst_236 = arith.constant dense<0.000000e+00> : vector<8x32xf32>
    %712 = tpu.matmul %709, %711, %cst_236 {dimension_numbers = #tpu.dot_dimension_numbers<[1], [0], [0], [1], [0, 0, 1, 1], [], []>} : vector<8x8xf32>, vector<8x32xf32>, vector<8x32xf32> -> vector<8x32xf32>
    %713 = arith.addf %687, %712 : vector<8x32xf32>
    %714 = vector.extract_strided_slice %603 {offsets = [8, 0], sizes = [8, 32], strides = [1, 1]} : vector<16x32xf32> to vector<8x32xf32>
    %715 = vector.extract_strided_slice %604 {offsets = [8, 0], sizes = [8, 32], strides = [1, 1]} : vector<16x32xf32> to vector<8x32xf32>
    %716 = vector.extract_strided_slice %605 {offsets = [8, 0], sizes = [8, 32], strides = [1, 1]} : vector<16x32xf32> to vector<8x32xf32>
    %cst_237 = arith.constant 0.000000e+00 : f32
    %717 = vector.broadcast %cst_237 : f32 to vector<8x32xf32>
    %c0_i32_238 = arith.constant 0 : i32
    %718 = vector.broadcast %c0_i32_238 : i32 to vector<1x32xi32>
    %719 = arith.cmpi sge, %0, %718 : vector<1x32xi32>
    %c8_i32_239 = arith.constant 8 : i32
    %720 = vector.broadcast %c8_i32_239 : i32 to vector<1x32xi32>
    %721 = arith.cmpi slt, %0, %720 : vector<1x32xi32>
    %722 = arith.andi %719, %721 : vector<1x32xi1>
    %723 = arith.extui %722 : vector<1x32xi1> to vector<1x32xi32>
    %724 = arith.sitofp %723 : vector<1x32xi32> to vector<1x32xf32>
    %725 = vector.broadcast %724 : vector<1x32xf32> to vector<8x32xf32>
    %726 = arith.mulf %714, %725 : vector<8x32xf32>
    %cst_240 = arith.constant dense<0.000000e+00> : vector<8x8xf32>
    %727 = tpu.matmul %726, %715, %cst_240 {dimension_numbers = #tpu.dot_dimension_numbers<[1], [1], [0], [0], [0, 0, 1, 0], [], []>} : vector<8x32xf32>, vector<8x32xf32>, vector<8x8xf32> -> vector<8x8xf32>
    %cst_241 = arith.constant 0.353553385 : f32
    %728 = vector.broadcast %cst_241 : f32 to vector<8x8xf32>
    %729 = arith.mulf %727, %728 : vector<8x8xf32>
    %cst_242 = arith.constant dense<0xFF800000> : vector<8xf32>
    %730 = vector.multi_reduction <maximumf>, %729, %cst_242 [1] : vector<8x8xf32> to vector<8xf32>
    %731 = vector.shape_cast %730 : vector<8xf32> to vector<8x1xf32>
    %732 = vector.broadcast %731 : vector<8x1xf32> to vector<8x8xf32>
    %733 = arith.subf %729, %732 : vector<8x8xf32>
    %734 = math.exp %733 : vector<8x8xf32>
    %cst_243 = arith.constant dense<0.000000e+00> : vector<8xf32>
    %735 = vector.multi_reduction <add>, %734, %cst_243 [1] : vector<8x8xf32> to vector<8xf32>
    %736 = vector.shape_cast %735 : vector<8xf32> to vector<8x1xf32>
    %737 = tpu.reciprocal %736 {approx = true} : vector<8x1xf32> -> vector<8x1xf32>
    %738 = vector.broadcast %737 : vector<8x1xf32> to vector<8x8xf32>
    %739 = arith.mulf %734, %738 : vector<8x8xf32>
    %740 = vector.broadcast %724 : vector<1x32xf32> to vector<8x32xf32>
    %741 = arith.mulf %716, %740 : vector<8x32xf32>
    %cst_244 = arith.constant dense<0.000000e+00> : vector<8x32xf32>
    %742 = tpu.matmul %739, %741, %cst_244 {dimension_numbers = #tpu.dot_dimension_numbers<[1], [0], [0], [1], [0, 0, 1, 1], [], []>} : vector<8x8xf32>, vector<8x32xf32>, vector<8x32xf32> -> vector<8x32xf32>
    %743 = arith.addf %717, %742 : vector<8x32xf32>
    %c8_i32_245 = arith.constant 8 : i32
    %744 = vector.broadcast %c8_i32_245 : i32 to vector<1x32xi32>
    %745 = arith.cmpi sge, %0, %744 : vector<1x32xi32>
    %c16_i32_246 = arith.constant 16 : i32
    %746 = vector.broadcast %c16_i32_246 : i32 to vector<1x32xi32>
    %747 = arith.cmpi slt, %0, %746 : vector<1x32xi32>
    %748 = arith.andi %745, %747 : vector<1x32xi1>
    %749 = arith.extui %748 : vector<1x32xi1> to vector<1x32xi32>
    %750 = arith.sitofp %749 : vector<1x32xi32> to vector<1x32xf32>
    %751 = vector.broadcast %750 : vector<1x32xf32> to vector<8x32xf32>
    %752 = arith.mulf %714, %751 : vector<8x32xf32>
    %cst_247 = arith.constant dense<0.000000e+00> : vector<8x8xf32>
    %753 = tpu.matmul %752, %715, %cst_247 {dimension_numbers = #tpu.dot_dimension_numbers<[1], [1], [0], [0], [0, 0, 1, 0], [], []>} : vector<8x32xf32>, vector<8x32xf32>, vector<8x8xf32> -> vector<8x8xf32>
    %cst_248 = arith.constant 0.353553385 : f32
    %754 = vector.broadcast %cst_248 : f32 to vector<8x8xf32>
    %755 = arith.mulf %753, %754 : vector<8x8xf32>
    %cst_249 = arith.constant dense<0xFF800000> : vector<8xf32>
    %756 = vector.multi_reduction <maximumf>, %755, %cst_249 [1] : vector<8x8xf32> to vector<8xf32>
    %757 = vector.shape_cast %756 : vector<8xf32> to vector<8x1xf32>
    %758 = vector.broadcast %757 : vector<8x1xf32> to vector<8x8xf32>
    %759 = arith.subf %755, %758 : vector<8x8xf32>
    %760 = math.exp %759 : vector<8x8xf32>
    %cst_250 = arith.constant dense<0.000000e+00> : vector<8xf32>
    %761 = vector.multi_reduction <add>, %760, %cst_250 [1] : vector<8x8xf32> to vector<8xf32>
    %762 = vector.shape_cast %761 : vector<8xf32> to vector<8x1xf32>
    %763 = tpu.reciprocal %762 {approx = true} : vector<8x1xf32> -> vector<8x1xf32>
    %764 = vector.broadcast %763 : vector<8x1xf32> to vector<8x8xf32>
    %765 = arith.mulf %760, %764 : vector<8x8xf32>
    %766 = vector.broadcast %750 : vector<1x32xf32> to vector<8x32xf32>
    %767 = arith.mulf %716, %766 : vector<8x32xf32>
    %cst_251 = arith.constant dense<0.000000e+00> : vector<8x32xf32>
    %768 = tpu.matmul %765, %767, %cst_251 {dimension_numbers = #tpu.dot_dimension_numbers<[1], [0], [0], [1], [0, 0, 1, 1], [], []>} : vector<8x8xf32>, vector<8x32xf32>, vector<8x32xf32> -> vector<8x32xf32>
    %769 = arith.addf %743, %768 : vector<8x32xf32>
    %c16_i32_252 = arith.constant 16 : i32
    %770 = vector.broadcast %c16_i32_252 : i32 to vector<1x32xi32>
    %771 = arith.cmpi sge, %0, %770 : vector<1x32xi32>
    %c24_i32_253 = arith.constant 24 : i32
    %772 = vector.broadcast %c24_i32_253 : i32 to vector<1x32xi32>
    %773 = arith.cmpi slt, %0, %772 : vector<1x32xi32>
    %774 = arith.andi %771, %773 : vector<1x32xi1>
    %775 = arith.extui %774 : vector<1x32xi1> to vector<1x32xi32>
    %776 = arith.sitofp %775 : vector<1x32xi32> to vector<1x32xf32>
    %777 = vector.broadcast %776 : vector<1x32xf32> to vector<8x32xf32>
    %778 = arith.mulf %714, %777 : vector<8x32xf32>
    %cst_254 = arith.constant dense<0.000000e+00> : vector<8x8xf32>
    %779 = tpu.matmul %778, %715, %cst_254 {dimension_numbers = #tpu.dot_dimension_numbers<[1], [1], [0], [0], [0, 0, 1, 0], [], []>} : vector<8x32xf32>, vector<8x32xf32>, vector<8x8xf32> -> vector<8x8xf32>
    %cst_255 = arith.constant 0.353553385 : f32
    %780 = vector.broadcast %cst_255 : f32 to vector<8x8xf32>
    %781 = arith.mulf %779, %780 : vector<8x8xf32>
    %cst_256 = arith.constant dense<0xFF800000> : vector<8xf32>
    %782 = vector.multi_reduction <maximumf>, %781, %cst_256 [1] : vector<8x8xf32> to vector<8xf32>
    %783 = vector.shape_cast %782 : vector<8xf32> to vector<8x1xf32>
    %784 = vector.broadcast %783 : vector<8x1xf32> to vector<8x8xf32>
    %785 = arith.subf %781, %784 : vector<8x8xf32>
    %786 = math.exp %785 : vector<8x8xf32>
    %cst_257 = arith.constant dense<0.000000e+00> : vector<8xf32>
    %787 = vector.multi_reduction <add>, %786, %cst_257 [1] : vector<8x8xf32> to vector<8xf32>
    %788 = vector.shape_cast %787 : vector<8xf32> to vector<8x1xf32>
    %789 = tpu.reciprocal %788 {approx = true} : vector<8x1xf32> -> vector<8x1xf32>
    %790 = vector.broadcast %789 : vector<8x1xf32> to vector<8x8xf32>
    %791 = arith.mulf %786, %790 : vector<8x8xf32>
    %792 = vector.broadcast %776 : vector<1x32xf32> to vector<8x32xf32>
    %793 = arith.mulf %716, %792 : vector<8x32xf32>
    %cst_258 = arith.constant dense<0.000000e+00> : vector<8x32xf32>
    %794 = tpu.matmul %791, %793, %cst_258 {dimension_numbers = #tpu.dot_dimension_numbers<[1], [0], [0], [1], [0, 0, 1, 1], [], []>} : vector<8x8xf32>, vector<8x32xf32>, vector<8x32xf32> -> vector<8x32xf32>
    %795 = arith.addf %769, %794 : vector<8x32xf32>
    %c24_i32_259 = arith.constant 24 : i32
    %796 = vector.broadcast %c24_i32_259 : i32 to vector<1x32xi32>
    %797 = arith.cmpi sge, %0, %796 : vector<1x32xi32>
    %c32_i32_260 = arith.constant 32 : i32
    %798 = vector.broadcast %c32_i32_260 : i32 to vector<1x32xi32>
    %799 = arith.cmpi slt, %0, %798 : vector<1x32xi32>
    %800 = arith.andi %797, %799 : vector<1x32xi1>
    %801 = arith.extui %800 : vector<1x32xi1> to vector<1x32xi32>
    %802 = arith.sitofp %801 : vector<1x32xi32> to vector<1x32xf32>
    %803 = vector.broadcast %802 : vector<1x32xf32> to vector<8x32xf32>
    %804 = arith.mulf %714, %803 : vector<8x32xf32>
    %cst_261 = arith.constant dense<0.000000e+00> : vector<8x8xf32>
    %805 = tpu.matmul %804, %715, %cst_261 {dimension_numbers = #tpu.dot_dimension_numbers<[1], [1], [0], [0], [0, 0, 1, 0], [], []>} : vector<8x32xf32>, vector<8x32xf32>, vector<8x8xf32> -> vector<8x8xf32>
    %cst_262 = arith.constant 0.353553385 : f32
    %806 = vector.broadcast %cst_262 : f32 to vector<8x8xf32>
    %807 = arith.mulf %805, %806 : vector<8x8xf32>
    %cst_263 = arith.constant dense<0xFF800000> : vector<8xf32>
    %808 = vector.multi_reduction <maximumf>, %807, %cst_263 [1] : vector<8x8xf32> to vector<8xf32>
    %809 = vector.shape_cast %808 : vector<8xf32> to vector<8x1xf32>
    %810 = vector.broadcast %809 : vector<8x1xf32> to vector<8x8xf32>
    %811 = arith.subf %807, %810 : vector<8x8xf32>
    %812 = math.exp %811 : vector<8x8xf32>
    %cst_264 = arith.constant dense<0.000000e+00> : vector<8xf32>
    %813 = vector.multi_reduction <add>, %812, %cst_264 [1] : vector<8x8xf32> to vector<8xf32>
    %814 = vector.shape_cast %813 : vector<8xf32> to vector<8x1xf32>
    %815 = tpu.reciprocal %814 {approx = true} : vector<8x1xf32> -> vector<8x1xf32>
    %816 = vector.broadcast %815 : vector<8x1xf32> to vector<8x8xf32>
    %817 = arith.mulf %812, %816 : vector<8x8xf32>
    %818 = vector.broadcast %802 : vector<1x32xf32> to vector<8x32xf32>
    %819 = arith.mulf %716, %818 : vector<8x32xf32>
    %cst_265 = arith.constant dense<0.000000e+00> : vector<8x32xf32>
    %820 = tpu.matmul %817, %819, %cst_265 {dimension_numbers = #tpu.dot_dimension_numbers<[1], [0], [0], [1], [0, 0, 1, 1], [], []>} : vector<8x8xf32>, vector<8x32xf32>, vector<8x32xf32> -> vector<8x32xf32>
    %821 = arith.addf %795, %820 : vector<8x32xf32>
    %822 = tpu.concatenate %713, %821 in 0 : vector<8x32xf32>, vector<8x32xf32> -> vector<16x32xf32>
    %c0_266 = arith.constant 0 : index
    %c0_267 = arith.constant 0 : index
    %823 = vector.load %arg16[%c0_266, %c0_267] : memref<32x32xf32, #tpu.memory_space<vmem>>, vector<32x32xf32>
    %cst_268 = arith.constant dense<0.000000e+00> : vector<16x32xf32>
    %824 = tpu.matmul %822, %823, %cst_268 {dimension_numbers = #tpu.dot_dimension_numbers<[1], [0], [0], [1], [0, 0, 1, 1], [], []>} : vector<16x32xf32>, vector<32x32xf32>, vector<16x32xf32> -> vector<16x32xf32>
    %c0_269 = arith.constant 0 : index
    %c0_270 = arith.constant 0 : index
    %825 = vector.load %arg14[%c0_269, %c0_270] : memref<1x32xf32, #tpu.memory_space<vmem>>, vector<1x32xf32>
    %826 = vector.broadcast %825 : vector<1x32xf32> to vector<16x32xf32>
    %827 = arith.addf %824, %826 : vector<16x32xf32>
    %828 = arith.addf %597, %827 : vector<16x32xf32>
    %cst_271 = arith.constant dense<0.000000e+00> : vector<16xf32>
    %829 = vector.multi_reduction <add>, %828, %cst_271 [1] : vector<16x32xf32> to vector<16xf32>
    %830 = vector.shape_cast %829 : vector<16xf32> to vector<16x1xf32>
    %cst_272 = arith.constant 3.200000e+01 : f32
    %831 = vector.broadcast %cst_272 : f32 to vector<16x1xf32>
    %832 = arith.divf %830, %831 : vector<16x1xf32>
    %833 = vector.broadcast %832 : vector<16x1xf32> to vector<16x32xf32>
    %834 = arith.subf %828, %833 : vector<16x32xf32>
    %835 = arith.mulf %834, %834 : vector<16x32xf32>
    %cst_273 = arith.constant dense<0.000000e+00> : vector<16xf32>
    %836 = vector.multi_reduction <add>, %835, %cst_273 [1] : vector<16x32xf32> to vector<16xf32>
    %837 = vector.shape_cast %836 : vector<16xf32> to vector<16x1xf32>
    %cst_274 = arith.constant 3.200000e+01 : f32
    %838 = vector.broadcast %cst_274 : f32 to vector<16x1xf32>
    %839 = arith.divf %837, %838 : vector<16x1xf32>
    %cst_275 = arith.constant 9.99999974E-6 : f32
    %840 = vector.broadcast %cst_275 : f32 to vector<16x1xf32>
    %841 = arith.addf %839, %840 : vector<16x1xf32>
    %842 = math.rsqrt %841 : vector<16x1xf32>
    %843 = vector.broadcast %842 : vector<16x1xf32> to vector<16x32xf32>
    %844 = arith.mulf %834, %843 : vector<16x32xf32>
    %c0_276 = arith.constant 0 : index
    %c0_277 = arith.constant 0 : index
    %845 = vector.load %arg9[%c0_276, %c0_277] : memref<1x32xf32, #tpu.memory_space<vmem>>, vector<1x32xf32>
    %846 = vector.broadcast %845 : vector<1x32xf32> to vector<16x32xf32>
    %847 = arith.mulf %844, %846 : vector<16x32xf32>
    %c0_278 = arith.constant 0 : index
    %c0_279 = arith.constant 0 : index
    %848 = vector.load %arg8[%c0_278, %c0_279] : memref<1x32xf32, #tpu.memory_space<vmem>>, vector<1x32xf32>
    %849 = vector.broadcast %848 : vector<1x32xf32> to vector<16x32xf32>
    %850 = arith.addf %847, %849 : vector<16x32xf32>
    %c0_280 = arith.constant 0 : index
    %c0_281 = arith.constant 0 : index
    %851 = vector.load %arg3[%c0_280, %c0_281] : memref<32x96xf32, #tpu.memory_space<vmem>>, vector<32x96xf32>
    %c0_282 = arith.constant 0 : index
    %c0_283 = arith.constant 0 : index
    %852 = vector.load %arg1[%c0_282, %c0_283] : memref<1x96xf32, #tpu.memory_space<vmem>>, vector<1x96xf32>
    %853 = vector.extract_strided_slice %851 {offsets = [0, 0], sizes = [32, 32], strides = [1, 1]} : vector<32x96xf32> to vector<32x32xf32>
    %cst_284 = arith.constant dense<0.000000e+00> : vector<16x32xf32>
    %854 = tpu.matmul %850, %853, %cst_284 {dimension_numbers = #tpu.dot_dimension_numbers<[1], [0], [0], [1], [0, 0, 1, 1], [], []>} : vector<16x32xf32>, vector<32x32xf32>, vector<16x32xf32> -> vector<16x32xf32>
    %855 = vector.extract_strided_slice %852 {offsets = [0, 0], sizes = [1, 32], strides = [1, 1]} : vector<1x96xf32> to vector<1x32xf32>
    %856 = vector.broadcast %855 : vector<1x32xf32> to vector<16x32xf32>
    %857 = arith.addf %854, %856 : vector<16x32xf32>
    %858 = vector.extract_strided_slice %851 {offsets = [0, 32], sizes = [32, 64], strides = [1, 1]} : vector<32x96xf32> to vector<32x64xf32>
    %cst_285 = arith.constant dense<0.000000e+00> : vector<8x64xf32>
    %859 = tpu.matmul %585, %858, %cst_285 {dimension_numbers = #tpu.dot_dimension_numbers<[1], [0], [0], [1], [0, 0, 1, 1], [], []>} : vector<8x32xf32>, vector<32x64xf32>, vector<8x64xf32> -> vector<8x64xf32>
    %860 = vector.extract_strided_slice %852 {offsets = [0, 32], sizes = [1, 64], strides = [1, 1]} : vector<1x96xf32> to vector<1x64xf32>
    %861 = vector.broadcast %860 : vector<1x64xf32> to vector<8x64xf32>
    %862 = arith.addf %859, %861 : vector<8x64xf32>
    %863 = vector.extract_strided_slice %862 {offsets = [0, 0], sizes = [8, 32], strides = [1, 1]} : vector<8x64xf32> to vector<8x32xf32>
    %864 = vector.extract_strided_slice %862 {offsets = [0, 32], sizes = [8, 32], strides = [1, 1]} : vector<8x64xf32> to vector<8x32xf32>
    %865 = vector.extract_strided_slice %857 {offsets = [0, 0], sizes = [8, 32], strides = [1, 1]} : vector<16x32xf32> to vector<8x32xf32>
    %866 = vector.extract_strided_slice %863 {offsets = [0, 0], sizes = [4, 32], strides = [1, 1]} : vector<8x32xf32> to vector<4x32xf32>
    %867 = vector.extract_strided_slice %864 {offsets = [0, 0], sizes = [4, 32], strides = [1, 1]} : vector<8x32xf32> to vector<4x32xf32>
    %cst_286 = arith.constant 0.000000e+00 : f32
    %868 = vector.broadcast %cst_286 : f32 to vector<8x32xf32>
    %c0_i32_287 = arith.constant 0 : i32
    %869 = vector.broadcast %c0_i32_287 : i32 to vector<1x32xi32>
    %870 = arith.cmpi sge, %0, %869 : vector<1x32xi32>
    %c8_i32_288 = arith.constant 8 : i32
    %871 = vector.broadcast %c8_i32_288 : i32 to vector<1x32xi32>
    %872 = arith.cmpi slt, %0, %871 : vector<1x32xi32>
    %873 = arith.andi %870, %872 : vector<1x32xi1>
    %874 = arith.extui %873 : vector<1x32xi1> to vector<1x32xi32>
    %875 = arith.sitofp %874 : vector<1x32xi32> to vector<1x32xf32>
    %876 = vector.broadcast %875 : vector<1x32xf32> to vector<8x32xf32>
    %877 = arith.mulf %865, %876 : vector<8x32xf32>
    %cst_289 = arith.constant dense<0.000000e+00> : vector<8x4xf32>
    %878 = tpu.matmul %877, %866, %cst_289 {dimension_numbers = #tpu.dot_dimension_numbers<[1], [1], [0], [0], [0, 0, 1, 0], [], []>} : vector<8x32xf32>, vector<4x32xf32>, vector<8x4xf32> -> vector<8x4xf32>
    %cst_290 = arith.constant 0.353553385 : f32
    %879 = vector.broadcast %cst_290 : f32 to vector<8x4xf32>
    %880 = arith.mulf %878, %879 : vector<8x4xf32>
    %cst_291 = arith.constant dense<0xFF800000> : vector<8xf32>
    %881 = vector.multi_reduction <maximumf>, %880, %cst_291 [1] : vector<8x4xf32> to vector<8xf32>
    %882 = vector.shape_cast %881 : vector<8xf32> to vector<8x1xf32>
    %883 = vector.broadcast %882 : vector<8x1xf32> to vector<8x4xf32>
    %884 = arith.subf %880, %883 : vector<8x4xf32>
    %885 = math.exp %884 : vector<8x4xf32>
    %cst_292 = arith.constant dense<0.000000e+00> : vector<8xf32>
    %886 = vector.multi_reduction <add>, %885, %cst_292 [1] : vector<8x4xf32> to vector<8xf32>
    %887 = vector.shape_cast %886 : vector<8xf32> to vector<8x1xf32>
    %888 = tpu.reciprocal %887 {approx = true} : vector<8x1xf32> -> vector<8x1xf32>
    %889 = vector.broadcast %888 : vector<8x1xf32> to vector<8x4xf32>
    %890 = arith.mulf %885, %889 : vector<8x4xf32>
    %891 = vector.broadcast %875 : vector<1x32xf32> to vector<4x32xf32>
    %892 = arith.mulf %867, %891 : vector<4x32xf32>
    %cst_293 = arith.constant dense<0.000000e+00> : vector<8x32xf32>
    %893 = tpu.matmul %890, %892, %cst_293 {dimension_numbers = #tpu.dot_dimension_numbers<[1], [0], [0], [1], [0, 0, 1, 1], [], []>} : vector<8x4xf32>, vector<4x32xf32>, vector<8x32xf32> -> vector<8x32xf32>
    %894 = arith.addf %868, %893 : vector<8x32xf32>
    %c8_i32_294 = arith.constant 8 : i32
    %895 = vector.broadcast %c8_i32_294 : i32 to vector<1x32xi32>
    %896 = arith.cmpi sge, %0, %895 : vector<1x32xi32>
    %c16_i32_295 = arith.constant 16 : i32
    %897 = vector.broadcast %c16_i32_295 : i32 to vector<1x32xi32>
    %898 = arith.cmpi slt, %0, %897 : vector<1x32xi32>
    %899 = arith.andi %896, %898 : vector<1x32xi1>
    %900 = arith.extui %899 : vector<1x32xi1> to vector<1x32xi32>
    %901 = arith.sitofp %900 : vector<1x32xi32> to vector<1x32xf32>
    %902 = vector.broadcast %901 : vector<1x32xf32> to vector<8x32xf32>
    %903 = arith.mulf %865, %902 : vector<8x32xf32>
    %cst_296 = arith.constant dense<0.000000e+00> : vector<8x4xf32>
    %904 = tpu.matmul %903, %866, %cst_296 {dimension_numbers = #tpu.dot_dimension_numbers<[1], [1], [0], [0], [0, 0, 1, 0], [], []>} : vector<8x32xf32>, vector<4x32xf32>, vector<8x4xf32> -> vector<8x4xf32>
    %cst_297 = arith.constant 0.353553385 : f32
    %905 = vector.broadcast %cst_297 : f32 to vector<8x4xf32>
    %906 = arith.mulf %904, %905 : vector<8x4xf32>
    %cst_298 = arith.constant dense<0xFF800000> : vector<8xf32>
    %907 = vector.multi_reduction <maximumf>, %906, %cst_298 [1] : vector<8x4xf32> to vector<8xf32>
    %908 = vector.shape_cast %907 : vector<8xf32> to vector<8x1xf32>
    %909 = vector.broadcast %908 : vector<8x1xf32> to vector<8x4xf32>
    %910 = arith.subf %906, %909 : vector<8x4xf32>
    %911 = math.exp %910 : vector<8x4xf32>
    %cst_299 = arith.constant dense<0.000000e+00> : vector<8xf32>
    %912 = vector.multi_reduction <add>, %911, %cst_299 [1] : vector<8x4xf32> to vector<8xf32>
    %913 = vector.shape_cast %912 : vector<8xf32> to vector<8x1xf32>
    %914 = tpu.reciprocal %913 {approx = true} : vector<8x1xf32> -> vector<8x1xf32>
    %915 = vector.broadcast %914 : vector<8x1xf32> to vector<8x4xf32>
    %916 = arith.mulf %911, %915 : vector<8x4xf32>
    %917 = vector.broadcast %901 : vector<1x32xf32> to vector<4x32xf32>
    %918 = arith.mulf %867, %917 : vector<4x32xf32>
    %cst_300 = arith.constant dense<0.000000e+00> : vector<8x32xf32>
    %919 = tpu.matmul %916, %918, %cst_300 {dimension_numbers = #tpu.dot_dimension_numbers<[1], [0], [0], [1], [0, 0, 1, 1], [], []>} : vector<8x4xf32>, vector<4x32xf32>, vector<8x32xf32> -> vector<8x32xf32>
    %920 = arith.addf %894, %919 : vector<8x32xf32>
    %c16_i32_301 = arith.constant 16 : i32
    %921 = vector.broadcast %c16_i32_301 : i32 to vector<1x32xi32>
    %922 = arith.cmpi sge, %0, %921 : vector<1x32xi32>
    %c24_i32_302 = arith.constant 24 : i32
    %923 = vector.broadcast %c24_i32_302 : i32 to vector<1x32xi32>
    %924 = arith.cmpi slt, %0, %923 : vector<1x32xi32>
    %925 = arith.andi %922, %924 : vector<1x32xi1>
    %926 = arith.extui %925 : vector<1x32xi1> to vector<1x32xi32>
    %927 = arith.sitofp %926 : vector<1x32xi32> to vector<1x32xf32>
    %928 = vector.broadcast %927 : vector<1x32xf32> to vector<8x32xf32>
    %929 = arith.mulf %865, %928 : vector<8x32xf32>
    %cst_303 = arith.constant dense<0.000000e+00> : vector<8x4xf32>
    %930 = tpu.matmul %929, %866, %cst_303 {dimension_numbers = #tpu.dot_dimension_numbers<[1], [1], [0], [0], [0, 0, 1, 0], [], []>} : vector<8x32xf32>, vector<4x32xf32>, vector<8x4xf32> -> vector<8x4xf32>
    %cst_304 = arith.constant 0.353553385 : f32
    %931 = vector.broadcast %cst_304 : f32 to vector<8x4xf32>
    %932 = arith.mulf %930, %931 : vector<8x4xf32>
    %cst_305 = arith.constant dense<0xFF800000> : vector<8xf32>
    %933 = vector.multi_reduction <maximumf>, %932, %cst_305 [1] : vector<8x4xf32> to vector<8xf32>
    %934 = vector.shape_cast %933 : vector<8xf32> to vector<8x1xf32>
    %935 = vector.broadcast %934 : vector<8x1xf32> to vector<8x4xf32>
    %936 = arith.subf %932, %935 : vector<8x4xf32>
    %937 = math.exp %936 : vector<8x4xf32>
    %cst_306 = arith.constant dense<0.000000e+00> : vector<8xf32>
    %938 = vector.multi_reduction <add>, %937, %cst_306 [1] : vector<8x4xf32> to vector<8xf32>
    %939 = vector.shape_cast %938 : vector<8xf32> to vector<8x1xf32>
    %940 = tpu.reciprocal %939 {approx = true} : vector<8x1xf32> -> vector<8x1xf32>
    %941 = vector.broadcast %940 : vector<8x1xf32> to vector<8x4xf32>
    %942 = arith.mulf %937, %941 : vector<8x4xf32>
    %943 = vector.broadcast %927 : vector<1x32xf32> to vector<4x32xf32>
    %944 = arith.mulf %867, %943 : vector<4x32xf32>
    %cst_307 = arith.constant dense<0.000000e+00> : vector<8x32xf32>
    %945 = tpu.matmul %942, %944, %cst_307 {dimension_numbers = #tpu.dot_dimension_numbers<[1], [0], [0], [1], [0, 0, 1, 1], [], []>} : vector<8x4xf32>, vector<4x32xf32>, vector<8x32xf32> -> vector<8x32xf32>
    %946 = arith.addf %920, %945 : vector<8x32xf32>
    %c24_i32_308 = arith.constant 24 : i32
    %947 = vector.broadcast %c24_i32_308 : i32 to vector<1x32xi32>
    %948 = arith.cmpi sge, %0, %947 : vector<1x32xi32>
    %c32_i32_309 = arith.constant 32 : i32
    %949 = vector.broadcast %c32_i32_309 : i32 to vector<1x32xi32>
    %950 = arith.cmpi slt, %0, %949 : vector<1x32xi32>
    %951 = arith.andi %948, %950 : vector<1x32xi1>
    %952 = arith.extui %951 : vector<1x32xi1> to vector<1x32xi32>
    %953 = arith.sitofp %952 : vector<1x32xi32> to vector<1x32xf32>
    %954 = vector.broadcast %953 : vector<1x32xf32> to vector<8x32xf32>
    %955 = arith.mulf %865, %954 : vector<8x32xf32>
    %cst_310 = arith.constant dense<0.000000e+00> : vector<8x4xf32>
    %956 = tpu.matmul %955, %866, %cst_310 {dimension_numbers = #tpu.dot_dimension_numbers<[1], [1], [0], [0], [0, 0, 1, 0], [], []>} : vector<8x32xf32>, vector<4x32xf32>, vector<8x4xf32> -> vector<8x4xf32>
    %cst_311 = arith.constant 0.353553385 : f32
    %957 = vector.broadcast %cst_311 : f32 to vector<8x4xf32>
    %958 = arith.mulf %956, %957 : vector<8x4xf32>
    %cst_312 = arith.constant dense<0xFF800000> : vector<8xf32>
    %959 = vector.multi_reduction <maximumf>, %958, %cst_312 [1] : vector<8x4xf32> to vector<8xf32>
    %960 = vector.shape_cast %959 : vector<8xf32> to vector<8x1xf32>
    %961 = vector.broadcast %960 : vector<8x1xf32> to vector<8x4xf32>
    %962 = arith.subf %958, %961 : vector<8x4xf32>
    %963 = math.exp %962 : vector<8x4xf32>
    %cst_313 = arith.constant dense<0.000000e+00> : vector<8xf32>
    %964 = vector.multi_reduction <add>, %963, %cst_313 [1] : vector<8x4xf32> to vector<8xf32>
    %965 = vector.shape_cast %964 : vector<8xf32> to vector<8x1xf32>
    %966 = tpu.reciprocal %965 {approx = true} : vector<8x1xf32> -> vector<8x1xf32>
    %967 = vector.broadcast %966 : vector<8x1xf32> to vector<8x4xf32>
    %968 = arith.mulf %963, %967 : vector<8x4xf32>
    %969 = vector.broadcast %953 : vector<1x32xf32> to vector<4x32xf32>
    %970 = arith.mulf %867, %969 : vector<4x32xf32>
    %cst_314 = arith.constant dense<0.000000e+00> : vector<8x32xf32>
    %971 = tpu.matmul %968, %970, %cst_314 {dimension_numbers = #tpu.dot_dimension_numbers<[1], [0], [0], [1], [0, 0, 1, 1], [], []>} : vector<8x4xf32>, vector<4x32xf32>, vector<8x32xf32> -> vector<8x32xf32>
    %972 = arith.addf %946, %971 : vector<8x32xf32>
    %973 = vector.extract_strided_slice %857 {offsets = [8, 0], sizes = [8, 32], strides = [1, 1]} : vector<16x32xf32> to vector<8x32xf32>
    %974 = vector.extract_strided_slice %863 {offsets = [4, 0], sizes = [4, 32], strides = [1, 1]} : vector<8x32xf32> to vector<4x32xf32>
    %975 = vector.extract_strided_slice %864 {offsets = [4, 0], sizes = [4, 32], strides = [1, 1]} : vector<8x32xf32> to vector<4x32xf32>
    %cst_315 = arith.constant 0.000000e+00 : f32
    %976 = vector.broadcast %cst_315 : f32 to vector<8x32xf32>
    %c0_i32_316 = arith.constant 0 : i32
    %977 = vector.broadcast %c0_i32_316 : i32 to vector<1x32xi32>
    %978 = arith.cmpi sge, %0, %977 : vector<1x32xi32>
    %c8_i32_317 = arith.constant 8 : i32
    %979 = vector.broadcast %c8_i32_317 : i32 to vector<1x32xi32>
    %980 = arith.cmpi slt, %0, %979 : vector<1x32xi32>
    %981 = arith.andi %978, %980 : vector<1x32xi1>
    %982 = arith.extui %981 : vector<1x32xi1> to vector<1x32xi32>
    %983 = arith.sitofp %982 : vector<1x32xi32> to vector<1x32xf32>
    %984 = vector.broadcast %983 : vector<1x32xf32> to vector<8x32xf32>
    %985 = arith.mulf %973, %984 : vector<8x32xf32>
    %cst_318 = arith.constant dense<0.000000e+00> : vector<8x4xf32>
    %986 = tpu.matmul %985, %974, %cst_318 {dimension_numbers = #tpu.dot_dimension_numbers<[1], [1], [0], [0], [0, 0, 1, 0], [], []>} : vector<8x32xf32>, vector<4x32xf32>, vector<8x4xf32> -> vector<8x4xf32>
    %cst_319 = arith.constant 0.353553385 : f32
    %987 = vector.broadcast %cst_319 : f32 to vector<8x4xf32>
    %988 = arith.mulf %986, %987 : vector<8x4xf32>
    %cst_320 = arith.constant dense<0xFF800000> : vector<8xf32>
    %989 = vector.multi_reduction <maximumf>, %988, %cst_320 [1] : vector<8x4xf32> to vector<8xf32>
    %990 = vector.shape_cast %989 : vector<8xf32> to vector<8x1xf32>
    %991 = vector.broadcast %990 : vector<8x1xf32> to vector<8x4xf32>
    %992 = arith.subf %988, %991 : vector<8x4xf32>
    %993 = math.exp %992 : vector<8x4xf32>
    %cst_321 = arith.constant dense<0.000000e+00> : vector<8xf32>
    %994 = vector.multi_reduction <add>, %993, %cst_321 [1] : vector<8x4xf32> to vector<8xf32>
    %995 = vector.shape_cast %994 : vector<8xf32> to vector<8x1xf32>
    %996 = tpu.reciprocal %995 {approx = true} : vector<8x1xf32> -> vector<8x1xf32>
    %997 = vector.broadcast %996 : vector<8x1xf32> to vector<8x4xf32>
    %998 = arith.mulf %993, %997 : vector<8x4xf32>
    %999 = vector.broadcast %983 : vector<1x32xf32> to vector<4x32xf32>
    %1000 = arith.mulf %975, %999 : vector<4x32xf32>
    %cst_322 = arith.constant dense<0.000000e+00> : vector<8x32xf32>
    %1001 = tpu.matmul %998, %1000, %cst_322 {dimension_numbers = #tpu.dot_dimension_numbers<[1], [0], [0], [1], [0, 0, 1, 1], [], []>} : vector<8x4xf32>, vector<4x32xf32>, vector<8x32xf32> -> vector<8x32xf32>
    %1002 = arith.addf %976, %1001 : vector<8x32xf32>
    %c8_i32_323 = arith.constant 8 : i32
    %1003 = vector.broadcast %c8_i32_323 : i32 to vector<1x32xi32>
    %1004 = arith.cmpi sge, %0, %1003 : vector<1x32xi32>
    %c16_i32_324 = arith.constant 16 : i32
    %1005 = vector.broadcast %c16_i32_324 : i32 to vector<1x32xi32>
    %1006 = arith.cmpi slt, %0, %1005 : vector<1x32xi32>
    %1007 = arith.andi %1004, %1006 : vector<1x32xi1>
    %1008 = arith.extui %1007 : vector<1x32xi1> to vector<1x32xi32>
    %1009 = arith.sitofp %1008 : vector<1x32xi32> to vector<1x32xf32>
    %1010 = vector.broadcast %1009 : vector<1x32xf32> to vector<8x32xf32>
    %1011 = arith.mulf %973, %1010 : vector<8x32xf32>
    %cst_325 = arith.constant dense<0.000000e+00> : vector<8x4xf32>
    %1012 = tpu.matmul %1011, %974, %cst_325 {dimension_numbers = #tpu.dot_dimension_numbers<[1], [1], [0], [0], [0, 0, 1, 0], [], []>} : vector<8x32xf32>, vector<4x32xf32>, vector<8x4xf32> -> vector<8x4xf32>
    %cst_326 = arith.constant 0.353553385 : f32
    %1013 = vector.broadcast %cst_326 : f32 to vector<8x4xf32>
    %1014 = arith.mulf %1012, %1013 : vector<8x4xf32>
    %cst_327 = arith.constant dense<0xFF800000> : vector<8xf32>
    %1015 = vector.multi_reduction <maximumf>, %1014, %cst_327 [1] : vector<8x4xf32> to vector<8xf32>
    %1016 = vector.shape_cast %1015 : vector<8xf32> to vector<8x1xf32>
    %1017 = vector.broadcast %1016 : vector<8x1xf32> to vector<8x4xf32>
    %1018 = arith.subf %1014, %1017 : vector<8x4xf32>
    %1019 = math.exp %1018 : vector<8x4xf32>
    %cst_328 = arith.constant dense<0.000000e+00> : vector<8xf32>
    %1020 = vector.multi_reduction <add>, %1019, %cst_328 [1] : vector<8x4xf32> to vector<8xf32>
    %1021 = vector.shape_cast %1020 : vector<8xf32> to vector<8x1xf32>
    %1022 = tpu.reciprocal %1021 {approx = true} : vector<8x1xf32> -> vector<8x1xf32>
    %1023 = vector.broadcast %1022 : vector<8x1xf32> to vector<8x4xf32>
    %1024 = arith.mulf %1019, %1023 : vector<8x4xf32>
    %1025 = vector.broadcast %1009 : vector<1x32xf32> to vector<4x32xf32>
    %1026 = arith.mulf %975, %1025 : vector<4x32xf32>
    %cst_329 = arith.constant dense<0.000000e+00> : vector<8x32xf32>
    %1027 = tpu.matmul %1024, %1026, %cst_329 {dimension_numbers = #tpu.dot_dimension_numbers<[1], [0], [0], [1], [0, 0, 1, 1], [], []>} : vector<8x4xf32>, vector<4x32xf32>, vector<8x32xf32> -> vector<8x32xf32>
    %1028 = arith.addf %1002, %1027 : vector<8x32xf32>
    %c16_i32_330 = arith.constant 16 : i32
    %1029 = vector.broadcast %c16_i32_330 : i32 to vector<1x32xi32>
    %1030 = arith.cmpi sge, %0, %1029 : vector<1x32xi32>
    %c24_i32_331 = arith.constant 24 : i32
    %1031 = vector.broadcast %c24_i32_331 : i32 to vector<1x32xi32>
    %1032 = arith.cmpi slt, %0, %1031 : vector<1x32xi32>
    %1033 = arith.andi %1030, %1032 : vector<1x32xi1>
    %1034 = arith.extui %1033 : vector<1x32xi1> to vector<1x32xi32>
    %1035 = arith.sitofp %1034 : vector<1x32xi32> to vector<1x32xf32>
    %1036 = vector.broadcast %1035 : vector<1x32xf32> to vector<8x32xf32>
    %1037 = arith.mulf %973, %1036 : vector<8x32xf32>
    %cst_332 = arith.constant dense<0.000000e+00> : vector<8x4xf32>
    %1038 = tpu.matmul %1037, %974, %cst_332 {dimension_numbers = #tpu.dot_dimension_numbers<[1], [1], [0], [0], [0, 0, 1, 0], [], []>} : vector<8x32xf32>, vector<4x32xf32>, vector<8x4xf32> -> vector<8x4xf32>
    %cst_333 = arith.constant 0.353553385 : f32
    %1039 = vector.broadcast %cst_333 : f32 to vector<8x4xf32>
    %1040 = arith.mulf %1038, %1039 : vector<8x4xf32>
    %cst_334 = arith.constant dense<0xFF800000> : vector<8xf32>
    %1041 = vector.multi_reduction <maximumf>, %1040, %cst_334 [1] : vector<8x4xf32> to vector<8xf32>
    %1042 = vector.shape_cast %1041 : vector<8xf32> to vector<8x1xf32>
    %1043 = vector.broadcast %1042 : vector<8x1xf32> to vector<8x4xf32>
    %1044 = arith.subf %1040, %1043 : vector<8x4xf32>
    %1045 = math.exp %1044 : vector<8x4xf32>
    %cst_335 = arith.constant dense<0.000000e+00> : vector<8xf32>
    %1046 = vector.multi_reduction <add>, %1045, %cst_335 [1] : vector<8x4xf32> to vector<8xf32>
    %1047 = vector.shape_cast %1046 : vector<8xf32> to vector<8x1xf32>
    %1048 = tpu.reciprocal %1047 {approx = true} : vector<8x1xf32> -> vector<8x1xf32>
    %1049 = vector.broadcast %1048 : vector<8x1xf32> to vector<8x4xf32>
    %1050 = arith.mulf %1045, %1049 : vector<8x4xf32>
    %1051 = vector.broadcast %1035 : vector<1x32xf32> to vector<4x32xf32>
    %1052 = arith.mulf %975, %1051 : vector<4x32xf32>
    %cst_336 = arith.constant dense<0.000000e+00> : vector<8x32xf32>
    %1053 = tpu.matmul %1050, %1052, %cst_336 {dimension_numbers = #tpu.dot_dimension_numbers<[1], [0], [0], [1], [0, 0, 1, 1], [], []>} : vector<8x4xf32>, vector<4x32xf32>, vector<8x32xf32> -> vector<8x32xf32>
    %1054 = arith.addf %1028, %1053 : vector<8x32xf32>
    %c24_i32_337 = arith.constant 24 : i32
    %1055 = vector.broadcast %c24_i32_337 : i32 to vector<1x32xi32>
    %1056 = arith.cmpi sge, %0, %1055 : vector<1x32xi32>
    %c32_i32_338 = arith.constant 32 : i32
    %1057 = vector.broadcast %c32_i32_338 : i32 to vector<1x32xi32>
    %1058 = arith.cmpi slt, %0, %1057 : vector<1x32xi32>
    %1059 = arith.andi %1056, %1058 : vector<1x32xi1>
    %1060 = arith.extui %1059 : vector<1x32xi1> to vector<1x32xi32>
    %1061 = arith.sitofp %1060 : vector<1x32xi32> to vector<1x32xf32>
    %1062 = vector.broadcast %1061 : vector<1x32xf32> to vector<8x32xf32>
    %1063 = arith.mulf %973, %1062 : vector<8x32xf32>
    %cst_339 = arith.constant dense<0.000000e+00> : vector<8x4xf32>
    %1064 = tpu.matmul %1063, %974, %cst_339 {dimension_numbers = #tpu.dot_dimension_numbers<[1], [1], [0], [0], [0, 0, 1, 0], [], []>} : vector<8x32xf32>, vector<4x32xf32>, vector<8x4xf32> -> vector<8x4xf32>
    %cst_340 = arith.constant 0.353553385 : f32
    %1065 = vector.broadcast %cst_340 : f32 to vector<8x4xf32>
    %1066 = arith.mulf %1064, %1065 : vector<8x4xf32>
    %cst_341 = arith.constant dense<0xFF800000> : vector<8xf32>
    %1067 = vector.multi_reduction <maximumf>, %1066, %cst_341 [1] : vector<8x4xf32> to vector<8xf32>
    %1068 = vector.shape_cast %1067 : vector<8xf32> to vector<8x1xf32>
    %1069 = vector.broadcast %1068 : vector<8x1xf32> to vector<8x4xf32>
    %1070 = arith.subf %1066, %1069 : vector<8x4xf32>
    %1071 = math.exp %1070 : vector<8x4xf32>
    %cst_342 = arith.constant dense<0.000000e+00> : vector<8xf32>
    %1072 = vector.multi_reduction <add>, %1071, %cst_342 [1] : vector<8x4xf32> to vector<8xf32>
    %1073 = vector.shape_cast %1072 : vector<8xf32> to vector<8x1xf32>
    %1074 = tpu.reciprocal %1073 {approx = true} : vector<8x1xf32> -> vector<8x1xf32>
    %1075 = vector.broadcast %1074 : vector<8x1xf32> to vector<8x4xf32>
    %1076 = arith.mulf %1071, %1075 : vector<8x4xf32>
    %1077 = vector.broadcast %1061 : vector<1x32xf32> to vector<4x32xf32>
    %1078 = arith.mulf %975, %1077 : vector<4x32xf32>
    %cst_343 = arith.constant dense<0.000000e+00> : vector<8x32xf32>
    %1079 = tpu.matmul %1076, %1078, %cst_343 {dimension_numbers = #tpu.dot_dimension_numbers<[1], [0], [0], [1], [0, 0, 1, 1], [], []>} : vector<8x4xf32>, vector<4x32xf32>, vector<8x32xf32> -> vector<8x32xf32>
    %1080 = arith.addf %1054, %1079 : vector<8x32xf32>
    %1081 = tpu.concatenate %972, %1080 in 0 : vector<8x32xf32>, vector<8x32xf32> -> vector<16x32xf32>
    %c0_344 = arith.constant 0 : index
    %c0_345 = arith.constant 0 : index
    %1082 = vector.load %arg2[%c0_344, %c0_345] : memref<32x32xf32, #tpu.memory_space<vmem>>, vector<32x32xf32>
    %cst_346 = arith.constant dense<0.000000e+00> : vector<16x32xf32>
    %1083 = tpu.matmul %1081, %1082, %cst_346 {dimension_numbers = #tpu.dot_dimension_numbers<[1], [0], [0], [1], [0, 0, 1, 1], [], []>} : vector<16x32xf32>, vector<32x32xf32>, vector<16x32xf32> -> vector<16x32xf32>
    %c0_347 = arith.constant 0 : index
    %c0_348 = arith.constant 0 : index
    %1084 = vector.load %arg0[%c0_347, %c0_348] : memref<1x32xf32, #tpu.memory_space<vmem>>, vector<1x32xf32>
    %1085 = vector.broadcast %1084 : vector<1x32xf32> to vector<16x32xf32>
    %1086 = arith.addf %1083, %1085 : vector<16x32xf32>
    %1087 = arith.addf %850, %1086 : vector<16x32xf32>
    %cst_349 = arith.constant dense<0.000000e+00> : vector<16xf32>
    %1088 = vector.multi_reduction <add>, %1087, %cst_349 [1] : vector<16x32xf32> to vector<16xf32>
    %1089 = vector.shape_cast %1088 : vector<16xf32> to vector<16x1xf32>
    %cst_350 = arith.constant 3.200000e+01 : f32
    %1090 = vector.broadcast %cst_350 : f32 to vector<16x1xf32>
    %1091 = arith.divf %1089, %1090 : vector<16x1xf32>
    %1092 = vector.broadcast %1091 : vector<16x1xf32> to vector<16x32xf32>
    %1093 = arith.subf %1087, %1092 : vector<16x32xf32>
    %1094 = arith.mulf %1093, %1093 : vector<16x32xf32>
    %cst_351 = arith.constant dense<0.000000e+00> : vector<16xf32>
    %1095 = vector.multi_reduction <add>, %1094, %cst_351 [1] : vector<16x32xf32> to vector<16xf32>
    %1096 = vector.shape_cast %1095 : vector<16xf32> to vector<16x1xf32>
    %cst_352 = arith.constant 3.200000e+01 : f32
    %1097 = vector.broadcast %cst_352 : f32 to vector<16x1xf32>
    %1098 = arith.divf %1096, %1097 : vector<16x1xf32>
    %cst_353 = arith.constant 9.99999974E-6 : f32
    %1099 = vector.broadcast %cst_353 : f32 to vector<16x1xf32>
    %1100 = arith.addf %1098, %1099 : vector<16x1xf32>
    %1101 = math.rsqrt %1100 : vector<16x1xf32>
    %1102 = vector.broadcast %1101 : vector<16x1xf32> to vector<16x32xf32>
    %1103 = arith.mulf %1093, %1102 : vector<16x32xf32>
    %c0_354 = arith.constant 0 : index
    %c0_355 = arith.constant 0 : index
    %1104 = vector.load %arg11[%c0_354, %c0_355] : memref<1x32xf32, #tpu.memory_space<vmem>>, vector<1x32xf32>
    %1105 = vector.broadcast %1104 : vector<1x32xf32> to vector<16x32xf32>
    %1106 = arith.mulf %1103, %1105 : vector<16x32xf32>
    %c0_356 = arith.constant 0 : index
    %c0_357 = arith.constant 0 : index
    %1107 = vector.load %arg10[%c0_356, %c0_357] : memref<1x32xf32, #tpu.memory_space<vmem>>, vector<1x32xf32>
    %1108 = vector.broadcast %1107 : vector<1x32xf32> to vector<16x32xf32>
    %1109 = arith.addf %1106, %1108 : vector<16x32xf32>
    %c0_358 = arith.constant 0 : index
    %c0_359 = arith.constant 0 : index
    %1110 = vector.load %arg5[%c0_358, %c0_359] : memref<32x128xf32, #tpu.memory_space<vmem>>, vector<32x128xf32>
    %cst_360 = arith.constant dense<0.000000e+00> : vector<16x128xf32>
    %1111 = tpu.matmul %1109, %1110, %cst_360 {dimension_numbers = #tpu.dot_dimension_numbers<[1], [0], [0], [1], [0, 0, 1, 1], [], []>} : vector<16x32xf32>, vector<32x128xf32>, vector<16x128xf32> -> vector<16x128xf32>
    %c0_361 = arith.constant 0 : index
    %c0_362 = arith.constant 0 : index
    %1112 = vector.load %arg4[%c0_361, %c0_362] : memref<1x128xf32, #tpu.memory_space<vmem>>, vector<1x128xf32>
    %1113 = vector.broadcast %1112 : vector<1x128xf32> to vector<16x128xf32>
    %1114 = arith.addf %1111, %1113 : vector<16x128xf32>
    %cst_363 = arith.constant 0.000000e+00 : f32
    %1115 = vector.broadcast %cst_363 : f32 to vector<16x128xf32>
    %1116 = arith.maximumf %1114, %1115 : vector<16x128xf32>
    %c0_364 = arith.constant 0 : index
    %c0_365 = arith.constant 0 : index
    %1117 = vector.load %arg7[%c0_364, %c0_365] : memref<128x32xf32, #tpu.memory_space<vmem>>, vector<128x32xf32>
    %cst_366 = arith.constant dense<0.000000e+00> : vector<16x32xf32>
    %1118 = tpu.matmul %1116, %1117, %cst_366 {dimension_numbers = #tpu.dot_dimension_numbers<[1], [0], [0], [1], [0, 0, 1, 1], [], []>} : vector<16x128xf32>, vector<128x32xf32>, vector<16x32xf32> -> vector<16x32xf32>
    %c0_367 = arith.constant 0 : index
    %c0_368 = arith.constant 0 : index
    %1119 = vector.load %arg6[%c0_367, %c0_368] : memref<1x32xf32, #tpu.memory_space<vmem>>, vector<1x32xf32>
    %1120 = vector.broadcast %1119 : vector<1x32xf32> to vector<16x32xf32>
    %1121 = arith.addf %1118, %1120 : vector<16x32xf32>
    %1122 = arith.addf %1109, %1121 : vector<16x32xf32>
    %cst_369 = arith.constant dense<0.000000e+00> : vector<16xf32>
    %1123 = vector.multi_reduction <add>, %1122, %cst_369 [1] : vector<16x32xf32> to vector<16xf32>
    %1124 = vector.shape_cast %1123 : vector<16xf32> to vector<16x1xf32>
    %cst_370 = arith.constant 3.200000e+01 : f32
    %1125 = vector.broadcast %cst_370 : f32 to vector<16x1xf32>
    %1126 = arith.divf %1124, %1125 : vector<16x1xf32>
    %1127 = vector.broadcast %1126 : vector<16x1xf32> to vector<16x32xf32>
    %1128 = arith.subf %1122, %1127 : vector<16x32xf32>
    %1129 = arith.mulf %1128, %1128 : vector<16x32xf32>
    %cst_371 = arith.constant dense<0.000000e+00> : vector<16xf32>
    %1130 = vector.multi_reduction <add>, %1129, %cst_371 [1] : vector<16x32xf32> to vector<16xf32>
    %1131 = vector.shape_cast %1130 : vector<16xf32> to vector<16x1xf32>
    %cst_372 = arith.constant 3.200000e+01 : f32
    %1132 = vector.broadcast %cst_372 : f32 to vector<16x1xf32>
    %1133 = arith.divf %1131, %1132 : vector<16x1xf32>
    %cst_373 = arith.constant 9.99999974E-6 : f32
    %1134 = vector.broadcast %cst_373 : f32 to vector<16x1xf32>
    %1135 = arith.addf %1133, %1134 : vector<16x1xf32>
    %1136 = math.rsqrt %1135 : vector<16x1xf32>
    %1137 = vector.broadcast %1136 : vector<16x1xf32> to vector<16x32xf32>
    %1138 = arith.mulf %1128, %1137 : vector<16x32xf32>
    %c0_374 = arith.constant 0 : index
    %c0_375 = arith.constant 0 : index
    %1139 = vector.load %arg13[%c0_374, %c0_375] : memref<1x32xf32, #tpu.memory_space<vmem>>, vector<1x32xf32>
    %1140 = vector.broadcast %1139 : vector<1x32xf32> to vector<16x32xf32>
    %1141 = arith.mulf %1138, %1140 : vector<16x32xf32>
    %c0_376 = arith.constant 0 : index
    %c0_377 = arith.constant 0 : index
    %1142 = vector.load %arg12[%c0_376, %c0_377] : memref<1x32xf32, #tpu.memory_space<vmem>>, vector<1x32xf32>
    %1143 = vector.broadcast %1142 : vector<1x32xf32> to vector<16x32xf32>
    %1144 = arith.addf %1141, %1143 : vector<16x32xf32>
    %c0_378 = arith.constant 0 : index
    %c0_379 = arith.constant 0 : index
    %1145 = vector.load %arg35[%c0_378, %c0_379] : memref<32x96xf32, #tpu.memory_space<vmem>>, vector<32x96xf32>
    %c0_380 = arith.constant 0 : index
    %c0_381 = arith.constant 0 : index
    %1146 = vector.load %arg33[%c0_380, %c0_381] : memref<1x96xf32, #tpu.memory_space<vmem>>, vector<1x96xf32>
    %cst_382 = arith.constant dense<0.000000e+00> : vector<16x96xf32>
    %1147 = tpu.matmul %1144, %1145, %cst_382 {dimension_numbers = #tpu.dot_dimension_numbers<[1], [0], [0], [1], [0, 0, 1, 1], [], []>} : vector<16x32xf32>, vector<32x96xf32>, vector<16x96xf32> -> vector<16x96xf32>
    %1148 = vector.broadcast %1146 : vector<1x96xf32> to vector<16x96xf32>
    %1149 = arith.addf %1147, %1148 : vector<16x96xf32>
    %1150 = vector.extract_strided_slice %1149 {offsets = [0, 0], sizes = [16, 32], strides = [1, 1]} : vector<16x96xf32> to vector<16x32xf32>
    %1151 = vector.extract_strided_slice %1149 {offsets = [0, 32], sizes = [16, 32], strides = [1, 1]} : vector<16x96xf32> to vector<16x32xf32>
    %1152 = vector.extract_strided_slice %1149 {offsets = [0, 64], sizes = [16, 32], strides = [1, 1]} : vector<16x96xf32> to vector<16x32xf32>
    %1153 = vector.extract_strided_slice %1150 {offsets = [0, 0], sizes = [8, 32], strides = [1, 1]} : vector<16x32xf32> to vector<8x32xf32>
    %1154 = vector.extract_strided_slice %1151 {offsets = [0, 0], sizes = [8, 32], strides = [1, 1]} : vector<16x32xf32> to vector<8x32xf32>
    %1155 = vector.extract_strided_slice %1152 {offsets = [0, 0], sizes = [8, 32], strides = [1, 1]} : vector<16x32xf32> to vector<8x32xf32>
    %cst_383 = arith.constant 0.000000e+00 : f32
    %1156 = vector.broadcast %cst_383 : f32 to vector<8x32xf32>
    %c0_i32_384 = arith.constant 0 : i32
    %1157 = vector.broadcast %c0_i32_384 : i32 to vector<1x32xi32>
    %1158 = arith.cmpi sge, %0, %1157 : vector<1x32xi32>
    %c8_i32_385 = arith.constant 8 : i32
    %1159 = vector.broadcast %c8_i32_385 : i32 to vector<1x32xi32>
    %1160 = arith.cmpi slt, %0, %1159 : vector<1x32xi32>
    %1161 = arith.andi %1158, %1160 : vector<1x32xi1>
    %1162 = arith.extui %1161 : vector<1x32xi1> to vector<1x32xi32>
    %1163 = arith.sitofp %1162 : vector<1x32xi32> to vector<1x32xf32>
    %1164 = vector.broadcast %1163 : vector<1x32xf32> to vector<8x32xf32>
    %1165 = arith.mulf %1153, %1164 : vector<8x32xf32>
    %cst_386 = arith.constant dense<0.000000e+00> : vector<8x8xf32>
    %1166 = tpu.matmul %1165, %1154, %cst_386 {dimension_numbers = #tpu.dot_dimension_numbers<[1], [1], [0], [0], [0, 0, 1, 0], [], []>} : vector<8x32xf32>, vector<8x32xf32>, vector<8x8xf32> -> vector<8x8xf32>
    %cst_387 = arith.constant 0.353553385 : f32
    %1167 = vector.broadcast %cst_387 : f32 to vector<8x8xf32>
    %1168 = arith.mulf %1166, %1167 : vector<8x8xf32>
    %cst_388 = arith.constant dense<0xFF800000> : vector<8xf32>
    %1169 = vector.multi_reduction <maximumf>, %1168, %cst_388 [1] : vector<8x8xf32> to vector<8xf32>
    %1170 = vector.shape_cast %1169 : vector<8xf32> to vector<8x1xf32>
    %1171 = vector.broadcast %1170 : vector<8x1xf32> to vector<8x8xf32>
    %1172 = arith.subf %1168, %1171 : vector<8x8xf32>
    %1173 = math.exp %1172 : vector<8x8xf32>
    %cst_389 = arith.constant dense<0.000000e+00> : vector<8xf32>
    %1174 = vector.multi_reduction <add>, %1173, %cst_389 [1] : vector<8x8xf32> to vector<8xf32>
    %1175 = vector.shape_cast %1174 : vector<8xf32> to vector<8x1xf32>
    %1176 = tpu.reciprocal %1175 {approx = true} : vector<8x1xf32> -> vector<8x1xf32>
    %1177 = vector.broadcast %1176 : vector<8x1xf32> to vector<8x8xf32>
    %1178 = arith.mulf %1173, %1177 : vector<8x8xf32>
    %1179 = vector.broadcast %1163 : vector<1x32xf32> to vector<8x32xf32>
    %1180 = arith.mulf %1155, %1179 : vector<8x32xf32>
    %cst_390 = arith.constant dense<0.000000e+00> : vector<8x32xf32>
    %1181 = tpu.matmul %1178, %1180, %cst_390 {dimension_numbers = #tpu.dot_dimension_numbers<[1], [0], [0], [1], [0, 0, 1, 1], [], []>} : vector<8x8xf32>, vector<8x32xf32>, vector<8x32xf32> -> vector<8x32xf32>
    %1182 = arith.addf %1156, %1181 : vector<8x32xf32>
    %c8_i32_391 = arith.constant 8 : i32
    %1183 = vector.broadcast %c8_i32_391 : i32 to vector<1x32xi32>
    %1184 = arith.cmpi sge, %0, %1183 : vector<1x32xi32>
    %c16_i32_392 = arith.constant 16 : i32
    %1185 = vector.broadcast %c16_i32_392 : i32 to vector<1x32xi32>
    %1186 = arith.cmpi slt, %0, %1185 : vector<1x32xi32>
    %1187 = arith.andi %1184, %1186 : vector<1x32xi1>
    %1188 = arith.extui %1187 : vector<1x32xi1> to vector<1x32xi32>
    %1189 = arith.sitofp %1188 : vector<1x32xi32> to vector<1x32xf32>
    %1190 = vector.broadcast %1189 : vector<1x32xf32> to vector<8x32xf32>
    %1191 = arith.mulf %1153, %1190 : vector<8x32xf32>
    %cst_393 = arith.constant dense<0.000000e+00> : vector<8x8xf32>
    %1192 = tpu.matmul %1191, %1154, %cst_393 {dimension_numbers = #tpu.dot_dimension_numbers<[1], [1], [0], [0], [0, 0, 1, 0], [], []>} : vector<8x32xf32>, vector<8x32xf32>, vector<8x8xf32> -> vector<8x8xf32>
    %cst_394 = arith.constant 0.353553385 : f32
    %1193 = vector.broadcast %cst_394 : f32 to vector<8x8xf32>
    %1194 = arith.mulf %1192, %1193 : vector<8x8xf32>
    %cst_395 = arith.constant dense<0xFF800000> : vector<8xf32>
    %1195 = vector.multi_reduction <maximumf>, %1194, %cst_395 [1] : vector<8x8xf32> to vector<8xf32>
    %1196 = vector.shape_cast %1195 : vector<8xf32> to vector<8x1xf32>
    %1197 = vector.broadcast %1196 : vector<8x1xf32> to vector<8x8xf32>
    %1198 = arith.subf %1194, %1197 : vector<8x8xf32>
    %1199 = math.exp %1198 : vector<8x8xf32>
    %cst_396 = arith.constant dense<0.000000e+00> : vector<8xf32>
    %1200 = vector.multi_reduction <add>, %1199, %cst_396 [1] : vector<8x8xf32> to vector<8xf32>
    %1201 = vector.shape_cast %1200 : vector<8xf32> to vector<8x1xf32>
    %1202 = tpu.reciprocal %1201 {approx = true} : vector<8x1xf32> -> vector<8x1xf32>
    %1203 = vector.broadcast %1202 : vector<8x1xf32> to vector<8x8xf32>
    %1204 = arith.mulf %1199, %1203 : vector<8x8xf32>
    %1205 = vector.broadcast %1189 : vector<1x32xf32> to vector<8x32xf32>
    %1206 = arith.mulf %1155, %1205 : vector<8x32xf32>
    %cst_397 = arith.constant dense<0.000000e+00> : vector<8x32xf32>
    %1207 = tpu.matmul %1204, %1206, %cst_397 {dimension_numbers = #tpu.dot_dimension_numbers<[1], [0], [0], [1], [0, 0, 1, 1], [], []>} : vector<8x8xf32>, vector<8x32xf32>, vector<8x32xf32> -> vector<8x32xf32>
    %1208 = arith.addf %1182, %1207 : vector<8x32xf32>
    %c16_i32_398 = arith.constant 16 : i32
    %1209 = vector.broadcast %c16_i32_398 : i32 to vector<1x32xi32>
    %1210 = arith.cmpi sge, %0, %1209 : vector<1x32xi32>
    %c24_i32_399 = arith.constant 24 : i32
    %1211 = vector.broadcast %c24_i32_399 : i32 to vector<1x32xi32>
    %1212 = arith.cmpi slt, %0, %1211 : vector<1x32xi32>
    %1213 = arith.andi %1210, %1212 : vector<1x32xi1>
    %1214 = arith.extui %1213 : vector<1x32xi1> to vector<1x32xi32>
    %1215 = arith.sitofp %1214 : vector<1x32xi32> to vector<1x32xf32>
    %1216 = vector.broadcast %1215 : vector<1x32xf32> to vector<8x32xf32>
    %1217 = arith.mulf %1153, %1216 : vector<8x32xf32>
    %cst_400 = arith.constant dense<0.000000e+00> : vector<8x8xf32>
    %1218 = tpu.matmul %1217, %1154, %cst_400 {dimension_numbers = #tpu.dot_dimension_numbers<[1], [1], [0], [0], [0, 0, 1, 0], [], []>} : vector<8x32xf32>, vector<8x32xf32>, vector<8x8xf32> -> vector<8x8xf32>
    %cst_401 = arith.constant 0.353553385 : f32
    %1219 = vector.broadcast %cst_401 : f32 to vector<8x8xf32>
    %1220 = arith.mulf %1218, %1219 : vector<8x8xf32>
    %cst_402 = arith.constant dense<0xFF800000> : vector<8xf32>
    %1221 = vector.multi_reduction <maximumf>, %1220, %cst_402 [1] : vector<8x8xf32> to vector<8xf32>
    %1222 = vector.shape_cast %1221 : vector<8xf32> to vector<8x1xf32>
    %1223 = vector.broadcast %1222 : vector<8x1xf32> to vector<8x8xf32>
    %1224 = arith.subf %1220, %1223 : vector<8x8xf32>
    %1225 = math.exp %1224 : vector<8x8xf32>
    %cst_403 = arith.constant dense<0.000000e+00> : vector<8xf32>
    %1226 = vector.multi_reduction <add>, %1225, %cst_403 [1] : vector<8x8xf32> to vector<8xf32>
    %1227 = vector.shape_cast %1226 : vector<8xf32> to vector<8x1xf32>
    %1228 = tpu.reciprocal %1227 {approx = true} : vector<8x1xf32> -> vector<8x1xf32>
    %1229 = vector.broadcast %1228 : vector<8x1xf32> to vector<8x8xf32>
    %1230 = arith.mulf %1225, %1229 : vector<8x8xf32>
    %1231 = vector.broadcast %1215 : vector<1x32xf32> to vector<8x32xf32>
    %1232 = arith.mulf %1155, %1231 : vector<8x32xf32>
    %cst_404 = arith.constant dense<0.000000e+00> : vector<8x32xf32>
    %1233 = tpu.matmul %1230, %1232, %cst_404 {dimension_numbers = #tpu.dot_dimension_numbers<[1], [0], [0], [1], [0, 0, 1, 1], [], []>} : vector<8x8xf32>, vector<8x32xf32>, vector<8x32xf32> -> vector<8x32xf32>
    %1234 = arith.addf %1208, %1233 : vector<8x32xf32>
    %c24_i32_405 = arith.constant 24 : i32
    %1235 = vector.broadcast %c24_i32_405 : i32 to vector<1x32xi32>
    %1236 = arith.cmpi sge, %0, %1235 : vector<1x32xi32>
    %c32_i32_406 = arith.constant 32 : i32
    %1237 = vector.broadcast %c32_i32_406 : i32 to vector<1x32xi32>
    %1238 = arith.cmpi slt, %0, %1237 : vector<1x32xi32>
    %1239 = arith.andi %1236, %1238 : vector<1x32xi1>
    %1240 = arith.extui %1239 : vector<1x32xi1> to vector<1x32xi32>
    %1241 = arith.sitofp %1240 : vector<1x32xi32> to vector<1x32xf32>
    %1242 = vector.broadcast %1241 : vector<1x32xf32> to vector<8x32xf32>
    %1243 = arith.mulf %1153, %1242 : vector<8x32xf32>
    %cst_407 = arith.constant dense<0.000000e+00> : vector<8x8xf32>
    %1244 = tpu.matmul %1243, %1154, %cst_407 {dimension_numbers = #tpu.dot_dimension_numbers<[1], [1], [0], [0], [0, 0, 1, 0], [], []>} : vector<8x32xf32>, vector<8x32xf32>, vector<8x8xf32> -> vector<8x8xf32>
    %cst_408 = arith.constant 0.353553385 : f32
    %1245 = vector.broadcast %cst_408 : f32 to vector<8x8xf32>
    %1246 = arith.mulf %1244, %1245 : vector<8x8xf32>
    %cst_409 = arith.constant dense<0xFF800000> : vector<8xf32>
    %1247 = vector.multi_reduction <maximumf>, %1246, %cst_409 [1] : vector<8x8xf32> to vector<8xf32>
    %1248 = vector.shape_cast %1247 : vector<8xf32> to vector<8x1xf32>
    %1249 = vector.broadcast %1248 : vector<8x1xf32> to vector<8x8xf32>
    %1250 = arith.subf %1246, %1249 : vector<8x8xf32>
    %1251 = math.exp %1250 : vector<8x8xf32>
    %cst_410 = arith.constant dense<0.000000e+00> : vector<8xf32>
    %1252 = vector.multi_reduction <add>, %1251, %cst_410 [1] : vector<8x8xf32> to vector<8xf32>
    %1253 = vector.shape_cast %1252 : vector<8xf32> to vector<8x1xf32>
    %1254 = tpu.reciprocal %1253 {approx = true} : vector<8x1xf32> -> vector<8x1xf32>
    %1255 = vector.broadcast %1254 : vector<8x1xf32> to vector<8x8xf32>
    %1256 = arith.mulf %1251, %1255 : vector<8x8xf32>
    %1257 = vector.broadcast %1241 : vector<1x32xf32> to vector<8x32xf32>
    %1258 = arith.mulf %1155, %1257 : vector<8x32xf32>
    %cst_411 = arith.constant dense<0.000000e+00> : vector<8x32xf32>
    %1259 = tpu.matmul %1256, %1258, %cst_411 {dimension_numbers = #tpu.dot_dimension_numbers<[1], [0], [0], [1], [0, 0, 1, 1], [], []>} : vector<8x8xf32>, vector<8x32xf32>, vector<8x32xf32> -> vector<8x32xf32>
    %1260 = arith.addf %1234, %1259 : vector<8x32xf32>
    %1261 = vector.extract_strided_slice %1150 {offsets = [8, 0], sizes = [8, 32], strides = [1, 1]} : vector<16x32xf32> to vector<8x32xf32>
    %1262 = vector.extract_strided_slice %1151 {offsets = [8, 0], sizes = [8, 32], strides = [1, 1]} : vector<16x32xf32> to vector<8x32xf32>
    %1263 = vector.extract_strided_slice %1152 {offsets = [8, 0], sizes = [8, 32], strides = [1, 1]} : vector<16x32xf32> to vector<8x32xf32>
    %cst_412 = arith.constant 0.000000e+00 : f32
    %1264 = vector.broadcast %cst_412 : f32 to vector<8x32xf32>
    %c0_i32_413 = arith.constant 0 : i32
    %1265 = vector.broadcast %c0_i32_413 : i32 to vector<1x32xi32>
    %1266 = arith.cmpi sge, %0, %1265 : vector<1x32xi32>
    %c8_i32_414 = arith.constant 8 : i32
    %1267 = vector.broadcast %c8_i32_414 : i32 to vector<1x32xi32>
    %1268 = arith.cmpi slt, %0, %1267 : vector<1x32xi32>
    %1269 = arith.andi %1266, %1268 : vector<1x32xi1>
    %1270 = arith.extui %1269 : vector<1x32xi1> to vector<1x32xi32>
    %1271 = arith.sitofp %1270 : vector<1x32xi32> to vector<1x32xf32>
    %1272 = vector.broadcast %1271 : vector<1x32xf32> to vector<8x32xf32>
    %1273 = arith.mulf %1261, %1272 : vector<8x32xf32>
    %cst_415 = arith.constant dense<0.000000e+00> : vector<8x8xf32>
    %1274 = tpu.matmul %1273, %1262, %cst_415 {dimension_numbers = #tpu.dot_dimension_numbers<[1], [1], [0], [0], [0, 0, 1, 0], [], []>} : vector<8x32xf32>, vector<8x32xf32>, vector<8x8xf32> -> vector<8x8xf32>
    %cst_416 = arith.constant 0.353553385 : f32
    %1275 = vector.broadcast %cst_416 : f32 to vector<8x8xf32>
    %1276 = arith.mulf %1274, %1275 : vector<8x8xf32>
    %cst_417 = arith.constant dense<0xFF800000> : vector<8xf32>
    %1277 = vector.multi_reduction <maximumf>, %1276, %cst_417 [1] : vector<8x8xf32> to vector<8xf32>
    %1278 = vector.shape_cast %1277 : vector<8xf32> to vector<8x1xf32>
    %1279 = vector.broadcast %1278 : vector<8x1xf32> to vector<8x8xf32>
    %1280 = arith.subf %1276, %1279 : vector<8x8xf32>
    %1281 = math.exp %1280 : vector<8x8xf32>
    %cst_418 = arith.constant dense<0.000000e+00> : vector<8xf32>
    %1282 = vector.multi_reduction <add>, %1281, %cst_418 [1] : vector<8x8xf32> to vector<8xf32>
    %1283 = vector.shape_cast %1282 : vector<8xf32> to vector<8x1xf32>
    %1284 = tpu.reciprocal %1283 {approx = true} : vector<8x1xf32> -> vector<8x1xf32>
    %1285 = vector.broadcast %1284 : vector<8x1xf32> to vector<8x8xf32>
    %1286 = arith.mulf %1281, %1285 : vector<8x8xf32>
    %1287 = vector.broadcast %1271 : vector<1x32xf32> to vector<8x32xf32>
    %1288 = arith.mulf %1263, %1287 : vector<8x32xf32>
    %cst_419 = arith.constant dense<0.000000e+00> : vector<8x32xf32>
    %1289 = tpu.matmul %1286, %1288, %cst_419 {dimension_numbers = #tpu.dot_dimension_numbers<[1], [0], [0], [1], [0, 0, 1, 1], [], []>} : vector<8x8xf32>, vector<8x32xf32>, vector<8x32xf32> -> vector<8x32xf32>
    %1290 = arith.addf %1264, %1289 : vector<8x32xf32>
    %c8_i32_420 = arith.constant 8 : i32
    %1291 = vector.broadcast %c8_i32_420 : i32 to vector<1x32xi32>
    %1292 = arith.cmpi sge, %0, %1291 : vector<1x32xi32>
    %c16_i32_421 = arith.constant 16 : i32
    %1293 = vector.broadcast %c16_i32_421 : i32 to vector<1x32xi32>
    %1294 = arith.cmpi slt, %0, %1293 : vector<1x32xi32>
    %1295 = arith.andi %1292, %1294 : vector<1x32xi1>
    %1296 = arith.extui %1295 : vector<1x32xi1> to vector<1x32xi32>
    %1297 = arith.sitofp %1296 : vector<1x32xi32> to vector<1x32xf32>
    %1298 = vector.broadcast %1297 : vector<1x32xf32> to vector<8x32xf32>
    %1299 = arith.mulf %1261, %1298 : vector<8x32xf32>
    %cst_422 = arith.constant dense<0.000000e+00> : vector<8x8xf32>
    %1300 = tpu.matmul %1299, %1262, %cst_422 {dimension_numbers = #tpu.dot_dimension_numbers<[1], [1], [0], [0], [0, 0, 1, 0], [], []>} : vector<8x32xf32>, vector<8x32xf32>, vector<8x8xf32> -> vector<8x8xf32>
    %cst_423 = arith.constant 0.353553385 : f32
    %1301 = vector.broadcast %cst_423 : f32 to vector<8x8xf32>
    %1302 = arith.mulf %1300, %1301 : vector<8x8xf32>
    %cst_424 = arith.constant dense<0xFF800000> : vector<8xf32>
    %1303 = vector.multi_reduction <maximumf>, %1302, %cst_424 [1] : vector<8x8xf32> to vector<8xf32>
    %1304 = vector.shape_cast %1303 : vector<8xf32> to vector<8x1xf32>
    %1305 = vector.broadcast %1304 : vector<8x1xf32> to vector<8x8xf32>
    %1306 = arith.subf %1302, %1305 : vector<8x8xf32>
    %1307 = math.exp %1306 : vector<8x8xf32>
    %cst_425 = arith.constant dense<0.000000e+00> : vector<8xf32>
    %1308 = vector.multi_reduction <add>, %1307, %cst_425 [1] : vector<8x8xf32> to vector<8xf32>
    %1309 = vector.shape_cast %1308 : vector<8xf32> to vector<8x1xf32>
    %1310 = tpu.reciprocal %1309 {approx = true} : vector<8x1xf32> -> vector<8x1xf32>
    %1311 = vector.broadcast %1310 : vector<8x1xf32> to vector<8x8xf32>
    %1312 = arith.mulf %1307, %1311 : vector<8x8xf32>
    %1313 = vector.broadcast %1297 : vector<1x32xf32> to vector<8x32xf32>
    %1314 = arith.mulf %1263, %1313 : vector<8x32xf32>
    %cst_426 = arith.constant dense<0.000000e+00> : vector<8x32xf32>
    %1315 = tpu.matmul %1312, %1314, %cst_426 {dimension_numbers = #tpu.dot_dimension_numbers<[1], [0], [0], [1], [0, 0, 1, 1], [], []>} : vector<8x8xf32>, vector<8x32xf32>, vector<8x32xf32> -> vector<8x32xf32>
    %1316 = arith.addf %1290, %1315 : vector<8x32xf32>
    %c16_i32_427 = arith.constant 16 : i32
    %1317 = vector.broadcast %c16_i32_427 : i32 to vector<1x32xi32>
    %1318 = arith.cmpi sge, %0, %1317 : vector<1x32xi32>
    %c24_i32_428 = arith.constant 24 : i32
    %1319 = vector.broadcast %c24_i32_428 : i32 to vector<1x32xi32>
    %1320 = arith.cmpi slt, %0, %1319 : vector<1x32xi32>
    %1321 = arith.andi %1318, %1320 : vector<1x32xi1>
    %1322 = arith.extui %1321 : vector<1x32xi1> to vector<1x32xi32>
    %1323 = arith.sitofp %1322 : vector<1x32xi32> to vector<1x32xf32>
    %1324 = vector.broadcast %1323 : vector<1x32xf32> to vector<8x32xf32>
    %1325 = arith.mulf %1261, %1324 : vector<8x32xf32>
    %cst_429 = arith.constant dense<0.000000e+00> : vector<8x8xf32>
    %1326 = tpu.matmul %1325, %1262, %cst_429 {dimension_numbers = #tpu.dot_dimension_numbers<[1], [1], [0], [0], [0, 0, 1, 0], [], []>} : vector<8x32xf32>, vector<8x32xf32>, vector<8x8xf32> -> vector<8x8xf32>
    %cst_430 = arith.constant 0.353553385 : f32
    %1327 = vector.broadcast %cst_430 : f32 to vector<8x8xf32>
    %1328 = arith.mulf %1326, %1327 : vector<8x8xf32>
    %cst_431 = arith.constant dense<0xFF800000> : vector<8xf32>
    %1329 = vector.multi_reduction <maximumf>, %1328, %cst_431 [1] : vector<8x8xf32> to vector<8xf32>
    %1330 = vector.shape_cast %1329 : vector<8xf32> to vector<8x1xf32>
    %1331 = vector.broadcast %1330 : vector<8x1xf32> to vector<8x8xf32>
    %1332 = arith.subf %1328, %1331 : vector<8x8xf32>
    %1333 = math.exp %1332 : vector<8x8xf32>
    %cst_432 = arith.constant dense<0.000000e+00> : vector<8xf32>
    %1334 = vector.multi_reduction <add>, %1333, %cst_432 [1] : vector<8x8xf32> to vector<8xf32>
    %1335 = vector.shape_cast %1334 : vector<8xf32> to vector<8x1xf32>
    %1336 = tpu.reciprocal %1335 {approx = true} : vector<8x1xf32> -> vector<8x1xf32>
    %1337 = vector.broadcast %1336 : vector<8x1xf32> to vector<8x8xf32>
    %1338 = arith.mulf %1333, %1337 : vector<8x8xf32>
    %1339 = vector.broadcast %1323 : vector<1x32xf32> to vector<8x32xf32>
    %1340 = arith.mulf %1263, %1339 : vector<8x32xf32>
    %cst_433 = arith.constant dense<0.000000e+00> : vector<8x32xf32>
    %1341 = tpu.matmul %1338, %1340, %cst_433 {dimension_numbers = #tpu.dot_dimension_numbers<[1], [0], [0], [1], [0, 0, 1, 1], [], []>} : vector<8x8xf32>, vector<8x32xf32>, vector<8x32xf32> -> vector<8x32xf32>
    %1342 = arith.addf %1316, %1341 : vector<8x32xf32>
    %c24_i32_434 = arith.constant 24 : i32
    %1343 = vector.broadcast %c24_i32_434 : i32 to vector<1x32xi32>
    %1344 = arith.cmpi sge, %0, %1343 : vector<1x32xi32>
    %c32_i32_435 = arith.constant 32 : i32
    %1345 = vector.broadcast %c32_i32_435 : i32 to vector<1x32xi32>
    %1346 = arith.cmpi slt, %0, %1345 : vector<1x32xi32>
    %1347 = arith.andi %1344, %1346 : vector<1x32xi1>
    %1348 = arith.extui %1347 : vector<1x32xi1> to vector<1x32xi32>
    %1349 = arith.sitofp %1348 : vector<1x32xi32> to vector<1x32xf32>
    %1350 = vector.broadcast %1349 : vector<1x32xf32> to vector<8x32xf32>
    %1351 = arith.mulf %1261, %1350 : vector<8x32xf32>
    %cst_436 = arith.constant dense<0.000000e+00> : vector<8x8xf32>
    %1352 = tpu.matmul %1351, %1262, %cst_436 {dimension_numbers = #tpu.dot_dimension_numbers<[1], [1], [0], [0], [0, 0, 1, 0], [], []>} : vector<8x32xf32>, vector<8x32xf32>, vector<8x8xf32> -> vector<8x8xf32>
    %cst_437 = arith.constant 0.353553385 : f32
    %1353 = vector.broadcast %cst_437 : f32 to vector<8x8xf32>
    %1354 = arith.mulf %1352, %1353 : vector<8x8xf32>
    %cst_438 = arith.constant dense<0xFF800000> : vector<8xf32>
    %1355 = vector.multi_reduction <maximumf>, %1354, %cst_438 [1] : vector<8x8xf32> to vector<8xf32>
    %1356 = vector.shape_cast %1355 : vector<8xf32> to vector<8x1xf32>
    %1357 = vector.broadcast %1356 : vector<8x1xf32> to vector<8x8xf32>
    %1358 = arith.subf %1354, %1357 : vector<8x8xf32>
    %1359 = math.exp %1358 : vector<8x8xf32>
    %cst_439 = arith.constant dense<0.000000e+00> : vector<8xf32>
    %1360 = vector.multi_reduction <add>, %1359, %cst_439 [1] : vector<8x8xf32> to vector<8xf32>
    %1361 = vector.shape_cast %1360 : vector<8xf32> to vector<8x1xf32>
    %1362 = tpu.reciprocal %1361 {approx = true} : vector<8x1xf32> -> vector<8x1xf32>
    %1363 = vector.broadcast %1362 : vector<8x1xf32> to vector<8x8xf32>
    %1364 = arith.mulf %1359, %1363 : vector<8x8xf32>
    %1365 = vector.broadcast %1349 : vector<1x32xf32> to vector<8x32xf32>
    %1366 = arith.mulf %1263, %1365 : vector<8x32xf32>
    %cst_440 = arith.constant dense<0.000000e+00> : vector<8x32xf32>
    %1367 = tpu.matmul %1364, %1366, %cst_440 {dimension_numbers = #tpu.dot_dimension_numbers<[1], [0], [0], [1], [0, 0, 1, 1], [], []>} : vector<8x8xf32>, vector<8x32xf32>, vector<8x32xf32> -> vector<8x32xf32>
    %1368 = arith.addf %1342, %1367 : vector<8x32xf32>
    %1369 = tpu.concatenate %1260, %1368 in 0 : vector<8x32xf32>, vector<8x32xf32> -> vector<16x32xf32>
    %c0_441 = arith.constant 0 : index
    %c0_442 = arith.constant 0 : index
    %1370 = vector.load %arg34[%c0_441, %c0_442] : memref<32x32xf32, #tpu.memory_space<vmem>>, vector<32x32xf32>
    %cst_443 = arith.constant dense<0.000000e+00> : vector<16x32xf32>
    %1371 = tpu.matmul %1369, %1370, %cst_443 {dimension_numbers = #tpu.dot_dimension_numbers<[1], [0], [0], [1], [0, 0, 1, 1], [], []>} : vector<16x32xf32>, vector<32x32xf32>, vector<16x32xf32> -> vector<16x32xf32>
    %c0_444 = arith.constant 0 : index
    %c0_445 = arith.constant 0 : index
    %1372 = vector.load %arg32[%c0_444, %c0_445] : memref<1x32xf32, #tpu.memory_space<vmem>>, vector<1x32xf32>
    %1373 = vector.broadcast %1372 : vector<1x32xf32> to vector<16x32xf32>
    %1374 = arith.addf %1371, %1373 : vector<16x32xf32>
    %1375 = arith.addf %1144, %1374 : vector<16x32xf32>
    %cst_446 = arith.constant dense<0.000000e+00> : vector<16xf32>
    %1376 = vector.multi_reduction <add>, %1375, %cst_446 [1] : vector<16x32xf32> to vector<16xf32>
    %1377 = vector.shape_cast %1376 : vector<16xf32> to vector<16x1xf32>
    %cst_447 = arith.constant 3.200000e+01 : f32
    %1378 = vector.broadcast %cst_447 : f32 to vector<16x1xf32>
    %1379 = arith.divf %1377, %1378 : vector<16x1xf32>
    %1380 = vector.broadcast %1379 : vector<16x1xf32> to vector<16x32xf32>
    %1381 = arith.subf %1375, %1380 : vector<16x32xf32>
    %1382 = arith.mulf %1381, %1381 : vector<16x32xf32>
    %cst_448 = arith.constant dense<0.000000e+00> : vector<16xf32>
    %1383 = vector.multi_reduction <add>, %1382, %cst_448 [1] : vector<16x32xf32> to vector<16xf32>
    %1384 = vector.shape_cast %1383 : vector<16xf32> to vector<16x1xf32>
    %cst_449 = arith.constant 3.200000e+01 : f32
    %1385 = vector.broadcast %cst_449 : f32 to vector<16x1xf32>
    %1386 = arith.divf %1384, %1385 : vector<16x1xf32>
    %cst_450 = arith.constant 9.99999974E-6 : f32
    %1387 = vector.broadcast %cst_450 : f32 to vector<16x1xf32>
    %1388 = arith.addf %1386, %1387 : vector<16x1xf32>
    %1389 = math.rsqrt %1388 : vector<16x1xf32>
    %1390 = vector.broadcast %1389 : vector<16x1xf32> to vector<16x32xf32>
    %1391 = arith.mulf %1381, %1390 : vector<16x32xf32>
    %c0_451 = arith.constant 0 : index
    %c0_452 = arith.constant 0 : index
    %1392 = vector.load %arg27[%c0_451, %c0_452] : memref<1x32xf32, #tpu.memory_space<vmem>>, vector<1x32xf32>
    %1393 = vector.broadcast %1392 : vector<1x32xf32> to vector<16x32xf32>
    %1394 = arith.mulf %1391, %1393 : vector<16x32xf32>
    %c0_453 = arith.constant 0 : index
    %c0_454 = arith.constant 0 : index
    %1395 = vector.load %arg26[%c0_453, %c0_454] : memref<1x32xf32, #tpu.memory_space<vmem>>, vector<1x32xf32>
    %1396 = vector.broadcast %1395 : vector<1x32xf32> to vector<16x32xf32>
    %1397 = arith.addf %1394, %1396 : vector<16x32xf32>
    %c0_455 = arith.constant 0 : index
    %c0_456 = arith.constant 0 : index
    %1398 = vector.load %arg21[%c0_455, %c0_456] : memref<32x96xf32, #tpu.memory_space<vmem>>, vector<32x96xf32>
    %c0_457 = arith.constant 0 : index
    %c0_458 = arith.constant 0 : index
    %1399 = vector.load %arg19[%c0_457, %c0_458] : memref<1x96xf32, #tpu.memory_space<vmem>>, vector<1x96xf32>
    %1400 = vector.extract_strided_slice %1398 {offsets = [0, 0], sizes = [32, 32], strides = [1, 1]} : vector<32x96xf32> to vector<32x32xf32>
    %cst_459 = arith.constant dense<0.000000e+00> : vector<16x32xf32>
    %1401 = tpu.matmul %1397, %1400, %cst_459 {dimension_numbers = #tpu.dot_dimension_numbers<[1], [0], [0], [1], [0, 0, 1, 1], [], []>} : vector<16x32xf32>, vector<32x32xf32>, vector<16x32xf32> -> vector<16x32xf32>
    %1402 = vector.extract_strided_slice %1399 {offsets = [0, 0], sizes = [1, 32], strides = [1, 1]} : vector<1x96xf32> to vector<1x32xf32>
    %1403 = vector.broadcast %1402 : vector<1x32xf32> to vector<16x32xf32>
    %1404 = arith.addf %1401, %1403 : vector<16x32xf32>
    %1405 = vector.extract_strided_slice %1398 {offsets = [0, 32], sizes = [32, 64], strides = [1, 1]} : vector<32x96xf32> to vector<32x64xf32>
    %cst_460 = arith.constant dense<0.000000e+00> : vector<8x64xf32>
    %1406 = tpu.matmul %585, %1405, %cst_460 {dimension_numbers = #tpu.dot_dimension_numbers<[1], [0], [0], [1], [0, 0, 1, 1], [], []>} : vector<8x32xf32>, vector<32x64xf32>, vector<8x64xf32> -> vector<8x64xf32>
    %1407 = vector.extract_strided_slice %1399 {offsets = [0, 32], sizes = [1, 64], strides = [1, 1]} : vector<1x96xf32> to vector<1x64xf32>
    %1408 = vector.broadcast %1407 : vector<1x64xf32> to vector<8x64xf32>
    %1409 = arith.addf %1406, %1408 : vector<8x64xf32>
    %1410 = vector.extract_strided_slice %1409 {offsets = [0, 0], sizes = [8, 32], strides = [1, 1]} : vector<8x64xf32> to vector<8x32xf32>
    %1411 = vector.extract_strided_slice %1409 {offsets = [0, 32], sizes = [8, 32], strides = [1, 1]} : vector<8x64xf32> to vector<8x32xf32>
    %1412 = vector.extract_strided_slice %1404 {offsets = [0, 0], sizes = [8, 32], strides = [1, 1]} : vector<16x32xf32> to vector<8x32xf32>
    %1413 = vector.extract_strided_slice %1410 {offsets = [0, 0], sizes = [4, 32], strides = [1, 1]} : vector<8x32xf32> to vector<4x32xf32>
    %1414 = vector.extract_strided_slice %1411 {offsets = [0, 0], sizes = [4, 32], strides = [1, 1]} : vector<8x32xf32> to vector<4x32xf32>
    %cst_461 = arith.constant 0.000000e+00 : f32
    %1415 = vector.broadcast %cst_461 : f32 to vector<8x32xf32>
    %c0_i32_462 = arith.constant 0 : i32
    %1416 = vector.broadcast %c0_i32_462 : i32 to vector<1x32xi32>
    %1417 = arith.cmpi sge, %0, %1416 : vector<1x32xi32>
    %c8_i32_463 = arith.constant 8 : i32
    %1418 = vector.broadcast %c8_i32_463 : i32 to vector<1x32xi32>
    %1419 = arith.cmpi slt, %0, %1418 : vector<1x32xi32>
    %1420 = arith.andi %1417, %1419 : vector<1x32xi1>
    %1421 = arith.extui %1420 : vector<1x32xi1> to vector<1x32xi32>
    %1422 = arith.sitofp %1421 : vector<1x32xi32> to vector<1x32xf32>
    %1423 = vector.broadcast %1422 : vector<1x32xf32> to vector<8x32xf32>
    %1424 = arith.mulf %1412, %1423 : vector<8x32xf32>
    %cst_464 = arith.constant dense<0.000000e+00> : vector<8x4xf32>
    %1425 = tpu.matmul %1424, %1413, %cst_464 {dimension_numbers = #tpu.dot_dimension_numbers<[1], [1], [0], [0], [0, 0, 1, 0], [], []>} : vector<8x32xf32>, vector<4x32xf32>, vector<8x4xf32> -> vector<8x4xf32>
    %cst_465 = arith.constant 0.353553385 : f32
    %1426 = vector.broadcast %cst_465 : f32 to vector<8x4xf32>
    %1427 = arith.mulf %1425, %1426 : vector<8x4xf32>
    %cst_466 = arith.constant dense<0xFF800000> : vector<8xf32>
    %1428 = vector.multi_reduction <maximumf>, %1427, %cst_466 [1] : vector<8x4xf32> to vector<8xf32>
    %1429 = vector.shape_cast %1428 : vector<8xf32> to vector<8x1xf32>
    %1430 = vector.broadcast %1429 : vector<8x1xf32> to vector<8x4xf32>
    %1431 = arith.subf %1427, %1430 : vector<8x4xf32>
    %1432 = math.exp %1431 : vector<8x4xf32>
    %cst_467 = arith.constant dense<0.000000e+00> : vector<8xf32>
    %1433 = vector.multi_reduction <add>, %1432, %cst_467 [1] : vector<8x4xf32> to vector<8xf32>
    %1434 = vector.shape_cast %1433 : vector<8xf32> to vector<8x1xf32>
    %1435 = tpu.reciprocal %1434 {approx = true} : vector<8x1xf32> -> vector<8x1xf32>
    %1436 = vector.broadcast %1435 : vector<8x1xf32> to vector<8x4xf32>
    %1437 = arith.mulf %1432, %1436 : vector<8x4xf32>
    %1438 = vector.broadcast %1422 : vector<1x32xf32> to vector<4x32xf32>
    %1439 = arith.mulf %1414, %1438 : vector<4x32xf32>
    %cst_468 = arith.constant dense<0.000000e+00> : vector<8x32xf32>
    %1440 = tpu.matmul %1437, %1439, %cst_468 {dimension_numbers = #tpu.dot_dimension_numbers<[1], [0], [0], [1], [0, 0, 1, 1], [], []>} : vector<8x4xf32>, vector<4x32xf32>, vector<8x32xf32> -> vector<8x32xf32>
    %1441 = arith.addf %1415, %1440 : vector<8x32xf32>
    %c8_i32_469 = arith.constant 8 : i32
    %1442 = vector.broadcast %c8_i32_469 : i32 to vector<1x32xi32>
    %1443 = arith.cmpi sge, %0, %1442 : vector<1x32xi32>
    %c16_i32_470 = arith.constant 16 : i32
    %1444 = vector.broadcast %c16_i32_470 : i32 to vector<1x32xi32>
    %1445 = arith.cmpi slt, %0, %1444 : vector<1x32xi32>
    %1446 = arith.andi %1443, %1445 : vector<1x32xi1>
    %1447 = arith.extui %1446 : vector<1x32xi1> to vector<1x32xi32>
    %1448 = arith.sitofp %1447 : vector<1x32xi32> to vector<1x32xf32>
    %1449 = vector.broadcast %1448 : vector<1x32xf32> to vector<8x32xf32>
    %1450 = arith.mulf %1412, %1449 : vector<8x32xf32>
    %cst_471 = arith.constant dense<0.000000e+00> : vector<8x4xf32>
    %1451 = tpu.matmul %1450, %1413, %cst_471 {dimension_numbers = #tpu.dot_dimension_numbers<[1], [1], [0], [0], [0, 0, 1, 0], [], []>} : vector<8x32xf32>, vector<4x32xf32>, vector<8x4xf32> -> vector<8x4xf32>
    %cst_472 = arith.constant 0.353553385 : f32
    %1452 = vector.broadcast %cst_472 : f32 to vector<8x4xf32>
    %1453 = arith.mulf %1451, %1452 : vector<8x4xf32>
    %cst_473 = arith.constant dense<0xFF800000> : vector<8xf32>
    %1454 = vector.multi_reduction <maximumf>, %1453, %cst_473 [1] : vector<8x4xf32> to vector<8xf32>
    %1455 = vector.shape_cast %1454 : vector<8xf32> to vector<8x1xf32>
    %1456 = vector.broadcast %1455 : vector<8x1xf32> to vector<8x4xf32>
    %1457 = arith.subf %1453, %1456 : vector<8x4xf32>
    %1458 = math.exp %1457 : vector<8x4xf32>
    %cst_474 = arith.constant dense<0.000000e+00> : vector<8xf32>
    %1459 = vector.multi_reduction <add>, %1458, %cst_474 [1] : vector<8x4xf32> to vector<8xf32>
    %1460 = vector.shape_cast %1459 : vector<8xf32> to vector<8x1xf32>
    %1461 = tpu.reciprocal %1460 {approx = true} : vector<8x1xf32> -> vector<8x1xf32>
    %1462 = vector.broadcast %1461 : vector<8x1xf32> to vector<8x4xf32>
    %1463 = arith.mulf %1458, %1462 : vector<8x4xf32>
    %1464 = vector.broadcast %1448 : vector<1x32xf32> to vector<4x32xf32>
    %1465 = arith.mulf %1414, %1464 : vector<4x32xf32>
    %cst_475 = arith.constant dense<0.000000e+00> : vector<8x32xf32>
    %1466 = tpu.matmul %1463, %1465, %cst_475 {dimension_numbers = #tpu.dot_dimension_numbers<[1], [0], [0], [1], [0, 0, 1, 1], [], []>} : vector<8x4xf32>, vector<4x32xf32>, vector<8x32xf32> -> vector<8x32xf32>
    %1467 = arith.addf %1441, %1466 : vector<8x32xf32>
    %c16_i32_476 = arith.constant 16 : i32
    %1468 = vector.broadcast %c16_i32_476 : i32 to vector<1x32xi32>
    %1469 = arith.cmpi sge, %0, %1468 : vector<1x32xi32>
    %c24_i32_477 = arith.constant 24 : i32
    %1470 = vector.broadcast %c24_i32_477 : i32 to vector<1x32xi32>
    %1471 = arith.cmpi slt, %0, %1470 : vector<1x32xi32>
    %1472 = arith.andi %1469, %1471 : vector<1x32xi1>
    %1473 = arith.extui %1472 : vector<1x32xi1> to vector<1x32xi32>
    %1474 = arith.sitofp %1473 : vector<1x32xi32> to vector<1x32xf32>
    %1475 = vector.broadcast %1474 : vector<1x32xf32> to vector<8x32xf32>
    %1476 = arith.mulf %1412, %1475 : vector<8x32xf32>
    %cst_478 = arith.constant dense<0.000000e+00> : vector<8x4xf32>
    %1477 = tpu.matmul %1476, %1413, %cst_478 {dimension_numbers = #tpu.dot_dimension_numbers<[1], [1], [0], [0], [0, 0, 1, 0], [], []>} : vector<8x32xf32>, vector<4x32xf32>, vector<8x4xf32> -> vector<8x4xf32>
    %cst_479 = arith.constant 0.353553385 : f32
    %1478 = vector.broadcast %cst_479 : f32 to vector<8x4xf32>
    %1479 = arith.mulf %1477, %1478 : vector<8x4xf32>
    %cst_480 = arith.constant dense<0xFF800000> : vector<8xf32>
    %1480 = vector.multi_reduction <maximumf>, %1479, %cst_480 [1] : vector<8x4xf32> to vector<8xf32>
    %1481 = vector.shape_cast %1480 : vector<8xf32> to vector<8x1xf32>
    %1482 = vector.broadcast %1481 : vector<8x1xf32> to vector<8x4xf32>
    %1483 = arith.subf %1479, %1482 : vector<8x4xf32>
    %1484 = math.exp %1483 : vector<8x4xf32>
    %cst_481 = arith.constant dense<0.000000e+00> : vector<8xf32>
    %1485 = vector.multi_reduction <add>, %1484, %cst_481 [1] : vector<8x4xf32> to vector<8xf32>
    %1486 = vector.shape_cast %1485 : vector<8xf32> to vector<8x1xf32>
    %1487 = tpu.reciprocal %1486 {approx = true} : vector<8x1xf32> -> vector<8x1xf32>
    %1488 = vector.broadcast %1487 : vector<8x1xf32> to vector<8x4xf32>
    %1489 = arith.mulf %1484, %1488 : vector<8x4xf32>
    %1490 = vector.broadcast %1474 : vector<1x32xf32> to vector<4x32xf32>
    %1491 = arith.mulf %1414, %1490 : vector<4x32xf32>
    %cst_482 = arith.constant dense<0.000000e+00> : vector<8x32xf32>
    %1492 = tpu.matmul %1489, %1491, %cst_482 {dimension_numbers = #tpu.dot_dimension_numbers<[1], [0], [0], [1], [0, 0, 1, 1], [], []>} : vector<8x4xf32>, vector<4x32xf32>, vector<8x32xf32> -> vector<8x32xf32>
    %1493 = arith.addf %1467, %1492 : vector<8x32xf32>
    %c24_i32_483 = arith.constant 24 : i32
    %1494 = vector.broadcast %c24_i32_483 : i32 to vector<1x32xi32>
    %1495 = arith.cmpi sge, %0, %1494 : vector<1x32xi32>
    %c32_i32_484 = arith.constant 32 : i32
    %1496 = vector.broadcast %c32_i32_484 : i32 to vector<1x32xi32>
    %1497 = arith.cmpi slt, %0, %1496 : vector<1x32xi32>
    %1498 = arith.andi %1495, %1497 : vector<1x32xi1>
    %1499 = arith.extui %1498 : vector<1x32xi1> to vector<1x32xi32>
    %1500 = arith.sitofp %1499 : vector<1x32xi32> to vector<1x32xf32>
    %1501 = vector.broadcast %1500 : vector<1x32xf32> to vector<8x32xf32>
    %1502 = arith.mulf %1412, %1501 : vector<8x32xf32>
    %cst_485 = arith.constant dense<0.000000e+00> : vector<8x4xf32>
    %1503 = tpu.matmul %1502, %1413, %cst_485 {dimension_numbers = #tpu.dot_dimension_numbers<[1], [1], [0], [0], [0, 0, 1, 0], [], []>} : vector<8x32xf32>, vector<4x32xf32>, vector<8x4xf32> -> vector<8x4xf32>
    %cst_486 = arith.constant 0.353553385 : f32
    %1504 = vector.broadcast %cst_486 : f32 to vector<8x4xf32>
    %1505 = arith.mulf %1503, %1504 : vector<8x4xf32>
    %cst_487 = arith.constant dense<0xFF800000> : vector<8xf32>
    %1506 = vector.multi_reduction <maximumf>, %1505, %cst_487 [1] : vector<8x4xf32> to vector<8xf32>
    %1507 = vector.shape_cast %1506 : vector<8xf32> to vector<8x1xf32>
    %1508 = vector.broadcast %1507 : vector<8x1xf32> to vector<8x4xf32>
    %1509 = arith.subf %1505, %1508 : vector<8x4xf32>
    %1510 = math.exp %1509 : vector<8x4xf32>
    %cst_488 = arith.constant dense<0.000000e+00> : vector<8xf32>
    %1511 = vector.multi_reduction <add>, %1510, %cst_488 [1] : vector<8x4xf32> to vector<8xf32>
    %1512 = vector.shape_cast %1511 : vector<8xf32> to vector<8x1xf32>
    %1513 = tpu.reciprocal %1512 {approx = true} : vector<8x1xf32> -> vector<8x1xf32>
    %1514 = vector.broadcast %1513 : vector<8x1xf32> to vector<8x4xf32>
    %1515 = arith.mulf %1510, %1514 : vector<8x4xf32>
    %1516 = vector.broadcast %1500 : vector<1x32xf32> to vector<4x32xf32>
    %1517 = arith.mulf %1414, %1516 : vector<4x32xf32>
    %cst_489 = arith.constant dense<0.000000e+00> : vector<8x32xf32>
    %1518 = tpu.matmul %1515, %1517, %cst_489 {dimension_numbers = #tpu.dot_dimension_numbers<[1], [0], [0], [1], [0, 0, 1, 1], [], []>} : vector<8x4xf32>, vector<4x32xf32>, vector<8x32xf32> -> vector<8x32xf32>
    %1519 = arith.addf %1493, %1518 : vector<8x32xf32>
    %1520 = vector.extract_strided_slice %1404 {offsets = [8, 0], sizes = [8, 32], strides = [1, 1]} : vector<16x32xf32> to vector<8x32xf32>
    %1521 = vector.extract_strided_slice %1410 {offsets = [4, 0], sizes = [4, 32], strides = [1, 1]} : vector<8x32xf32> to vector<4x32xf32>
    %1522 = vector.extract_strided_slice %1411 {offsets = [4, 0], sizes = [4, 32], strides = [1, 1]} : vector<8x32xf32> to vector<4x32xf32>
    %cst_490 = arith.constant 0.000000e+00 : f32
    %1523 = vector.broadcast %cst_490 : f32 to vector<8x32xf32>
    %c0_i32_491 = arith.constant 0 : i32
    %1524 = vector.broadcast %c0_i32_491 : i32 to vector<1x32xi32>
    %1525 = arith.cmpi sge, %0, %1524 : vector<1x32xi32>
    %c8_i32_492 = arith.constant 8 : i32
    %1526 = vector.broadcast %c8_i32_492 : i32 to vector<1x32xi32>
    %1527 = arith.cmpi slt, %0, %1526 : vector<1x32xi32>
    %1528 = arith.andi %1525, %1527 : vector<1x32xi1>
    %1529 = arith.extui %1528 : vector<1x32xi1> to vector<1x32xi32>
    %1530 = arith.sitofp %1529 : vector<1x32xi32> to vector<1x32xf32>
    %1531 = vector.broadcast %1530 : vector<1x32xf32> to vector<8x32xf32>
    %1532 = arith.mulf %1520, %1531 : vector<8x32xf32>
    %cst_493 = arith.constant dense<0.000000e+00> : vector<8x4xf32>
    %1533 = tpu.matmul %1532, %1521, %cst_493 {dimension_numbers = #tpu.dot_dimension_numbers<[1], [1], [0], [0], [0, 0, 1, 0], [], []>} : vector<8x32xf32>, vector<4x32xf32>, vector<8x4xf32> -> vector<8x4xf32>
    %cst_494 = arith.constant 0.353553385 : f32
    %1534 = vector.broadcast %cst_494 : f32 to vector<8x4xf32>
    %1535 = arith.mulf %1533, %1534 : vector<8x4xf32>
    %cst_495 = arith.constant dense<0xFF800000> : vector<8xf32>
    %1536 = vector.multi_reduction <maximumf>, %1535, %cst_495 [1] : vector<8x4xf32> to vector<8xf32>
    %1537 = vector.shape_cast %1536 : vector<8xf32> to vector<8x1xf32>
    %1538 = vector.broadcast %1537 : vector<8x1xf32> to vector<8x4xf32>
    %1539 = arith.subf %1535, %1538 : vector<8x4xf32>
    %1540 = math.exp %1539 : vector<8x4xf32>
    %cst_496 = arith.constant dense<0.000000e+00> : vector<8xf32>
    %1541 = vector.multi_reduction <add>, %1540, %cst_496 [1] : vector<8x4xf32> to vector<8xf32>
    %1542 = vector.shape_cast %1541 : vector<8xf32> to vector<8x1xf32>
    %1543 = tpu.reciprocal %1542 {approx = true} : vector<8x1xf32> -> vector<8x1xf32>
    %1544 = vector.broadcast %1543 : vector<8x1xf32> to vector<8x4xf32>
    %1545 = arith.mulf %1540, %1544 : vector<8x4xf32>
    %1546 = vector.broadcast %1530 : vector<1x32xf32> to vector<4x32xf32>
    %1547 = arith.mulf %1522, %1546 : vector<4x32xf32>
    %cst_497 = arith.constant dense<0.000000e+00> : vector<8x32xf32>
    %1548 = tpu.matmul %1545, %1547, %cst_497 {dimension_numbers = #tpu.dot_dimension_numbers<[1], [0], [0], [1], [0, 0, 1, 1], [], []>} : vector<8x4xf32>, vector<4x32xf32>, vector<8x32xf32> -> vector<8x32xf32>
    %1549 = arith.addf %1523, %1548 : vector<8x32xf32>
    %c8_i32_498 = arith.constant 8 : i32
    %1550 = vector.broadcast %c8_i32_498 : i32 to vector<1x32xi32>
    %1551 = arith.cmpi sge, %0, %1550 : vector<1x32xi32>
    %c16_i32_499 = arith.constant 16 : i32
    %1552 = vector.broadcast %c16_i32_499 : i32 to vector<1x32xi32>
    %1553 = arith.cmpi slt, %0, %1552 : vector<1x32xi32>
    %1554 = arith.andi %1551, %1553 : vector<1x32xi1>
    %1555 = arith.extui %1554 : vector<1x32xi1> to vector<1x32xi32>
    %1556 = arith.sitofp %1555 : vector<1x32xi32> to vector<1x32xf32>
    %1557 = vector.broadcast %1556 : vector<1x32xf32> to vector<8x32xf32>
    %1558 = arith.mulf %1520, %1557 : vector<8x32xf32>
    %cst_500 = arith.constant dense<0.000000e+00> : vector<8x4xf32>
    %1559 = tpu.matmul %1558, %1521, %cst_500 {dimension_numbers = #tpu.dot_dimension_numbers<[1], [1], [0], [0], [0, 0, 1, 0], [], []>} : vector<8x32xf32>, vector<4x32xf32>, vector<8x4xf32> -> vector<8x4xf32>
    %cst_501 = arith.constant 0.353553385 : f32
    %1560 = vector.broadcast %cst_501 : f32 to vector<8x4xf32>
    %1561 = arith.mulf %1559, %1560 : vector<8x4xf32>
    %cst_502 = arith.constant dense<0xFF800000> : vector<8xf32>
    %1562 = vector.multi_reduction <maximumf>, %1561, %cst_502 [1] : vector<8x4xf32> to vector<8xf32>
    %1563 = vector.shape_cast %1562 : vector<8xf32> to vector<8x1xf32>
    %1564 = vector.broadcast %1563 : vector<8x1xf32> to vector<8x4xf32>
    %1565 = arith.subf %1561, %1564 : vector<8x4xf32>
    %1566 = math.exp %1565 : vector<8x4xf32>
    %cst_503 = arith.constant dense<0.000000e+00> : vector<8xf32>
    %1567 = vector.multi_reduction <add>, %1566, %cst_503 [1] : vector<8x4xf32> to vector<8xf32>
    %1568 = vector.shape_cast %1567 : vector<8xf32> to vector<8x1xf32>
    %1569 = tpu.reciprocal %1568 {approx = true} : vector<8x1xf32> -> vector<8x1xf32>
    %1570 = vector.broadcast %1569 : vector<8x1xf32> to vector<8x4xf32>
    %1571 = arith.mulf %1566, %1570 : vector<8x4xf32>
    %1572 = vector.broadcast %1556 : vector<1x32xf32> to vector<4x32xf32>
    %1573 = arith.mulf %1522, %1572 : vector<4x32xf32>
    %cst_504 = arith.constant dense<0.000000e+00> : vector<8x32xf32>
    %1574 = tpu.matmul %1571, %1573, %cst_504 {dimension_numbers = #tpu.dot_dimension_numbers<[1], [0], [0], [1], [0, 0, 1, 1], [], []>} : vector<8x4xf32>, vector<4x32xf32>, vector<8x32xf32> -> vector<8x32xf32>
    %1575 = arith.addf %1549, %1574 : vector<8x32xf32>
    %c16_i32_505 = arith.constant 16 : i32
    %1576 = vector.broadcast %c16_i32_505 : i32 to vector<1x32xi32>
    %1577 = arith.cmpi sge, %0, %1576 : vector<1x32xi32>
    %c24_i32_506 = arith.constant 24 : i32
    %1578 = vector.broadcast %c24_i32_506 : i32 to vector<1x32xi32>
    %1579 = arith.cmpi slt, %0, %1578 : vector<1x32xi32>
    %1580 = arith.andi %1577, %1579 : vector<1x32xi1>
    %1581 = arith.extui %1580 : vector<1x32xi1> to vector<1x32xi32>
    %1582 = arith.sitofp %1581 : vector<1x32xi32> to vector<1x32xf32>
    %1583 = vector.broadcast %1582 : vector<1x32xf32> to vector<8x32xf32>
    %1584 = arith.mulf %1520, %1583 : vector<8x32xf32>
    %cst_507 = arith.constant dense<0.000000e+00> : vector<8x4xf32>
    %1585 = tpu.matmul %1584, %1521, %cst_507 {dimension_numbers = #tpu.dot_dimension_numbers<[1], [1], [0], [0], [0, 0, 1, 0], [], []>} : vector<8x32xf32>, vector<4x32xf32>, vector<8x4xf32> -> vector<8x4xf32>
    %cst_508 = arith.constant 0.353553385 : f32
    %1586 = vector.broadcast %cst_508 : f32 to vector<8x4xf32>
    %1587 = arith.mulf %1585, %1586 : vector<8x4xf32>
    %cst_509 = arith.constant dense<0xFF800000> : vector<8xf32>
    %1588 = vector.multi_reduction <maximumf>, %1587, %cst_509 [1] : vector<8x4xf32> to vector<8xf32>
    %1589 = vector.shape_cast %1588 : vector<8xf32> to vector<8x1xf32>
    %1590 = vector.broadcast %1589 : vector<8x1xf32> to vector<8x4xf32>
    %1591 = arith.subf %1587, %1590 : vector<8x4xf32>
    %1592 = math.exp %1591 : vector<8x4xf32>
    %cst_510 = arith.constant dense<0.000000e+00> : vector<8xf32>
    %1593 = vector.multi_reduction <add>, %1592, %cst_510 [1] : vector<8x4xf32> to vector<8xf32>
    %1594 = vector.shape_cast %1593 : vector<8xf32> to vector<8x1xf32>
    %1595 = tpu.reciprocal %1594 {approx = true} : vector<8x1xf32> -> vector<8x1xf32>
    %1596 = vector.broadcast %1595 : vector<8x1xf32> to vector<8x4xf32>
    %1597 = arith.mulf %1592, %1596 : vector<8x4xf32>
    %1598 = vector.broadcast %1582 : vector<1x32xf32> to vector<4x32xf32>
    %1599 = arith.mulf %1522, %1598 : vector<4x32xf32>
    %cst_511 = arith.constant dense<0.000000e+00> : vector<8x32xf32>
    %1600 = tpu.matmul %1597, %1599, %cst_511 {dimension_numbers = #tpu.dot_dimension_numbers<[1], [0], [0], [1], [0, 0, 1, 1], [], []>} : vector<8x4xf32>, vector<4x32xf32>, vector<8x32xf32> -> vector<8x32xf32>
    %1601 = arith.addf %1575, %1600 : vector<8x32xf32>
    %c24_i32_512 = arith.constant 24 : i32
    %1602 = vector.broadcast %c24_i32_512 : i32 to vector<1x32xi32>
    %1603 = arith.cmpi sge, %0, %1602 : vector<1x32xi32>
    %c32_i32_513 = arith.constant 32 : i32
    %1604 = vector.broadcast %c32_i32_513 : i32 to vector<1x32xi32>
    %1605 = arith.cmpi slt, %0, %1604 : vector<1x32xi32>
    %1606 = arith.andi %1603, %1605 : vector<1x32xi1>
    %1607 = arith.extui %1606 : vector<1x32xi1> to vector<1x32xi32>
    %1608 = arith.sitofp %1607 : vector<1x32xi32> to vector<1x32xf32>
    %1609 = vector.broadcast %1608 : vector<1x32xf32> to vector<8x32xf32>
    %1610 = arith.mulf %1520, %1609 : vector<8x32xf32>
    %cst_514 = arith.constant dense<0.000000e+00> : vector<8x4xf32>
    %1611 = tpu.matmul %1610, %1521, %cst_514 {dimension_numbers = #tpu.dot_dimension_numbers<[1], [1], [0], [0], [0, 0, 1, 0], [], []>} : vector<8x32xf32>, vector<4x32xf32>, vector<8x4xf32> -> vector<8x4xf32>
    %cst_515 = arith.constant 0.353553385 : f32
    %1612 = vector.broadcast %cst_515 : f32 to vector<8x4xf32>
    %1613 = arith.mulf %1611, %1612 : vector<8x4xf32>
    %cst_516 = arith.constant dense<0xFF800000> : vector<8xf32>
    %1614 = vector.multi_reduction <maximumf>, %1613, %cst_516 [1] : vector<8x4xf32> to vector<8xf32>
    %1615 = vector.shape_cast %1614 : vector<8xf32> to vector<8x1xf32>
    %1616 = vector.broadcast %1615 : vector<8x1xf32> to vector<8x4xf32>
    %1617 = arith.subf %1613, %1616 : vector<8x4xf32>
    %1618 = math.exp %1617 : vector<8x4xf32>
    %cst_517 = arith.constant dense<0.000000e+00> : vector<8xf32>
    %1619 = vector.multi_reduction <add>, %1618, %cst_517 [1] : vector<8x4xf32> to vector<8xf32>
    %1620 = vector.shape_cast %1619 : vector<8xf32> to vector<8x1xf32>
    %1621 = tpu.reciprocal %1620 {approx = true} : vector<8x1xf32> -> vector<8x1xf32>
    %1622 = vector.broadcast %1621 : vector<8x1xf32> to vector<8x4xf32>
    %1623 = arith.mulf %1618, %1622 : vector<8x4xf32>
    %1624 = vector.broadcast %1608 : vector<1x32xf32> to vector<4x32xf32>
    %1625 = arith.mulf %1522, %1624 : vector<4x32xf32>
    %cst_518 = arith.constant dense<0.000000e+00> : vector<8x32xf32>
    %1626 = tpu.matmul %1623, %1625, %cst_518 {dimension_numbers = #tpu.dot_dimension_numbers<[1], [0], [0], [1], [0, 0, 1, 1], [], []>} : vector<8x4xf32>, vector<4x32xf32>, vector<8x32xf32> -> vector<8x32xf32>
    %1627 = arith.addf %1601, %1626 : vector<8x32xf32>
    %1628 = tpu.concatenate %1519, %1627 in 0 : vector<8x32xf32>, vector<8x32xf32> -> vector<16x32xf32>
    %c0_519 = arith.constant 0 : index
    %c0_520 = arith.constant 0 : index
    %1629 = vector.load %arg20[%c0_519, %c0_520] : memref<32x32xf32, #tpu.memory_space<vmem>>, vector<32x32xf32>
    %cst_521 = arith.constant dense<0.000000e+00> : vector<16x32xf32>
    %1630 = tpu.matmul %1628, %1629, %cst_521 {dimension_numbers = #tpu.dot_dimension_numbers<[1], [0], [0], [1], [0, 0, 1, 1], [], []>} : vector<16x32xf32>, vector<32x32xf32>, vector<16x32xf32> -> vector<16x32xf32>
    %c0_522 = arith.constant 0 : index
    %c0_523 = arith.constant 0 : index
    %1631 = vector.load %arg18[%c0_522, %c0_523] : memref<1x32xf32, #tpu.memory_space<vmem>>, vector<1x32xf32>
    %1632 = vector.broadcast %1631 : vector<1x32xf32> to vector<16x32xf32>
    %1633 = arith.addf %1630, %1632 : vector<16x32xf32>
    %1634 = arith.addf %1397, %1633 : vector<16x32xf32>
    %cst_524 = arith.constant dense<0.000000e+00> : vector<16xf32>
    %1635 = vector.multi_reduction <add>, %1634, %cst_524 [1] : vector<16x32xf32> to vector<16xf32>
    %1636 = vector.shape_cast %1635 : vector<16xf32> to vector<16x1xf32>
    %cst_525 = arith.constant 3.200000e+01 : f32
    %1637 = vector.broadcast %cst_525 : f32 to vector<16x1xf32>
    %1638 = arith.divf %1636, %1637 : vector<16x1xf32>
    %1639 = vector.broadcast %1638 : vector<16x1xf32> to vector<16x32xf32>
    %1640 = arith.subf %1634, %1639 : vector<16x32xf32>
    %1641 = arith.mulf %1640, %1640 : vector<16x32xf32>
    %cst_526 = arith.constant dense<0.000000e+00> : vector<16xf32>
    %1642 = vector.multi_reduction <add>, %1641, %cst_526 [1] : vector<16x32xf32> to vector<16xf32>
    %1643 = vector.shape_cast %1642 : vector<16xf32> to vector<16x1xf32>
    %cst_527 = arith.constant 3.200000e+01 : f32
    %1644 = vector.broadcast %cst_527 : f32 to vector<16x1xf32>
    %1645 = arith.divf %1643, %1644 : vector<16x1xf32>
    %cst_528 = arith.constant 9.99999974E-6 : f32
    %1646 = vector.broadcast %cst_528 : f32 to vector<16x1xf32>
    %1647 = arith.addf %1645, %1646 : vector<16x1xf32>
    %1648 = math.rsqrt %1647 : vector<16x1xf32>
    %1649 = vector.broadcast %1648 : vector<16x1xf32> to vector<16x32xf32>
    %1650 = arith.mulf %1640, %1649 : vector<16x32xf32>
    %c0_529 = arith.constant 0 : index
    %c0_530 = arith.constant 0 : index
    %1651 = vector.load %arg29[%c0_529, %c0_530] : memref<1x32xf32, #tpu.memory_space<vmem>>, vector<1x32xf32>
    %1652 = vector.broadcast %1651 : vector<1x32xf32> to vector<16x32xf32>
    %1653 = arith.mulf %1650, %1652 : vector<16x32xf32>
    %c0_531 = arith.constant 0 : index
    %c0_532 = arith.constant 0 : index
    %1654 = vector.load %arg28[%c0_531, %c0_532] : memref<1x32xf32, #tpu.memory_space<vmem>>, vector<1x32xf32>
    %1655 = vector.broadcast %1654 : vector<1x32xf32> to vector<16x32xf32>
    %1656 = arith.addf %1653, %1655 : vector<16x32xf32>
    %c0_533 = arith.constant 0 : index
    %c0_534 = arith.constant 0 : index
    %1657 = vector.load %arg23[%c0_533, %c0_534] : memref<32x128xf32, #tpu.memory_space<vmem>>, vector<32x128xf32>
    %cst_535 = arith.constant dense<0.000000e+00> : vector<16x128xf32>
    %1658 = tpu.matmul %1656, %1657, %cst_535 {dimension_numbers = #tpu.dot_dimension_numbers<[1], [0], [0], [1], [0, 0, 1, 1], [], []>} : vector<16x32xf32>, vector<32x128xf32>, vector<16x128xf32> -> vector<16x128xf32>
    %c0_536 = arith.constant 0 : index
    %c0_537 = arith.constant 0 : index
    %1659 = vector.load %arg22[%c0_536, %c0_537] : memref<1x128xf32, #tpu.memory_space<vmem>>, vector<1x128xf32>
    %1660 = vector.broadcast %1659 : vector<1x128xf32> to vector<16x128xf32>
    %1661 = arith.addf %1658, %1660 : vector<16x128xf32>
    %cst_538 = arith.constant 0.000000e+00 : f32
    %1662 = vector.broadcast %cst_538 : f32 to vector<16x128xf32>
    %1663 = arith.maximumf %1661, %1662 : vector<16x128xf32>
    %c0_539 = arith.constant 0 : index
    %c0_540 = arith.constant 0 : index
    %1664 = vector.load %arg25[%c0_539, %c0_540] : memref<128x32xf32, #tpu.memory_space<vmem>>, vector<128x32xf32>
    %cst_541 = arith.constant dense<0.000000e+00> : vector<16x32xf32>
    %1665 = tpu.matmul %1663, %1664, %cst_541 {dimension_numbers = #tpu.dot_dimension_numbers<[1], [0], [0], [1], [0, 0, 1, 1], [], []>} : vector<16x128xf32>, vector<128x32xf32>, vector<16x32xf32> -> vector<16x32xf32>
    %c0_542 = arith.constant 0 : index
    %c0_543 = arith.constant 0 : index
    %1666 = vector.load %arg24[%c0_542, %c0_543] : memref<1x32xf32, #tpu.memory_space<vmem>>, vector<1x32xf32>
    %1667 = vector.broadcast %1666 : vector<1x32xf32> to vector<16x32xf32>
    %1668 = arith.addf %1665, %1667 : vector<16x32xf32>
    %1669 = arith.addf %1656, %1668 : vector<16x32xf32>
    %cst_544 = arith.constant dense<0.000000e+00> : vector<16xf32>
    %1670 = vector.multi_reduction <add>, %1669, %cst_544 [1] : vector<16x32xf32> to vector<16xf32>
    %1671 = vector.shape_cast %1670 : vector<16xf32> to vector<16x1xf32>
    %cst_545 = arith.constant 3.200000e+01 : f32
    %1672 = vector.broadcast %cst_545 : f32 to vector<16x1xf32>
    %1673 = arith.divf %1671, %1672 : vector<16x1xf32>
    %1674 = vector.broadcast %1673 : vector<16x1xf32> to vector<16x32xf32>
    %1675 = arith.subf %1669, %1674 : vector<16x32xf32>
    %1676 = arith.mulf %1675, %1675 : vector<16x32xf32>
    %cst_546 = arith.constant dense<0.000000e+00> : vector<16xf32>
    %1677 = vector.multi_reduction <add>, %1676, %cst_546 [1] : vector<16x32xf32> to vector<16xf32>
    %1678 = vector.shape_cast %1677 : vector<16xf32> to vector<16x1xf32>
    %cst_547 = arith.constant 3.200000e+01 : f32
    %1679 = vector.broadcast %cst_547 : f32 to vector<16x1xf32>
    %1680 = arith.divf %1678, %1679 : vector<16x1xf32>
    %cst_548 = arith.constant 9.99999974E-6 : f32
    %1681 = vector.broadcast %cst_548 : f32 to vector<16x1xf32>
    %1682 = arith.addf %1680, %1681 : vector<16x1xf32>
    %1683 = math.rsqrt %1682 : vector<16x1xf32>
    %1684 = vector.broadcast %1683 : vector<16x1xf32> to vector<16x32xf32>
    %1685 = arith.mulf %1675, %1684 : vector<16x32xf32>
    %c0_549 = arith.constant 0 : index
    %c0_550 = arith.constant 0 : index
    %1686 = vector.load %arg31[%c0_549, %c0_550] : memref<1x32xf32, #tpu.memory_space<vmem>>, vector<1x32xf32>
    %1687 = vector.broadcast %1686 : vector<1x32xf32> to vector<16x32xf32>
    %1688 = arith.mulf %1685, %1687 : vector<16x32xf32>
    %c0_551 = arith.constant 0 : index
    %c0_552 = arith.constant 0 : index
    %1689 = vector.load %arg30[%c0_551, %c0_552] : memref<1x32xf32, #tpu.memory_space<vmem>>, vector<1x32xf32>
    %1690 = vector.broadcast %1689 : vector<1x32xf32> to vector<16x32xf32>
    %1691 = arith.addf %1688, %1690 : vector<16x32xf32>
    %c0_553 = arith.constant 0 : index
    %c0_554 = arith.constant 0 : index
    %1692 = vector.load %arg64[%c0_553, %c0_554] : memref<32x31xf32, #tpu.memory_space<vmem>>, vector<32x31xf32>
    %cst_555 = arith.constant dense<0.000000e+00> : vector<16x31xf32>
    %1693 = tpu.matmul %1691, %1692, %cst_555 {dimension_numbers = #tpu.dot_dimension_numbers<[1], [0], [0], [1], [0, 0, 1, 1], [], []>} : vector<16x32xf32>, vector<32x31xf32>, vector<16x31xf32> -> vector<16x31xf32>
    %c0_556 = arith.constant 0 : index
    %c0_557 = arith.constant 0 : index
    %1694 = vector.load %arg63[%c0_556, %c0_557] : memref<1x31xf32, #tpu.memory_space<vmem>>, vector<1x31xf32>
    %1695 = vector.broadcast %1694 : vector<1x31xf32> to vector<16x31xf32>
    %1696 = arith.addf %1693, %1695 : vector<16x31xf32>
    %c0_558 = arith.constant 0 : index
    %c0_559 = arith.constant 0 : index
    %1697 = vector.load %arg69[%c0_558, %c0_559] : memref<16x31xf32, #tpu.memory_space<vmem>>, vector<16x31xf32>
    tpu.vector_store %arg69[%c0_558, %c0_559], %1696 {strides = array<i32>} : memref<16x31xf32, #tpu.memory_space<vmem>>, vector<16x31xf32>,
    return
  }
}

</mosaic_0001>

<bundles_post_ra>
// kernel: music_notation_transformer_forward.1
= control target key start
LH: loop header
LB: loop body
LE: loop exit
PB: predicated region body
PF: predicated region fallthrough
CT: control target
= control target key end

     0   :  { %s14240_s6 = smov 1   ;;  %s14241_s10 = smov 2   ;;  %s16223_s0 = inlined_call_operand.smem [shape: u32[70], index: -1, kind: input, shape index: {}] }
   0x1   :  { %s14352_s5 = sld [smem:[%s16223_s0]]   ;;  %s14242_s14 = smov 3  }
   0x2   :  { %s14357_s9 = sld [smem:[%s16223_s0 + %s14240_s6]]   ;;  %s14243_s18 = smov 4  }
   0x3   :  { %s14362_s13 = sld [smem:[%s16223_s0 + %s14241_s10]]   ;;  %s14244_s22 = smov 5  }
   0x4   :  { %s14367_s17 = sld [smem:[%s16223_s0 + %s14242_s14]]   ;;  %s14245_s26 = smov 6  }
   0x5   :  { %s14372_s21 = sld [smem:[%s16223_s0 + %s14243_s18]]   ;;  %s14246_s30 = smov 7  }
   0x6   :  { %s14377_s25 = sld [smem:[%s16223_s0 + %s14244_s22]]   ;;  %s14247_s4 = smov 8  }
   0x7   :  { %16261 = sst [smem:[#allocation60_spill]] %s14352_s5  ;;  %s14248_s10 = smov 9  }
   0x8   :  { %16262 = sst [smem:[#allocation61_spill]] %s14357_s9  ;;  %s14249_s15 = smov 10  }
   0x9   :  { %16263 = sst [smem:[#allocation62_spill]] %s14362_s13  ;;  %s14250_s20 = smov 11  }
   0xa   :  { %16264 = sst [smem:[#allocation63_spill]] %s14367_s17  ;;  %s14252_s1 = smov 13  }
   0xb   :  { %16265 = sst [smem:[#allocation64_spill]] %s14372_s21  ;;  %s14253_s7 = smov 14  }
   0xc   :  { %16266 = sst [smem:[#allocation65_spill]] %s14377_s25  ;;  %s14255_s22 = smov 16  }
   0xd   :  { %s14382_s29 = sld [smem:[%s16223_s0 + %s14245_s26]]   ;;  %s14251_s26 = smov 12  }
   0xe   :  { %s14387_s3 = sld [smem:[%s16223_s0 + %s14246_s30]]   ;;  %s14256_s28 = smov 17  }
   0xf   :  { %s14392_s8 = sld [smem:[%s16223_s0 + %s14247_s4]]  }
  0x10   :  { %s14397_s14 = sld [smem:[%s16223_s0 + %s14248_s10]]  }
  0x11   :  { %s14402_s19 = sld [smem:[%s16223_s0 + %s14249_s15]]   ;;  %s14254_s15 = smov 15  }
  0x12   :  { %s14407_s24 = sld [smem:[%s16223_s0 + %s14250_s20]]  }
  0x13   :  { %16267 = sst [smem:[#allocation66_spill]] %s14382_s29 }
  0x14   :  { %16268 = sst [smem:[#allocation67_spill]] %s14387_s3 }
  0x15   :  { %16269 = sst [smem:[#allocation68_spill]] %s14392_s8 }
  0x16   :  { %16270 = sst [smem:[#allocation69_spill]] %s14397_s14 }
  0x17   :  { %16271 = sst [smem:[#allocation70_spill]] %s14402_s19 }
  0x18   :  { %16272 = sst [smem:[#allocation71_spill]] %s14407_s24 }
  0x19   :  { %s14412_s30 = sld [smem:[%s16223_s0 + %s14251_s26]]  }
  0x1a   :  { %s14417_s6 = sld [smem:[%s16223_s0 + %s14252_s1]]  }
  0x1b   :  { %s14422_s12 = sld [smem:[%s16223_s0 + %s14253_s7]]   ;;  %s14257_s7 = smov 18  }
  0x1c   :  { %s14427_s20 = sld [smem:[%s16223_s0 + %s14254_s15]]   ;;  %s14258_s15 = smov 19  }
  0x1d   :  { %s14432_s27 = sld [smem:[%s16223_s0 + %s14255_s22]]   ;;  %s14259_s22 = smov 20  }
  0x1e   :  { %s14437_s4 = sld [smem:[%s16223_s0 + %s14256_s28]]   ;;  %s14260_s28 = smov 21  }
  0x1f   :  { %16273 = sst [smem:[#allocation72_spill]] %s14412_s30 }
  0x20   :  { %16274 = sst [smem:[#allocation73_spill]] %s14417_s6 }
  0x21   :  { %16275 = sst [smem:[#allocation74_spill]] %s14422_s12 }
  0x22   :  { %16276 = sst [smem:[#allocation75_spill]] %s14427_s20 }
  0x23   :  { %16277 = sst [smem:[#allocation76_spill]] %s14432_s27 }
  0x24   :  { %16278 = sst [smem:[#allocation77_spill]] %s14437_s4 }
  0x25   :  { %s14442_s30 = sld [smem:[%s16223_s0 + %s14257_s7]]   ;;  %s14261_s7 = smov 22  }
  0x26   :  { %s14447_s6 = sld [smem:[%s16223_s0 + %s14258_s15]]   ;;  %s14262_s15 = smov 23  }
  0x27   :  { %s14452_s29 = sld [smem:[%s16223_s0 + %s14259_s22]]   ;;  %s14263_s22 = smov 24  }
  0x28   :  { %s14457_s21 = sld [smem:[%s16223_s0 + %s14260_s28]]   ;;  %s14264_s28 = smov 25  }
  0x2b   :  { %16279 = sst [smem:[#allocation78_spill]] %s14442_s30 }
  0x2c   :  { %16280 = sst [smem:[#allocation79_spill]] %s14447_s6 }
  0x2d   :  { %16281 = sst [smem:[#allocation80_spill]] %s14452_s29 }
  0x2e   :  { %16282 = sst [smem:[#allocation81_spill]] %s14457_s21 }
  0x2f   :  { %s14462_s30 = sld [smem:[%s16223_s0 + %s14261_s7]]   ;;  %s14265_s7 = smov 26  }
  0x30   :  { %s14467_s6 = sld [smem:[%s16223_s0 + %s14262_s15]]   ;;  %s14266_s15 = smov 27  }
  0x31   :  { %s14472_s29 = sld [smem:[%s16223_s0 + %s14263_s22]]   ;;  %s14267_s22 = smov 28  }
  0x32   :  { %s14477_s21 = sld [smem:[%s16223_s0 + %s14264_s28]]   ;;  %s14268_s28 = smov 29  }
  0x33   :  { %s14482_s19 = sld [smem:[%s16223_s0 + %s14265_s7]]   ;;  %s14269_s7 = smov 30  }
  0x34   :  { %s14492_s24 = sld [smem:[%s16223_s0 + %s14267_s22]]   ;;  %s14271_s22 = smov 32  }
  0x35   :  { %s14502_s3 = sld [smem:[%s16223_s0 + %s14269_s7]]   ;;  %s14273_s7 = smov 34  }
  0x36   :  { %16283 = sst [smem:[#allocation82_spill]] %s14467_s6 }
  0x37   :  { %s14487_s6 = sld [smem:[%s16223_s0 + %s14266_s15]]   ;;  %s14270_s15 = smov 31  }
  0x38   :  { %16284 = sst [smem:[#allocation83_spill]] %s14477_s21 }
  0x39   :  { %16285 = sst [smem:[#allocation84_spill]] %s14482_s19 }
  0x3a   :  { %16286 = sst [smem:[#allocation85_spill]] %s14492_s24 }
  0x3b   :  { %s14497_s21 = sld [smem:[%s16223_s0 + %s14268_s28]]   ;;  %s14272_s28 = smov 33  }
  0x3c   :  { %16287 = sst [smem:[#allocation86_spill]] %s14502_s3 }
  0x3d   :  { %s14507_s25 = sld [smem:[%s16223_s0 + %s14270_s15]]   ;;  %s14274_s15 = smov 35  }
  0x3e   :  { %s14512_s5 = sld [smem:[%s16223_s0 + %s14271_s22]]   ;;  %s14275_s22 = smov 36  }
  0x3f   :  { %s14517_s13 = sld [smem:[%s16223_s0 + %s14272_s28]]   ;;  %s14276_s28 = smov 37  }
  0x40   :  { %s14522_s8 = sld [smem:[%s16223_s0 + %s14273_s7]]   ;;  %s14277_s7 = smov 38  }
  0x41   :  { %s14527_s14 = sld [smem:[%s16223_s0 + %s14274_s15]]   ;;  %s14278_s15 = smov 39  }
  0x42   :  { %s14532_s9 = sld [smem:[%s16223_s0 + %s14275_s22]]   ;;  %s14279_s22 = smov 40  }
  0x43   :  { %s14537_s17 = sld [smem:[%s16223_s0 + %s14276_s28]]   ;;  %s14280_s28 = smov 41  }
  0x44   :  { %16288 = sst [smem:[#allocation87_spill]] %s14512_s5 }
  0x45   :  { %s14552_s12 = sld [smem:[%s16223_s0 + %s14279_s22]]   ;;  %s14283_s22 = smov 44  }
  0x46   :  { %16289 = sst [smem:[#allocation88_spill]] %s14522_s8 }
  0x47   :  { %16290 = sst [smem:[#allocation89_spill]] %s14527_s14 }
  0x48   :  { %16291 = sst [smem:[#allocation90_spill]] %s14532_s9 }
  0x49   :  { %s14542_s8 = sld [smem:[%s16223_s0 + %s14277_s7]]   ;;  %s14281_s7 = smov 42  }
  0x4a   :  { %s14547_s14 = sld [smem:[%s16223_s0 + %s14278_s15]]   ;;  %s14282_s15 = smov 43  }
  0x4b   :  { %16294 = sst [smem:[#allocation93_spill]] %s14552_s12 }
  0x4c   :  { %s14557_s27 = sld [smem:[%s16223_s0 + %s14280_s28]]   ;;  %s14284_s28 = smov 45  }
  0x4d   :  { %s14562_s20 = sld [smem:[%s16223_s0 + %s14281_s7]]   ;;  %s14285_s7 = smov 46  }
  0x4e   :  { %s14567_s4 = sld [smem:[%s16223_s0 + %s14282_s15]]   ;;  %s14286_s15 = smov 47  }
  0x4f   :  { %16292 = sst [smem:[#allocation91_spill]] %s14542_s8 }
  0x50   :  { %16293 = sst [smem:[#allocation92_spill]] %s14547_s14 }
  0x51   :  { %s14572_s8 = sld [smem:[%s16223_s0 + %s14283_s22]]   ;;  %s14287_s22 = smov 48  }
  0x52   :  { %16295 = sst [smem:[#allocation94_spill]] %s14557_s27 }
  0x53   :  { %s14577_s27 = sld [smem:[%s16223_s0 + %s14284_s28]]   ;;  %s14288_s28 = smov 49  }
  0x54   :  { %16296 = sst [smem:[#allocation95_spill]] %s14567_s4 }
  0x55   :  { %s14582_s14 = sld [smem:[%s16223_s0 + %s14285_s7]]   ;;  %s14289_s7 = smov 50  }
  0x56   :  { %s14587_s4 = sld [smem:[%s16223_s0 + %s14286_s15]]   ;;  %s14290_s15 = smov 51  }
  0x57   :  { %16297 = sst [smem:[#allocation96_spill]] %s14572_s8 }
  0x58   :  { %s14592_s8 = sld [smem:[%s16223_s0 + %s14287_s22]]   ;;  %s14291_s22 = smov 52  }
  0x59   :  { %s14597_s12 = sld [smem:[%s16223_s0 + %s14288_s28]]   ;;  %s14292_s28 = smov 53  }
  0x5a   :  { %s14607_s9 = sld [smem:[%s16223_s0 + %s14290_s15]]   ;;  %s14294_s15 = smov 55  }
  0x5b   :  { %16298 = sst [smem:[#allocation97_spill]] %s14582_s14 }
  0x5c   :  { %s14602_s14 = sld [smem:[%s16223_s0 + %s14289_s7]]   ;;  %s14293_s7 = smov 54  }
  0x5d   :  { %s14617_s5 = sld [smem:[%s16223_s0 + %s14292_s28]]   ;;  %s14296_s28 = smov 57  }
  0x5e   :  { %16299 = sst [smem:[#allocation98_spill]] %s14592_s8 }
  0x5f   :  { %s14612_s8 = sld [smem:[%s16223_s0 + %s14291_s22]]   ;;  %s14295_s22 = smov 56  }
  0x60   :  { %16301 = sst [smem:[#allocation100_spill]] %s14607_s9 }
  0x61   :  { %s14627_s9 = sld [smem:[%s16223_s0 + %s14294_s15]]   ;;  %s14298_s15 = smov 59  }
  0x62   :  { %16300 = sst [smem:[#allocation99_spill]] %s14602_s14 }
  0x63   :  { %16303 = sst [smem:[#allocation102_spill]] %s14617_s5 }
  0x64   :  { %s14622_s14 = sld [smem:[%s16223_s0 + %s14293_s7]]   ;;  %s14297_s7 = smov 58  }
  0x65   :  { %16302 = sst [smem:[#allocation101_spill]] %s14612_s8 }
  0x66   :  { %s14632_s8 = sld [smem:[%s16223_s0 + %s14295_s22]]   ;;  %s14299_s22 = smov 60  }
  0x67   :  { %16304 = sst [smem:[#allocation103_spill]] %s14627_s9 }
  0x68   :  { %s14637_s5 = sld [smem:[%s16223_s0 + %s14296_s28]]   ;;  %s14300_s28 = smov 61  }
  0x69   :  { %s14642_s3 = sld [smem:[%s16223_s0 + %s14297_s7]]   ;;  %s14301_s7 = smov 62  }
  0x6a   :  { %s14647_s9 = sld [smem:[%s16223_s0 + %s14298_s15]]   ;;  %s14302_s15 = smov 63  }
  0x6b   :  { %s14657_s24 = sld [smem:[%s16223_s0 + %s14300_s28]]   ;;  %s14304_s28 = smov 65  }
  0x6c   :  { %16305 = sst [smem:[#allocation104_spill]] %s14632_s8 }
  0x6d   :  { %s14652_s8 = sld [smem:[%s16223_s0 + %s14299_s22]]   ;;  %s14303_s22 = smov 64  }
  0x6e   :  { %s14667_s19 = sld [smem:[%s16223_s0 + %s14302_s15]]   ;;  %s14306_s15 = smov 67  }
  0x6f   :  { %16306 = sst [smem:[#allocation105_spill]] %s14642_s3 }
  0x70   :  { %s14662_s3 = sld [smem:[%s16223_s0 + %s14301_s7]]   ;;  %s14305_s7 = smov 66  }
  0x71   :  { %16308 = sst [smem:[#allocation107_spill]] %s14657_s24 }
  0x72   :  { %s14677_s24 = sld [smem:[%s16223_s0 + %s14304_s28]]   ;;  %s14308_s28 = smov 69  }
  0x73   :  { %16307 = sst [smem:[#allocation106_spill]] %s14652_s8 }
  0x74   :  { %16310 = sst [smem:[#allocation109_spill]] %s14667_s19 }
  0x75   :  { %s14672_s8 = sld [smem:[%s16223_s0 + %s14303_s22]]   ;;  %s14307_s22 = smov 68  }
  0x76   :  { %16309 = sst [smem:[#allocation108_spill]] %s14662_s3 }
  0x77   :  { %s14682_s3 = sld [smem:[%s16223_s0 + %s14305_s7]]  }
  0x78   :  { %16312 = sst [smem:[#allocation111_spill]] %s14677_s24 }
  0x79   :  { %s14687_s19 = sld [smem:[%s16223_s0 + %s14306_s15]]  }
  0x7a   :  { %s14697_s24 = sld [smem:[%s16223_s0 + %s14308_s28]]  }
  0x7b   :  { %16311 = sst [smem:[#allocation110_spill]] %s14672_s8 }
  0x7c   :  { %s14692_s8 = sld [smem:[%s16223_s0 + %s14307_s22]]  }
  0x7d   :  { %144 = vsyncpa [#allocation3], 0 }
  0x7e   :  { %145 = vsyncpa [#allocation5], 0 }
  0x7f   :  { %146 = vsyncpa [#allocation8], 0 }
  0x80   :  { %147 = vsyncpa [#allocation11], 0 }
  0x81   :  { %148 = vsyncpa [#allocation14], 0 }
  0x82   :  { %149 = vsyncpa [#allocation17], 0 }
  0x83   :  { %150 = vsyncpa [#allocation20], 0 }
  0x84   :  { %151 = vsyncpa [#allocation23], 0 }
  0x85   :  { %152 = vsyncpa [#allocation26], 0 }
  0x86   :  { %153 = vsyncpa [#allocation29], 0 }
  0x87   :  { %154 = vsyncpa [#allocation32], 0 }
  0x88   :  { %155 = vsyncpa [#allocation35], 0 }
  0x89   :  { %156 = vsyncpa [#allocation38], 0 }
  0x8a   :  { %157 = vsyncpa [#allocation41], 0 }
  0x8b   :  { %158 = vsyncpa [#allocation44], 0  ;;  %s14309_s0 = smov [#allocation4]   ;;  %s14310_s10 = smov [#allocation7]  }
  0x8c   :  { %s221_s7 = sshll.u32 %s14309_s0, 4  ;;  %s243_s11 = sshll.u32 %s14310_s10, 4  ;;  %s222_s7 = int_to_ptr.vmem [resolvable:$true] %s221_s7  ;;  %s244_s11 = int_to_ptr.vmem [resolvable:$true] %s243_s11 }
  0x8d   :  { %s13594_s15 = scalar_lea.hbm %s14472_s29, 16 }
  0x8e   :  { %p13595_p0 = scmp.ne.s32.totalorder %s14472_s29, %s13594_s15  ;;  %p13598_p1 = scmp.lt.u32.totalorder %s13594_s15, %s14472_s29 }
  0x90   :  { %p13600_p2 = pnand %p13598_p1, %p13595_p0 }
  0x92   :  { %13603 = shalt.err (!%p13600_p2)
}
  0x93   :  { %s13604_s16 = scalar_lea.vmem %s222_s7, 16  ;;  %s13608_s18 = scalar_lea.vmem %s222_s7, 32 }
  0x94   :  { %p13605_p3 = scmp.ne.s32.totalorder %s222_s7, %s13604_s16  ;;  %p13609_p4 = scmp.lt.s32.totalorder %s222_s7, %s222_s7 }
  0x95   :  { %p13610_p5 = scmp.lt.s32.totalorder %s13608_s18, %s13604_s16 }
  0x97   :  { %p13611_p6 = por %p13610_p5, %p13609_p4 }
  0x99   :  { %p13612_p7 = pnand %p13611_p6, %p13605_p3 }
  0x9b   :  { %13615 = shalt.err (!%p13612_p7)
}
  0x9c   :  { %224 = dma.hbm_to_vmem [thread:$0]  %s14472_s29, 16, %s222_s7, [#allocation5]  }
  0x9d   :  { %s13616_s22 = scalar_lea.hbm %s14487_s6, 16 }
  0x9e   :  { %p13617_p8 = scmp.ne.s32.totalorder %s14487_s6, %s13616_s22  ;;  %p13620_p9 = scmp.lt.u32.totalorder %s13616_s22, %s14487_s6 }
  0xa0   :  { %p13622_p10 = pnand %p13620_p9, %p13617_p8 }
  0xa2   :  { %13625 = shalt.err (!%p13622_p10)
}
  0xa3   :  { %s13626_s23 = scalar_lea.vmem %s244_s11, 16  ;;  %s13630_s26 = scalar_lea.vmem %s244_s11, 32 }
  0xa4   :  { %p13627_p11 = scmp.ne.s32.totalorder %s244_s11, %s13626_s23  ;;  %p13631_p12 = scmp.lt.s32.totalorder %s244_s11, %s244_s11 }
  0xa5   :  { %p13632_p13 = scmp.lt.s32.totalorder %s13630_s26, %s13626_s23 }
  0xa7   :  { %p13633_p0 = por %p13632_p13, %p13631_p12 }
  0xa9   :  { %p13634_p1 = pnand %p13633_p0, %p13627_p11 }
  0xab   :  { %13637 = shalt.err (!%p13634_p1)
}
  0xac   :  { %246 = dma.hbm_to_vmem [thread:$0]  %s14487_s6, 16, %s244_s11, [#allocation8]  }
  0xad   :  { %s14311_s28 = smov [#allocation10]   ;;  %s14312_s1 = smov [#allocation13]  }
  0xae   :  { %s263_s29 = sshll.u32 %s14311_s28, 4  ;;  %s283_s2 = sshll.u32 %s14312_s1, 4  ;;  %s264_s29 = int_to_ptr.vmem [resolvable:$true] %s263_s29  ;;  %s284_s2 = int_to_ptr.vmem [resolvable:$true] %s283_s2 }
  0xaf   :  { %s13638_s0 = scalar_lea.hbm %s14497_s21, 16 }
  0xb0   :  { %p13639_p2 = scmp.ne.s32.totalorder %s14497_s21, %s13638_s0  ;;  %p13642_p3 = scmp.lt.u32.totalorder %s13638_s0, %s14497_s21 }
  0xb2   :  { %p13644_p4 = pnand %p13642_p3, %p13639_p2 }
  0xb4   :  { %13647 = shalt.err (!%p13644_p4)
}
  0xb5   :  { %s13648_s7 = scalar_lea.vmem %s264_s29, 16  ;;  %s13652_s10 = scalar_lea.vmem %s264_s29, 32 }
  0xb6   :  { %p13649_p5 = scmp.ne.s32.totalorder %s264_s29, %s13648_s7  ;;  %p13653_p6 = scmp.lt.s32.totalorder %s264_s29, %s264_s29 }
  0xb7   :  { %p13654_p7 = scmp.lt.s32.totalorder %s13652_s10, %s13648_s7 }
  0xb9   :  { %p13655_p8 = por %p13654_p7, %p13653_p6 }
  0xbb   :  { %p13656_p9 = pnand %p13655_p8, %p13649_p5 }
  0xbd   :  { %13659 = shalt.err (!%p13656_p9)
}
  0xbe   :  { %266 = dma.hbm_to_vmem [thread:$0]  %s14497_s21, 16, %s264_s29, [#allocation11]  }
  0xbf   :  { %s13660_s6 = scalar_lea.hbm %s14507_s25, 16 }
  0xc0   :  { %p13661_p10 = scmp.ne.s32.totalorder %s14507_s25, %s13660_s6  ;;  %p13664_p11 = scmp.lt.u32.totalorder %s13660_s6, %s14507_s25 }
  0xc2   :  { %p13666_p12 = pnand %p13664_p11, %p13661_p10 }
  0xc4   :  { %13669 = shalt.err (!%p13666_p12)
}
  0xc5   :  { %s13670_s11 = scalar_lea.vmem %s284_s2, 16  ;;  %s13674_s15 = scalar_lea.vmem %s284_s2, 32 }
  0xc6   :  { %p13671_p13 = scmp.ne.s32.totalorder %s284_s2, %s13670_s11  ;;  %p13675_p0 = scmp.lt.s32.totalorder %s284_s2, %s284_s2 }
  0xc7   :  { %p13676_p1 = scmp.lt.s32.totalorder %s13674_s15, %s13670_s11 }
  0xc9   :  { %p13677_p2 = por %p13676_p1, %p13675_p0 }
  0xcb   :  { %p13678_p3 = pnand %p13677_p2, %p13671_p13 }
  0xcd   :  { %13681 = shalt.err (!%p13678_p3)
}
  0xce   :  { %286 = dma.hbm_to_vmem [thread:$0]  %s14507_s25, 16, %s284_s2, [#allocation14]  }
  0xcf   :  { %s14313_s16 = smov [#allocation16]   ;;  %s14314_s18 = smov [#allocation19]  }
  0xd0   :  { %s303_s21 = sshll.u32 %s14313_s16, 4  ;;  %s327_s22 = sshll.u32 %s14314_s18, 4  ;;  %s304_s21 = int_to_ptr.vmem [resolvable:$true] %s303_s21  ;;  %s328_s22 = int_to_ptr.vmem [resolvable:$true] %s327_s22 }
  0xd1   :  { %s13682_s23 = scalar_lea.hbm %s14517_s13, 16 }
  0xd2   :  { %p13683_p4 = scmp.ne.s32.totalorder %s14517_s13, %s13682_s23  ;;  %p13686_p5 = scmp.lt.u32.totalorder %s13682_s23, %s14517_s13 }
  0xd4   :  { %p13688_p6 = pnand %p13686_p5, %p13683_p4 }
  0xd6   :  { %13691 = shalt.err (!%p13688_p6)
}
  0xd7   :  { %s13692_s26 = scalar_lea.vmem %s304_s21, 16  ;;  %s13696_s28 = scalar_lea.vmem %s304_s21, 32 }
  0xd8   :  { %p13693_p7 = scmp.ne.s32.totalorder %s304_s21, %s13692_s26  ;;  %p13697_p8 = scmp.lt.s32.totalorder %s304_s21, %s304_s21 }
  0xd9   :  { %p13698_p9 = scmp.lt.s32.totalorder %s13696_s28, %s13692_s26 }
  0xdb   :  { %p13699_p10 = por %p13698_p9, %p13697_p8 }
  0xdd   :  { %p13700_p11 = pnand %p13699_p10, %p13693_p7 }
  0xdf   :  { %13703 = shalt.err (!%p13700_p11)
}
  0xe0   :  { %306 = dma.hbm_to_vmem [thread:$0]  %s14517_s13, 16, %s304_s21, [#allocation17]  }
  0xe1   :  { %s13704_s25 = scalar_lea.hbm %s14537_s17, 16 }
  0xe2   :  { %p13705_p12 = scmp.ne.s32.totalorder %s14537_s17, %s13704_s25  ;;  %p13708_p13 = scmp.lt.u32.totalorder %s13704_s25, %s14537_s17 }
  0xe4   :  { %p13710_p0 = pnand %p13708_p13, %p13705_p12 }
  0xe6   :  { %13713 = shalt.err (!%p13710_p0)
}
  0xe7   :  { %s13714_s29 = scalar_lea.vmem %s328_s22, 16  ;;  %s13718_s1 = scalar_lea.vmem %s328_s22, 32 }
  0xe8   :  { %p13715_p1 = scmp.ne.s32.totalorder %s328_s22, %s13714_s29  ;;  %p13719_p2 = scmp.lt.s32.totalorder %s328_s22, %s328_s22 }
  0xe9   :  { %p13720_p3 = scmp.lt.s32.totalorder %s13718_s1, %s13714_s29 }
  0xeb   :  { %p13721_p4 = por %p13720_p3, %p13719_p2 }
  0xed   :  { %p13722_p5 = pnand %p13721_p4, %p13715_p1 }
  0xef   :  { %13725 = shalt.err (!%p13722_p5)
}
  0xf0   :  { %330 = dma.hbm_to_vmem [thread:$0]  %s14537_s17, 16, %s328_s22, [#allocation20]  }
  0xf1   :  { %s14315_s2 = smov [#allocation22]   ;;  %s14316_s0 = smov [#allocation25]  }
  0xf2   :  { %s353_s13 = sshll.u32 %s14315_s2, 4  ;;  %s375_s7 = sshll.u32 %s14316_s0, 4  ;;  %s354_s13 = int_to_ptr.vmem [resolvable:$true] %s353_s13  ;;  %s376_s7 = int_to_ptr.vmem [resolvable:$true] %s375_s7 }
  0xf3   :  { %s13726_s10 = scalar_lea.hbm %s14562_s20, 16 }
  0xf4   :  { %p13727_p6 = scmp.ne.s32.totalorder %s14562_s20, %s13726_s10  ;;  %p13730_p7 = scmp.lt.u32.totalorder %s13726_s10, %s14562_s20 }
  0xf6   :  { %p13732_p8 = pnand %p13730_p7, %p13727_p6 }
  0xf8   :  { %13735 = shalt.err (!%p13732_p8)
}
  0xf9   :  { %s13736_s6 = scalar_lea.vmem %s354_s13, 16  ;;  %s13740_s11 = scalar_lea.vmem %s354_s13, 32 }
  0xfa   :  { %p13737_p9 = scmp.ne.s32.totalorder %s354_s13, %s13736_s6  ;;  %p13741_p10 = scmp.lt.s32.totalorder %s354_s13, %s354_s13 }
  0xfb   :  { %p13742_p11 = scmp.lt.s32.totalorder %s13740_s11, %s13736_s6 }
  0xfd   :  { %p13743_p12 = por %p13742_p11, %p13741_p10 }
  0xff   :  { %p13744_p13 = pnand %p13743_p12, %p13737_p9 }
 0x101   :  { %13747 = shalt.err (!%p13744_p13)
}
 0x102   :  { %356 = dma.hbm_to_vmem [thread:$0]  %s14562_s20, 16, %s354_s13, [#allocation23]  }
 0x103   :  { %s13748_s17 = scalar_lea.hbm %s14577_s27, 16 }
 0x104   :  { %p13749_p0 = scmp.ne.s32.totalorder %s14577_s27, %s13748_s17  ;;  %p13752_p1 = scmp.lt.u32.totalorder %s13748_s17, %s14577_s27 }
 0x106   :  { %p13754_p2 = pnand %p13752_p1, %p13749_p0 }
 0x108   :  { %13757 = shalt.err (!%p13754_p2)
}
 0x109   :  { %s13758_s15 = scalar_lea.vmem %s376_s7, 16  ;;  %s13762_s16 = scalar_lea.vmem %s376_s7, 32 }
 0x10a   :  { %p13759_p3 = scmp.ne.s32.totalorder %s376_s7, %s13758_s15  ;;  %p13763_p4 = scmp.lt.s32.totalorder %s376_s7, %s376_s7 }
 0x10b   :  { %p13764_p5 = scmp.lt.s32.totalorder %s13762_s16, %s13758_s15 }
 0x10d   :  { %p13765_p6 = por %p13764_p5, %p13763_p4 }
 0x10f   :  { %p13766_p7 = pnand %p13765_p6, %p13759_p3 }
 0x111   :  { %13769 = shalt.err (!%p13766_p7)
}
 0x112   :  { %378 = dma.hbm_to_vmem [thread:$0]  %s14577_s27, 16, %s376_s7, [#allocation26]  }
 0x113   :  { %s14317_s21 = smov [#allocation28]   ;;  %s14318_s18 = smov [#allocation31]  }
 0x114   :  { %s395_s20 = sshll.u32 %s14317_s21, 4  ;;  %s415_s22 = sshll.u32 %s14318_s18, 4  ;;  %s396_s20 = int_to_ptr.vmem [resolvable:$true] %s395_s20  ;;  %s416_s22 = int_to_ptr.vmem [resolvable:$true] %s415_s22 }
 0x115   :  { %s13770_s23 = scalar_lea.hbm %s14587_s4, 16 }
 0x116   :  { %p13771_p8 = scmp.ne.s32.totalorder %s14587_s4, %s13770_s23  ;;  %p13774_p9 = scmp.lt.u32.totalorder %s13770_s23, %s14587_s4 }
 0x118   :  { %p13776_p10 = pnand %p13774_p9, %p13771_p8 }
 0x11a   :  { %13779 = shalt.err (!%p13776_p10)
}
 0x11b   :  { %s13780_s26 = scalar_lea.vmem %s396_s20, 16  ;;  %s13784_s28 = scalar_lea.vmem %s396_s20, 32 }
 0x11c   :  { %p13781_p11 = scmp.ne.s32.totalorder %s396_s20, %s13780_s26  ;;  %p13785_p12 = scmp.lt.s32.totalorder %s396_s20, %s396_s20 }
 0x11d   :  { %p13786_p13 = scmp.lt.s32.totalorder %s13784_s28, %s13780_s26 }
 0x11f   :  { %p13787_p0 = por %p13786_p13, %p13785_p12 }
 0x121   :  { %p13788_p1 = pnand %p13787_p0, %p13781_p11 }
 0x123   :  { %13791 = shalt.err (!%p13788_p1)
}
 0x124   :  { %398 = dma.hbm_to_vmem [thread:$0]  %s14587_s4, 16, %s396_s20, [#allocation29]  }
 0x125   :  { %s13792_s27 = scalar_lea.hbm %s14597_s12, 16 }
 0x126   :  { %p13793_p2 = scmp.ne.s32.totalorder %s14597_s12, %s13792_s27  ;;  %p13796_p3 = scmp.lt.u32.totalorder %s13792_s27, %s14597_s12 }
 0x128   :  { %p13798_p4 = pnand %p13796_p3, %p13793_p2 }
 0x12a   :  { %13801 = shalt.err (!%p13798_p4)
}
 0x12b   :  { %s13802_s25 = scalar_lea.vmem %s416_s22, 16  ;;  %s13806_s29 = scalar_lea.vmem %s416_s22, 32 }
 0x12c   :  { %p13803_p5 = scmp.ne.s32.totalorder %s416_s22, %s13802_s25  ;;  %p13807_p6 = scmp.lt.s32.totalorder %s416_s22, %s416_s22 }
 0x12d   :  { %p13808_p7 = scmp.lt.s32.totalorder %s13806_s29, %s13802_s25 }
 0x12f   :  { %p13809_p8 = por %p13808_p7, %p13807_p6 }
 0x131   :  { %p13810_p9 = pnand %p13809_p8, %p13803_p5 }
 0x133   :  { %13813 = shalt.err (!%p13810_p9)
}
 0x134   :  { %418 = dma.hbm_to_vmem [thread:$0]  %s14597_s12, 16, %s416_s22, [#allocation32]  }
 0x135   :  { %s14319_s1 = smov [#allocation34]   ;;  %s14320_s2 = smov [#allocation37]  }
 0x136   :  { %s441_s4 = sshll.u32 %s14319_s1, 4  ;;  %s463_s13 = sshll.u32 %s14320_s2, 4  ;;  %s442_s4 = int_to_ptr.vmem [resolvable:$true] %s441_s4  ;;  %s464_s13 = int_to_ptr.vmem [resolvable:$true] %s463_s13 }
 0x137   :  { %s13814_s0 = scalar_lea.hbm %s14622_s14, 16 }
 0x138   :  { %p13815_p10 = scmp.ne.s32.totalorder %s14622_s14, %s13814_s0  ;;  %p13818_p11 = scmp.lt.u32.totalorder %s13814_s0, %s14622_s14 }
 0x13a   :  { %p13820_p12 = pnand %p13818_p11, %p13815_p10 }
 0x13c   :  { %13823 = shalt.err (!%p13820_p12)
}
 0x13d   :  { %s13824_s7 = scalar_lea.vmem %s442_s4, 16  ;;  %s13828_s10 = scalar_lea.vmem %s442_s4, 32 }
 0x13e   :  { %p13825_p13 = scmp.ne.s32.totalorder %s442_s4, %s13824_s7  ;;  %p13829_p0 = scmp.lt.s32.totalorder %s442_s4, %s442_s4 }
 0x13f   :  { %p13830_p1 = scmp.lt.s32.totalorder %s13828_s10, %s13824_s7 }
 0x141   :  { %p13831_p2 = por %p13830_p1, %p13829_p0 }
 0x143   :  { %p13832_p3 = pnand %p13831_p2, %p13825_p13 }
 0x145   :  { %13835 = shalt.err (!%p13832_p3)
}
 0x146   :  { %444 = dma.hbm_to_vmem [thread:$0]  %s14622_s14, 16, %s442_s4, [#allocation35]  }
 0x147   :  { %s13836_s12 = scalar_lea.hbm %s14637_s5, 16 }
 0x148   :  { %p13837_p4 = scmp.ne.s32.totalorder %s14637_s5, %s13836_s12  ;;  %p13840_p5 = scmp.lt.u32.totalorder %s13836_s12, %s14637_s5 }
 0x14a   :  { %p13842_p6 = pnand %p13840_p5, %p13837_p4 }
 0x14c   :  { %13845 = shalt.err (!%p13842_p6)
}
 0x14d   :  { %s13846_s6 = scalar_lea.vmem %s464_s13, 16  ;;  %s13850_s11 = scalar_lea.vmem %s464_s13, 32 }
 0x14e   :  { %p13847_p7 = scmp.ne.s32.totalorder %s464_s13, %s13846_s6  ;;  %p13851_p8 = scmp.lt.s32.totalorder %s464_s13, %s464_s13 }
 0x14f   :  { %p13852_p9 = scmp.lt.s32.totalorder %s13850_s11, %s13846_s6 }
 0x151   :  { %p13853_p10 = por %p13852_p9, %p13851_p8 }
 0x153   :  { %p13854_p11 = pnand %p13853_p10, %p13847_p7 }
 0x155   :  { %13857 = shalt.err (!%p13854_p11)
}
 0x156   :  { %466 = dma.hbm_to_vmem [thread:$0]  %s14637_s5, 16, %s464_s13, [#allocation38]  }
 0x157   :  { %s14321_s17 = smov [#allocation40]   ;;  %s14322_s15 = smov [#allocation2]  }
 0x158   :  { %s483_s14 = sshll.u32 %s14321_s17, 4  ;;  %s209_s16 = sshll.u32 %s14322_s15, 4  ;;  %s484_s14 = int_to_ptr.vmem [resolvable:$true] %s483_s14  ;;  %s210_s16 = int_to_ptr.vmem [resolvable:$true] %s209_s16 }
 0x159   :  { %s13858_s21 = scalar_lea.hbm %s14647_s9, 16 }
 0x15a   :  { %p13859_p12 = scmp.ne.s32.totalorder %s14647_s9, %s13858_s21  ;;  %p13862_p13 = scmp.lt.u32.totalorder %s13858_s21, %s14647_s9 }
 0x15c   :  { %p13864_p0 = pnand %p13862_p13, %p13859_p12 }
 0x15e   :  { %13867 = shalt.err (!%p13864_p0)
}
 0x15f   :  { %s13868_s20 = scalar_lea.vmem %s484_s14, 16  ;;  %s13872_s18 = scalar_lea.vmem %s484_s14, 32 }
 0x160   :  { %p13869_p1 = scmp.ne.s32.totalorder %s484_s14, %s13868_s20  ;;  %p13873_p2 = scmp.lt.s32.totalorder %s484_s14, %s484_s14 }
 0x161   :  { %p13874_p3 = scmp.lt.s32.totalorder %s13872_s18, %s13868_s20 }
 0x163   :  { %p13875_p4 = por %p13874_p3, %p13873_p2 }
 0x165   :  { %p13876_p5 = pnand %p13875_p4, %p13869_p1 }
 0x167   :  { %13879 = shalt.err (!%p13876_p5)
}
 0x168   :  { %486 = dma.hbm_to_vmem [thread:$0]  %s14647_s9, 16, %s484_s14, [#allocation41]  }
 0x169   :  { %s13880_s5 = scalar_lea.hbm %s14462_s30, 16 }
 0x16a   :  { %p13881_p6 = scmp.ne.s32.totalorder %s14462_s30, %s13880_s5  ;;  %p13884_p7 = scmp.lt.u32.totalorder %s13880_s5, %s14462_s30 }
 0x16c   :  { %p13886_p8 = pnand %p13884_p7, %p13881_p6 }
 0x16e   :  { %13889 = shalt.err (!%p13886_p8)
}
 0x16f   :  { %s13890_s22 = scalar_lea.vmem %s210_s16, 16  ;;  %s13894_s23 = scalar_lea.vmem %s210_s16, 32 }
 0x170   :  { %p13891_p9 = scmp.ne.s32.totalorder %s210_s16, %s13890_s22  ;;  %p13895_p10 = scmp.lt.s32.totalorder %s210_s16, %s210_s16 }
 0x171   :  { %p13896_p11 = scmp.lt.s32.totalorder %s13894_s23, %s13890_s22 }
 0x173   :  { %p13897_p12 = por %p13896_p11, %p13895_p10 }
 0x175   :  { %p13898_p13 = pnand %p13897_p12, %p13891_p9 }
 0x177   :  { %13901 = shalt.err (!%p13898_p13)
}
 0x178   :  { %s16313_s26 = sld [smem:[#allocation84_spill]]  ;;  %s14323_s28 = smov [#allocation6]  }
 0x179   :  { %212 = dma.hbm_to_vmem [thread:$0]  %s14462_s30, 16, %s210_s16, [#allocation3]  }
 0x17a   :  { %s233_s9 = sshll.u32 %s14323_s28, 4  ;;  %s14324_s27 = smov [#allocation9]   ;;  %s234_s9 = int_to_ptr.vmem [resolvable:$true] %s233_s9 }
 0x17b   :  { %s253_s25 = sshll.u32 %s14324_s27, 4  ;;  %s254_s25 = int_to_ptr.vmem [resolvable:$true] %s253_s25 }
 0x17e   :  { %s13902_s29 = scalar_lea.hbm %s16313_s26, 16 }
 0x17f   :  { %p13903_p0 = scmp.ne.s32.totalorder %s16313_s26, %s13902_s29  ;;  %p13906_p1 = scmp.lt.u32.totalorder %s13902_s29, %s16313_s26 }
 0x181   :  { %p13908_p2 = pnand %p13906_p1, %p13903_p0 }
 0x183   :  { %13911 = shalt.err (!%p13908_p2)
}
 0x184   :  { %s13912_s1 = scalar_lea.vmem %s234_s9, 16  ;;  %s13916_s4 = scalar_lea.vmem %s234_s9, 32 }
 0x185   :  { %p13913_p3 = scmp.ne.s32.totalorder %s234_s9, %s13912_s1  ;;  %p13917_p4 = scmp.lt.s32.totalorder %s234_s9, %s234_s9 }
 0x186   :  { %p13918_p5 = scmp.lt.s32.totalorder %s13916_s4, %s13912_s1 }
 0x188   :  { %p13919_p6 = por %p13918_p5, %p13917_p4 }
 0x18a   :  { %p13920_p7 = pnand %p13919_p6, %p13913_p3 }
 0x18c   :  { %13923 = shalt.err (!%p13920_p7)
}
 0x18d   :  { %s16314_s30 = sld [smem:[#allocation85_spill]] }
 0x18e   :  { %236 = dma.hbm_to_vmem [thread:$0]  %s16313_s26, 16, %s234_s9, [#allocation5]  }
 0x193   :  { %s13924_s2 = scalar_lea.hbm %s16314_s30, 16 }
 0x194   :  { %p13925_p8 = scmp.ne.s32.totalorder %s16314_s30, %s13924_s2  ;;  %p13928_p9 = scmp.lt.u32.totalorder %s13924_s2, %s16314_s30 }
 0x196   :  { %p13930_p10 = pnand %p13928_p9, %p13925_p8 }
 0x198   :  { %13933 = shalt.err (!%p13930_p10)
}
 0x199   :  { %s13934_s13 = scalar_lea.vmem %s254_s25, 16  ;;  %s13938_s0 = scalar_lea.vmem %s254_s25, 32 }
 0x19a   :  { %p13935_p11 = scmp.ne.s32.totalorder %s254_s25, %s13934_s13  ;;  %p13939_p12 = scmp.lt.s32.totalorder %s254_s25, %s254_s25 }
 0x19b   :  { %p13940_p13 = scmp.lt.s32.totalorder %s13938_s0, %s13934_s13 }
 0x19d   :  { %p13941_p0 = por %p13940_p13, %p13939_p12 }
 0x19f   :  { %p13942_p1 = pnand %p13941_p0, %p13935_p11 }
 0x1a1   :  { %13945 = shalt.err (!%p13942_p1)
}
 0x1a2   :  { %s16315_s7 = sld [smem:[#allocation86_spill]]  ;;  %s14325_s10 = smov [#allocation12]  }
 0x1a3   :  { %256 = dma.hbm_to_vmem [thread:$0]  %s16314_s30, 16, %s254_s25, [#allocation8]  }
 0x1a4   :  { %s273_s12 = sshll.u32 %s14325_s10, 4  ;;  %s14326_s6 = smov [#allocation15]   ;;  %s274_s12 = int_to_ptr.vmem [resolvable:$true] %s273_s12 }
 0x1a5   :  { %s293_s11 = sshll.u32 %s14326_s6, 4  ;;  %s294_s11 = int_to_ptr.vmem [resolvable:$true] %s293_s11 }
 0x1a8   :  { %s13946_s17 = scalar_lea.hbm %s16315_s7, 16 }
 0x1a9   :  { %p13947_p2 = scmp.ne.s32.totalorder %s16315_s7, %s13946_s17  ;;  %p13950_p3 = scmp.lt.u32.totalorder %s13946_s17, %s16315_s7 }
 0x1ab   :  { %p13952_p4 = pnand %p13950_p3, %p13947_p2 }
 0x1ad   :  { %13955 = shalt.err (!%p13952_p4)
}
 0x1ae   :  { %s13956_s14 = scalar_lea.vmem %s274_s12, 16  ;;  %s13960_s15 = scalar_lea.vmem %s274_s12, 32 }
 0x1af   :  { %p13957_p5 = scmp.ne.s32.totalorder %s274_s12, %s13956_s14  ;;  %p13961_p6 = scmp.lt.s32.totalorder %s274_s12, %s274_s12 }
 0x1b0   :  { %p13962_p7 = scmp.lt.s32.totalorder %s13960_s15, %s13956_s14 }
 0x1b2   :  { %p13963_p8 = por %p13962_p7, %p13961_p6 }
 0x1b4   :  { %p13964_p9 = pnand %p13963_p8, %p13957_p5 }
 0x1b6   :  { %13967 = shalt.err (!%p13964_p9)
}
 0x1b7   :  { %s16316_s16 = sld [smem:[#allocation87_spill]] }
 0x1b8   :  { %276 = dma.hbm_to_vmem [thread:$0]  %s16315_s7, 16, %s274_s12, [#allocation11]  }
 0x1bd   :  { %s13968_s21 = scalar_lea.hbm %s16316_s16, 16 }
 0x1be   :  { %p13969_p10 = scmp.ne.s32.totalorder %s16316_s16, %s13968_s21  ;;  %p13972_p11 = scmp.lt.u32.totalorder %s13968_s21, %s16316_s16 }
 0x1c0   :  { %p13974_p12 = pnand %p13972_p11, %p13969_p10 }
 0x1c2   :  { %13977 = shalt.err (!%p13974_p12)
}
 0x1c3   :  { %s13978_s20 = scalar_lea.vmem %s294_s11, 16  ;;  %s13982_s18 = scalar_lea.vmem %s294_s11, 32 }
 0x1c4   :  { %p13979_p13 = scmp.ne.s32.totalorder %s294_s11, %s13978_s20  ;;  %p13983_p0 = scmp.lt.s32.totalorder %s294_s11, %s294_s11 }
 0x1c5   :  { %p13984_p1 = scmp.lt.s32.totalorder %s13982_s18, %s13978_s20 }
 0x1c7   :  { %p13985_p2 = por %p13984_p1, %p13983_p0 }
 0x1c9   :  { %p13986_p3 = pnand %p13985_p2, %p13979_p13 }
 0x1cb   :  { %13989 = shalt.err (!%p13986_p3)
}
 0x1cc   :  { %s16317_s5 = sld [smem:[#allocation90_spill]]  ;;  %s14327_s22 = smov [#allocation18]  }
 0x1cd   :  { %296 = dma.hbm_to_vmem [thread:$0]  %s16316_s16, 16, %s294_s11, [#allocation14]  }
 0x1ce   :  { %s317_s23 = sshll.u32 %s14327_s22, 4  ;;  %s14328_s26 = smov [#allocation21]   ;;  %s318_s23 = int_to_ptr.vmem [resolvable:$true] %s317_s23 }
 0x1cf   :  { %s341_s28 = sshll.u32 %s14328_s26, 4  ;;  %s342_s28 = int_to_ptr.vmem [resolvable:$true] %s341_s28 }
 0x1d2   :  { %s13990_s9 = scalar_lea.hbm %s16317_s5, 16 }
 0x1d3   :  { %p13991_p4 = scmp.ne.s32.totalorder %s16317_s5, %s13990_s9  ;;  %p13994_p5 = scmp.lt.u32.totalorder %s13990_s9, %s16317_s5 }
 0x1d5   :  { %p13996_p6 = pnand %p13994_p5, %p13991_p4 }
 0x1d7   :  { %13999 = shalt.err (!%p13996_p6)
}
 0x1d8   :  { %s14000_s27 = scalar_lea.vmem %s318_s23, 16  ;;  %s14004_s25 = scalar_lea.vmem %s318_s23, 32 }
 0x1d9   :  { %p14001_p7 = scmp.ne.s32.totalorder %s318_s23, %s14000_s27  ;;  %p14005_p8 = scmp.lt.s32.totalorder %s318_s23, %s318_s23 }
 0x1da   :  { %p14006_p9 = scmp.lt.s32.totalorder %s14004_s25, %s14000_s27 }
 0x1dc   :  { %p14007_p10 = por %p14006_p9, %p14005_p8 }
 0x1de   :  { %p14008_p11 = pnand %p14007_p10, %p14001_p7 }
 0x1e0   :  { %14011 = shalt.err (!%p14008_p11)
}
 0x1e1   :  { %s16318_s29 = sld [smem:[#allocation93_spill]] }
 0x1e2   :  { %320 = dma.hbm_to_vmem [thread:$0]  %s16317_s5, 16, %s318_s23, [#allocation17]  }
 0x1e7   :  { %s14012_s1 = scalar_lea.hbm %s16318_s29, 16 }
 0x1e8   :  { %p14013_p12 = scmp.ne.s32.totalorder %s16318_s29, %s14012_s1  ;;  %p14016_p13 = scmp.lt.u32.totalorder %s14012_s1, %s16318_s29 }
 0x1ea   :  { %p14018_p0 = pnand %p14016_p13, %p14013_p12 }
 0x1ec   :  { %14021 = shalt.err (!%p14018_p0)
}
 0x1ed   :  { %s14022_s4 = scalar_lea.vmem %s342_s28, 16  ;;  %s14026_s30 = scalar_lea.vmem %s342_s28, 32 }
 0x1ee   :  { %p14023_p1 = scmp.ne.s32.totalorder %s342_s28, %s14022_s4  ;;  %p14027_p2 = scmp.lt.s32.totalorder %s342_s28, %s342_s28 }
 0x1ef   :  { %p14028_p3 = scmp.lt.s32.totalorder %s14026_s30, %s14022_s4 }
 0x1f1   :  { %p14029_p4 = por %p14028_p3, %p14027_p2 }
 0x1f3   :  { %p14030_p5 = pnand %p14029_p4, %p14023_p1 }
 0x1f5   :  { %14033 = shalt.err (!%p14030_p5)
}
 0x1f6   :  { %s16319_s2 = sld [smem:[#allocation96_spill]]  ;;  %s14329_s13 = smov [#allocation24]  }
 0x1f7   :  { %344 = dma.hbm_to_vmem [thread:$0]  %s16318_s29, 16, %s342_s28, [#allocation20]  }
 0x1f8   :  { %s365_s0 = sshll.u32 %s14329_s13, 4  ;;  %s14330_s7 = smov [#allocation27]   ;;  %s366_s0 = int_to_ptr.vmem [resolvable:$true] %s365_s0 }
 0x1f9   :  { %s385_s10 = sshll.u32 %s14330_s7, 4  ;;  %s386_s10 = int_to_ptr.vmem [resolvable:$true] %s385_s10 }
 0x1fc   :  { %s14034_s12 = scalar_lea.hbm %s16319_s2, 16 }
 0x1fd   :  { %p14035_p6 = scmp.ne.s32.totalorder %s16319_s2, %s14034_s12  ;;  %p14038_p7 = scmp.lt.u32.totalorder %s14034_s12, %s16319_s2 }
 0x1ff   :  { %p14040_p8 = pnand %p14038_p7, %p14035_p6 }
 0x201   :  { %14043 = shalt.err (!%p14040_p8)
}
 0x202   :  { %s14044_s6 = scalar_lea.vmem %s366_s0, 16  ;;  %s14048_s11 = scalar_lea.vmem %s366_s0, 32 }
 0x203   :  { %p14045_p9 = scmp.ne.s32.totalorder %s366_s0, %s14044_s6  ;;  %p14049_p10 = scmp.lt.s32.totalorder %s366_s0, %s366_s0 }
 0x204   :  { %p14050_p11 = scmp.lt.s32.totalorder %s14048_s11, %s14044_s6 }
 0x206   :  { %p14051_p12 = por %p14050_p11, %p14049_p10 }
 0x208   :  { %p14052_p13 = pnand %p14051_p12, %p14045_p9 }
 0x20a   :  { %14055 = shalt.err (!%p14052_p13)
}
 0x20b   :  { %s16320_s17 = sld [smem:[#allocation97_spill]] }
 0x20c   :  { %368 = dma.hbm_to_vmem [thread:$0]  %s16319_s2, 16, %s366_s0, [#allocation23]  }
 0x211   :  { %s14056_s14 = scalar_lea.hbm %s16320_s17, 16 }
 0x212   :  { %p14057_p0 = scmp.ne.s32.totalorder %s16320_s17, %s14056_s14  ;;  %p14060_p1 = scmp.lt.u32.totalorder %s14056_s14, %s16320_s17 }
 0x214   :  { %p14062_p2 = pnand %p14060_p1, %p14057_p0 }
 0x216   :  { %14065 = shalt.err (!%p14062_p2)
}
 0x217   :  { %s14066_s15 = scalar_lea.vmem %s386_s10, 16  ;;  %s14070_s16 = scalar_lea.vmem %s386_s10, 32 }
 0x218   :  { %p14067_p3 = scmp.ne.s32.totalorder %s386_s10, %s14066_s15  ;;  %p14071_p4 = scmp.lt.s32.totalorder %s386_s10, %s386_s10 }
 0x219   :  { %p14072_p5 = scmp.lt.s32.totalorder %s14070_s16, %s14066_s15 }
 0x21b   :  { %p14073_p6 = por %p14072_p5, %p14071_p4 }
 0x21d   :  { %p14074_p7 = pnand %p14073_p6, %p14067_p3 }
 0x21f   :  { %14077 = shalt.err (!%p14074_p7)
}
 0x220   :  { %s16321_s21 = sld [smem:[#allocation98_spill]]  ;;  %s14331_s20 = smov [#allocation30]  }
 0x221   :  { %388 = dma.hbm_to_vmem [thread:$0]  %s16320_s17, 16, %s386_s10, [#allocation26]  }
 0x222   :  { %s405_s18 = sshll.u32 %s14331_s20, 4  ;;  %s14332_s5 = smov [#allocation33]   ;;  %s406_s18 = int_to_ptr.vmem [resolvable:$true] %s405_s18 }
 0x223   :  { %s429_s22 = sshll.u32 %s14332_s5, 4  ;;  %s430_s22 = int_to_ptr.vmem [resolvable:$true] %s429_s22 }
 0x226   :  { %s14078_s23 = scalar_lea.hbm %s16321_s21, 16 }
 0x227   :  { %p14079_p8 = scmp.ne.s32.totalorder %s16321_s21, %s14078_s23  ;;  %p14082_p9 = scmp.lt.u32.totalorder %s14078_s23, %s16321_s21 }
 0x229   :  { %p14084_p10 = pnand %p14082_p9, %p14079_p8 }
 0x22b   :  { %14087 = shalt.err (!%p14084_p10)
}
 0x22c   :  { %s14088_s26 = scalar_lea.vmem %s406_s18, 16  ;;  %s14092_s28 = scalar_lea.vmem %s406_s18, 32 }
 0x22d   :  { %p14089_p11 = scmp.ne.s32.totalorder %s406_s18, %s14088_s26  ;;  %p14093_p12 = scmp.lt.s32.totalorder %s406_s18, %s406_s18 }
 0x22e   :  { %p14094_p13 = scmp.lt.s32.totalorder %s14092_s28, %s14088_s26 }
 0x230   :  { %p14095_p0 = por %p14094_p13, %p14093_p12 }
 0x232   :  { %p14096_p1 = pnand %p14095_p0, %p14089_p11 }
 0x234   :  { %14099 = shalt.err (!%p14096_p1)
}
 0x235   :  { %s16322_s9 = sld [smem:[#allocation101_spill]] }
 0x236   :  { %408 = dma.hbm_to_vmem [thread:$0]  %s16321_s21, 16, %s406_s18, [#allocation29]  }
 0x23b   :  { %s14100_s27 = scalar_lea.hbm %s16322_s9, 16 }
 0x23c   :  { %p14101_p2 = scmp.ne.s32.totalorder %s16322_s9, %s14100_s27  ;;  %p14104_p3 = scmp.lt.u32.totalorder %s14100_s27, %s16322_s9 }
 0x23e   :  { %p14106_p4 = pnand %p14104_p3, %p14101_p2 }
 0x240   :  { %14109 = shalt.err (!%p14106_p4)
}
 0x241   :  { %s14110_s25 = scalar_lea.vmem %s430_s22, 16  ;;  %s14114_s29 = scalar_lea.vmem %s430_s22, 32 }
 0x242   :  { %p14111_p5 = scmp.ne.s32.totalorder %s430_s22, %s14110_s25  ;;  %p14115_p6 = scmp.lt.s32.totalorder %s430_s22, %s430_s22 }
 0x243   :  { %p14116_p7 = scmp.lt.s32.totalorder %s14114_s29, %s14110_s25 }
 0x245   :  { %p14117_p8 = por %p14116_p7, %p14115_p6 }
 0x247   :  { %p14118_p9 = pnand %p14117_p8, %p14111_p5 }
 0x249   :  { %14121 = shalt.err (!%p14118_p9)
}
 0x24a   :  { %s16323_s1 = sld [smem:[#allocation104_spill]]  ;;  %s14333_s4 = smov [#allocation36]  }
 0x24b   :  { %432 = dma.hbm_to_vmem [thread:$0]  %s16322_s9, 16, %s430_s22, [#allocation32]  }
 0x24c   :  { %s453_s30 = sshll.u32 %s14333_s4, 4  ;;  %s14334_s2 = smov [#allocation39]   ;;  %s454_s30 = int_to_ptr.vmem [resolvable:$true] %s453_s30 }
 0x24d   :  { %s473_s13 = sshll.u32 %s14334_s2, 4  ;;  %s474_s13 = int_to_ptr.vmem [resolvable:$true] %s473_s13 }
 0x250   :  { %s14122_s0 = scalar_lea.hbm %s16323_s1, 16 }
 0x251   :  { %p14123_p10 = scmp.ne.s32.totalorder %s16323_s1, %s14122_s0  ;;  %p14126_p11 = scmp.lt.u32.totalorder %s14122_s0, %s16323_s1 }
 0x253   :  { %p14128_p12 = pnand %p14126_p11, %p14123_p10 }
 0x255   :  { %14131 = shalt.err (!%p14128_p12)
}
 0x256   :  { %s14132_s7 = scalar_lea.vmem %s454_s30, 16  ;;  %s14136_s10 = scalar_lea.vmem %s454_s30, 32 }
 0x257   :  { %p14133_p13 = scmp.ne.s32.totalorder %s454_s30, %s14132_s7  ;;  %p14137_p0 = scmp.lt.s32.totalorder %s454_s30, %s454_s30 }
 0x258   :  { %p14138_p1 = scmp.lt.s32.totalorder %s14136_s10, %s14132_s7 }
 0x25a   :  { %p14139_p2 = por %p14138_p1, %p14137_p0 }
 0x25c   :  { %p14140_p3 = pnand %p14139_p2, %p14133_p13 }
 0x25e   :  { %14143 = shalt.err (!%p14140_p3)
}
 0x25f   :  { %s16324_s12 = sld [smem:[#allocation105_spill]] }
 0x260   :  { %456 = dma.hbm_to_vmem [thread:$0]  %s16323_s1, 16, %s454_s30, [#allocation35]  }
 0x265   :  { %s14144_s6 = scalar_lea.hbm %s16324_s12, 16 }
 0x266   :  { %p14145_p4 = scmp.ne.s32.totalorder %s16324_s12, %s14144_s6  ;;  %p14148_p5 = scmp.lt.u32.totalorder %s14144_s6, %s16324_s12 }
 0x268   :  { %p14150_p6 = pnand %p14148_p5, %p14145_p4 }
 0x26a   :  { %14153 = shalt.err (!%p14150_p6)
}
 0x26b   :  { %s14154_s11 = scalar_lea.vmem %s474_s13, 16  ;;  %s14158_s17 = scalar_lea.vmem %s474_s13, 32 }
 0x26c   :  { %p14155_p7 = scmp.ne.s32.totalorder %s474_s13, %s14154_s11  ;;  %p14159_p8 = scmp.lt.s32.totalorder %s474_s13, %s474_s13 }
 0x26d   :  { %p14160_p9 = scmp.lt.s32.totalorder %s14158_s17, %s14154_s11 }
 0x26f   :  { %p14161_p10 = por %p14160_p9, %p14159_p8 }
 0x271   :  { %p14162_p11 = pnand %p14161_p10, %p14155_p7 }
 0x273   :  { %14165 = shalt.err (!%p14162_p11)
}
 0x274   :  { %s16325_s14 = sld [smem:[#allocation106_spill]]  ;;  %s14335_s15 = smov [#allocation42]  }
 0x275   :  { %476 = dma.hbm_to_vmem [thread:$0]  %s16324_s12, 16, %s474_s13, [#allocation38]  }
 0x276   :  { %s493_s16 = sshll.u32 %s14335_s15, 4  ;;  %s14336_s21 = smov [#allocation43]   ;;  %s494_s16 = int_to_ptr.vmem [resolvable:$true] %s493_s16 }
 0x277   :  { %s507_s20 = sshll.u32 %s14336_s21, 4  ;;  %s508_s20 = int_to_ptr.vmem [resolvable:$true] %s507_s20 }
 0x27a   :  { %s14166_s18 = scalar_lea.hbm %s16325_s14, 16 }
 0x27b   :  { %p14167_p12 = scmp.ne.s32.totalorder %s16325_s14, %s14166_s18  ;;  %p14170_p13 = scmp.lt.u32.totalorder %s14166_s18, %s16325_s14 }
 0x27d   :  { %p14172_p0 = pnand %p14170_p13, %p14167_p12 }
 0x27f   :  { %14175 = shalt.err (!%p14172_p0)
}
 0x280   :  { %s14176_s5 = scalar_lea.vmem %s494_s16, 16  ;;  %s14180_s22 = scalar_lea.vmem %s494_s16, 32 }
 0x281   :  { %p14177_p1 = scmp.ne.s32.totalorder %s494_s16, %s14176_s5  ;;  %p14181_p2 = scmp.lt.s32.totalorder %s494_s16, %s494_s16 }
 0x282   :  { %p14182_p3 = scmp.lt.s32.totalorder %s14180_s22, %s14176_s5 }
 0x284   :  { %p14183_p4 = por %p14182_p3, %p14181_p2 }
 0x286   :  { %p14184_p5 = pnand %p14183_p4, %p14177_p1 }
 0x288   :  { %14187 = shalt.err (!%p14184_p5)
}
 0x289   :  { %s16326_s23 = sld [smem:[#allocation109_spill]] }
 0x28a   :  { %496 = dma.hbm_to_vmem [thread:$0]  %s16325_s14, 16, %s494_s16, [#allocation41]  }
 0x28f   :  { %s14188_s26 = scalar_lea.hbm %s16326_s23, 16 }
 0x290   :  { %p14189_p6 = scmp.ne.s32.totalorder %s16326_s23, %s14188_s26  ;;  %p14192_p7 = scmp.lt.u32.totalorder %s14188_s26, %s16326_s23 }
 0x292   :  { %p14194_p8 = pnand %p14192_p7, %p14189_p6 }
 0x294   :  { %14197 = shalt.err (!%p14194_p8)
}
 0x295   :  { %s14198_s28 = scalar_lea.vmem %s508_s20, 16  ;;  %s14202_s9 = scalar_lea.vmem %s508_s20, 32 }
 0x296   :  { %p14199_p9 = scmp.ne.s32.totalorder %s508_s20, %s14198_s28  ;;  %p14203_p10 = scmp.lt.s32.totalorder %s508_s20, %s508_s20 }
 0x297   :  { %p14204_p11 = scmp.lt.s32.totalorder %s14202_s9, %s14198_s28 }
 0x299   :  { %p14205_p12 = por %p14204_p11, %p14203_p10 }
 0x29b   :  { %p14206_p13 = pnand %p14205_p12, %p14199_p9 }
 0x29d   :  { %14209 = shalt.err (!%p14206_p13)
}
 0x29e   :  { %510 = dma.hbm_to_vmem [thread:$0]  %s16326_s23, 16, %s508_s20, [#allocation44]  }
 0x29f   :  { %14210 = dma.done.wait [#allocation3], 16  }
 0x2a0   :  { %14211 = vsyncadd [#allocation3], 4294967280 }
 0x2a1   :  { %14212 = dma.done.wait [#allocation5], 32  }
 0x2a2   :  { %14213 = vsyncadd [#allocation5], 4294967264 }
 0x2a3   :  { %14214 = dma.done.wait [#allocation8], 32  }
 0x2a4   :  { %14215 = vsyncadd [#allocation8], 4294967264 }
 0x2a5   :  { %14216 = dma.done.wait [#allocation11], 32  }
 0x2a6   :  { %14217 = vsyncadd [#allocation11], 4294967264 }
 0x2a7   :  { %14218 = dma.done.wait [#allocation14], 32  }
 0x2a8   :  { %14219 = vsyncadd [#allocation14], 4294967264 }
 0x2a9   :  { %14220 = dma.done.wait [#allocation17], 32  }
 0x2aa   :  { %14221 = vsyncadd [#allocation17], 4294967264 }
 0x2ab   :  { %14222 = dma.done.wait [#allocation20], 32  }
 0x2ac   :  { %14223 = vsyncadd [#allocation20], 4294967264 }
 0x2ad   :  { %14224 = dma.done.wait [#allocation23], 32  }
 0x2ae   :  { %14225 = vsyncadd [#allocation23], 4294967264 }
 0x2af   :  { %14226 = dma.done.wait [#allocation26], 32  }
 0x2b0   :  { %14227 = vsyncadd [#allocation26], 4294967264 }
 0x2b1   :  { %14228 = dma.done.wait [#allocation29], 32  }
 0x2b2   :  { %14229 = vsyncadd [#allocation29], 4294967264 }
 0x2b3   :  { %14230 = dma.done.wait [#allocation32], 32  }
 0x2b4   :  { %14231 = vsyncadd [#allocation32], 4294967264 }
 0x2b5   :  { %14232 = dma.done.wait [#allocation35], 32  }
 0x2b6   :  { %14233 = vsyncadd [#allocation35], 4294967264 }
 0x2b7   :  { %14234 = dma.done.wait [#allocation38], 32  }
 0x2b8   :  { %14235 = vsyncadd [#allocation38], 4294967264 }
 0x2b9   :  { %14236 = dma.done.wait [#allocation41], 32  }
 0x2ba   :  { %14237 = vsyncadd [#allocation41], 4294967264 }
 0x2bb   :  { %14238 = dma.done.wait [#allocation44], 16  }
 0x2bc   :  { %14239 = vsyncadd [#allocation44], 4294967280  ;;  %s16327_s27 = sld [smem:[#allocation107_spill]]  ;;  %v14337_v0 = vmov 0.0|0.0   ;;  %s16328_s25 = sld [smem:[#allocation92_spill]]  ;;  %vm640_vm0 = vcmask 523264   ;;  %v605_v58 = vlaneseq }
 0x2bd   :  { %12874 = vmatprep.subr.bf16.mxu0 %v14337_v0  ;;  %12910 = vmatprep.subr.bf16.mxu1 %v14337_v0  ;;  %v608_v12 = vld [vmem:[%s14682_s3 + $0x8] sm:$0xff]  ;;  %s16329_s29 = sld [smem:[#allocation108_spill]]  ;;  %v607_v41 = vld [vmem:[%s14682_s3] sm:$0xff]  ;;  %vm14338_vm1 = vmmov 0   ;;  %v14339_v45 = vmov 0.0   ;;  %vm718_vm2 = vcmask 1043456  }
 0x2be   :  { %11410 = vmatprep.mubr.msk.f32.mxu0 %vm640_vm0, %v608_v12  ;;  %12046 = vmatprep.mubr.msk.f32.mxu1 %vm14338_vm1, %v14339_v45  ;;  %v11409_v48 = vld [vmem:[#allocation42] ss:$0 sm:$0xff]  ;;  %vm732_vm3 = vcmask 261120   ;;  %v11411_v54 = vld [vmem:[#allocation19] ss:$0 sm:$0xff]  ;;  %s14340_s3 = smov 96  }
 0x2bf   :  { %v14873_v59 = vand.u32 127, %v605_v58  ;;  %vm891_vm8 = vcmask 27648   ;;  %s14341_s1 = smov 64   ;;  %vm1007_vm14 = vcmask 31744   ;;  %s16330_s4 = sld [smem:[#allocation91_spill]] }
 0x2c0   :  { %s16331_s30 = sld [smem:[#allocation94_spill]]  ;;  %s16332_s2 = sld [smem:[#allocation95_spill]] }
 0x2c1   :  { %vm807_vm4 = vcmp.lt.s32.totalorder %v14873_v59, 8  ;;  %vm908_vm5 = vcmp.ge.s32.totalorder %v14873_v59, 8  ;;  %vm909_vm6 = vcmp.lt.s32.totalorder %v14873_v59, 16  ;;  %vm1161_vm9 = vcmp.ge.s32.totalorder %v14873_v59, 16  ;;  %s16333_s13 = sld [smem:[#allocation100_spill]]  ;;  %s16334_s0 = sld [smem:[#allocation99_spill]] }
 0x2c2   :  { %v609_v1 = vld [vmem:[%s16327_s27] sm:$0xff]  ;;  %v610_v2 = vld [vmem:[%s16327_s27 + $0x8] sm:$0xff]  ;;  %v611_v3 = vld [vmem:[%s16327_s27 + $0x10] sm:$0xff]  ;;  %v14879_v60 = vsel %vm807_vm4, 1.0, %v14339_v45  ;;  %vm1162_vm10 = vcmp.lt.s32.totalorder %v14873_v59, 24  ;;  %vm1336_vm12 = vcmp.ge.s32.totalorder %v14873_v59, 24 }
 0x2c3   :  { %v12875_v4 = vpack.c.bf16 %v610_v2, %v609_v1  ;;  %v612_v5 = vld [vmem:[%s16327_s27 + $0x18] sm:$0xff]  ;;  %v613_v7 = vld [vmem:[%s16327_s27 + $0x20] sm:$0xff]  ;;  %v614_v8 = vld [vmem:[%s16327_s27 + $0x28] sm:$0xff]  ;;  %vm1337_vm13 = vcmp.lt.s32.totalorder %v14873_v59, 32  ;;  %s16335_s7 = sld [smem:[#allocation111_spill]]  ;;  %s16336_s10 = sld [smem:[#allocation102_spill]] }
 0x2c4   :  { %v12878_v6 = vpack.c.bf16 %v612_v5, %v611_v3  ;;  %v12881_v9 = vpack.c.bf16 %v614_v8, %v613_v7  ;;  %v615_v10 = vld [vmem:[%s16327_s27 + $0x30] sm:$0xff]  ;;  %v616_v11 = vld [vmem:[%s16327_s27 + $0x38] sm:$0xff]  ;;  %v721_v13 = vld [vmem:[%s16328_s25] sm:$0xff]  ;;  %s16337_s12 = sld [smem:[#allocation103_spill]]  ;;  %s16339_s6 = sld [smem:[#allocation75_spill]] }
 0x2c5   :  { %12876 = vmatpush1.bf16.msra.mxu0 %v12875_v4  ;;  %v722_v14 = vld [vmem:[%s16328_s25 + $0x8] sm:$0xff]  ;;  %v12884_v16 = vpack.c.bf16 %v616_v11, %v615_v10  ;;  %v617_v17 = vld [vmem:[%s16327_s27 + $0x40] sm:$0xff]  ;;  %v619_v20 = vld [vmem:[%s16327_s27 + $0x50] sm:$0xff]  ;;  %s16341_s11 = sld [smem:[#allocation74_spill]]  ;;  %s16342_s17 = sld [smem:[#allocation63_spill]] }
 0x2c6   :  { %12877 = vmatprep.subr.bf16.mxu0 %v14337_v0  ;;  %v12911_v15 = vpack.c.bf16 %v722_v14, %v721_v13  ;;  %v618_v18 = vld [vmem:[%s16327_s27 + $0x48] sm:$0xff]  ;;  %v620_v21 = vld [vmem:[%s16327_s27 + $0x58] sm:$0xff]  ;;  %v621_v23 = vld [vmem:[%s16327_s27 + $0x60] sm:$0xff]  ;;  %s16343_s14 = sld [smem:[#allocation61_spill]]  ;;  %s14343_s15 = smov 32  }
 0x2c7   :  { %v12887_v19 = vpack.c.bf16 %v618_v18, %v617_v17  ;;  %v12890_v22 = vpack.c.bf16 %v620_v21, %v619_v20  ;;  %v622_v24 = vld [vmem:[%s16327_s27 + $0x68] sm:$0xff]  ;;  %v623_v26 = vld [vmem:[%s16327_s27 + $0x70] sm:$0xff]  ;;  %v624_v27 = vld [vmem:[%s16327_s27 + $0x78] sm:$0xff]  ;;  %s16344_s16 = sld [smem:[#allocation69_spill]]  ;;  %s16345_s21 = sld [smem:[#allocation68_spill]] }
 0x2c8   :  { %12912 = vmatpush3.bf16.msra.mxu1 %v12911_v15  ;;  %v12893_v25 = vpack.c.bf16 %v622_v24, %v621_v23  ;;  %v12896_v28 = vpack.c.bf16 %v624_v27, %v623_v26  ;;  %v625_v29 = vld [vmem:[%s16327_s27 + $0x80] sm:$0xff]  ;;  %v626_v30 = vld [vmem:[%s16327_s27 + $0x88] sm:$0xff]  ;;  %v627_v32 = vld [vmem:[%s16327_s27 + $0x90] sm:$0xff]  ;;  %s16346_s20 = sld [smem:[#allocation62_spill]]  ;;  %s16347_s18 = sld [smem:[#allocation60_spill]] }
 0x2c9   :  { %12879 = vmatpush1.bf16.msra.mxu0 %v12878_v6  ;;  %12913 = vmatprep.subr.bf16.mxu1 %v14337_v0  ;;  %v12899_v31 = vpack.c.bf16 %v626_v30, %v625_v29  ;;  %v628_v33 = vld [vmem:[%s16327_s27 + $0x98] sm:$0xff]  ;;  %v629_v35 = vld [vmem:[%s16327_s27 + $0xa0] sm:$0xff]  ;;  %v630_v36 = vld [vmem:[%s16327_s27 + $0xa8] sm:$0xff]  ;;  %s16348_s5 = sld [smem:[#allocation65_spill]]  ;;  %s16349_s22 = sld [smem:[#allocation67_spill]] }
 0x2ca   :  { %12880 = vmatprep.subr.bf16.mxu0 %v14337_v0  ;;  %v12902_v34 = vpack.c.bf16 %v628_v33, %v627_v32  ;;  %v12905_v37 = vpack.c.bf16 %v630_v36, %v629_v35  ;;  %v631_v38 = vld [vmem:[%s16327_s27 + $0xb0] sm:$0xff]  ;;  %v632_v39 = vld [vmem:[%s16327_s27 + $0xb8] sm:$0xff]  ;;  %v714_v46 = vld [vmem:[%s16329_s29] sm:$0xf]  ;;  %s16350_s23 = sld [smem:[#allocation71_spill]]  ;;  %s16351_s26 = sld [smem:[#allocation70_spill]] }
 0x2cb   :  { %v12908_v40 = vpack.c.bf16 %v632_v39, %v631_v38  ;;  %v723_v42 = vld [vmem:[%s16328_s25 + $0x10] sm:$0xff]  ;;  %v724_v43 = vld [vmem:[%s16328_s25 + $0x18] sm:$0xff]  ;;  %v716_v47 = vrot.slane %v714_v46, 4  ;;  %vm910_vm7 = vmand %vm908_vm5, %vm909_vm6  ;;  %vm4250_vm5 = vcmask 130048   ;;  %vm4504_vm6 = vcmask 64512   ;;  %s16352_s28 = sld [smem:[#allocation64_spill]] }
 0x2cc   :  { %v12914_v44 = vpack.c.bf16 %v724_v43, %v723_v42  ;;  %v14891_v63 = vsel %vm910_vm7, 1.0, %v14339_v45  ;;  %vm1163_vm11 = vmand %vm1161_vm9, %vm1162_vm10  ;;  %s16353_s9 = sld [smem:[#allocation66_spill]]  ;;  %s16354_s27 = sld [smem:[#allocation89_spill]] }
 0x2cd   :  { %12882 = vmatpush1.bf16.msra.mxu0 %v12881_v9  ;;  %v719_v50 = vsel %vm718_vm2, %v714_v46, %v716_v47  ;;  %v14935_v24 = vsel %vm1163_vm11, 1.0, %v14339_v45  ;;  %vm1338_vm15 = vmand %vm1336_vm12, %vm1337_vm13  ;;  %s16355_s25 = sld [smem:[#allocation73_spill]]  ;;  %s16356_s29 = sld [smem:[#allocation72_spill]] }
 0x2ce   :  { %12883 = vmatprep.subr.bf16.mxu0 %v14337_v0  ;;  %12915 = vmatpush3.bf16.msra.mxu1 %v12914_v44  ;;  %v14953_v33 = vsel %vm1338_vm15, 1.0, %v14339_v45 }
 0x2cf   :  { %12049 = vmatprep.subr.mxu1 %v14339_v45 }
 0x2d1   :  { %12885 = vmatpush1.bf16.msra.mxu0 %v12884_v16 }
 0x2d2   :  { %12886 = vmatprep.subr.bf16.mxu0 %v14337_v0 }
 0x2d5   :  { %12888 = vmatpush1.bf16.msra.mxu0 %v12887_v19 }
 0x2d6   :  { %12889 = vmatprep.subr.bf16.mxu0 %v14337_v0 }
 0x2d9   :  { %12891 = vmatpush1.bf16.msra.mxu0 %v12890_v22 }
 0x2da   :  { %12892 = vmatprep.subr.bf16.mxu0 %v14337_v0 }
 0x2dd   :  { %12894 = vmatpush1.bf16.msra.mxu0 %v12893_v25 }
 0x2de   :  { %12895 = vmatprep.subr.bf16.mxu0 %v14337_v0 }
 0x2e1   :  { %12897 = vmatpush1.bf16.msra.mxu0 %v12896_v28 }
 0x2e2   :  { %12898 = vmatprep.subr.bf16.mxu0 %v14337_v0 }
 0x2e5   :  { %12900 = vmatpush1.bf16.msra.mxu0 %v12899_v31 }
 0x2e6   :  { %12901 = vmatprep.subr.bf16.mxu0 %v14337_v0 }
 0x2e9   :  { %12903 = vmatpush1.bf16.msra.mxu0 %v12902_v34 }
 0x2ea   :  { %12904 = vmatprep.subr.bf16.mxu0 %v14337_v0 }
 0x2ed   :  { %12906 = vmatpush1.bf16.msra.mxu0 %v12905_v37 }
 0x2ee   :  { %12907 = vmatprep.subr.bf16.mxu0 %v14337_v0 }
 0x2f1   :  { %12909 = vmatpush1.bf16.msra.mxu0 %v12908_v40 }
 0x2f2   :  { %12099 = vmatprep.subr.mxu0 %v14339_v45 }
 0x2f4   :  { %709 = vmatmul.mubr.f32.vlgmr.msra.gmra.mrb[0].mxu0 %v607_v41 }
 0x2f5   :  { %12101 = vmatprep.mubr.msk.f32.mxu0 %vm14338_vm1, %v14339_v45 }
 0x3c7   :  { %v710_v49 = vpop.f32.mrb[0].mxu0 }
 0x3c8   :  { %v711_v51 = vadd.f32 %v11409_v48, %v710_v49  ;;  %v712_v52 = vpop.f32.mrb[1].mxu0 }
 0x3ca   :  { %v14863_v53 = vadd.f32 %v719_v50, %v711_v51 }
 0x3cc   :  { %12047 = vmatmul.mubr.msk.f32.vlgmr.msra.gmra.mrb[0].mxu1 %vm732_vm3, %v14863_v53 }
 0x3cd   :  { %12051 = vmatprep.mubr.msk.f32.mxu1 %vm14338_vm1, %v14339_v45 }
 0x49f   :  { %v802_v55 = vpop.f32.mrb[0].mxu1 }
 0x4a0   :  { %v14869_v56 = vadd.f32 %v11411_v54, %v802_v55  ;;  %v12048_v57 = vpop.f32.mrb[1].mxu1 }
 0x4a2   :  { %813 = vrot.lane.b32.xlu0 %v14869_v56, %s14340_s3  ;;  %v14887_v62 = vmul.f32 %v14879_v60, %v14869_v56  ;;  %v14901_v1 = vmul.f32 %v14891_v63, %v14869_v56  ;;  %v14968_v36 = vmul.f32 %v14935_v24, %v14869_v56  ;;  %v1341_v54 = vmul.f32 %v14953_v33, %v14869_v56 }
 0x514   :  { %v14881_v61 = vpop.permute.xlu0 %813 }
 0x515   :  { %12050 = vmatpush3.xpose.msk.msra.mxu1 %vm732_vm3, %v14881_v61 }
 0x516   :  { %12054 = vmatprep.subr.mxu1 %v14339_v45 }
 0x518   :  { %12052 = vmatmul.mubr.msk.f32.vlgmr.msra.gmra.mrb[2].mxu1 %vm732_vm3, %v14887_v62 }
 0x519   :  { %12055 = vmatpush3.xpose.msk.msra.mxu1 %vm732_vm3, %v14881_v61  ;;  %12056 = vmatprep.mubr.msk.f32.mxu1 %vm14338_vm1, %v14339_v45 }
 0x51a   :  { %12059 = vmatprep.subr.mxu1 %v14339_v45 }
 0x51c   :  { %12057 = vmatmul.mubr.msk.f32.vlgmr.msra.gmra.mrb[4].mxu1 %vm732_vm3, %v14901_v1 }
 0x51d   :  { %12061 = vmatprep.mubr.msk.f32.mxu1 %vm14338_vm1, %v14339_v45 }
 0x5eb   :  { %v886_v2 = vpop.f32.mrb[2].mxu1 }
 0x5ec   :  { %v890_v3 = vmul.f32 0.35355338, %v886_v2  ;;  %v12053_v4 = vpop.f32.mrb[3].mxu1 }
 0x5ee   :  { %v892_v5 = vsel %vm891_vm8, %v890_v3, -inf }
 0x5ef   :  { %893 = vmax.xlane.f32.xlu1 %v892_v5  ;;  %v983_v6 = vpop.f32.mrb[4].mxu1 }
 0x5f0   :  { %v987_v7 = vmul.f32 0.35355338, %v983_v6  ;;  %v12058_v8 = vpop.f32.mrb[5].mxu1 }
 0x5f1   :  { %v1512_v8 = vrot.slane %v14869_v56, 4 }
 0x5f2   :  { %v988_v9 = vsel %vm891_vm8, %v987_v7, -inf }
 0x5f3   :  { %989 = vmax.xlane.f32.xlu0 %v988_v9 }
 0x600   :  { %1000 = vrot.lane.b32.xlu1 %v14891_v63, %s14341_s1 }
 0x604   :  { %904 = vrot.lane.b32.xlu1 %v14879_v60, %s14341_s1 }
 0x67c   :  { %v894_v10 = vpop.xlane.xlu1 %893 }
 0x67d   :  { %v895_v11 = vsub.f32 %v890_v3, %v894_v10 }
 0x67f   :  { %v896_v12 = vmul.f32 1.442695, %v895_v11 }
 0x680   :  { %v990_v13 = vpop.xlane.xlu0 %989  ;;  %v14916_v20 = vpop.permute.xlu1 %1000 }
 0x681   :  { %13370 = vpow2.f32 %v896_v12  ;;  %v991_v14 = vsub.f32 %v987_v7, %v990_v13  ;;  %v14920_v21 = vmul.f32 %v14916_v20, %v14869_v56  ;;  %v1511_v13 = vrot.slane %v14887_v62, 4 }
 0x682   :  { %v1842_v62 = vrot.slane %v14968_v36, 4 }
 0x683   :  { %v992_v15 = vmul.f32 1.442695, %v991_v14  ;;  %v2006_v14 = vrot.slane %v1341_v54, 4 }
 0x684   :  { %v14922_v22 = vpop.permute.xlu1 %904 }
 0x685   :  { %13372 = vpow2.f32 %v992_v15  ;;  %v14930_v23 = vmul.f32 %v14922_v22, %v14869_v56 }
 0x68b   :  { %v13371_v16 = vpop.eup %13370 }
 0x68c   :  { %v898_v17 = vsel %vm891_vm8, %v13371_v16, 0.0 }
 0x68d   :  { %899 = vadd.xlane.f32.xlu0 %v898_v17 }
 0x68f   :  { %v13373_v18 = vpop.eup %13372 }
 0x690   :  { %v994_v19 = vsel %vm891_vm8, %v13373_v18, 0.0 }
 0x691   :  { %995 = vadd.xlane.f32.xlu1 %v994_v19 }
 0x6a3   :  { %1005 = vrot.lane.b32.xlu0 %v14920_v21, %s14341_s1 }
 0x6a7   :  { %1084 = vrot.lane.b32.xlu0 %v14930_v23, %s14341_s1 }
 0x6ab   :  { %1253 = vrot.lane.b32.xlu0 %v14935_v24, %s14341_s1 }
 0x71a   :  { %v900_v25 = vpop.xlane.xlu0 %899 }
 0x71e   :  { %v996_v26 = vpop.xlane.xlu1 %995  ;;  %v1006_v27 = vpop.permute.xlu0 %1005 }
 0x71f   :  { %13374 = vrcp.f32 %v996_v26  ;;  %12060 = vmatpush3.msk.msra.mxu1 %vm718_vm2, %v1006_v27 }
 0x720   :  { %12064 = vmatprep.subr.mxu1 %v14339_v45  ;;  %13376 = vrcp.f32 %v900_v25 }
 0x722   :  { %v1085_v28 = vpop.permute.xlu0 %1084 }
 0x726   :  { %v14941_v29 = vpop.permute.xlu0 %1253 }
 0x727   :  { %v14947_v30 = vmul.f32 %v14941_v29, %v14869_v56 }
 0x729   :  { %v13375_v31 = vpop.eup %13374  ;;  %1258 = vrot.lane.b32.xlu0 %v14947_v30, %s14341_s1 }
 0x72a   :  { %v998_v32 = vmul.f32 %v13375_v31, %v13373_v18  ;;  %v13377_v34 = vpop.eup %13376 }
 0x72b   :  { %v902_v35 = vmul.f32 %v13377_v34, %v13371_v16 }
 0x72c   :  { %12062 = vmatmul.mubr.msk.f32.vlgmr.msra.gmra.mrb[6].mxu1 %vm1007_vm14, %v998_v32 }
 0x72d   :  { %12065 = vmatpush3.msk.msra.mxu1 %vm718_vm2, %v1085_v28  ;;  %1428 = vrot.lane.b32.xlu0 %v14953_v33, %s14341_s1 }
 0x72e   :  { %12066 = vmatprep.mubr.msk.f32.mxu1 %vm14338_vm1, %v14339_v45  ;;  %12069 = vmatprep.subr.mxu1 %v14339_v45 }
 0x734   :  { %12067 = vmatmul.mubr.msk.f32.vlgmr.msra.gmra.mrb[6].mxu1 %vm1007_vm14, %v902_v35 }
 0x735   :  { %12070 = vmatpush3.xpose.msk.msra.mxu1 %vm732_vm3, %v14881_v61  ;;  %12071 = vmatprep.mubr.msk.f32.mxu1 %vm14338_vm1, %v14339_v45 }
 0x736   :  { %12074 = vmatprep.subr.mxu1 %v14339_v45 }
 0x738   :  { %12072 = vmatmul.mubr.msk.f32.vlgmr.msra.gmra.mrb[8].mxu1 %vm732_vm3, %v14968_v36 }
 0x739   :  { %12076 = vmatprep.mubr.msk.f32.mxu1 %vm14338_vm1, %v14339_v45 }
 0x79b   :  { %v1259_v37 = vpop.permute.xlu0 %1258 }
 0x79c   :  { %12075 = vmatpush3.msk.msra.mxu1 %vm718_vm2, %v1259_v37 }
 0x79d   :  { %12079 = vmatprep.subr.mxu1 %v14339_v45 }
 0x79f   :  { %v14977_v38 = vpop.permute.xlu0 %1428 }
 0x7a0   :  { %v14981_v39 = vmul.f32 %v14977_v38, %v14869_v56  ;;  %v1601_v56 = vrot.slane %v14901_v1, 4 }
 0x7a2   :  { %1433 = vrot.lane.b32.xlu0 %v14981_v39, %s14341_s1 }
 0x80b   :  { %v1236_v40 = vpop.f32.mrb[8].mxu1 }
 0x80c   :  { %v1240_v41 = vmul.f32 0.35355338, %v1236_v40  ;;  %v12073_v42 = vpop.f32.mrb[9].mxu1 }
 0x80d   :  { %v1764_v42 = vrot.slane %v14930_v23, 4 }
 0x80e   :  { %v1241_v43 = vsel %vm891_vm8, %v1240_v41, -inf }
 0x80f   :  { %1242 = vmax.xlane.f32.xlu1 %v1241_v43 }
 0x814   :  { %v1434_v55 = vpop.permute.xlu0 %1433 }
 0x89c   :  { %v1243_v44 = vpop.xlane.xlu1 %1242 }
 0x89d   :  { %v1244_v46 = vsub.f32 %v1240_v41, %v1243_v44 }
 0x89f   :  { %v1245_v47 = vmul.f32 1.442695, %v1244_v46 }
 0x8a1   :  { %13378 = vpow2.f32 %v1245_v47 }
 0x8ab   :  { %v13379_v48 = vpop.eup %13378 }
 0x8ac   :  { %v1247_v49 = vsel %vm891_vm8, %v13379_v48, 0.0 }
 0x8ad   :  { %1248 = vadd.xlane.f32.xlu1 %v1247_v49 }
 0x93a   :  { %v1249_v50 = vpop.xlane.xlu1 %1248 }
 0x93b   :  { %13380 = vrcp.f32 %v1249_v50 }
 0x945   :  { %v13381_v51 = vpop.eup %13380 }
 0x946   :  { %v1251_v52 = vmul.f32 %v13381_v51, %v13379_v48 }
 0x948   :  { %12077 = vmatmul.mubr.msk.f32.vlgmr.msra.gmra.mrb[6].mxu1 %vm1007_vm14, %v1251_v52 }
 0x949   :  { %12080 = vmatpush3.xpose.msk.msra.mxu1 %vm732_vm3, %v14881_v61  ;;  %12081 = vmatprep.mubr.msk.f32.mxu1 %vm14338_vm1, %v14339_v45 }
 0x94a   :  { %12084 = vmatprep.subr.mxu1 %v14339_v45 }
 0x94c   :  { %12082 = vmatmul.mubr.msk.f32.vlgmr.msra.gmra.mrb[10].mxu1 %vm732_vm3, %v1341_v54 }
 0x94d   :  { %12085 = vmatpush3.msk.msra.mxu1 %vm718_vm2, %v1434_v55  ;;  %12086 = vmatprep.mubr.msk.f32.mxu1 %vm14338_vm1, %v14339_v45 }
 0x94e   :  { %12089 = vmatprep.subr.mxu1 %v14339_v45 }
 0xa1f   :  { %v1411_v57 = vpop.f32.mrb[10].mxu1 }
 0xa20   :  { %v1415_v58 = vmul.f32 0.35355338, %v1411_v57  ;;  %v12083_v61 = vpop.f32.mrb[11].mxu1 }
 0xa22   :  { %v1416_v2 = vsel %vm891_vm8, %v1415_v58, -inf }
 0xa23   :  { %1417 = vmax.xlane.f32.xlu1 %v1416_v2 }
 0xab0   :  { %v1418_v3 = vpop.xlane.xlu1 %1417 }
 0xab1   :  { %v1419_v4 = vsub.f32 %v1415_v58, %v1418_v3 }
 0xab3   :  { %v1420_v5 = vmul.f32 1.442695, %v1419_v4 }
 0xab5   :  { %13382 = vpow2.f32 %v1420_v5 }
 0xabf   :  { %v13383_v6 = vpop.eup %13382 }
 0xac0   :  { %v1422_v7 = vsel %vm891_vm8, %v13383_v6, 0.0 }
 0xac1   :  { %1423 = vadd.xlane.f32.xlu1 %v1422_v7  ;;  %v1927_v7 = vrot.slane %v14947_v30, 4 }
 0xad2   :  { %1513 = vrot.lane.b32.xlu1 %v1512_v8, %s14340_s3  ;;  %v1686_v8 = vrot.slane %v14920_v21, 4 }
 0xb4e   :  { %v1424_v9 = vpop.xlane.xlu1 %1423 }
 0xb4f   :  { %13384 = vrcp.f32 %v1424_v9  ;;  %v2091_v9 = vrot.slane %v14981_v39, 4 }
 0xb52   :  { %v1514_v12 = vpop.permute.xlu1 %1513 }
 0xb59   :  { %v13385_v10 = vpop.eup %13384 }
 0xb5a   :  { %v1426_v11 = vmul.f32 %v13385_v10, %v13383_v6  ;;  %v2174_v10 = vld [vmem:[%s16330_s4] sm:$0xff] }
 0xb5c   :  { %12087 = vmatmul.mubr.msk.f32.vlgmr.msra.gmra.mrb[6].mxu1 %vm1007_vm14, %v1426_v11  ;;  %v2175_v11 = vld [vmem:[%s16330_s4 + $0x8] sm:$0xff] }
 0xb5d   :  { %12090 = vmatpush3.xpose.msk.msra.mxu1 %vm732_vm3, %v1514_v12  ;;  %12091 = vmatprep.mubr.msk.f32.mxu1 %vm14338_vm1, %v14339_v45 }
 0xb5e   :  { %12094 = vmatprep.subr.mxu1 %v14339_v45 }
 0xb60   :  { %12092 = vmatmul.mubr.msk.f32.vlgmr.msra.gmra.mrb[12].mxu1 %vm732_vm3, %v1511_v13 }
 0xb61   :  { %12095 = vmatpush3.xpose.msk.msra.mxu1 %vm732_vm3, %v1514_v12  ;;  %12096 = vmatprep.mubr.msk.f32.mxu1 %vm14338_vm1, %v14339_v45 }
 0xb62   :  { %12109 = vmatprep.subr.mxu1 %v14339_v45 }
 0xb64   :  { %12097 = vmatmul.mubr.msk.f32.vlgmr.msra.gmra.mrb[14].mxu1 %vm732_vm3, %v1601_v56 }
 0xb65   :  { %12110 = vmatpush3.xpose.msk.msra.mxu1 %vm732_vm3, %v1514_v12  ;;  %12111 = vmatprep.mubr.msk.f32.mxu1 %vm14338_vm1, %v14339_v45 }
 0xb66   :  { %12119 = vmatprep.subr.mxu1 %v14339_v45 }
 0xb68   :  { %12112 = vmatmul.mubr.msk.f32.vlgmr.msra.gmra.mrb[16].mxu1 %vm732_vm3, %v1842_v62 }
 0xb69   :  { %12120 = vmatpush3.xpose.msk.msra.mxu1 %vm732_vm3, %v1514_v12  ;;  %12121 = vmatprep.mubr.msk.f32.mxu1 %vm14338_vm1, %v14339_v45  ;;  %v12917_v12 = vpack.c.bf16 %v2175_v11, %v2174_v10 }
 0xb6a   :  { %12916 = vmatprep.subr.bf16.mxu1 %v14337_v0 }
 0xb6c   :  { %12122 = vmatmul.mubr.msk.f32.vlgmr.msra.gmra.mrb[18].mxu1 %vm732_vm3, %v2006_v14 }
 0xb6d   :  { %12137 = vmatprep.mubr.msk.f32.mxu1 %vm14338_vm1, %v14339_v45  ;;  %12918 = vmatpush3.bf16.msra.mxu1 %v12917_v12  ;;  %v2376_v12 = vld [vmem:[%s16332_s2 + $0x10] sm:$0xff] }
 0xb6e   :  { %12919 = vmatprep.subr.bf16.mxu1 %v14337_v0 }
 0xc2f   :  { %v15030_v1 = vpop.f32.mrb[6].mxu1 }
 0xc30   :  { %v12088_v15 = vpop.f32.mrb[7].mxu1 }
 0xc33   :  { %v1585_v16 = vpop.f32.mrb[12].mxu1 }
 0xc34   :  { %v1589_v17 = vmul.f32 0.35355338, %v1585_v16  ;;  %v12093_v18 = vpop.f32.mrb[13].mxu1 }
 0xc36   :  { %v1590_v19 = vsel %vm891_vm8, %v1589_v17, -inf }
 0xc37   :  { %1591 = vmax.xlane.f32.xlu1 %v1590_v19  ;;  %v1670_v25 = vpop.f32.mrb[14].mxu1 }
 0xc38   :  { %v1674_v26 = vmul.f32 0.35355338, %v1670_v25  ;;  %v12098_v27 = vpop.f32.mrb[15].mxu1 }
 0xc3a   :  { %v1675_v28 = vsel %vm891_vm8, %v1674_v26, -inf }
 0xc3b   :  { %1676 = vmax.xlane.f32.xlu0 %v1675_v28  ;;  %v1911_v31 = vpop.f32.mrb[16].mxu1 }
 0xc3c   :  { %v1915_v32 = vmul.f32 0.35355338, %v1911_v31  ;;  %v12113_v34 = vpop.f32.mrb[17].mxu1  ;;  %v2176_v31 = vld [vmem:[%s16330_s4 + $0x10] sm:$0xff] }
 0xc3e   :  { %v1916_v35 = vsel %vm891_vm8, %v1915_v32, -inf }
 0xc3f   :  { %1917 = vmax.xlane.f32.xlu0 %v1916_v35  ;;  %v2075_v36 = vpop.f32.mrb[18].mxu1 }
 0xc40   :  { %v2079_v37 = vmul.f32 0.35355338, %v2075_v36  ;;  %v12123_v40 = vpop.f32.mrb[19].mxu1 }
 0xc42   :  { %v2080_v41 = vsel %vm891_vm8, %v2079_v37, -inf }
 0xc43   :  { %2081 = vmax.xlane.f32.xlu0 %v2080_v41  ;;  %v11449_v41 = vld [vmem:[#allocation18] ss:$0 sm:$0xff] }
 0xc48   :  { %1765 = vrot.lane.b32.xlu1 %v1764_v42, %s14341_s1 }
 0xcc4   :  { %v1592_v43 = vpop.xlane.xlu1 %1591 }
 0xcc5   :  { %v1593_v44 = vsub.f32 %v1589_v17, %v1592_v43 }
 0xcc7   :  { %v1594_v46 = vmul.f32 1.442695, %v1593_v44 }
 0xcc8   :  { %v1677_v47 = vpop.xlane.xlu0 %1676  ;;  %v1766_v39 = vpop.permute.xlu1 %1765 }
 0xcc9   :  { %13386 = vpow2.f32 %v1594_v46  ;;  %v1678_v48 = vsub.f32 %v1674_v26, %v1677_v47 }
 0xccb   :  { %v1679_v49 = vmul.f32 1.442695, %v1678_v48 }
 0xccc   :  { %v1918_v50 = vpop.xlane.xlu0 %1917 }
 0xccd   :  { %13388 = vpow2.f32 %v1679_v49  ;;  %v1919_v51 = vsub.f32 %v1915_v32, %v1918_v50  ;;  %v2177_v32 = vld [vmem:[%s16330_s4 + $0x18] sm:$0xff]  ;;  %s16358_s4 = sld [smem:[#allocation81_spill]] }
 0xcce   :  { %v12920_v34 = vpack.c.bf16 %v2177_v32, %v2176_v31  ;;  %v2388_v32 = vld [vmem:[%s16332_s2 + $0x70] sm:$0xff] }
 0xccf   :  { %v1920_v52 = vmul.f32 1.442695, %v1919_v51 }
 0xcd0   :  { %v2082_v54 = vpop.xlane.xlu0 %2081  ;;  %12921 = vmatpush3.bf16.msra.mxu1 %v12920_v34  ;;  %v2389_v34 = vld [vmem:[%s16332_s2 + $0x78] sm:$0xff] }
 0xcd1   :  { %13390 = vpow2.f32 %v1920_v52  ;;  %v2083_v55 = vsub.f32 %v2079_v37, %v2082_v54  ;;  %12922 = vmatprep.subr.bf16.mxu1 %v14337_v0  ;;  %v2289_v52 = vld [vmem:[%s16331_s30] sm:$0xff]  ;;  %v2290_v54 = vld [vmem:[%s16331_s30 + $0x8] sm:$0xff] }
 0xcd3   :  { %v13387_v57 = vpop.eup %13386  ;;  %v2084_v58 = vmul.f32 1.442695, %v2083_v55  ;;  %v12923_v55 = vpack.c.bf16 %v2290_v54, %v2289_v52 }
 0xcd4   :  { %v1596_v23 = vsel %vm891_vm8, %v13387_v57, 0.0 }
 0xcd5   :  { %13392 = vpow2.f32 %v2084_v58  ;;  %1597 = vadd.xlane.f32.xlu0 %v1596_v23  ;;  %v2292_v58 = vld [vmem:[%s16331_s30 + $0x18] sm:$0xff] }
 0xcd7   :  { %v13389_v61 = vpop.eup %13388 }
 0xcd8   :  { %v1681_v2 = vsel %vm891_vm8, %v13389_v61, 0.0 }
 0xcd9   :  { %1682 = vadd.xlane.f32.xlu0 %v1681_v2 }
 0xcdb   :  { %v13391_v3 = vpop.eup %13390 }
 0xcdc   :  { %v1922_v4 = vsel %vm891_vm8, %v13391_v3, 0.0 }
 0xcdd   :  { %1923 = vadd.xlane.f32.xlu0 %v1922_v4  ;;  %v11451_v4 = vld [vmem:[#allocation25] ss:$0 sm:$0xff] }
 0xcdf   :  { %v13393_v5 = vpop.eup %13392 }
 0xce0   :  { %v2086_v6 = vsel %vm891_vm8, %v13393_v5, 0.0 }
 0xce1   :  { %2087 = vadd.xlane.f32.xlu1 %v2086_v6  ;;  %v2374_v6 = vld [vmem:[%s16332_s2] sm:$0xff] }
 0xcf2   :  { %1928 = vrot.lane.b32.xlu1 %v1927_v7, %s14341_s1  ;;  %v2375_v7 = vld [vmem:[%s16332_s2 + $0x8] sm:$0xff] }
 0xcf3   :  { %1687 = vrot.lane.b32.xlu0 %v1686_v8, %s14341_s1  ;;  %v11452_v8 = vld [vmem:[#allocation24] ss:$0 sm:$0xff]  ;;  %v12929_v10 = vpack.c.bf16 %v2375_v7, %v2374_v6  ;;  %v11456_v6 = vld [vmem:[#allocation28] ss:$0 sm:$0xff] }
 0xcf7   :  { %2092 = vrot.lane.b32.xlu0 %v2091_v9, %s14341_s1 }
 0xd62   :  { %v1598_v13 = vpop.xlane.xlu0 %1597 }
 0xd66   :  { %v1683_v56 = vpop.xlane.xlu0 %1682 }
 0xd67   :  { %13394 = vrcp.f32 %v1683_v56 }
 0xd68   :  { %13396 = vrcp.f32 %v1598_v13  ;;  %v2377_v13 = vld [vmem:[%s16332_s2 + $0x18] sm:$0xff] }
 0xd69   :  { %v12932_v56 = vpack.c.bf16 %v2377_v13, %v2376_v12 }
 0xd6a   :  { %v1924_v30 = vpop.xlane.xlu0 %1923 }
 0xd6b   :  { %13398 = vrcp.f32 %v1924_v30  ;;  %v2378_v30 = vld [vmem:[%s16332_s2 + $0x20] sm:$0xff] }
 0xd6e   :  { %v1688_v21 = vpop.permute.xlu0 %1687  ;;  %v2088_v15 = vpop.xlane.xlu1 %2087 }
 0xd6f   :  { %12100 = vmatpush3.msk.msra.mxu0 %vm718_vm2, %v1688_v21  ;;  %13400 = vrcp.f32 %v2088_v15  ;;  %v2379_v21 = vld [vmem:[%s16332_s2 + $0x28] sm:$0xff] }
 0xd70   :  { %12104 = vmatprep.subr.mxu0 %v14339_v45 }
 0xd71   :  { %v13395_v62 = vpop.eup %13394 }
 0xd72   :  { %v1685_v14 = vmul.f32 %v13395_v62, %v13389_v61  ;;  %v13397_v16 = vpop.eup %13396  ;;  %v1929_v18 = vpop.permute.xlu1 %1928  ;;  %v12935_v62 = vpack.c.bf16 %v2379_v21, %v2378_v30 }
 0xd73   :  { %v1600_v17 = vmul.f32 %v13397_v16, %v13387_v57  ;;  %v2093_v26 = vpop.permute.xlu0 %2092  ;;  %v2291_v57 = vld [vmem:[%s16331_s30 + $0x10] sm:$0xff]  ;;  %v2382_v16 = vld [vmem:[%s16332_s2 + $0x40] sm:$0xff]  ;;  %s16359_s30 = sld [smem:[#allocation79_spill]] }
 0xd74   :  { %12102 = vmatmul.mubr.msk.f32.vlgmr.msra.gmra.mrb[2].mxu0 %vm1007_vm14, %v1685_v14  ;;  %v2381_v14 = vld [vmem:[%s16332_s2 + $0x38] sm:$0xff] }
 0xd75   :  { %12105 = vmatpush3.msk.msra.mxu0 %vm718_vm2, %v1766_v39  ;;  %12106 = vmatprep.mubr.msk.f32.mxu0 %vm14338_vm1, %v14339_v45  ;;  %v13399_v19 = vpop.eup %13398  ;;  %v2380_v39 = vld [vmem:[%s16332_s2 + $0x30] sm:$0xff] }
 0xd76   :  { %12114 = vmatprep.subr.mxu0 %v14339_v45  ;;  %v1926_v25 = vmul.f32 %v13399_v19, %v13391_v3  ;;  %v12938_v15 = vpack.c.bf16 %v2381_v14, %v2380_v39  ;;  %v2384_v19 = vld [vmem:[%s16332_s2 + $0x50] sm:$0xff] }
 0xd79   :  { %v13401_v27 = vpop.eup %13400 }
 0xd7a   :  { %v2090_v28 = vmul.f32 %v13401_v27, %v13393_v5  ;;  %v2386_v27 = vld [vmem:[%s16332_s2 + $0x60] sm:$0xff] }
 0xd7c   :  { %12107 = vmatmul.mubr.msk.f32.vlgmr.msra.gmra.mrb[2].mxu0 %vm1007_vm14, %v1600_v17  ;;  %v2383_v17 = vld [vmem:[%s16332_s2 + $0x48] sm:$0xff] }
 0xd7d   :  { %12115 = vmatpush3.msk.msra.mxu0 %vm718_vm2, %v1929_v18  ;;  %12116 = vmatprep.mubr.msk.f32.mxu0 %vm14338_vm1, %v14339_v45  ;;  %v12941_v18 = vpack.c.bf16 %v2383_v17, %v2382_v16 }
 0xd7e   :  { %12124 = vmatprep.subr.mxu0 %v14339_v45 }
 0xd84   :  { %12117 = vmatmul.mubr.msk.f32.vlgmr.msra.gmra.mrb[2].mxu0 %vm1007_vm14, %v1926_v25  ;;  %v2385_v25 = vld [vmem:[%s16332_s2 + $0x58] sm:$0xff] }
 0xd85   :  { %12125 = vmatpush3.msk.msra.mxu0 %vm718_vm2, %v2093_v26  ;;  %12126 = vmatprep.mubr.msk.f32.mxu0 %vm14338_vm1, %v14339_v45  ;;  %v12944_v26 = vpack.c.bf16 %v2385_v25, %v2384_v19 }
 0xd86   :  { %12952 = vmatprep.subr.bf16.mxu0 %v14337_v0 }
 0xd8c   :  { %12127 = vmatmul.mubr.msk.f32.vlgmr.msra.gmra.mrb[2].mxu0 %vm1007_vm14, %v2090_v28  ;;  %v2387_v28 = vld [vmem:[%s16332_s2 + $0x68] sm:$0xff]  ;;  %s16361_s2 = sld [smem:[#allocation78_spill]] }
 0xd8d   :  { %12194 = vmatprep.mubr.msk.f32.mxu0 %vm14338_vm1, %v14339_v45  ;;  %v12947_v31 = vpack.c.bf16 %v2387_v28, %v2386_v27 }
 0xe5f   :  { %v2165_v35 = vpop.f32.mrb[2].mxu0 }
 0xe60   :  { %v2171_v36 = vrot.slane %v2165_v35, 4  ;;  %v12128_v37 = vpop.f32.mrb[3].mxu0  ;;  %v12950_v35 = vpack.c.bf16 %v2389_v34, %v2388_v32 }
 0xe62   :  { %v2173_v40 = vsel %vm718_vm2, %v15030_v1, %v2171_v36  ;;  %v11453_v36 = vld [vmem:[#allocation21] ss:$0 sm:$0xff] }
 0xe63   :  { %12138 = vmatmul.mubr.msk.f32.vlgmr.msra.gmra.mrb[20].mxu1 %vm732_vm3, %v2173_v40 }
 0xe64   :  { %12148 = vmatprep.mubr.msk.f32.mxu1 %vm14338_vm1, %v14339_v45  ;;  %12924 = vmatpush3.bf16.msra.mxu1 %v12923_v55  ;;  %v2497_v55 = vld [vmem:[%s16333_s13] sm:$0xff] }
 0xe65   :  { %12925 = vmatprep.subr.bf16.mxu1 %v14337_v0 }
 0xf36   :  { %v2254_v42 = vpop.f32.mrb[20].mxu1 }
 0xf37   :  { %v2255_v43 = vadd.f32 %v11449_v41, %v2254_v42  ;;  %v12139_v44 = vpop.f32.mrb[21].mxu1 }
 0xf39   :  { %v2258_v46 = vadd.f32 %v2255_v43, %v14863_v53  ;;  %v12926_v53 = vpack.c.bf16 %v2292_v58, %v2291_v57  ;;  %v11455_v43 = vld [vmem:[#allocation22] ss:$0 sm:$0xff]  ;;  %v2498_v57 = vld [vmem:[%s16333_s13 + $0x8] sm:$0xff] }
 0xf3a   :  { %v12953_v58 = vpack.c.bf16 %v2498_v57, %v2497_v55 }
 0xf3b   :  { %v2259_v47 = vsel %vm732_vm3, %v2258_v46, 0.0  ;;  %12927 = vmatpush3.bf16.msra.mxu1 %v12926_v53  ;;  %v2499_v53 = vld [vmem:[%s16333_s13 + $0x10] sm:$0xff] }
 0xf3c   :  { %2260 = vadd.xlane.f32.xlu1 %v2259_v47  ;;  %12928 = vmatprep.subr.bf16.mxu1 %v14337_v0 }
 0xf3d   :  { %12954 = vmatpush3.bf16.msra.mxu0 %v12953_v58 }
 0xf3e   :  { %12955 = vmatprep.subr.bf16.mxu0 %v14337_v0 }
 0xfc9   :  { %v2261_v48 = vpop.xlane.xlu1 %2260 }
 0xfca   :  { %v2263_v1 = vmul.f32 0.03125, %v2261_v48 }
 0xfcc   :  { %v2264_v49 = vsub.f32 %v2258_v46, %v2263_v1 }
 0xfce   :  { %v2265_v50 = vmul.f32 %v2264_v49, %v2264_v49 }
 0xfd0   :  { %v2266_v51 = vsel %vm732_vm3, %v2265_v50, 0.0 }
 0xfd1   :  { %2267 = vadd.xlane.f32.xlu0 %v2266_v51 }
0x105e   :  { %v2268_v23 = vpop.xlane.xlu0 %2267 }
0x105f   :  { %v2269_v61 = vmul.f32 0.03125, %v2268_v23  ;;  %v2500_v23 = vld [vmem:[%s16333_s13 + $0x18] sm:$0xff]  ;;  %s16362_s13 = sld [smem:[#allocation82_spill]] }
0x1061   :  { %v2270_v2 = vadd.f32 1e-05, %v2269_v61  ;;  %v12956_v61 = vpack.c.bf16 %v2500_v23, %v2499_v53 }
0x1063   :  { %13402 = vrsqrt.f32 %v2270_v2  ;;  %12957 = vmatpush3.bf16.msra.mxu0 %v12956_v61 }
0x1064   :  { %12197 = vmatprep.subr.mxu0 %v14339_v45 }
0x106d   :  { %v13403_v3 = vpop.eup %13402 }
0x106e   :  { %v2272_v5 = vmul.f32 %v13403_v3, %v2264_v49 }
0x1070   :  { %v2280_v9 = vmul.f32 %v11451_v4, %v2272_v5 }
0x1072   :  { %v2288_v11 = vadd.f32 %v11452_v8, %v2280_v9  ;;  %v11457_v8 = vld [vmem:[#allocation27] ss:$0 sm:$0xff] }
0x1074   :  { %12149 = vmatmul.mubr.msk.f32.vlgmr.msra.gmra.mrb[22].mxu1 %vm732_vm3, %v2288_v11 }
0x1075   :  { %12930 = vmatpush3.bf16.msra.mxu1 %v12929_v10  ;;  %12183 = vmatprep.mubr.msk.f32.mxu1 %vm14338_vm1, %v14339_v45 }
0x1076   :  { %12931 = vmatprep.subr.bf16.mxu1 %v14337_v0 }
0x1079   :  { %12933 = vmatpush3.bf16.msra.mxu1 %v12932_v56 }
0x107a   :  { %12934 = vmatprep.subr.bf16.mxu1 %v14337_v0 }
0x107d   :  { %12936 = vmatpush3.bf16.msra.mxu1 %v12935_v62 }
0x107e   :  { %12937 = vmatprep.subr.bf16.mxu1 %v14337_v0 }
0x1081   :  { %12939 = vmatpush3.bf16.msra.mxu1 %v12938_v15 }
0x1082   :  { %12940 = vmatprep.subr.bf16.mxu1 %v14337_v0 }
0x1085   :  { %12942 = vmatpush3.bf16.msra.mxu1 %v12941_v18 }
0x1086   :  { %12943 = vmatprep.subr.bf16.mxu1 %v14337_v0 }
0x1089   :  { %12945 = vmatpush3.bf16.msra.mxu1 %v12944_v26 }
0x108a   :  { %12946 = vmatprep.subr.bf16.mxu1 %v14337_v0 }
0x108d   :  { %12948 = vmatpush3.bf16.msra.mxu1 %v12947_v31 }
0x108e   :  { %12949 = vmatprep.subr.bf16.mxu1 %v14337_v0 }
0x1091   :  { %12951 = vmatpush3.bf16.msra.mxu1 %v12950_v35 }
0x1092   :  { %12227 = vmatprep.subr.mxu1 %v14339_v45 }
0x1147   :  { %v2369_v37 = vpop.f32.mrb[22].mxu1 }
0x1148   :  { %v2370_v40 = vadd.f32 %v11453_v36, %v2369_v37  ;;  %v12150_v41 = vpop.f32.mrb[23].mxu1 }
0x114a   :  { %v2373_v42 = vmax.f32 %v2370_v40, 0.0 }
0x114c   :  { %12184 = vmatmul.mubr.f32.vlgmr.msra.gmra.mrb[24].mxu1 %v2373_v42 }
0x114d   :  { %12229 = vmatprep.mubr.msk.f32.mxu1 %vm14338_vm1, %v14339_v45 }
0x121f   :  { %v2463_v44 = vpop.f32.mrb[24].mxu1 }
0x1220   :  { %v2464_v46 = vadd.f32 %v11455_v43, %v2463_v44  ;;  %v12185_v47 = vpop.f32.mrb[25].mxu1 }
0x1222   :  { %v2467_v48 = vadd.f32 %v2464_v46, %v2288_v11  ;;  %v11458_v11 = vld [vmem:[#allocation31] ss:$0 sm:$0xff] }
0x1224   :  { %v2468_v1 = vsel %vm732_vm3, %v2467_v48, 0.0 }
0x1225   :  { %2469 = vadd.xlane.f32.xlu0 %v2468_v1 }
0x12b2   :  { %v2470_v49 = vpop.xlane.xlu0 %2469 }
0x12b3   :  { %v2471_v50 = vmul.f32 0.03125, %v2470_v49 }
0x12b5   :  { %v2472_v51 = vsub.f32 %v2467_v48, %v2471_v50 }
0x12b7   :  { %v2473_v52 = vmul.f32 %v2472_v51, %v2472_v51 }
0x12b9   :  { %v2474_v54 = vsel %vm732_vm3, %v2473_v52, 0.0 }
0x12ba   :  { %2475 = vadd.xlane.f32.xlu1 %v2474_v54 }
0x1347   :  { %v2476_v2 = vpop.xlane.xlu1 %2475 }
0x1348   :  { %v2477_v3 = vmul.f32 0.03125, %v2476_v2 }
0x134a   :  { %v2478_v4 = vadd.f32 1e-05, %v2477_v3 }
0x134c   :  { %13404 = vrsqrt.f32 %v2478_v4 }
0x1356   :  { %v13405_v5 = vpop.eup %13404 }
0x1357   :  { %v2480_v7 = vmul.f32 %v13405_v5, %v2472_v51 }
0x1359   :  { %v2488_v9 = vmul.f32 %v11456_v6, %v2480_v7 }
0x135b   :  { %v15125_v10 = vadd.f32 %v11457_v8, %v2488_v9 }
0x135d   :  { %12195 = vmatmul.mubr.msk.f32.vlgmr.msra.gmra.mrb[4].mxu0 %vm732_vm3, %v15125_v10 }
0x135e   :  { %12199 = vmatprep.mubr.msk.f32.mxu0 %vm14338_vm1, %v14339_v45 }
0x1430   :  { %v2577_v12 = vpop.f32.mrb[4].mxu0 }
0x1431   :  { %v15131_v13 = vadd.f32 %v11458_v11, %v2577_v12  ;;  %v12196_v56 = vpop.f32.mrb[5].mxu0 }
0x1433   :  { %2583 = vrot.lane.b32.xlu0 %v15131_v13, %s14340_s3  ;;  %v15137_v30 = vmul.f32 %v15131_v13, %v14922_v22  ;;  %v3249_v21 = vrot.slane %v15131_v13, 4  ;;  %v3082_v39 = vmul.f32 %v14953_v33, %v15131_v13  ;;  %v2581_v14 = vmul.f32 %v14879_v60, %v15131_v13 }
0x1434   :  { %v2673_v16 = vmul.f32 %v14891_v63, %v15131_v13  ;;  %v15180_v25 = vmul.f32 %v14935_v24, %v15131_v13  ;;  %v15204_v3 = vmul.f32 %v15131_v13, %v14916_v20 }
0x1435   :  { %v3248_v18 = vrot.slane %v2581_v14, 4  ;;  %v3743_v27 = vrot.slane %v3082_v39, 4 }
0x1436   :  { %v3338_v19 = vrot.slane %v2673_v16, 4  ;;  %v3579_v26 = vrot.slane %v15180_v25, 4 }
0x1437   :  { %2839 = vrot.lane.b32.xlu0 %v15137_v30, %s14341_s1 }
0x143b   :  { %3250 = vrot.lane.b32.xlu0 %v3249_v21, %s14340_s3 }
0x14a5   :  { %v15143_v62 = vpop.permute.xlu0 %2583 }
0x14a6   :  { %12198 = vmatpush3.xpose.msk.msra.mxu0 %vm732_vm3, %v15143_v62  ;;  %12228 = vmatpush3.xpose.msk.msra.mxu1 %vm732_vm3, %v15143_v62 }
0x14a7   :  { %12202 = vmatprep.subr.mxu0 %v14339_v45  ;;  %12237 = vmatprep.subr.mxu1 %v14339_v45 }
0x14a9   :  { %12230 = vmatmul.mubr.msk.f32.vlgmr.msra.gmra.mrb[26].mxu1 %vm732_vm3, %v3082_v39  ;;  %v15156_v15 = vpop.permute.xlu0 %2839  ;;  %12200 = vmatmul.mubr.msk.f32.vlgmr.msra.gmra.mrb[6].mxu0 %vm732_vm3, %v2581_v14 }
0x14aa   :  { %12203 = vmatpush3.xpose.msk.msra.mxu0 %vm732_vm3, %v15143_v62  ;;  %12204 = vmatprep.mubr.msk.f32.mxu0 %vm14338_vm1, %v14339_v45 }
0x14ab   :  { %12239 = vmatprep.mubr.msk.f32.mxu1 %vm14338_vm1, %v14339_v45  ;;  %12207 = vmatprep.subr.mxu0 %v14339_v45 }
0x14ad   :  { %v3251_v17 = vpop.permute.xlu0 %3250  ;;  %12205 = vmatmul.mubr.msk.f32.vlgmr.msra.gmra.mrb[8].mxu0 %vm732_vm3, %v2673_v16 }
0x14ae   :  { %12238 = vmatpush3.xpose.msk.msra.mxu1 %vm732_vm3, %v3251_v17  ;;  %12209 = vmatprep.mubr.msk.f32.mxu0 %vm14338_vm1, %v14339_v45 }
0x14af   :  { %12242 = vmatprep.subr.mxu1 %v14339_v45 }
0x14b1   :  { %12240 = vmatmul.mubr.msk.f32.vlgmr.msra.gmra.mrb[28].mxu1 %vm732_vm3, %v3248_v18 }
0x14b2   :  { %12243 = vmatpush3.xpose.msk.msra.mxu1 %vm732_vm3, %v3251_v17  ;;  %12244 = vmatprep.mubr.msk.f32.mxu1 %vm14338_vm1, %v14339_v45 }
0x14b3   :  { %12257 = vmatprep.subr.mxu1 %v14339_v45 }
0x14b5   :  { %12245 = vmatmul.mubr.msk.f32.vlgmr.msra.gmra.mrb[30].mxu1 %vm732_vm3, %v3338_v19 }
0x14b6   :  { %12258 = vmatpush3.xpose.msk.msra.mxu1 %vm732_vm3, %v3251_v17  ;;  %12259 = vmatprep.mubr.msk.f32.mxu1 %vm14338_vm1, %v14339_v45 }
0x14b7   :  { %12267 = vmatprep.subr.mxu1 %v14339_v45 }
0x14b9   :  { %12260 = vmatmul.mubr.msk.f32.vlgmr.msra.gmra.mrb[32].mxu1 %vm732_vm3, %v3579_v26 }
0x14ba   :  { %12268 = vmatpush3.xpose.msk.msra.mxu1 %vm732_vm3, %v3251_v17  ;;  %12269 = vmatprep.mubr.msk.f32.mxu1 %vm14338_vm1, %v14339_v45 }
0x14bb   :  { %12958 = vmatprep.subr.bf16.mxu1 %v14337_v0 }
0x14bd   :  { %12270 = vmatmul.mubr.msk.f32.vlgmr.msra.gmra.mrb[34].mxu1 %vm732_vm3, %v3743_v27 }
0x14be   :  { %12285 = vmatprep.mubr.msk.f32.mxu1 %vm14338_vm1, %v14339_v45 }
0x157c   :  { %v2656_v28 = vpop.f32.mrb[6].mxu0  ;;  %v3152_v31 = vpop.f32.mrb[26].mxu1 }
0x157d   :  { %v12201_v32 = vpop.f32.mrb[7].mxu0  ;;  %v12231_v34 = vpop.f32.mrb[27].mxu1  ;;  %v2660_v40 = vmul.f32 0.35355338, %v2656_v28  ;;  %v3156_v4 = vmul.f32 0.35355338, %v3152_v31 }
0x157f   :  { %v2661_v44 = vsel %vm891_vm8, %v2660_v40, -inf  ;;  %v3157_v6 = vsel %vm891_vm8, %v3156_v4, -inf }
0x1580   :  { %v2743_v35 = vpop.f32.mrb[8].mxu0 }
0x1581   :  { %v2747_v36 = vmul.f32 0.35355338, %v2743_v35  ;;  %v12206_v37 = vpop.f32.mrb[9].mxu0 }
0x1583   :  { %v2748_v41 = vsel %vm891_vm8, %v2747_v36, -inf }
0x1584   :  { %2749 = vmax.xlane.f32.xlu1 %v2748_v41  ;;  %v15197_v42 = vpop.f32.mrb[28].mxu1 }
0x1585   :  { %v12241_v43 = vpop.f32.mrb[29].mxu1 }
0x1588   :  { %2662 = vmax.xlane.f32.xlu1 %v2661_v44  ;;  %v3407_v46 = vpop.f32.mrb[30].mxu1 }
0x1589   :  { %v12246_v47 = vpop.f32.mrb[31].mxu1  ;;  %v3411_v27 = vmul.f32 0.35355338, %v3407_v46 }
0x158b   :  { %v3412_v31 = vsel %vm891_vm8, %v3411_v27, -inf }
0x158c   :  { %v3648_v48 = vpop.f32.mrb[32].mxu1 }
0x158d   :  { %v12261_v1 = vpop.f32.mrb[33].mxu1  ;;  %v3652_v32 = vmul.f32 0.35355338, %v3648_v48 }
0x158f   :  { %v3653_v35 = vsel %vm891_vm8, %v3652_v32, -inf }
0x1590   :  { %v3812_v49 = vpop.f32.mrb[34].mxu1 }
0x1591   :  { %v12271_v50 = vpop.f32.mrb[35].mxu1  ;;  %v15208_v5 = vmul.f32 0.35355338, %v3812_v49 }
0x1593   :  { %v3817_v7 = vsel %vm891_vm8, %v15208_v5, -inf }
0x1611   :  { %v2750_v51 = vpop.xlane.xlu1 %2749 }
0x1612   :  { %v2751_v52 = vsub.f32 %v2747_v36, %v2750_v51 }
0x1614   :  { %v2752_v57 = vmul.f32 1.442695, %v2751_v52 }
0x1615   :  { %v2663_v54 = vpop.xlane.xlu1 %2662 }
0x1616   :  { %v2664_v55 = vsub.f32 %v2660_v40, %v2663_v54 }
0x1618   :  { %v2665_v58 = vmul.f32 1.442695, %v2664_v55 }
0x161a   :  { %13406 = vpow2.f32 %v2665_v58 }
0x161b   :  { %13408 = vpow2.f32 %v2752_v57 }
0x1624   :  { %v13407_v53 = vpop.eup %13406 }
0x1625   :  { %v2667_v23 = vsel %vm891_vm8, %v13407_v53, 0.0  ;;  %v13409_v61 = vpop.eup %13408 }
0x1626   :  { %2668 = vadd.xlane.f32.xlu1 %v2667_v23  ;;  %v2754_v2 = vsel %vm891_vm8, %v13409_v61, 0.0  ;;  %v3168_v23 = vmul.f32 %v15131_v13, %v14977_v38 }
0x162a   :  { %2755 = vadd.xlane.f32.xlu1 %v2754_v2  ;;  %v3423_v2 = vrot.slane %v15204_v3, 4 }
0x163b   :  { %2761 = vrot.lane.b32.xlu1 %v15204_v3, %s14341_s1 }
0x165f   :  { %3158 = vmax.xlane.f32.xlu1 %v3157_v6 }
0x1663   :  { %3818 = vmax.xlane.f32.xlu1 %v3817_v7 }
0x16b3   :  { %v2669_v8 = vpop.xlane.xlu1 %2668 }
0x16b7   :  { %v2756_v9 = vpop.xlane.xlu1 %2755 }
0x16b8   :  { %13410 = vrcp.f32 %v2756_v9 }
0x16b9   :  { %13412 = vrcp.f32 %v2669_v8 }
0x16bb   :  { %v2762_v11 = vpop.permute.xlu1 %2761 }
0x16bc   :  { %12208 = vmatpush3.msk.msra.mxu0 %vm718_vm2, %v2762_v11 }
0x16bd   :  { %12212 = vmatprep.subr.mxu0 %v14339_v45 }
0x16c2   :  { %v13411_v12 = vpop.eup %13410 }
0x16c3   :  { %v2758_v56 = vmul.f32 %v13411_v12, %v13409_v61  ;;  %v13413_v21 = vpop.eup %13412  ;;  %v3002_v61 = vmul.f32 %v15131_v13, %v14941_v29  ;;  %v3828_v13 = vrot.slane %v3168_v23, 4 }
0x16c4   :  { %v2671_v39 = vmul.f32 %v13413_v21, %v13407_v53 }
0x16c5   :  { %12210 = vmatmul.mubr.msk.f32.vlgmr.msra.gmra.mrb[10].mxu0 %vm1007_vm14, %v2758_v56  ;;  %v3664_v8 = vrot.slane %v3002_v61, 4 }
0x16c6   :  { %12213 = vmatpush3.msk.msra.mxu0 %vm718_vm2, %v15156_v15  ;;  %12214 = vmatprep.mubr.msk.f32.mxu0 %vm14338_vm1, %v14339_v45 }
0x16c7   :  { %12217 = vmatprep.subr.mxu0 %v14339_v45 }
0x16cd   :  { %12215 = vmatmul.mubr.msk.f32.vlgmr.msra.gmra.mrb[10].mxu0 %vm1007_vm14, %v2671_v39 }
0x16ce   :  { %12218 = vmatpush3.xpose.msk.msra.mxu0 %vm732_vm3, %v15143_v62  ;;  %12219 = vmatprep.mubr.msk.f32.mxu0 %vm14338_vm1, %v14339_v45 }
0x16cf   :  { %12222 = vmatprep.subr.mxu0 %v14339_v45 }
0x16d1   :  { %12220 = vmatmul.mubr.msk.f32.vlgmr.msra.gmra.mrb[12].mxu0 %vm732_vm3, %v15180_v25  ;;  %v3326_v25 = vmul.f32 0.35355338, %v15197_v42 }
0x16d2   :  { %12224 = vmatprep.mubr.msk.f32.mxu0 %vm14338_vm1, %v14339_v45 }
0x16d3   :  { %v3327_v34 = vsel %vm891_vm8, %v3326_v25, -inf }
0x16ec   :  { %v3159_v14 = vpop.xlane.xlu1 %3158 }
0x16ed   :  { %v3160_v15 = vsub.f32 %v3156_v4, %v3159_v14  ;;  %v3501_v4 = vrot.slane %v15137_v30, 4 }
0x16ef   :  { %v3161_v16 = vmul.f32 1.442695, %v3160_v15 }
0x16f0   :  { %v3819_v6 = vpop.xlane.xlu1 %3818 }
0x16f1   :  { %13414 = vpow2.f32 %v3161_v16  ;;  %v3820_v7 = vsub.f32 %v15208_v5, %v3819_v6 }
0x16f3   :  { %v3821_v9 = vmul.f32 1.442695, %v3820_v7 }
0x16fb   :  { %v15231_v17 = vpop.eup %13414 }
0x16fc   :  { %v3163_v62 = vsel %vm891_vm8, %v15231_v17, 0.0 }
0x16fd   :  { %3164 = vadd.xlane.f32.xlu1 %v3163_v62 }
0x178a   :  { %v3165_v56 = vpop.xlane.xlu1 %3164 }
0x17a4   :  { %v2986_v18 = vpop.f32.mrb[12].mxu0 }
0x17a5   :  { %v2990_v19 = vmul.f32 0.35355338, %v2986_v18  ;;  %v12221_v26 = vpop.f32.mrb[13].mxu0 }
0x17a7   :  { %v2991_v28 = vsel %vm891_vm8, %v2990_v19, -inf }
0x17a8   :  { %2992 = vmax.xlane.f32.xlu0 %v2991_v28 }
0x17ac   :  { %3413 = vmax.xlane.f32.xlu0 %v3412_v31 }
0x17b0   :  { %3328 = vmax.xlane.f32.xlu0 %v3327_v34 }
0x17b4   :  { %3654 = vmax.xlane.f32.xlu0 %v3653_v35 }
0x1835   :  { %v2993_v36 = vpop.xlane.xlu0 %2992 }
0x1836   :  { %v2994_v37 = vsub.f32 %v2990_v19, %v2993_v36 }
0x1838   :  { %v2995_v43 = vmul.f32 1.442695, %v2994_v37 }
0x1839   :  { %v3414_v40 = vpop.xlane.xlu0 %3413 }
0x183a   :  { %v3415_v41 = vsub.f32 %v3411_v27, %v3414_v40 }
0x183c   :  { %v3416_v44 = vmul.f32 1.442695, %v3415_v41  ;;  %v3911_v41 = vld [vmem:[%s16334_s0] sm:$0xff] }
0x183d   :  { %v3329_v46 = vpop.xlane.xlu0 %3328 }
0x183e   :  { %13416 = vpow2.f32 %v3416_v44  ;;  %v3330_v47 = vsub.f32 %v3326_v25, %v3329_v46  ;;  %v3913_v46 = vld [vmem:[%s16334_s0 + $0x10] sm:$0xff] }
0x183f   :  { %13418 = vpow2.f32 %v2995_v43  ;;  %v3912_v43 = vld [vmem:[%s16334_s0 + $0x8] sm:$0xff] }
0x1840   :  { %v3331_v42 = vmul.f32 1.442695, %v3330_v47  ;;  %v12959_v44 = vpack.c.bf16 %v3912_v43, %v3911_v41  ;;  %v3914_v47 = vld [vmem:[%s16334_s0 + $0x18] sm:$0xff]  ;;  %v4122_v41 = vld [vmem:[%s16337_s12 + $0x60] sm:$0xff]  ;;  %v4123_v43 = vld [vmem:[%s16337_s12 + $0x68] sm:$0xff]  ;;  %s16363_s0 = sld [smem:[#allocation83_spill]] }
0x1841   :  { %v3655_v1 = vpop.xlane.xlu0 %3654 }
0x1842   :  { %13420 = vpow2.f32 %v3331_v42  ;;  %v3656_v48 = vsub.f32 %v3652_v32, %v3655_v1  ;;  %12960 = vmatpush3.bf16.msra.mxu1 %v12959_v44  ;;  %v12962_v42 = vpack.c.bf16 %v3914_v47, %v3913_v46  ;;  %v12989_v44 = vpack.c.bf16 %v4123_v43, %v4122_v41 }
0x1843   :  { %12961 = vmatprep.subr.bf16.mxu1 %v14337_v0 }
0x1844   :  { %v3657_v49 = vmul.f32 1.442695, %v3656_v48 }
0x1846   :  { %13422 = vpow2.f32 %v3657_v49  ;;  %12963 = vmatpush3.bf16.msra.mxu1 %v12962_v42 }
0x1847   :  { %13424 = vpow2.f32 %v3821_v9  ;;  %12970 = vmatprep.subr.bf16.mxu1 %v14337_v0  ;;  %v4233_v9 = vld [vmem:[%s16335_s7] sm:$0xff] }
0x1848   :  { %v13417_v50 = vpop.eup %13416 }
0x1849   :  { %v3418_v51 = vsel %vm891_vm8, %v13417_v50, 0.0  ;;  %v13419_v52 = vpop.eup %13418 }
0x184a   :  { %3419 = vadd.xlane.f32.xlu0 %v3418_v51  ;;  %v2997_v55 = vsel %vm891_vm8, %v13419_v52, 0.0 }
0x184c   :  { %v13421_v54 = vpop.eup %13420 }
0x184d   :  { %v3333_v57 = vsel %vm891_vm8, %v13421_v54, 0.0 }
0x184e   :  { %2998 = vadd.xlane.f32.xlu0 %v2997_v55  ;;  %3334 = vadd.xlane.f32.xlu1 %v3333_v57 }
0x1850   :  { %v15243_v58 = vpop.eup %13422 }
0x1851   :  { %v3659_v53 = vsel %vm891_vm8, %v15243_v58, 0.0  ;;  %v13425_v11 = vpop.eup %13424 }
0x1852   :  { %3660 = vadd.xlane.f32.xlu1 %v3659_v53  ;;  %v3823_v3 = vsel %vm891_vm8, %v13425_v11, 0.0 }
0x1863   :  { %3170 = vrot.lane.b32.xlu1 %v3168_v23, %s14341_s1 }
0x1864   :  { %3004 = vrot.lane.b32.xlu0 %v3002_v61, %s14341_s1  ;;  %v14342_v61 = vmov 0  }
0x1865   :  { %13338 = vset.pattern.permute.xlu0 %v14342_v61  ;;  %13339 = vset.pattern.permute.xlu1 %v14342_v61 }
0x1867   :  { %3424 = vrot.lane.b32.xlu1 %v3423_v2, %s14341_s1  ;;  %v4234_v2 = vld [vmem:[%s16335_s7 + $0x8] sm:$0xff]  ;;  %s16364_s7 = sld [smem:[#allocation110_spill]] }
0x186b   :  { %3502 = vrot.lane.b32.xlu1 %v3501_v4, %s14341_s1 }
0x186f   :  { %3665 = vrot.lane.b32.xlu1 %v3664_v8, %s14341_s1 }
0x1873   :  { %3829 = vrot.lane.b32.xlu1 %v3828_v13, %s14341_s1  ;;  %v4025_v13 = vld [vmem:[%s16336_s10] sm:$0xff] }
0x1883   :  { %3824 = vadd.xlane.f32.xlu0 %v3823_v3 }
0x18d7   :  { %v3420_v12 = vpop.xlane.xlu0 %3419 }
0x18db   :  { %v2999_v30 = vpop.xlane.xlu0 %2998  ;;  %v3335_v21 = vpop.xlane.xlu1 %3334 }
0x18dc   :  { %13426 = vrcp.f32 %v2999_v30 }
0x18dd   :  { %13428 = vrcp.f32 %v3165_v56  ;;  %v4028_v56 = vld [vmem:[%s16336_s10 + $0x18] sm:$0xff] }
0x18de   :  { %13430 = vrcp.f32 %v3420_v12  ;;  %v4027_v12 = vld [vmem:[%s16336_s10 + $0x10] sm:$0xff] }
0x18df   :  { %v3005_v39 = vpop.permute.xlu0 %3004  ;;  %v3661_v5 = vpop.xlane.xlu1 %3660  ;;  %13432 = vrcp.f32 %v3335_v21  ;;  %v12968_v30 = vpack.c.bf16 %v4028_v56, %v4027_v12  ;;  %v4247_v21 = vld [vmem:[%s14692_s8] sm:$0xff] }
0x18e0   :  { %12223 = vmatpush3.msk.msra.mxu0 %vm718_vm2, %v3005_v39  ;;  %13434 = vrcp.f32 %v3661_v5  ;;  %v4248_v39 = vld [vmem:[%s14692_s8 + $0x8] sm:$0xff]  ;;  %s16338_s8 = sld [smem:[#allocation77_spill]]  ;;  %v4249_v12 = vld [vmem:[%s14687_s19] sm:$0xff]  ;;  %s16340_s19 = sld [smem:[#allocation76_spill]] }
0x18e1   :  { %12232 = vmatprep.subr.mxu0 %v14339_v45  ;;  %v12994_v5 = vpack.c.bf16 %v4248_v39, %v4247_v21 }
0x18e3   :  { %v3171_v16 = vpop.permute.xlu1 %3170 }
0x18e6   :  { %v13427_v14 = vpop.eup %13426 }
0x18e7   :  { %v3001_v15 = vmul.f32 %v13427_v14, %v13419_v52  ;;  %v13429_v62 = vpop.eup %13428  ;;  %v3425_v18 = vpop.permute.xlu1 %3424  ;;  %v4110_v14 = vld [vmem:[%s16337_s12] sm:$0xff] }
0x18e8   :  { %v3167_v19 = vmul.f32 %v13429_v62, %v15231_v17  ;;  %v13431_v26 = vpop.eup %13430 }
0x18e9   :  { %12225 = vmatmul.mubr.msk.f32.vlgmr.msra.gmra.mrb[10].mxu0 %vm1007_vm14, %v3001_v15  ;;  %v3422_v27 = vmul.f32 %v13431_v26, %v13417_v50  ;;  %v13433_v17 = vpop.eup %13432  ;;  %v4111_v15 = vld [vmem:[%s16337_s12 + $0x8] sm:$0xff]  ;;  %v4114_v26 = vld [vmem:[%s16337_s12 + $0x20] sm:$0xff] }
0x18ea   :  { %12233 = vmatpush3.msk.msra.mxu0 %vm718_vm2, %v3171_v16  ;;  %12234 = vmatprep.mubr.msk.f32.mxu0 %vm14338_vm1, %v14339_v45  ;;  %v3337_v25 = vmul.f32 %v13433_v17, %v13421_v54  ;;  %v13435_v32 = vpop.eup %13434  ;;  %v11492_v54 = vld [vmem:[#allocation30] ss:$0 sm:$0xff]  ;;  %v4112_v16 = vld [vmem:[%s16337_s12 + $0x10] sm:$0xff]  ;;  %v12971_v62 = vpack.c.bf16 %v4111_v15, %v4110_v14  ;;  %v11505_v15 = vld [vmem:[%s16339_s6] ss:$0 sm:$0xff] }
0x18eb   :  { %12247 = vmatprep.subr.mxu0 %v14339_v45  ;;  %v3503_v28 = vpop.permute.xlu1 %3502  ;;  %v3663_v34 = vmul.f32 %v13435_v32, %v15243_v58  ;;  %v4116_v17 = vld [vmem:[%s16337_s12 + $0x30] sm:$0xff]  ;;  %v4118_v32 = vld [vmem:[%s16337_s12 + $0x40] sm:$0xff] }
0x18ef   :  { %v3666_v31 = vpop.permute.xlu1 %3665 }
0x18f1   :  { %12235 = vmatmul.mubr.msk.f32.vlgmr.msra.gmra.mrb[10].mxu0 %vm1007_vm14, %v3167_v19 }
0x18f2   :  { %12248 = vmatpush3.msk.msra.mxu0 %vm718_vm2, %v3425_v18  ;;  %12249 = vmatprep.mubr.msk.f32.mxu0 %vm14338_vm1, %v14339_v45  ;;  %v4113_v18 = vld [vmem:[%s16337_s12 + $0x18] sm:$0xff] }
0x18f3   :  { %12252 = vmatprep.subr.mxu0 %v14339_v45  ;;  %v3830_v35 = vpop.permute.xlu1 %3829  ;;  %v12974_v19 = vpack.c.bf16 %v4113_v18, %v4112_v16 }
0x18f5   :  { %12250 = vmatmul.mubr.msk.f32.vlgmr.msra.gmra.mrb[14].mxu0 %vm1007_vm14, %v3422_v27  ;;  %v4115_v27 = vld [vmem:[%s16337_s12 + $0x28] sm:$0xff] }
0x18f6   :  { %12253 = vmatpush3.msk.msra.mxu0 %vm718_vm2, %v3503_v28  ;;  %12254 = vmatprep.mubr.msk.f32.mxu0 %vm14338_vm1, %v14339_v45  ;;  %v12977_v28 = vpack.c.bf16 %v4115_v27, %v4114_v26 }
0x18f7   :  { %12262 = vmatprep.subr.mxu0 %v14339_v45 }
0x18fd   :  { %12255 = vmatmul.mubr.msk.f32.vlgmr.msra.gmra.mrb[14].mxu0 %vm1007_vm14, %v3337_v25  ;;  %v4117_v25 = vld [vmem:[%s16337_s12 + $0x38] sm:$0xff] }
0x18fe   :  { %12263 = vmatpush3.msk.msra.mxu0 %vm718_vm2, %v3666_v31  ;;  %12264 = vmatprep.mubr.msk.f32.mxu0 %vm14338_vm1, %v14339_v45  ;;  %v12980_v31 = vpack.c.bf16 %v4117_v25, %v4116_v17 }
0x18ff   :  { %12272 = vmatprep.subr.mxu0 %v14339_v45 }
0x1905   :  { %12265 = vmatmul.mubr.msk.f32.vlgmr.msra.gmra.mrb[14].mxu0 %vm1007_vm14, %v3663_v34  ;;  %v4119_v34 = vld [vmem:[%s16337_s12 + $0x48] sm:$0xff] }
0x1906   :  { %12273 = vmatpush3.msk.msra.mxu0 %vm718_vm2, %v3830_v35  ;;  %12274 = vmatprep.mubr.msk.f32.mxu0 %vm14338_vm1, %v14339_v45  ;;  %v12983_v35 = vpack.c.bf16 %v4119_v34, %v4118_v32 }
0x1907   :  { %12964 = vmatprep.subr.bf16.mxu0 %v14337_v0 }
0x1910   :  { %v3825_v36 = vpop.xlane.xlu0 %3824 }
0x1911   :  { %13436 = vrcp.f32 %v3825_v36  ;;  %v4120_v36 = vld [vmem:[%s16337_s12 + $0x50] sm:$0xff] }
0x191b   :  { %v13437_v37 = vpop.eup %13436 }
0x191c   :  { %v3827_v40 = vmul.f32 %v13437_v37, %v13425_v11  ;;  %v4026_v11 = vld [vmem:[%s16336_s10 + $0x8] sm:$0xff]  ;;  %v4121_v37 = vld [vmem:[%s16337_s12 + $0x58] sm:$0xff] }
0x191d   :  { %v12965_v3 = vpack.c.bf16 %v4026_v11, %v4025_v13 }
0x191e   :  { %12275 = vmatmul.mubr.msk.f32.vlgmr.msra.gmra.mrb[14].mxu0 %vm1007_vm14, %v3827_v40  ;;  %v12986_v40 = vpack.c.bf16 %v4121_v37, %v4120_v36 }
0x191f   :  { %12296 = vmatprep.mubr.msk.f32.mxu0 %vm14338_vm1, %v14339_v45  ;;  %12966 = vmatpush3.bf16.msra.mxu0 %v12965_v3 }
0x1920   :  { %12967 = vmatprep.subr.bf16.mxu0 %v14337_v0 }
0x1923   :  { %12969 = vmatpush3.bf16.msra.mxu0 %v12968_v30 }
0x1924   :  { %12995 = vmatprep.subr.bf16.mxu0 %v12994_v5 }
0x19c4   :  { %v3243_v1 = vpop.f32.mrb[10].mxu0 }
0x19c5   :  { %v12236_v48 = vpop.f32.mrb[11].mxu0 }
0x19f1   :  { %v3902_v49 = vpop.f32.mrb[14].mxu0 }
0x19f2   :  { %v3908_v50 = vrot.slane %v3902_v49, 4  ;;  %v12276_v51 = vpop.f32.mrb[15].mxu0  ;;  %v11494_v49 = vld [vmem:[#allocation37] ss:$0 sm:$0xff] }
0x19f3   :  { %v11495_v51 = vld [vmem:[#allocation36] ss:$0 sm:$0xff] }
0x19f4   :  { %v3910_v52 = vsel %vm718_vm2, %v3243_v1, %v3908_v50 }
0x19f5   :  { %12286 = vmatmul.mubr.msk.f32.vlgmr.msra.gmra.mrb[36].mxu1 %vm732_vm3, %v3910_v52 }
0x19f6   :  { %12331 = vmatprep.mubr.msk.f32.mxu1 %vm14338_vm1, %v14339_v45  ;;  %12972 = vmatpush3.bf16.msra.mxu1 %v12971_v62 }
0x19f7   :  { %12973 = vmatprep.subr.bf16.mxu1 %v14337_v0 }
0x19fa   :  { %12975 = vmatpush3.bf16.msra.mxu1 %v12974_v19 }
0x19fb   :  { %12976 = vmatprep.subr.bf16.mxu1 %v14337_v0 }
0x19fe   :  { %12978 = vmatpush3.bf16.msra.mxu1 %v12977_v28 }
0x19ff   :  { %12979 = vmatprep.subr.bf16.mxu1 %v14337_v0 }
0x1a02   :  { %12981 = vmatpush3.bf16.msra.mxu1 %v12980_v31 }
0x1a03   :  { %12982 = vmatprep.subr.bf16.mxu1 %v14337_v0 }
0x1a06   :  { %12984 = vmatpush3.bf16.msra.mxu1 %v12983_v35 }
0x1a07   :  { %12985 = vmatprep.subr.bf16.mxu1 %v14337_v0 }
0x1a0a   :  { %12987 = vmatpush3.bf16.msra.mxu1 %v12986_v40 }
0x1a0b   :  { %12988 = vmatprep.subr.bf16.mxu1 %v14337_v0 }
0x1a0e   :  { %12990 = vmatpush3.bf16.msra.mxu1 %v12989_v44 }
0x1a0f   :  { %12991 = vmatprep.subr.bf16.mxu1 %v14337_v0 }
0x1ac8   :  { %v3991_v55 = vpop.f32.mrb[36].mxu1 }
0x1ac9   :  { %v3992_v57 = vadd.f32 %v11492_v54, %v3991_v55  ;;  %v12287_v58 = vpop.f32.mrb[37].mxu1 }
0x1acb   :  { %v3995_v53 = vadd.f32 %v3992_v57, %v15125_v10 }
0x1acd   :  { %v3996_v23 = vsel %vm732_vm3, %v3995_v53, 0.0 }
0x1ace   :  { %3997 = vadd.xlane.f32.xlu1 %v3996_v23  ;;  %v4333_v23 = vld [vmem:[%s16338_s8 + $0x8] sm:$0xff] }
0x1adf   :  { %4239 = vperm.xlu1 %13339, %v4234_v2   ;;  %v4124_v2 = vld [vmem:[%s16337_s12 + $0x70] sm:$0xff] }
0x1b5b   :  { %v3998_v4 = vpop.xlane.xlu1 %3997 }
0x1b5c   :  { %v3999_v6 = vmul.f32 0.03125, %v3998_v4  ;;  %v4125_v4 = vld [vmem:[%s16337_s12 + $0x78] sm:$0xff] }
0x1b5e   :  { %v4000_v7 = vsub.f32 %v3995_v53, %v3999_v6  ;;  %v4332_v53 = vld [vmem:[%s16338_s8] sm:$0xff]  ;;  %v12992_v6 = vpack.c.bf16 %v4125_v4, %v4124_v2 }
0x1b5f   :  { %v4240_v52 = vpop.permute.xlu1 %4239  ;;  %v12998_v61 = vpack.c.bf16 %v4333_v23, %v4332_v53 }
0x1b60   :  { %v4001_v8 = vmul.f32 %v4000_v7, %v4000_v7  ;;  %vm4242_vm4 = vcmp.eq.s32.totalorder %v14873_v59, %v4240_v52  ;;  %12993 = vmatpush3.bf16.msra.mxu1 %v12992_v6 }
0x1b61   :  { %v11502_v58 = vsel %vm4242_vm4, 1.0, %v14339_v45  ;;  %12372 = vmatprep.subr.mxu1 %v14339_v45 }
0x1b62   :  { %v4002_v10 = vsel %vm732_vm3, %v4001_v8, 0.0 }
0x1b63   :  { %4003 = vadd.xlane.f32.xlu0 %v4002_v10  ;;  %v11496_v10 = vld [vmem:[#allocation33] ss:$0 sm:$0xff] }
0x1b79   :  { %4236 = vperm.xlu0 %13338, %v4233_v9  }
0x1bf0   :  { %v4004_v46 = vpop.xlane.xlu0 %4003 }
0x1bf1   :  { %v4005_v47 = vmul.f32 0.03125, %v4004_v46 }
0x1bf3   :  { %v4006_v42 = vadd.f32 1e-05, %v4005_v47 }
0x1bf5   :  { %13438 = vrsqrt.f32 %v4006_v42 }
0x1bf8   :  { %v4237_v1 = vpop.permute.xlu0 %4236 }
0x1bf9   :  { %vm4241_vm0 = vcmp.eq.s32.totalorder %v14873_v59, %v4237_v1  ;;  %v4334_v59 = vld [vmem:[%s16338_s8 + $0x10] sm:$0xff] }
0x1bfa   :  { %v11501_v57 = vsel %vm4241_vm0, 1.0, %v14339_v45 }
0x1bff   :  { %v13439_v48 = vpop.eup %13438 }
0x1c00   :  { %v4008_v50 = vmul.f32 %v13439_v48, %v4000_v7  ;;  %v4335_v7 = vld [vmem:[%s16338_s8 + $0x18] sm:$0xff] }
0x1c01   :  { %v13002_v8 = vpack.c.bf16 %v4335_v7, %v4334_v59 }
0x1c02   :  { %v4016_v54 = vmul.f32 %v11494_v49, %v4008_v50 }
0x1c04   :  { %v15337_v55 = vadd.f32 %v11495_v51, %v4016_v54 }
0x1c06   :  { %12297 = vmatmul.mubr.msk.f32.vlgmr.msra.gmra.mrb[16].mxu0 %vm732_vm3, %v15337_v55 }
0x1c07   :  { %12997 = vmatpush3.bf16.msra.mxu0 %v12994_v5  ;;  %12338 = vmatprep.mubr.msk.f32.mxu0 %vm4250_vm5, %v11501_v57 }
0x1c08   :  { %12999 = vmatprep.subr.bf16.mxu0 %v12998_v61 }
0x1c0a   :  { %12339 = vmatmul.mubr.msk.f32.vlgmr.msra.gmra.mrb[18].mxu0 %vm4250_vm5, %v11502_v58 }
0x1c0b   :  { %13001 = vmatpush3.bf16.msra.mxu0 %v12998_v61 }
0x1c0c   :  { %13003 = vmatprep.subr.bf16.mxu0 %v13002_v8 }
0x1c0f   :  { %13005 = vmatpush3.bf16.msra.mxu0 %v13002_v8 }
0x1c10   :  { %12352 = vmatprep.subr.mxu0 %v14339_v45 }
0x1cd9   :  { %v4105_v9 = vpop.f32.mrb[16].mxu0 }
0x1cda   :  { %v4106_v13 = vadd.f32 %v11496_v10, %v4105_v9  ;;  %v12298_v11 = vpop.f32.mrb[17].mxu0 }
0x1cdc   :  { %v4109_v3 = vmax.f32 %v4106_v13, 0.0 }
0x1cdd   :  { %v12340_v56 = vpop.f32.mrb[18].mxu0 }
0x1cde   :  { %12332 = vmatmul.mubr.f32.vlgmr.msra.gmra.mrb[38].mxu1 %v4109_v3  ;;  %v4323_v30 = vpop.f32.mrb[19].mxu0  ;;  %v15357_v39 = vadd.f32 %v12340_v56, %v4249_v12 }
0x1cdf   :  { %v15353_v21 = vadd.f32 %v4323_v30, %v4249_v12  ;;  %12374 = vmatprep.mubr.msk.f32.mxu1 %vm14338_vm1, %v14339_v45 }
0x1ce1   :  { %12349 = vmatprep.mubr.msk.f32.mxu0 %vm732_vm3, %v15353_v21 }
0x1ce2   :  { %12350 = vmatmul.mubr.msk.f32.vlgmr.msra.gmra.mrb[20].mxu0 %vm732_vm3, %v15357_v39 }
0x1ce3   :  { %12354 = vmatprep.mubr.msk.f32.mxu0 %vm14338_vm1, %v14339_v45 }
0x1db1   :  { %v15365_v5 = vpop.f32.mrb[38].mxu1 }
0x1db2   :  { %v12333_v14 = vpop.f32.mrb[39].mxu1 }
0x1db5   :  { %v12351_v16 = vpop.f32.mrb[20].mxu0 }
0x1db6   :  { %v15368_v62 = vadd.f32 %v12351_v16, %v11505_v15  ;;  %v4415_v18 = vpop.f32.mrb[21].mxu0 }
0x1db7   :  { %v15370_v19 = vadd.f32 %v11505_v15, %v4415_v18 }
0x1db9   :  { %4426 = vrot.lane.b32.xlu1 %v15370_v19, %s14340_s3  ;;  %v4424_v27 = vmul.f32 %v14879_v60, %v15370_v19  ;;  %v4758_v28 = vmul.f32 %v14935_v24, %v15370_v19  ;;  %v4517_v17 = vmul.f32 %v14891_v63, %v15370_v19  ;;  %v4923_v25 = vmul.f32 %v14953_v33, %v15370_v19 }
0x1dba   :  { %v4516_v10 = vmul.f32 %v15370_v19, %v14922_v22  ;;  %v4844_v9 = vmul.f32 %v15370_v19, %v14941_v29  ;;  %v4603_v13 = vmul.f32 %v15370_v19, %v14916_v20  ;;  %v5009_v14 = vmul.f32 %v15370_v19, %v14977_v38 }
0x1e2b   :  { %v4427_v26 = vpop.permute.xlu1 %4426 }
0x1e2c   :  { %12353 = vmatpush3.xpose.msk.msra.mxu0 %vm732_vm3, %v4427_v26  ;;  %12373 = vmatpush3.xpose.msk.msra.mxu1 %vm732_vm3, %v4427_v26 }
0x1e2d   :  { %12357 = vmatprep.subr.mxu0 %v14339_v45  ;;  %12382 = vmatprep.subr.mxu1 %v14339_v45 }
0x1e2f   :  { %12355 = vmatmul.mubr.msk.f32.vlgmr.msra.gmra.mrb[22].mxu0 %vm732_vm3, %v4424_v27  ;;  %12375 = vmatmul.mubr.msk.f32.vlgmr.msra.gmra.mrb[40].mxu1 %vm732_vm3, %v4758_v28  ;;  %v5088_v28 = vmul.f32 %v14879_v60, %v15368_v62 }
0x1e30   :  { %12358 = vmatpush3.xpose.msk.msra.mxu0 %vm732_vm3, %v4427_v26  ;;  %12383 = vmatpush3.xpose.msk.msra.mxu1 %vm732_vm3, %v4427_v26 }
0x1e31   :  { %12359 = vmatprep.mubr.msk.f32.mxu0 %vm14338_vm1, %v14339_v45  ;;  %12384 = vmatprep.mubr.msk.f32.mxu1 %vm14338_vm1, %v14339_v45 }
0x1e32   :  { %12362 = vmatprep.subr.mxu0 %v14339_v45  ;;  %12392 = vmatprep.subr.mxu1 %v14339_v45 }
0x1e33   :  { %12360 = vmatmul.mubr.msk.f32.vlgmr.msra.gmra.mrb[24].mxu0 %vm732_vm3, %v4517_v17  ;;  %12385 = vmatmul.mubr.msk.f32.vlgmr.msra.gmra.mrb[42].mxu1 %vm732_vm3, %v4923_v25 }
0x1e34   :  { %12394 = vmatprep.mubr.msk.f32.mxu1 %vm14338_vm1, %v14339_v45  ;;  %12364 = vmatprep.mubr.msk.f32.mxu0 %vm14338_vm1, %v14339_v45 }
0x1f02   :  { %v4499_v31 = vpop.f32.mrb[22].mxu0  ;;  %v4828_v32 = vpop.f32.mrb[40].mxu1 }
0x1f03   :  { %v4503_v34 = vmul.f32 0.35355338, %v4499_v31  ;;  %v12356_v35 = vpop.f32.mrb[23].mxu0  ;;  %v12376_v36 = vpop.f32.mrb[41].mxu1  ;;  %v4832_v37 = vmul.f32 0.35355338, %v4828_v32 }
0x1f05   :  { %v4505_v40 = vsel %vm4504_vm6, %v4503_v34, -inf  ;;  %v4833_v48 = vsel %vm4504_vm6, %v4832_v37, -inf }
0x1f06   :  { %4506 = vmax.xlane.f32.xlu0 %v4505_v40  ;;  %v4587_v41 = vpop.f32.mrb[24].mxu0  ;;  %v4993_v43 = vpop.f32.mrb[42].mxu1 }
0x1f07   :  { %v4591_v44 = vmul.f32 0.35355338, %v4587_v41  ;;  %v12361_v46 = vpop.f32.mrb[25].mxu0  ;;  %v12386_v47 = vpop.f32.mrb[43].mxu1  ;;  %v4997_v42 = vmul.f32 0.35355338, %v4993_v43 }
0x1f08   :  { %v5421_v46 = vmul.f32 %v14935_v24, %v15368_v62  ;;  %v5586_v47 = vmul.f32 %v14953_v33, %v15368_v62 }
0x1f09   :  { %v4592_v1 = vsel %vm4504_vm6, %v4591_v44, -inf  ;;  %v4998_v49 = vsel %vm4504_vm6, %v4997_v42, -inf }
0x1f0a   :  { %4593 = vmax.xlane.f32.xlu1 %v4592_v1  ;;  %4834 = vmax.xlane.f32.xlu0 %v4833_v48 }
0x1f0e   :  { %4999 = vmax.xlane.f32.xlu1 %v4998_v49 }
0x1f93   :  { %v4507_v50 = vpop.xlane.xlu0 %4506 }
0x1f94   :  { %v4508_v51 = vsub.f32 %v4503_v34, %v4507_v50 }
0x1f96   :  { %v4509_v52 = vmul.f32 1.442695, %v4508_v51 }
0x1f97   :  { %v4594_v54 = vpop.xlane.xlu1 %4593  ;;  %v4835_v57 = vpop.xlane.xlu0 %4834 }
0x1f98   :  { %13440 = vpow2.f32 %v4509_v52  ;;  %v4595_v58 = vsub.f32 %v4591_v44, %v4594_v54  ;;  %v4836_v53 = vsub.f32 %v4832_v37, %v4835_v57  ;;  %v5180_v44 = vmul.f32 %v14891_v63, %v15368_v62 }
0x1f9a   :  { %v4837_v23 = vmul.f32 1.442695, %v4836_v53  ;;  %v4596_v61 = vmul.f32 1.442695, %v4595_v58 }
0x1f9b   :  { %v5000_v11 = vpop.xlane.xlu1 %4999 }
0x1f9c   :  { %13442 = vpow2.f32 %v4837_v23  ;;  %v5001_v3 = vsub.f32 %v4997_v42, %v5000_v11 }
0x1f9d   :  { %13444 = vpow2.f32 %v4596_v61 }
0x1f9e   :  { %v5002_v12 = vmul.f32 1.442695, %v5001_v3 }
0x1fa0   :  { %13446 = vpow2.f32 %v5002_v12 }
0x1fa2   :  { %v13441_v2 = vpop.eup %13440 }
0x1fa3   :  { %v4511_v4 = vsel %vm4504_vm6, %v13441_v2, 0.0 }
0x1fa4   :  { %4512 = vadd.xlane.f32.xlu1 %v4511_v4 }
0x1fa6   :  { %v13443_v6 = vpop.eup %13442 }
0x1fa7   :  { %v4839_v59 = vsel %vm4504_vm6, %v13443_v6, 0.0  ;;  %v13445_v7 = vpop.eup %13444 }
0x1fa8   :  { %4840 = vadd.xlane.f32.xlu0 %v4839_v59  ;;  %v4598_v8 = vsel %vm4504_vm6, %v13445_v7, 0.0 }
0x1faa   :  { %v13447_v56 = vpop.eup %13446 }
0x1fab   :  { %v5004_v30 = vsel %vm4504_vm6, %v13447_v56, 0.0 }
0x1fac   :  { %4599 = vadd.xlane.f32.xlu0 %v4598_v8 }
0x1fb5   :  { %4682 = vrot.lane.b32.xlu1 %v4516_v10, %s14341_s1 }
0x1fb9   :  { %4846 = vrot.lane.b32.xlu1 %v4844_v9, %s14341_s1 }
0x1fc2   :  { %4605 = vrot.lane.b32.xlu0 %v4603_v13, %s14341_s1 }
0x1fc6   :  { %5090 = vrot.lane.b32.xlu0 %v15368_v62, %s14340_s3 }
0x1fdd   :  { %5005 = vadd.xlane.f32.xlu1 %v5004_v30 }
0x1fee   :  { %5011 = vrot.lane.b32.xlu1 %v5009_v14, %s14341_s1 }
0x2031   :  { %v4513_v18 = vpop.xlane.xlu1 %4512 }
0x2035   :  { %v4841_v15 = vpop.xlane.xlu0 %4840  ;;  %v4683_v25 = vpop.permute.xlu1 %4682 }
0x2039   :  { %v4600_v16 = vpop.xlane.xlu0 %4599  ;;  %v4847_v34 = vpop.permute.xlu1 %4846 }
0x203a   :  { %13448 = vrcp.f32 %v4600_v16 }
0x203b   :  { %13450 = vrcp.f32 %v4513_v18 }
0x203c   :  { %13452 = vrcp.f32 %v4841_v15 }
0x203d   :  { %v4606_v26 = vpop.permute.xlu0 %4605 }
0x203e   :  { %12363 = vmatpush3.msra.mxu0 %v4606_v26 }
0x203f   :  { %12367 = vmatprep.subr.mxu0 %v14339_v45 }
0x2041   :  { %v5091_v27 = vpop.permute.xlu0 %5090 }
0x2042   :  { %12393 = vmatpush3.xpose.msk.msra.mxu1 %vm732_vm3, %v5091_v27 }
0x2043   :  { %12402 = vmatprep.subr.mxu1 %v14339_v45 }
0x2044   :  { %v13449_v19 = vpop.eup %13448 }
0x2045   :  { %12395 = vmatmul.mubr.msk.f32.vlgmr.msra.gmra.mrb[44].mxu1 %vm732_vm3, %v5088_v28  ;;  %v4602_v17 = vmul.f32 %v13449_v19, %v13445_v7  ;;  %v13451_v31 = vpop.eup %13450  ;;  %v5266_v19 = vmul.f32 %v15368_v62, %v14916_v20 }
0x2046   :  { %12404 = vmatprep.mubr.msk.f32.mxu1 %vm14338_vm1, %v14339_v45  ;;  %v4515_v32 = vmul.f32 %v13451_v31, %v13441_v2  ;;  %v13453_v35 = vpop.eup %13452 }
0x2047   :  { %12365 = vmatmul.mubr.msk.f32.vlgmr.msra.gmra.mrb[26].mxu0 %vm4504_vm6, %v4602_v17  ;;  %v4843_v36 = vmul.f32 %v13453_v35, %v13443_v6  ;;  %v5179_v17 = vmul.f32 %v15368_v62, %v14922_v22 }
0x2048   :  { %12368 = vmatpush3.msra.mxu0 %v4683_v25  ;;  %12369 = vmatprep.mubr.msk.f32.mxu0 %vm14338_vm1, %v14339_v45 }
0x2049   :  { %12377 = vmatprep.subr.mxu0 %v14339_v45 }
0x204f   :  { %12370 = vmatmul.mubr.msk.f32.vlgmr.msra.gmra.mrb[26].mxu0 %vm4504_vm6, %v4515_v32 }
0x2050   :  { %12378 = vmatpush3.msra.mxu0 %v4847_v34  ;;  %12379 = vmatprep.mubr.msk.f32.mxu0 %vm14338_vm1, %v14339_v45  ;;  %v11498_v34 = vld [vmem:[#allocation34] ss:$0 sm:$0xff] }
0x2051   :  { %12387 = vmatprep.subr.mxu0 %v14339_v45  ;;  %v4200_v35 = vadd.f32 %v11498_v34, %v15365_v5  ;;  %v5752_v5 = vld [vmem:[%s16340_s19 + $0x8] sm:$0xff] }
0x2057   :  { %12380 = vmatmul.mubr.msk.f32.vlgmr.msra.gmra.mrb[26].mxu0 %vm4504_vm6, %v4843_v36 }
0x2058   :  { %12389 = vmatprep.mubr.msk.f32.mxu0 %vm14338_vm1, %v14339_v45 }
0x206a   :  { %v5006_v37 = vpop.xlane.xlu1 %5005 }
0x206b   :  { %13454 = vrcp.f32 %v5006_v37  ;;  %v4203_v37 = vadd.f32 %v4200_v35, %v15337_v55 }
0x206e   :  { %v5012_v40 = vpop.permute.xlu1 %5011 }
0x206f   :  { %12388 = vmatpush3.msra.mxu0 %v5012_v40  ;;  %v4204_v40 = vsel %vm732_vm3, %v4203_v37, 0.0 }
0x2070   :  { %12397 = vmatprep.subr.mxu0 %v14339_v45 }
0x2075   :  { %v13455_v41 = vpop.eup %13454 }
0x2076   :  { %v5008_v43 = vmul.f32 %v13455_v41, %v13447_v56  ;;  %v5507_v41 = vmul.f32 %v15368_v62, %v14941_v29 }
0x2078   :  { %12390 = vmatmul.mubr.msk.f32.vlgmr.msra.gmra.mrb[26].mxu0 %vm4504_vm6, %v5008_v43  ;;  %v5672_v43 = vmul.f32 %v15368_v62, %v14977_v38 }
0x2079   :  { %12398 = vmatpush3.xpose.msk.msra.mxu0 %vm732_vm3, %v5091_v27  ;;  %12399 = vmatprep.mubr.msk.f32.mxu0 %vm14338_vm1, %v14339_v45 }
0x207a   :  { %12412 = vmatprep.subr.mxu0 %v14339_v45 }
0x207c   :  { %12400 = vmatmul.mubr.msk.f32.vlgmr.msra.gmra.mrb[28].mxu0 %vm732_vm3, %v5180_v44  ;;  %v5751_v44 = vld [vmem:[%s16340_s19] sm:$0xff] }
0x207d   :  { %12413 = vmatpush3.xpose.msk.msra.mxu0 %vm732_vm3, %v5091_v27  ;;  %12414 = vmatprep.mubr.msk.f32.mxu0 %vm14338_vm1, %v14339_v45 }
0x207e   :  { %12422 = vmatprep.subr.mxu0 %v14339_v45 }
0x2080   :  { %12415 = vmatmul.mubr.msk.f32.vlgmr.msra.gmra.mrb[30].mxu0 %vm732_vm3, %v5421_v46  ;;  %v5753_v46 = vld [vmem:[%s16340_s19 + $0x10] sm:$0xff] }
0x2081   :  { %12423 = vmatpush3.xpose.msk.msra.mxu0 %vm732_vm3, %v5091_v27  ;;  %12424 = vmatprep.mubr.msk.f32.mxu0 %vm14338_vm1, %v14339_v45 }
0x2084   :  { %12425 = vmatmul.mubr.msk.f32.vlgmr.msra.gmra.mrb[32].mxu0 %vm732_vm3, %v5586_v47  ;;  %v13006_v47 = vpack.c.bf16 %v5752_v5, %v5751_v44 }
0x2086   :  { %13007 = vmatprep.subr.bf16.mxu0 %v13006_v47 }
0x2087   :  { %13009 = vmatpush3.bf16.msra.mxu0 %v13006_v47 }
0x2118   :  { %v5163_v42 = vpop.f32.mrb[44].mxu1 }
0x2119   :  { %v5167_v1 = vmul.f32 0.35355338, %v5163_v42  ;;  %v12396_v48 = vpop.f32.mrb[45].mxu1  ;;  %v5754_v42 = vld [vmem:[%s16340_s19 + $0x18] sm:$0xff] }
0x211b   :  { %v5168_v49 = vsel %vm4504_vm6, %v5167_v1, -inf }
0x211c   :  { %5169 = vmax.xlane.f32.xlu0 %v5168_v49 }
0x214b   :  { %v5083_v50 = vpop.f32.mrb[26].mxu0 }
0x214c   :  { %v12391_v51 = vpop.f32.mrb[27].mxu0  ;;  %12440 = vmatprep.mubr.msk.f32.mxu0 %vm732_vm3, %v5083_v50 }
0x214f   :  { %v5250_v52 = vpop.f32.mrb[28].mxu0 }
0x2150   :  { %v5254_v54 = vmul.f32 0.35355338, %v5250_v52  ;;  %v12401_v57 = vpop.f32.mrb[29].mxu0 }
0x2152   :  { %v5255_v58 = vsel %vm4504_vm6, %v5254_v54, -inf }
0x2153   :  { %5256 = vmax.xlane.f32.xlu1 %v5255_v58  ;;  %v5491_v53 = vpop.f32.mrb[30].mxu0 }
0x2154   :  { %v5495_v23 = vmul.f32 0.35355338, %v5491_v53  ;;  %v12416_v61 = vpop.f32.mrb[31].mxu0 }
0x2156   :  { %v5496_v2 = vsel %vm4504_vm6, %v5495_v23, -inf }
0x2157   :  { %v5656_v4 = vpop.f32.mrb[32].mxu0  ;;  %5497 = vmax.xlane.f32.xlu0 %v5496_v2 }
0x2158   :  { %v5660_v6 = vmul.f32 0.35355338, %v5656_v4  ;;  %v12426_v59 = vpop.f32.mrb[33].mxu0 }
0x215a   :  { %v5661_v7 = vsel %vm4504_vm6, %v5660_v6, -inf }
0x215b   :  { %5662 = vmax.xlane.f32.xlu0 %v5661_v7 }
0x21a9   :  { %v5170_v8 = vpop.xlane.xlu0 %5169 }
0x21aa   :  { %v5171_v10 = vsub.f32 %v5167_v1, %v5170_v8  ;;  %v13010_v1 = vpack.c.bf16 %v5754_v42, %v5753_v46 }
0x21ac   :  { %v5172_v9 = vmul.f32 1.442695, %v5171_v10  ;;  %13011 = vmatprep.subr.bf16.mxu0 %v13010_v1 }
0x21ad   :  { %13013 = vmatpush3.bf16.msra.mxu0 %v13010_v1 }
0x21ae   :  { %13456 = vpow2.f32 %v5172_v9  ;;  %13022 = vmatprep.subr.bf16.mxu0 %v14337_v0  ;;  %v11532_v9 = vld [vmem:[%s16341_s11] ss:$0 sm:$0xff] }
0x21b8   :  { %v15470_v13 = vpop.eup %13456 }
0x21b9   :  { %v5174_v11 = vsel %vm4504_vm6, %v15470_v13, 0.0 }
0x21ba   :  { %5175 = vadd.xlane.f32.xlu0 %v5174_v11 }
0x21e0   :  { %v5257_v3 = vpop.xlane.xlu1 %5256 }
0x21e1   :  { %v5258_v12 = vsub.f32 %v5254_v54, %v5257_v3 }
0x21e3   :  { %v5259_v56 = vmul.f32 1.442695, %v5258_v12 }
0x21e4   :  { %v5498_v30 = vpop.xlane.xlu0 %5497 }
0x21e5   :  { %13458 = vpow2.f32 %v5259_v56  ;;  %v5499_v25 = vsub.f32 %v5495_v23, %v5498_v30 }
0x21e7   :  { %v5500_v31 = vmul.f32 1.442695, %v5499_v25 }
0x21e8   :  { %v5663_v14 = vpop.xlane.xlu0 %5662 }
0x21e9   :  { %v5664_v15 = vsub.f32 %v5660_v6, %v5663_v14 }
0x21eb   :  { %v5665_v16 = vmul.f32 1.442695, %v5664_v15 }
0x21ed   :  { %13460 = vpow2.f32 %v5665_v16 }
0x21ee   :  { %13462 = vpow2.f32 %v5500_v31 }
0x21ef   :  { %v13459_v18 = vpop.eup %13458 }
0x21f0   :  { %v5261_v26 = vsel %vm4504_vm6, %v13459_v18, 0.0 }
0x21f1   :  { %5262 = vadd.xlane.f32.xlu1 %v5261_v26 }
0x21f7   :  { %v15475_v27 = vpop.eup %13460 }
0x21f8   :  { %v5667_v28 = vsel %vm4504_vm6, %v15475_v27, 0.0  ;;  %v13463_v32 = vpop.eup %13462 }
0x21f9   :  { %5668 = vadd.xlane.f32.xlu0 %v5667_v28  ;;  %v5502_v36 = vsel %vm4504_vm6, %v13463_v32, 0.0  ;;  %v5890_v28 = vld [vmem:[%s16342_s17 + $0x8] sm:$0xff] }
0x2202   :  { %5268 = vrot.lane.b32.xlu1 %v5266_v19, %s14341_s1 }
0x220f   :  { %5345 = vrot.lane.b32.xlu0 %v5179_v17, %s14341_s1 }
0x2226   :  { %5503 = vadd.xlane.f32.xlu1 %v5502_v36 }
0x222e   :  { %4205 = vadd.xlane.f32.xlu0 %v4204_v40 }
0x2237   :  { %5509 = vrot.lane.b32.xlu1 %v5507_v41, %s14341_s1  ;;  %v5891_v41 = vld [vmem:[%s16342_s17 + $0x10] sm:$0xff] }
0x223b   :  { %5674 = vrot.lane.b32.xlu1 %v5672_v43, %s14341_s1  ;;  %v5892_v43 = vld [vmem:[%s16342_s17 + $0x18] sm:$0xff] }
0x223c   :  { %v13345_v47 = vpack.i.bf16 %v5892_v43, %v5891_v41 }
0x2247   :  { %v5176_v48 = vpop.xlane.xlu0 %5175 }
0x227e   :  { %v5263_v55 = vpop.xlane.xlu1 %5262 }
0x227f   :  { %13464 = vrcp.f32 %v5263_v55  ;;  %v13018_v55 = vpack.c.bf16 %v5892_v43, %v5891_v41 }
0x2280   :  { %13466 = vrcp.f32 %v5176_v48  ;;  %v15535_v48 = vld [vmem:[%s16343_s14] ss:$0 sm:$0xff] }
0x2282   :  { %v5269_v49 = vpop.permute.xlu1 %5268 }
0x2283   :  { %12403 = vmatpush3.msra.mxu1 %v5269_v49  ;;  %v13350_v49 = vpack.i.bf16 %v14879_v60, %v14891_v63 }
0x2284   :  { %12407 = vmatprep.subr.mxu1 %v14339_v45 }
0x2286   :  { %v5669_v62 = vpop.xlane.xlu0 %5668 }
0x2289   :  { %v13465_v50 = vpop.eup %13464 }
0x228a   :  { %v5346_v51 = vpop.permute.xlu0 %5345  ;;  %v5265_v52 = vmul.f32 %v13465_v50, %v13459_v18  ;;  %v13467_v54 = vpop.eup %13466 }
0x228b   :  { %v5178_v57 = vmul.f32 %v13467_v54, %v15470_v13 }
0x228c   :  { %12405 = vmatmul.mubr.msk.f32.vlgmr.msra.gmra.mrb[46].mxu1 %vm4504_vm6, %v5265_v52 }
0x228d   :  { %12408 = vmatpush3.msra.mxu1 %v5346_v51  ;;  %12409 = vmatprep.mubr.msk.f32.mxu1 %vm14338_vm1, %v14339_v45 }
0x228e   :  { %12417 = vmatprep.subr.mxu1 %v14339_v45 }
0x2294   :  { %12410 = vmatmul.mubr.msk.f32.vlgmr.msra.gmra.mrb[46].mxu1 %vm4504_vm6, %v5178_v57 }
0x2295   :  { %12419 = vmatprep.mubr.msk.f32.mxu1 %vm14338_vm1, %v14339_v45 }
0x22b3   :  { %v5504_v58 = vpop.xlane.xlu1 %5503 }
0x22b4   :  { %13468 = vrcp.f32 %v5504_v58 }
0x22b5   :  { %13470 = vrcp.f32 %v5669_v62  ;;  %v13355_v62 = vpack.i.bf16 %v14953_v33, %v14935_v24 }
0x22b7   :  { %v5510_v53 = vpop.permute.xlu1 %5509 }
0x22b8   :  { %12418 = vmatpush3.msra.mxu1 %v5510_v53 }
0x22b9   :  { %12427 = vmatprep.subr.mxu1 %v14339_v45 }
0x22bb   :  { %v5675_v2 = vpop.permute.xlu1 %5674  ;;  %v4206_v8 = vpop.xlane.xlu0 %4205 }
0x22bc   :  { %v4207_v10 = vmul.f32 0.03125, %v4206_v8 }
0x22be   :  { %v13469_v23 = vpop.eup %13468  ;;  %v4208_v12 = vsub.f32 %v4203_v37, %v4207_v10 }
0x22bf   :  { %v5506_v61 = vmul.f32 %v13469_v23, %v13463_v32  ;;  %v13471_v4 = vpop.eup %13470 }
0x22c0   :  { %v5671_v6 = vmul.f32 %v13471_v4, %v15475_v27  ;;  %v4209_v18 = vmul.f32 %v4208_v12, %v4208_v12  ;;  %v5889_v27 = vld [vmem:[%s16342_s17] sm:$0xff]  ;;  %v11499_v4 = vld [vmem:[#allocation40] ss:$0 sm:$0xff] }
0x22c1   :  { %12420 = vmatmul.mubr.msk.f32.vlgmr.msra.gmra.mrb[46].mxu1 %vm4504_vm6, %v5506_v61  ;;  %v13340_v19 = vpack.i.bf16 %v5890_v28, %v5889_v27  ;;  %v13014_v1 = vpack.c.bf16 %v5890_v28, %v5889_v27 }
0x22c2   :  { %12428 = vmatpush3.msra.mxu1 %v5675_v2  ;;  %12429 = vmatprep.mubr.msk.f32.mxu1 %vm14338_vm1, %v14339_v45  ;;  %v4210_v26 = vsel %vm732_vm3, %v4209_v18, 0.0 }
0x22c3   :  { %13015 = vmatprep.subr.bf16.mxu1 %v13014_v1 }
0x22c9   :  { %12430 = vmatmul.mubr.msk.f32.vlgmr.msra.gmra.mrb[46].mxu1 %vm4504_vm6, %v5671_v6 }
0x22ca   :  { %13017 = vmatpush3.bf16.msra.mxu1 %v13014_v1 }
0x22cb   :  { %13019 = vmatprep.subr.bf16.mxu1 %v13018_v55 }
0x22ce   :  { %13021 = vmatpush3.bf16.msra.mxu1 %v13018_v55 }
0x22cf   :  { %12465 = vmatprep.subr.mxu1 %v14339_v45 }
0x239c   :  { %v5746_v59 = vpop.f32.mrb[46].mxu1 }
0x239d   :  { %v12431_v7 = vpop.f32.mrb[47].mxu1  ;;  %12441 = vmatmul.mubr.msk.f32.vlgmr.msra.gmra.mrb[34].mxu0 %vm732_vm3, %v5746_v59 }
0x239e   :  { %12462 = vmatprep.mubr.msk.f32.mxu0 %vm14338_vm1, %v14339_v45 }
0x2470   :  { %v12442_v13 = vpop.f32.mrb[34].mxu0 }
0x2471   :  { %v5840_v11 = vadd.f32 %v12442_v13, %v11532_v9  ;;  %v5834_v3 = vpop.f32.mrb[35].mxu0 }
0x2472   :  { %v5835_v56 = vadd.f32 %v11532_v9, %v5834_v3  ;;  %v11500_v9 = vld [vmem:[#allocation39] ss:$0 sm:$0xff] }
0x2473   :  { %v5844_v30 = vadd.f32 %v5840_v11, %v15357_v39 }
0x2474   :  { %v5843_v14 = vadd.f32 %v5835_v56, %v15353_v21 }
0x2475   :  { %v5848_v15 = vsel %vm732_vm3, %v5844_v30, 0.0 }
0x2476   :  { %5849 = vadd.xlane.f32.xlu0 %v5848_v15  ;;  %v5845_v16 = vsel %vm732_vm3, %v5843_v14, 0.0 }
0x2477   :  { %5846 = vadd.xlane.f32.xlu1 %v5845_v16  ;;  %v11536_v16 = vld [vmem:[%s16345_s21] ss:$0 sm:$0xff] }
0x247b   :  { %4211 = vadd.xlane.f32.xlu1 %v4210_v26 }
0x248c   :  { %13341 = vrot.lane.b32.xlu1 %v13340_v19, %s14340_s3 }
0x2490   :  { %5997 = vrot.lane.b32.xlu1 %v15535_v48, %s14340_s3 }
0x2494   :  { %13356 = vrot.lane.b32.xlu1 %v13355_v62, %s14343_s15 }
0x2503   :  { %v5850_v39 = vpop.xlane.xlu0 %5849 }
0x2504   :  { %v5852_v17 = vmul.f32 0.03125, %v5850_v39  ;;  %v5847_v21 = vpop.xlane.xlu1 %5846 }
0x2505   :  { %v5851_v25 = vmul.f32 0.03125, %v5847_v21 }
0x2506   :  { %v5854_v31 = vsub.f32 %v5844_v30, %v5852_v17 }
0x2507   :  { %v5853_v32 = vsub.f32 %v5843_v14, %v5851_v25 }
0x2508   :  { %v5856_v34 = vmul.f32 %v5854_v31, %v5854_v31  ;;  %v4212_v40 = vpop.xlane.xlu1 %4211 }
0x2509   :  { %v5855_v36 = vmul.f32 %v5853_v32, %v5853_v32  ;;  %v4213_v50 = vmul.f32 0.03125, %v4212_v40 }
0x250a   :  { %v5860_v35 = vsel %vm732_vm3, %v5856_v34, 0.0 }
0x250b   :  { %5861 = vadd.xlane.f32.xlu0 %v5860_v35  ;;  %v5857_v37 = vsel %vm732_vm3, %v5855_v36, 0.0  ;;  %v4214_v51 = vadd.f32 1e-05, %v4213_v50 }
0x250c   :  { %v13342_v44 = vpop.permute.xlu1 %13341 }
0x250d   :  { %v13344_v5 = vunpack.i.h.bf16 %v13342_v44  ;;  %v13343_v46 = vunpack.i.l.bf16 %v13342_v44  ;;  %13472 = vrsqrt.f32 %v4214_v51 }
0x250f   :  { %5858 = vadd.xlane.f32.xlu0 %v5857_v37  ;;  %v13023_v42 = vpack.c.bf16 %v13344_v5, %v13343_v46 }
0x2510   :  { %v5998_v39 = vpop.permute.xlu1 %5997 }
0x2511   :  { %13024 = vmatpush3.bf16.msra.mxu0 %v13023_v42 }
0x2512   :  { %13025 = vmatprep.subr.bf16.mxu0 %v14337_v0 }
0x2517   :  { %v13473_v57 = vpop.eup %13472 }
0x2518   :  { %v4216_v61 = vmul.f32 %v13473_v57, %v4208_v12  ;;  %v11535_v12 = vld [vmem:[%s16344_s16] ss:$0 sm:$0xff] }
0x251a   :  { %v4224_v8 = vmul.f32 %v11499_v4, %v4216_v61 }
0x251c   :  { %v15543_v13 = vadd.f32 %v11500_v9, %v4224_v8 }
0x2525   :  { %13346 = vrot.lane.b32.xlu0 %v13345_v47, %s14340_s3 }
0x2529   :  { %13351 = vrot.lane.b32.xlu0 %v13350_v49, %s14343_s15 }
0x2598   :  { %v5862_v52 = vpop.xlane.xlu0 %5861 }
0x2599   :  { %v5864_v54 = vmul.f32 0.03125, %v5862_v52 }
0x259b   :  { %v5866_v58 = vadd.f32 1e-05, %v5864_v54 }
0x259c   :  { %v5859_v53 = vpop.xlane.xlu0 %5858 }
0x259d   :  { %13474 = vrsqrt.f32 %v5866_v58  ;;  %v5863_v23 = vmul.f32 0.03125, %v5859_v53 }
0x259f   :  { %v5865_v2 = vadd.f32 1e-05, %v5863_v23 }
0x25a0   :  { %v13347_v6 = vpop.permute.xlu0 %13346 }
0x25a1   :  { %13476 = vrsqrt.f32 %v5865_v2  ;;  %v13349_v59 = vunpack.i.h.bf16 %v13347_v6  ;;  %v13348_v7 = vunpack.i.l.bf16 %v13347_v6 }
0x25a3   :  { %v13026_v10 = vpack.c.bf16 %v13349_v59, %v13348_v7 }
0x25a4   :  { %v15562_v27 = vpop.permute.xlu0 %13351 }
0x25a5   :  { %13027 = vmatpush3.bf16.msra.mxu0 %v13026_v10  ;;  %v13354_v28 = vunpack.i.h.bf16 %v15562_v27  ;;  %v13353_v19 = vunpack.i.l.bf16 %v15562_v27 }
0x25a6   :  { %12470 = vmatprep.subr.mxu0 %v14339_v45 }
0x25a7   :  { %v13475_v11 = vpop.eup %13474 }
0x25a8   :  { %12463 = vmatmul.mubr.msk.f32.vlgmr.msra.gmra.mrb[36].mxu0 %vm732_vm3, %v15543_v13  ;;  %v5870_v3 = vmul.f32 %v13475_v11, %v5854_v31 }
0x25a9   :  { %12472 = vmatprep.mubr.msk.f32.mxu0 %vm14338_vm1, %v14339_v45 }
0x25aa   :  { %v5879_v14 = vmul.f32 %v11535_v12, %v5870_v3 }
0x25ab   :  { %v13477_v56 = vpop.eup %13476 }
0x25ac   :  { %v5869_v30 = vmul.f32 %v13477_v56, %v5853_v32  ;;  %v15554_v26 = vadd.f32 %v11536_v16, %v5879_v14 }
0x25ae   :  { %v5878_v15 = vmul.f32 %v11535_v12, %v5869_v30 }
0x25b0   :  { %v15552_v18 = vadd.f32 %v11536_v16, %v5878_v15 }
0x25b2   :  { %12451 = vmatprep.mubr.msk.f32.mxu1 %vm732_vm3, %v15552_v18 }
0x25b3   :  { %12452 = vmatmul.mubr.msk.f32.vlgmr.msra.gmra.mrb[48].mxu1 %vm732_vm3, %v15554_v26 }
0x25b4   :  { %12467 = vmatprep.mubr.msk.f32.mxu1 %vm14338_vm1, %v14339_v45 }
0x267b   :  { %v6069_v17 = vpop.f32.mrb[36].mxu0 }
0x267c   :  { %v15566_v21 = vadd.f32 %v6069_v17, %v5998_v39  ;;  %v12464_v25 = vpop.f32.mrb[37].mxu0 }
0x267e   :  { %12466 = vmatpush3.xpose.msk.msra.mxu1 %vm732_vm3, %v15566_v21  ;;  %12471 = vmatpush3.xpose.msk.msra.mxu0 %vm732_vm3, %v15566_v21  ;;  %v15575_v31 = vmul.f32 %v13353_v19, %v15566_v21  ;;  %v15580_v32 = vmul.f32 %v13354_v28, %v15566_v21  ;;  %v6751_v5 = vrot.slane %v15566_v21, 4 }
0x267f   :  { %12485 = vmatprep.subr.mxu0 %v14339_v45  ;;  %12475 = vmatprep.subr.mxu1 %v14339_v45 }
0x2680   :  { %6257 = vrot.lane.b32.xlu0 %v15575_v31, %s14340_s3  ;;  %6335 = vrot.lane.b32.xlu1 %v15580_v32, %s14340_s3 }
0x2686   :  { %v12453_v34 = vpop.f32.mrb[48].mxu1 }
0x2687   :  { %v5972_v35 = vpop.f32.mrb[49].mxu1  ;;  %v5978_v43 = vadd.f32 %v12453_v34, %v15535_v48 }
0x2688   :  { %v5973_v36 = vadd.f32 %v15535_v48, %v5972_v35  ;;  %v15647_v35 = vpop.permute.xlu1 %13356 }
0x2689   :  { %v6750_v46 = vmul.f32 %v14879_v60, %v5978_v43  ;;  %v6839_v47 = vmul.f32 %v14891_v63, %v5978_v43  ;;  %v7081_v42 = vmul.f32 %v14935_v24, %v5978_v43  ;;  %v7246_v1 = vmul.f32 %v14953_v33, %v5978_v43 }
0x268a   :  { %v6073_v37 = vmul.f32 %v14879_v60, %v5973_v36  ;;  %v6166_v40 = vmul.f32 %v14891_v63, %v5973_v36  ;;  %v6412_v41 = vmul.f32 %v14935_v24, %v5973_v36  ;;  %v6581_v44 = vmul.f32 %v14953_v33, %v5973_v36 }
0x268b   :  { %v13358_v36 = vunpack.i.l.bf16 %v15647_v35 }
0x268c   :  { %12468 = vmatmul.mubr.msk.f32.vlgmr.msra.gmra.mrb[50].mxu1 %vm732_vm3, %v6073_v37  ;;  %12473 = vmatmul.mubr.msk.f32.vlgmr.msra.gmra.mrb[38].mxu0 %vm732_vm3, %v6166_v40 }
0x268d   :  { %12486 = vmatpush3.xpose.msk.msra.mxu0 %vm732_vm3, %v15566_v21  ;;  %12487 = vmatprep.mubr.msk.f32.mxu0 %vm14338_vm1, %v14339_v45  ;;  %v6501_v37 = vmul.f32 %v13358_v36, %v15566_v21 }
0x268e   :  { %12495 = vmatprep.subr.mxu0 %v14339_v45  ;;  %12477 = vmatprep.mubr.msk.f32.mxu1 %vm14338_vm1, %v14339_v45 }
0x2690   :  { %12488 = vmatmul.mubr.msk.f32.vlgmr.msra.gmra.mrb[40].mxu0 %vm732_vm3, %v6412_v41 }
0x2691   :  { %12496 = vmatpush3.xpose.msk.msra.mxu0 %vm732_vm3, %v15566_v21  ;;  %12497 = vmatprep.mubr.msk.f32.mxu0 %vm14338_vm1, %v14339_v45 }
0x2692   :  { %12505 = vmatprep.subr.mxu0 %v14339_v45 }
0x2694   :  { %12498 = vmatmul.mubr.msk.f32.vlgmr.msra.gmra.mrb[42].mxu0 %vm732_vm3, %v6581_v44 }
0x2695   :  { %12506 = vmatpush3.xpose.msk.msra.mxu0 %vm732_vm3, %v6751_v5  ;;  %12507 = vmatprep.mubr.msk.f32.mxu0 %vm14338_vm1, %v14339_v45 }
0x2696   :  { %12510 = vmatprep.subr.mxu0 %v14339_v45 }
0x2698   :  { %12508 = vmatmul.mubr.msk.f32.vlgmr.msra.gmra.mrb[44].mxu0 %vm732_vm3, %v6750_v46 }
0x2699   :  { %12511 = vmatpush3.xpose.msk.msra.mxu0 %vm732_vm3, %v6751_v5  ;;  %12512 = vmatprep.mubr.msk.f32.mxu0 %vm14338_vm1, %v14339_v45 }
0x269a   :  { %12525 = vmatprep.subr.mxu0 %v14339_v45 }
0x269c   :  { %12513 = vmatmul.mubr.msk.f32.vlgmr.msra.gmra.mrb[46].mxu0 %vm732_vm3, %v6839_v47 }
0x269d   :  { %12526 = vmatpush3.xpose.msk.msra.mxu0 %vm732_vm3, %v6751_v5  ;;  %12527 = vmatprep.mubr.msk.f32.mxu0 %vm14338_vm1, %v14339_v45 }
0x269e   :  { %12535 = vmatprep.subr.mxu0 %v14339_v45 }
0x26a0   :  { %12528 = vmatmul.mubr.msk.f32.vlgmr.msra.gmra.mrb[48].mxu0 %vm732_vm3, %v7081_v42 }
0x26a1   :  { %12536 = vmatpush3.xpose.msk.msra.mxu0 %vm732_vm3, %v6751_v5  ;;  %12537 = vmatprep.mubr.msk.f32.mxu0 %vm14338_vm1, %v14339_v45 }
0x26a4   :  { %12538 = vmatmul.mubr.msk.f32.vlgmr.msra.gmra.mrb[50].mxu0 %vm732_vm3, %v7246_v1 }
0x26f2   :  { %v6258_v55 = vpop.permute.xlu0 %6257  ;;  %v15654_v40 = vpop.permute.xlu1 %6335 }
0x26f3   :  { %12476 = vmatpush3.msk.msra.mxu1 %vm718_vm2, %v6258_v55 }
0x26f4   :  { %12480 = vmatprep.subr.mxu1 %v14339_v45 }
0x275f   :  { %v6146_v48 = vpop.f32.mrb[50].mxu1  ;;  %v6236_v49 = vpop.f32.mrb[38].mxu0 }
0x2760   :  { %v6150_v62 = vmul.f32 0.35355338, %v6146_v48  ;;  %v6240_v50 = vmul.f32 0.35355338, %v6236_v49  ;;  %v12469_v51 = vpop.f32.mrb[51].mxu1  ;;  %v12474_v52 = vpop.f32.mrb[39].mxu0 }
0x2762   :  { %v6241_v54 = vsel %vm1007_vm14, %v6240_v50, -inf  ;;  %v6151_v57 = vsel %vm1007_vm14, %v6150_v62, -inf }
0x2763   :  { %6242 = vmax.xlane.f32.xlu1 %v6241_v54  ;;  %v6482_v58 = vpop.f32.mrb[40].mxu0  ;;  %6152 = vmax.xlane.f32.xlu0 %v6151_v57  ;;  %v6925_v54 = vrot.slane %v15575_v31, 4  ;;  %v13359_v57 = vunpack.i.h.bf16 %v15647_v35 }
0x2764   :  { %v6486_v53 = vmul.f32 0.35355338, %v6482_v58  ;;  %v12489_v23 = vpop.f32.mrb[41].mxu0 }
0x2765   :  { %v6670_v58 = vmul.f32 %v13359_v57, %v15566_v21 }
0x2766   :  { %v6487_v61 = vsel %vm1007_vm14, %v6486_v53, -inf }
0x2767   :  { %v6651_v2 = vpop.f32.mrb[42].mxu0  ;;  %6488 = vmax.xlane.f32.xlu0 %v6487_v61 }
0x2768   :  { %v6655_v4 = vmul.f32 0.35355338, %v6651_v2  ;;  %v12499_v6 = vpop.f32.mrb[43].mxu0 }
0x276a   :  { %v6656_v59 = vsel %vm1007_vm14, %v6655_v4, -inf }
0x276b   :  { %6657 = vmax.xlane.f32.xlu1 %v6656_v59  ;;  %v6823_v7 = vpop.f32.mrb[44].mxu0 }
0x276c   :  { %v6827_v8 = vmul.f32 0.35355338, %v6823_v7  ;;  %v12509_v10 = vpop.f32.mrb[45].mxu0 }
0x276e   :  { %v6828_v9 = vsel %vm1007_vm14, %v6827_v8, -inf }
0x276f   :  { %6829 = vmax.xlane.f32.xlu1 %v6828_v9  ;;  %v6909_v11 = vpop.f32.mrb[46].mxu0 }
0x2770   :  { %v6913_v3 = vmul.f32 0.35355338, %v6909_v11  ;;  %v12514_v12 = vpop.f32.mrb[47].mxu0 }
0x2772   :  { %v6914_v56 = vsel %vm1007_vm14, %v6913_v3, -inf }
0x2773   :  { %v7151_v30 = vpop.f32.mrb[48].mxu0  ;;  %6915 = vmax.xlane.f32.xlu0 %v6914_v56 }
0x2774   :  { %v7155_v14 = vmul.f32 0.35355338, %v7151_v30  ;;  %v12529_v15 = vpop.f32.mrb[49].mxu0 }
0x2776   :  { %v7156_v16 = vsel %vm1007_vm14, %v7155_v14, -inf }
0x2777   :  { %v7316_v39 = vpop.f32.mrb[50].mxu0  ;;  %7157 = vmax.xlane.f32.xlu0 %v7156_v16  ;;  %v7003_v16 = vrot.slane %v15580_v32, 4 }
0x2778   :  { %v15643_v17 = vmul.f32 0.35355338, %v7316_v39  ;;  %v12539_v25 = vpop.f32.mrb[51].mxu0  ;;  %v7167_v39 = vrot.slane %v6501_v37, 4 }
0x277a   :  { %v7321_v34 = vsel %vm1007_vm14, %v15643_v17, -inf }
0x277b   :  { %7322 = vmax.xlane.f32.xlu1 %v7321_v34 }
0x278d   :  { %6503 = vrot.lane.b32.xlu0 %v6501_v37, %s14340_s3 }
0x27f0   :  { %v6243_v41 = vpop.xlane.xlu1 %6242  ;;  %v6153_v43 = vpop.xlane.xlu0 %6152 }
0x27f1   :  { %v6244_v44 = vsub.f32 %v6240_v50, %v6243_v41  ;;  %v6154_v5 = vsub.f32 %v6150_v62, %v6153_v43 }
0x27f3   :  { %v6245_v46 = vmul.f32 1.442695, %v6244_v44  ;;  %v6155_v47 = vmul.f32 1.442695, %v6154_v5  ;;  %v7332_v5 = vrot.slane %v6670_v58, 4 }
0x27f4   :  { %v6489_v42 = vpop.xlane.xlu0 %6488 }
0x27f5   :  { %13478 = vpow2.f32 %v6245_v46  ;;  %v6490_v1 = vsub.f32 %v6486_v53, %v6489_v42 }
0x27f6   :  { %13480 = vpow2.f32 %v6155_v47 }
0x27f7   :  { %v6491_v55 = vmul.f32 1.442695, %v6490_v1 }
0x27f8   :  { %v6658_v53 = vpop.xlane.xlu1 %6657 }
0x27f9   :  { %13482 = vpow2.f32 %v6491_v55  ;;  %v6659_v61 = vsub.f32 %v6655_v4, %v6658_v53 }
0x27fb   :  { %v6660_v59 = vmul.f32 1.442695, %v6659_v61 }
0x27fc   :  { %v6830_v2 = vpop.xlane.xlu1 %6829 }
0x27fd   :  { %v6831_v7 = vsub.f32 %v6827_v8, %v6830_v2  ;;  %13484 = vpow2.f32 %v6660_v59 }
0x27ff   :  { %v13479_v48 = vpop.eup %13478  ;;  %v6832_v31 = vmul.f32 1.442695, %v6831_v7 }
0x2800   :  { %v15656_v49 = vpop.eup %13480  ;;  %v6247_v51 = vsel %vm1007_vm14, %v13479_v48, 0.0  ;;  %v6916_v23 = vpop.xlane.xlu0 %6915 }
0x2801   :  { %6248 = vadd.xlane.f32.xlu1 %v6247_v51  ;;  %v6157_v52 = vsel %vm1007_vm14, %v15656_v49, 0.0  ;;  %v6917_v9 = vsub.f32 %v6913_v3, %v6916_v23  ;;  %13486 = vpow2.f32 %v6832_v31 }
0x2802   :  { %6158 = vadd.xlane.f32.xlu0 %v6157_v52 }
0x2803   :  { %v15661_v50 = vpop.eup %13482  ;;  %v6918_v12 = vmul.f32 1.442695, %v6917_v9 }
0x2804   :  { %v6493_v62 = vsel %vm1007_vm14, %v15661_v50, 0.0  ;;  %v7158_v6 = vpop.xlane.xlu0 %7157 }
0x2805   :  { %v7159_v10 = vsub.f32 %v7155_v14, %v7158_v6 }
0x2806   :  { %6494 = vadd.xlane.f32.xlu0 %v6493_v62 }
0x2807   :  { %v7160_v11 = vmul.f32 1.442695, %v7159_v10  ;;  %v13485_v56 = vpop.eup %13484 }
0x2808   :  { %v6662_v21 = vsel %vm1007_vm14, %v13485_v56, 0.0  ;;  %v7323_v25 = vpop.xlane.xlu1 %7322  ;;  %v6504_v32 = vpop.permute.xlu0 %6503 }
0x2809   :  { %13488 = vpow2.f32 %v7160_v11  ;;  %v7324_v34 = vsub.f32 %v15643_v17, %v7323_v25 }
0x280a   :  { %13490 = vpow2.f32 %v6918_v12 }
0x280b   :  { %v15673_v30 = vpop.eup %13486  ;;  %v7325_v41 = vmul.f32 1.442695, %v7324_v34  ;;  %v11573_v34 = vld [vmem:[%s16347_s18] ss:$0 sm:$0xff] }
0x280c   :  { %v6834_v8 = vsel %vm1007_vm14, %v15673_v30, 0.0 }
0x280d   :  { %13492 = vpow2.f32 %v7325_v41 }
0x2812   :  { %6926 = vrot.lane.b32.xlu1 %v6925_v54, %s14340_s3 }
0x2813   :  { %v15675_v4 = vpop.eup %13488 }
0x2814   :  { %v13491_v14 = vpop.eup %13490  ;;  %v7162_v3 = vsel %vm1007_vm14, %v15675_v4, 0.0 }
0x2815   :  { %v6920_v15 = vsel %vm1007_vm14, %v13491_v14, 0.0 }
0x2817   :  { %v15686_v43 = vpop.eup %13492 }
0x2818   :  { %v7327_v44 = vsel %vm1007_vm14, %v15686_v43, 0.0 }
0x281c   :  { %6672 = vrot.lane.b32.xlu0 %v6670_v58, %s14340_s3 }
0x2836   :  { %6663 = vadd.xlane.f32.xlu1 %v6662_v21  ;;  %v7411_v21 = vld [vmem:[%s16346_s20] sm:$0xff] }
0x283a   :  { %6835 = vadd.xlane.f32.xlu1 %v6834_v8  ;;  %v7413_v8 = vld [vmem:[%s16346_s20 + $0x10] sm:$0xff] }
0x283b   :  { %7163 = vadd.xlane.f32.xlu0 %v7162_v3 }
0x283e   :  { %6921 = vadd.xlane.f32.xlu1 %v6920_v15 }
0x284f   :  { %7004 = vrot.lane.b32.xlu1 %v7003_v16, %s14340_s3 }
0x2851   :  { %7168 = vrot.lane.b32.xlu0 %v7167_v39, %s14340_s3 }
0x2873   :  { %7328 = vadd.xlane.f32.xlu1 %v7327_v44 }
0x2884   :  { %7333 = vrot.lane.b32.xlu1 %v7332_v5, %s14340_s3 }
0x288e   :  { %v6249_v46 = vpop.xlane.xlu1 %6248 }
0x288f   :  { %13494 = vrcp.f32 %v6249_v46  ;;  %v6159_v37 = vpop.xlane.xlu0 %6158 }
0x2890   :  { %13496 = vrcp.f32 %v6159_v37 }
0x2893   :  { %v6495_v1 = vpop.xlane.xlu0 %6494 }
0x2894   :  { %13498 = vrcp.f32 %v6495_v1 }
0x2897   :  { %v6673_v51 = vpop.permute.xlu0 %6672 }
0x2899   :  { %v13495_v47 = vpop.eup %13494 }
0x289a   :  { %v6251_v42 = vmul.f32 %v13495_v47, %v13479_v48  ;;  %v13497_v17 = vpop.eup %13496 }
0x289b   :  { %v6161_v55 = vmul.f32 %v13497_v17, %v15656_v49  ;;  %v6927_v49 = vpop.permute.xlu1 %6926 }
0x289c   :  { %12478 = vmatmul.mubr.msk.f32.vlgmr.msra.gmra.mrb[52].mxu1 %vm1007_vm14, %v6251_v42 }
0x289d   :  { %12481 = vmatpush3.msk.msra.mxu1 %vm718_vm2, %v15654_v40  ;;  %12482 = vmatprep.mubr.msk.f32.mxu1 %vm14338_vm1, %v14339_v45 }
0x289e   :  { %12490 = vmatprep.subr.mxu1 %v14339_v45  ;;  %v13499_v48 = vpop.eup %13498 }
0x289f   :  { %v6497_v40 = vmul.f32 %v13499_v48, %v15661_v50 }
0x28a4   :  { %12483 = vmatmul.mubr.msk.f32.vlgmr.msra.gmra.mrb[52].mxu1 %vm1007_vm14, %v6161_v55 }
0x28a5   :  { %12491 = vmatpush3.msk.msra.mxu1 %vm718_vm2, %v6504_v32  ;;  %12492 = vmatprep.mubr.msk.f32.mxu1 %vm14338_vm1, %v14339_v45 }
0x28a6   :  { %12500 = vmatprep.subr.mxu1 %v14339_v45 }
0x28ac   :  { %12493 = vmatmul.mubr.msk.f32.vlgmr.msra.gmra.mrb[52].mxu1 %vm1007_vm14, %v6497_v40 }
0x28ad   :  { %12501 = vmatpush3.msk.msra.mxu1 %vm718_vm2, %v6673_v51  ;;  %12502 = vmatprep.mubr.msk.f32.mxu1 %vm14338_vm1, %v14339_v45 }
0x28ae   :  { %12515 = vmatprep.subr.mxu1 %v14339_v45 }
0x28c3   :  { %v6664_v52 = vpop.xlane.xlu1 %6663 }
0x28c4   :  { %13500 = vrcp.f32 %v6664_v52  ;;  %v7549_v52 = vld [vmem:[%s16348_s5] sm:$0xff] }
0x28c7   :  { %v6836_v62 = vpop.xlane.xlu1 %6835 }
0x28c8   :  { %v7164_v23 = vpop.xlane.xlu0 %7163 }
0x28cb   :  { %v6922_v54 = vpop.xlane.xlu1 %6921 }
0x28cc   :  { %13502 = vrcp.f32 %v6922_v54  ;;  %v7169_v7 = vpop.permute.xlu0 %7168 }
0x28cd   :  { %13504 = vrcp.f32 %v6836_v62  ;;  %v7550_v62 = vld [vmem:[%s16348_s5 + $0x8] sm:$0xff] }
0x28ce   :  { %v13501_v58 = vpop.eup %13500  ;;  %13506 = vrcp.f32 %v7164_v23  ;;  %v13036_v54 = vpack.c.bf16 %v7550_v62, %v7549_v52  ;;  %v7643_v23 = vld [vmem:[%s16349_s22] sm:$0xff] }
0x28cf   :  { %v6666_v53 = vmul.f32 %v13501_v58, %v13485_v56  ;;  %v7005_v2 = vpop.permute.xlu1 %7004  ;;  %v7551_v58 = vld [vmem:[%s16348_s5 + $0x10] sm:$0xff] }
0x28d1   :  { %12503 = vmatmul.mubr.msk.f32.vlgmr.msra.gmra.mrb[52].mxu1 %vm1007_vm14, %v6666_v53  ;;  %v7552_v53 = vld [vmem:[%s16348_s5 + $0x18] sm:$0xff] }
0x28d2   :  { %12516 = vmatpush3.msk.msra.mxu1 %vm718_vm2, %v6927_v49  ;;  %12517 = vmatprep.mubr.msk.f32.mxu1 %vm14338_vm1, %v14339_v45 }
0x28d3   :  { %12520 = vmatprep.subr.mxu1 %v14339_v45 }
0x28d6   :  { %v13503_v50 = vpop.eup %13502 }
0x28d7   :  { %v6924_v61 = vmul.f32 %v13503_v50, %v13491_v14  ;;  %v13505_v6 = vpop.eup %13504  ;;  %v7414_v14 = vld [vmem:[%s16346_s20 + $0x18] sm:$0xff]  ;;  %v13040_v50 = vpack.c.bf16 %v7552_v53, %v7551_v58 }
0x28d8   :  { %v6838_v59 = vmul.f32 %v13505_v6, %v15673_v30  ;;  %v13507_v10 = vpop.eup %13506  ;;  %v7412_v30 = vld [vmem:[%s16346_s20 + $0x8] sm:$0xff]  ;;  %v13032_v3 = vpack.c.bf16 %v7414_v14, %v7413_v8  ;;  %v7654_v14 = vld [vmem:[%s16349_s22 + $0x58] sm:$0xff] }
0x28d9   :  { %12518 = vmatmul.mubr.msk.f32.vlgmr.msra.gmra.mrb[54].mxu1 %vm1007_vm14, %v6924_v61  ;;  %v7166_v31 = vmul.f32 %v13507_v10, %v15675_v4  ;;  %v13028_v4 = vpack.c.bf16 %v7412_v30, %v7411_v21  ;;  %v7644_v61 = vld [vmem:[%s16349_s22 + $0x8] sm:$0xff]  ;;  %v7647_v10 = vld [vmem:[%s16349_s22 + $0x20] sm:$0xff] }
0x28da   :  { %12521 = vmatpush3.msk.msra.mxu1 %vm718_vm2, %v7005_v2  ;;  %12522 = vmatprep.mubr.msk.f32.mxu1 %vm14338_vm1, %v14339_v45  ;;  %v7645_v2 = vld [vmem:[%s16349_s22 + $0x10] sm:$0xff]  ;;  %v13044_v6 = vpack.c.bf16 %v7644_v61, %v7643_v23  ;;  %v7651_v21 = vld [vmem:[%s16349_s22 + $0x40] sm:$0xff]  ;;  %v7652_v30 = vld [vmem:[%s16349_s22 + $0x48] sm:$0xff] }
0x28db   :  { %12530 = vmatprep.subr.mxu1 %v14339_v45  ;;  %13029 = vmatprep.subr.bf16.mxu0 %v13028_v4  ;;  %v13060_v8 = vpack.c.bf16 %v7652_v30, %v7651_v21  ;;  %v11581_v23 = vld [vmem:[%s16353_s9] ss:$0 sm:$0xff] }
0x28dc   :  { %13031 = vmatpush3.bf16.msra.mxu0 %v13028_v4  ;;  %v7653_v4 = vld [vmem:[%s16349_s22 + $0x50] sm:$0xff] }
0x28dd   :  { %13033 = vmatprep.subr.bf16.mxu0 %v13032_v3 }
0x28e0   :  { %13035 = vmatpush3.bf16.msra.mxu0 %v13032_v3  ;;  %v13064_v3 = vpack.c.bf16 %v7654_v14, %v7653_v4 }
0x28e1   :  { %12523 = vmatmul.mubr.msk.f32.vlgmr.msra.gmra.mrb[54].mxu1 %vm1007_vm14, %v6838_v59  ;;  %v7646_v59 = vld [vmem:[%s16349_s22 + $0x18] sm:$0xff]  ;;  %13045 = vmatprep.subr.bf16.mxu0 %v13044_v6 }
0x28e2   :  { %12531 = vmatpush3.msk.msra.mxu1 %vm718_vm2, %v7169_v7  ;;  %12532 = vmatprep.mubr.msk.f32.mxu1 %vm14338_vm1, %v14339_v45  ;;  %v13048_v7 = vpack.c.bf16 %v7646_v59, %v7645_v2 }
0x28e3   :  { %12540 = vmatprep.subr.mxu1 %v14339_v45 }
0x28e9   :  { %12533 = vmatmul.mubr.msk.f32.vlgmr.msra.gmra.mrb[54].mxu1 %vm1007_vm14, %v7166_v31  ;;  %v7648_v31 = vld [vmem:[%s16349_s22 + $0x28] sm:$0xff] }
0x28ea   :  { %12542 = vmatprep.mubr.msk.f32.mxu1 %vm14338_vm1, %v14339_v45 }
0x2900   :  { %v7329_v9 = vpop.xlane.xlu1 %7328 }
0x2901   :  { %13508 = vrcp.f32 %v7329_v9  ;;  %v13052_v9 = vpack.c.bf16 %v7648_v31, %v7647_v10 }
0x2904   :  { %v7334_v11 = vpop.permute.xlu1 %7333 }
0x2905   :  { %12541 = vmatpush3.msk.msra.mxu1 %vm718_vm2, %v7334_v11  ;;  %v7649_v11 = vld [vmem:[%s16349_s22 + $0x30] sm:$0xff] }
0x2906   :  { %13037 = vmatprep.subr.bf16.mxu1 %v13036_v54 }
0x290b   :  { %v13509_v12 = vpop.eup %13508 }
0x290c   :  { %v7331_v56 = vmul.f32 %v13509_v12, %v15686_v43  ;;  %v7650_v12 = vld [vmem:[%s16349_s22 + $0x38] sm:$0xff] }
0x290e   :  { %12543 = vmatmul.mubr.msk.f32.vlgmr.msra.gmra.mrb[54].mxu1 %vm1007_vm14, %v7331_v56  ;;  %v13056_v56 = vpack.c.bf16 %v7650_v12, %v7649_v11 }
0x290f   :  { %13039 = vmatpush3.bf16.msra.mxu1 %v13036_v54 }
0x2910   :  { %13041 = vmatprep.subr.bf16.mxu1 %v13040_v50 }
0x2913   :  { %13043 = vmatpush3.bf16.msra.mxu1 %v13040_v50 }
0x29a4   :  { %v6745_v15 = vpop.f32.mrb[52].mxu1 }
0x29a5   :  { %v12504_v16 = vpop.f32.mrb[53].mxu1  ;;  %12553 = vmatprep.mubr.msk.f32.mxu0 %vm732_vm3, %v6745_v15  ;;  %v7655_v15 = vld [vmem:[%s16349_s22 + $0x60] sm:$0xff] }
0x29a6   :  { %v7656_v16 = vld [vmem:[%s16349_s22 + $0x68] sm:$0xff] }
0x29e1   :  { %v7406_v39 = vpop.f32.mrb[54].mxu1 }
0x29e2   :  { %v12544_v25 = vpop.f32.mrb[55].mxu1  ;;  %12554 = vmatmul.mubr.msk.f32.vlgmr.msra.gmra.mrb[52].mxu0 %vm732_vm3, %v7406_v39  ;;  %v13068_v39 = vpack.c.bf16 %v7656_v16, %v7655_v15  ;;  %v7787_v16 = vld [vmem:[%s16354_s27] sm:$0xff] }
0x29e3   :  { %13047 = vmatpush3.bf16.msra.mxu0 %v13044_v6 }
0x29e4   :  { %13049 = vmatprep.subr.bf16.mxu0 %v13048_v7 }
0x29e7   :  { %13051 = vmatpush3.bf16.msra.mxu0 %v13048_v7 }
0x29e8   :  { %13053 = vmatprep.subr.bf16.mxu0 %v13052_v9 }
0x29eb   :  { %13055 = vmatpush3.bf16.msra.mxu0 %v13052_v9 }
0x29ec   :  { %13057 = vmatprep.subr.bf16.mxu0 %v13056_v56 }
0x29ef   :  { %13059 = vmatpush3.bf16.msra.mxu0 %v13056_v56 }
0x29f0   :  { %13061 = vmatprep.subr.bf16.mxu0 %v13060_v8 }
0x29f3   :  { %13063 = vmatpush3.bf16.msra.mxu0 %v13060_v8 }
0x29f4   :  { %13065 = vmatprep.subr.bf16.mxu0 %v13064_v3 }
0x29f7   :  { %13067 = vmatpush3.bf16.msra.mxu0 %v13064_v3 }
0x29f8   :  { %13069 = vmatprep.subr.bf16.mxu0 %v13068_v39 }
0x29fb   :  { %13071 = vmatpush3.bf16.msra.mxu0 %v13068_v39  ;;  %v7788_v39 = vld [vmem:[%s16354_s27 + $0x8] sm:$0xff] }
0x2ab5   :  { %v12555_v41 = vpop.f32.mrb[52].mxu0 }
0x2ab6   :  { %v7500_v43 = vadd.f32 %v12555_v41, %v11573_v34  ;;  %v7494_v44 = vpop.f32.mrb[53].mxu0 }
0x2ab7   :  { %v7495_v5 = vadd.f32 %v11573_v34, %v7494_v44 }
0x2ab8   :  { %v7504_v32 = vadd.f32 %v7500_v43, %v15554_v26 }
0x2ab9   :  { %v7503_v46 = vadd.f32 %v7495_v5, %v15552_v18 }
0x2aba   :  { %v7508_v37 = vsel %vm732_vm3, %v7504_v32, 0.0 }
0x2abb   :  { %7509 = vadd.xlane.f32.xlu1 %v7508_v37  ;;  %v7505_v47 = vsel %vm732_vm3, %v7503_v46, 0.0 }
0x2abc   :  { %7506 = vadd.xlane.f32.xlu0 %v7505_v47  ;;  %v11577_v47 = vld [vmem:[%s16351_s26] ss:$0 sm:$0xff] }
0x2b48   :  { %v7510_v42 = vpop.xlane.xlu1 %7509 }
0x2b49   :  { %v7512_v1 = vmul.f32 0.03125, %v7510_v42  ;;  %v7507_v17 = vpop.xlane.xlu0 %7506 }
0x2b4a   :  { %v7511_v55 = vmul.f32 0.03125, %v7507_v17 }
0x2b4b   :  { %v15743_v48 = vsub.f32 %v7504_v32, %v7512_v1 }
0x2b4c   :  { %v7513_v40 = vsub.f32 %v7503_v46, %v7511_v55  ;;  %v11576_v46 = vld [vmem:[%s16350_s23] ss:$0 sm:$0xff] }
0x2b4d   :  { %v7516_v51 = vmul.f32 %v15743_v48, %v15743_v48 }
0x2b4e   :  { %v7515_v26 = vmul.f32 %v7513_v40, %v7513_v40 }
0x2b4f   :  { %v7520_v49 = vsel %vm732_vm3, %v7516_v51, 0.0  ;;  %v7657_v51 = vld [vmem:[%s16349_s22 + $0x70] sm:$0xff] }
0x2b50   :  { %v7517_v18 = vsel %vm732_vm3, %v7515_v26, 0.0 }
0x2b51   :  { %7518 = vadd.xlane.f32.xlu0 %v7517_v18 }
0x2b55   :  { %7521 = vadd.xlane.f32.xlu0 %v7520_v49  ;;  %v7658_v49 = vld [vmem:[%s16349_s22 + $0x78] sm:$0xff] }
0x2b56   :  { %v13072_v52 = vpack.c.bf16 %v7658_v49, %v7657_v51  ;;  %v11583_v51 = vld [vmem:[%s16356_s29] ss:$0 sm:$0xff] }
0x2b58   :  { %13073 = vmatprep.subr.bf16.mxu0 %v13072_v52 }
0x2b59   :  { %13075 = vmatpush3.bf16.msra.mxu0 %v13072_v52 }
0x2b5a   :  { %12643 = vmatprep.subr.mxu0 %v14339_v45 }
0x2bde   :  { %v7519_v25 = vpop.xlane.xlu0 %7518 }
0x2bdf   :  { %v7523_v34 = vmul.f32 0.03125, %v7519_v25  ;;  %v7789_v25 = vld [vmem:[%s16354_s27 + $0x10] sm:$0xff] }
0x2be1   :  { %v7525_v41 = vadd.f32 1e-05, %v7523_v34  ;;  %v13076_v34 = vpack.c.bf16 %v7788_v39, %v7787_v16 }
0x2be2   :  { %v7522_v43 = vpop.xlane.xlu0 %7521 }
0x2be3   :  { %13510 = vrsqrt.f32 %v7525_v41  ;;  %v7524_v44 = vmul.f32 0.03125, %v7522_v43  ;;  %v7790_v41 = vld [vmem:[%s16354_s27 + $0x18] sm:$0xff]  ;;  %13077 = vmatprep.subr.bf16.mxu1 %v13076_v34 }
0x2be4   :  { %v13080_v43 = vpack.c.bf16 %v7790_v41, %v7789_v25 }
0x2be5   :  { %v7526_v5 = vadd.f32 1e-05, %v7524_v44 }
0x2be7   :  { %13512 = vrsqrt.f32 %v7526_v5 }
0x2bed   :  { %v13511_v32 = vpop.eup %13510 }
0x2bee   :  { %v7529_v37 = vmul.f32 %v13511_v32, %v7513_v40  ;;  %v11578_v40 = vld [vmem:[%s16352_s28] ss:$0 sm:$0xff] }
0x2bf0   :  { %v7538_v42 = vmul.f32 %v11576_v46, %v7529_v37 }
0x2bf1   :  { %v13513_v1 = vpop.eup %13512 }
0x2bf2   :  { %v7530_v17 = vmul.f32 %v13513_v1, %v15743_v48  ;;  %v7547_v55 = vadd.f32 %v11577_v47, %v7538_v42  ;;  %v11582_v1 = vld [vmem:[%s16355_s25] ss:$0 sm:$0xff] }
0x2bf4   :  { %v7539_v26 = vmul.f32 %v11576_v46, %v7530_v17  ;;  %12564 = vmatprep.mubr.msk.f32.mxu1 %vm732_vm3, %v7547_v55 }
0x2bf6   :  { %v7548_v18 = vadd.f32 %v11577_v47, %v7539_v26 }
0x2bf8   :  { %12565 = vmatmul.mubr.msk.f32.vlgmr.msra.gmra.mrb[56].mxu1 %vm732_vm3, %v7548_v18 }
0x2bf9   :  { %13079 = vmatpush3.bf16.msra.mxu1 %v13076_v34 }
0x2bfa   :  { %13081 = vmatprep.subr.bf16.mxu1 %v13080_v43 }
0x2bfd   :  { %13083 = vmatpush3.bf16.msra.mxu1 %v13080_v43 }
0x2bfe   :  { %12613 = vmatprep.subr.mxu1 %v14339_v45 }
0x2ccb   :  { %v12566_v62 = vpop.f32.mrb[56].mxu1 }
0x2ccc   :  { %v7638_v54 = vadd.f32 %v12566_v62, %v11578_v40  ;;  %v7632_v58 = vpop.f32.mrb[57].mxu1  ;;  %v11584_v62 = vld [vmem:[#allocation16] ss:$0 sm:$0xff] }
0x2ccd   :  { %v7633_v48 = vadd.f32 %v11578_v40, %v7632_v58 }
0x2cce   :  { %v7642_v50 = vmax.f32 %v7638_v54, 0.0 }
0x2ccf   :  { %v7641_v53 = vmax.f32 %v7633_v48, 0.0 }
0x2cd1   :  { %12599 = vmatprep.mubr.f32.mxu0 %v7641_v53 }
0x2cd2   :  { %12600 = vmatmul.mubr.f32.vlgmr.msra.gmra.mrb[54].mxu0 %v7642_v50 }
0x2cd3   :  { %12645 = vmatprep.mubr.msk.f32.mxu0 %vm14338_vm1, %v14339_v45 }
0x2da5   :  { %v12601_v61 = vpop.f32.mrb[54].mxu0 }
0x2da6   :  { %v7738_v2 = vadd.f32 %v12601_v61, %v11581_v23  ;;  %v7732_v6 = vpop.f32.mrb[55].mxu0 }
0x2da7   :  { %v7733_v59 = vadd.f32 %v11581_v23, %v7732_v6 }
0x2da8   :  { %v7742_v7 = vadd.f32 %v7738_v2, %v7548_v18 }
0x2da9   :  { %v7741_v10 = vadd.f32 %v7733_v59, %v7547_v55 }
0x2daa   :  { %v7746_v31 = vsel %vm732_vm3, %v7742_v7, 0.0 }
0x2dab   :  { %7747 = vadd.xlane.f32.xlu1 %v7746_v31  ;;  %v7743_v9 = vsel %vm732_vm3, %v7741_v10, 0.0 }
0x2dac   :  { %7744 = vadd.xlane.f32.xlu0 %v7743_v9 }
0x2e38   :  { %v7748_v11 = vpop.xlane.xlu1 %7747 }
0x2e39   :  { %v7750_v12 = vmul.f32 0.03125, %v7748_v11  ;;  %v7745_v56 = vpop.xlane.xlu0 %7744 }
0x2e3a   :  { %v7749_v21 = vmul.f32 0.03125, %v7745_v56 }
0x2e3b   :  { %v7752_v30 = vsub.f32 %v7742_v7, %v7750_v12 }
0x2e3c   :  { %v7751_v8 = vsub.f32 %v7741_v10, %v7749_v21 }
0x2e3d   :  { %v7754_v4 = vmul.f32 %v7752_v30, %v7752_v30 }
0x2e3e   :  { %v7753_v14 = vmul.f32 %v7751_v8, %v7751_v8 }
0x2e3f   :  { %v7758_v3 = vsel %vm732_vm3, %v7754_v4, 0.0 }
0x2e40   :  { %7759 = vadd.xlane.f32.xlu1 %v7758_v3  ;;  %v7755_v15 = vsel %vm732_vm3, %v7753_v14, 0.0 }
0x2e41   :  { %7756 = vadd.xlane.f32.xlu0 %v7755_v15 }
0x2ecd   :  { %v7760_v44 = vpop.xlane.xlu1 %7759 }
0x2ece   :  { %v7762_v5 = vmul.f32 0.03125, %v7760_v44  ;;  %v7757_v32 = vpop.xlane.xlu0 %7756 }
0x2ecf   :  { %v7761_v46 = vmul.f32 0.03125, %v7757_v32 }
0x2ed0   :  { %v7764_v37 = vadd.f32 1e-05, %v7762_v5 }
0x2ed1   :  { %v7763_v47 = vadd.f32 1e-05, %v7761_v46 }
0x2ed2   :  { %13514 = vrsqrt.f32 %v7764_v37 }
0x2ed3   :  { %13516 = vrsqrt.f32 %v7763_v47 }
0x2edc   :  { %v13515_v42 = vpop.eup %13514 }
0x2edd   :  { %v13517_v17 = vpop.eup %13516  ;;  %v7768_v55 = vmul.f32 %v13515_v42, %v7752_v30 }
0x2ede   :  { %v7767_v26 = vmul.f32 %v13517_v17, %v7751_v8 }
0x2edf   :  { %v7777_v18 = vmul.f32 %v11582_v1, %v7768_v55 }
0x2ee0   :  { %v7776_v49 = vmul.f32 %v11582_v1, %v7767_v26 }
0x2ee1   :  { %v15792_v40 = vadd.f32 %v11583_v51, %v7777_v18 }
0x2ee2   :  { %v15790_v52 = vadd.f32 %v11583_v51, %v7776_v49 }
0x2ee4   :  { %12610 = vmatprep.mubr.msk.f32.mxu1 %vm732_vm3, %v15790_v52 }
0x2ee5   :  { %12611 = vmatmul.mubr.msk.f32.vlgmr.msra.gmra.mrb[58].mxu1 %vm732_vm3, %v15792_v40 }
0x2ee6   :  { %12615 = vmatprep.mubr.msk.f32.mxu1 %vm14338_vm1, %v14339_v45 }
0x2fb8   :  { %v12612_v54 = vpop.f32.mrb[58].mxu1 }
0x2fb9   :  { %v7870_v58 = vpop.f32.mrb[59].mxu1  ;;  %v15807_v50 = vadd.f32 %v12612_v54, %v11584_v62 }
0x2fba   :  { %v15800_v48 = vadd.f32 %v11584_v62, %v7870_v58 }
0x2fbb   :  { %v8542_v10 = vmul.f32 %v14879_v60, %v15807_v50  ;;  %v8634_v31 = vmul.f32 %v14891_v63, %v15807_v50  ;;  %v8875_v9 = vmul.f32 %v14935_v24, %v15807_v50  ;;  %v9040_v11 = vmul.f32 %v14953_v33, %v15807_v50 }
0x2fbc   :  { %7881 = vrot.lane.b32.xlu0 %v15800_v48, %s14340_s3  ;;  %v7970_v53 = vmul.f32 %v15800_v48, %v14922_v22  ;;  %v8377_v61 = vmul.f32 %v14953_v33, %v15800_v48  ;;  %v7879_v2 = vmul.f32 %v14879_v60, %v15800_v48  ;;  %v7971_v59 = vmul.f32 %v14891_v63, %v15800_v48 }
0x2fbd   :  { %v8057_v49 = vmul.f32 %v15800_v48, %v14916_v20 }
0x2fc0   :  { %8136 = vrot.lane.b32.xlu0 %v7970_v53, %s14341_s1 }
0x2fc4   :  { %8544 = vrot.lane.b32.xlu0 %v15807_v50, %s14340_s3 }
0x302e   :  { %v15811_v23 = vpop.permute.xlu0 %7881 }
0x302f   :  { %12614 = vmatpush3.xpose.msk.msra.mxu1 %vm732_vm3, %v15811_v23  ;;  %12644 = vmatpush3.xpose.msk.msra.mxu0 %vm732_vm3, %v15811_v23 }
0x3030   :  { %12618 = vmatprep.subr.mxu1 %v14339_v45  ;;  %12653 = vmatprep.subr.mxu0 %v14339_v45 }
0x3032   :  { %12646 = vmatmul.mubr.msk.f32.vlgmr.msra.gmra.mrb[56].mxu0 %vm732_vm3, %v8377_v61  ;;  %v15824_v6 = vpop.permute.xlu0 %8136  ;;  %12616 = vmatmul.mubr.msk.f32.vlgmr.msra.gmra.mrb[60].mxu1 %vm732_vm3, %v7879_v2 }
0x3033   :  { %12619 = vmatpush3.xpose.msk.msra.mxu1 %vm732_vm3, %v15811_v23  ;;  %12620 = vmatprep.mubr.msk.f32.mxu1 %vm14338_vm1, %v14339_v45 }
0x3034   :  { %12655 = vmatprep.mubr.msk.f32.mxu0 %vm14338_vm1, %v14339_v45  ;;  %12623 = vmatprep.subr.mxu1 %v14339_v45 }
0x3036   :  { %v8545_v7 = vpop.permute.xlu0 %8544  ;;  %12621 = vmatmul.mubr.msk.f32.vlgmr.msra.gmra.mrb[62].mxu1 %vm732_vm3, %v7971_v59 }
0x3037   :  { %12654 = vmatpush3.xpose.msk.msra.mxu0 %vm732_vm3, %v8545_v7  ;;  %12625 = vmatprep.mubr.msk.f32.mxu1 %vm14338_vm1, %v14339_v45 }
0x3038   :  { %12658 = vmatprep.subr.mxu0 %v14339_v45 }
0x303a   :  { %12656 = vmatmul.mubr.msk.f32.vlgmr.msra.gmra.mrb[58].mxu0 %vm732_vm3, %v8542_v10 }
0x303b   :  { %12659 = vmatpush3.xpose.msk.msra.mxu0 %vm732_vm3, %v8545_v7  ;;  %12660 = vmatprep.mubr.msk.f32.mxu0 %vm14338_vm1, %v14339_v45 }
0x303c   :  { %12673 = vmatprep.subr.mxu0 %v14339_v45 }
0x303e   :  { %12661 = vmatmul.mubr.msk.f32.vlgmr.msra.gmra.mrb[60].mxu0 %vm732_vm3, %v8634_v31 }
0x303f   :  { %12674 = vmatpush3.xpose.msk.msra.mxu0 %vm732_vm3, %v8545_v7  ;;  %12675 = vmatprep.mubr.msk.f32.mxu0 %vm14338_vm1, %v14339_v45 }
0x3040   :  { %12683 = vmatprep.subr.mxu0 %v14339_v45 }
0x3042   :  { %12676 = vmatmul.mubr.msk.f32.vlgmr.msra.gmra.mrb[62].mxu0 %vm732_vm3, %v8875_v9 }
0x3043   :  { %12684 = vmatpush3.xpose.msk.msra.mxu0 %vm732_vm3, %v8545_v7  ;;  %12685 = vmatprep.mubr.msk.f32.mxu0 %vm14338_vm1, %v14339_v45 }
0x3046   :  { %12686 = vmatmul.mubr.msk.f32.vlgmr.msra.gmra.mrb[64].mxu0 %vm732_vm3, %v9040_v11  ;;  %v8212_v11 = vmul.f32 %v14935_v24, %v15800_v48 }
0x3105   :  { %v7954_v12 = vpop.f32.mrb[60].mxu1  ;;  %v8447_v56 = vpop.f32.mrb[56].mxu0 }
0x3106   :  { %v12617_v21 = vpop.f32.mrb[61].mxu1  ;;  %v12647_v30 = vpop.f32.mrb[57].mxu0  ;;  %v7958_v3 = vmul.f32 0.35355338, %v7954_v12  ;;  %v8451_v62 = vmul.f32 0.35355338, %v8447_v56 }
0x3108   :  { %v7959_v25 = vsel %vm4504_vm6, %v7958_v3, -inf  ;;  %v8452_v58 = vsel %vm4504_vm6, %v8451_v62, -inf }
0x3109   :  { %v8041_v8 = vpop.f32.mrb[62].mxu1 }
0x310a   :  { %v8045_v4 = vmul.f32 0.35355338, %v8041_v8  ;;  %v12622_v14 = vpop.f32.mrb[63].mxu1 }
0x310c   :  { %v8046_v15 = vsel %vm4504_vm6, %v8045_v4, -inf }
0x310d   :  { %v15865_v16 = vpop.f32.mrb[58].mxu0  ;;  %8047 = vmax.xlane.f32.xlu1 %v8046_v15 }
0x310e   :  { %v12657_v39 = vpop.f32.mrb[59].mxu0  ;;  %v8621_v15 = vmul.f32 0.35355338, %v15865_v16 }
0x3111   :  { %v8704_v34 = vpop.f32.mrb[60].mxu0  ;;  %7960 = vmax.xlane.f32.xlu1 %v7959_v25 }
0x3112   :  { %v12662_v41 = vpop.f32.mrb[61].mxu0  ;;  %v8708_v14 = vmul.f32 0.35355338, %v8704_v34 }
0x3113   :  { %v8622_v41 = vsel %vm4504_vm6, %v8621_v15, -inf }
0x3114   :  { %v8709_v39 = vsel %vm4504_vm6, %v8708_v14, -inf }
0x3115   :  { %v15868_v43 = vpop.f32.mrb[62].mxu0 }
0x3116   :  { %v12677_v44 = vpop.f32.mrb[63].mxu0  ;;  %v8949_v25 = vmul.f32 0.35355338, %v15868_v43 }
0x3118   :  { %v8950_v44 = vsel %vm4504_vm6, %v8949_v25, -inf }
0x3119   :  { %v9110_v5 = vpop.f32.mrb[64].mxu0 }
0x311a   :  { %v12687_v32 = vpop.f32.mrb[65].mxu0  ;;  %v15875_v54 = vmul.f32 0.35355338, %v9110_v5 }
0x311c   :  { %v9115_v53 = vsel %vm4504_vm6, %v15875_v54, -inf }
0x319a   :  { %v8048_v46 = vpop.xlane.xlu1 %8047 }
0x319b   :  { %v8049_v37 = vsub.f32 %v8045_v4, %v8048_v46 }
0x319d   :  { %v8050_v1 = vmul.f32 1.442695, %v8049_v37 }
0x319e   :  { %v7961_v47 = vpop.xlane.xlu1 %7960 }
0x319f   :  { %v7962_v42 = vsub.f32 %v7958_v3, %v7961_v47 }
0x31a1   :  { %v7963_v17 = vmul.f32 1.442695, %v7962_v42 }
0x31a3   :  { %13518 = vpow2.f32 %v7963_v17 }
0x31a4   :  { %13520 = vpow2.f32 %v8050_v1 }
0x31ad   :  { %v13519_v55 = vpop.eup %13518 }
0x31ae   :  { %v7965_v26 = vsel %vm4504_vm6, %v13519_v55, 0.0  ;;  %v13521_v18 = vpop.eup %13520 }
0x31af   :  { %7966 = vadd.xlane.f32.xlu1 %v7965_v26  ;;  %v8052_v51 = vsel %vm4504_vm6, %v13521_v18, 0.0 }
0x31b3   :  { %8053 = vadd.xlane.f32.xlu1 %v8052_v51 }
0x31c4   :  { %8059 = vrot.lane.b32.xlu1 %v8057_v49, %s14341_s1 }
0x31e8   :  { %8453 = vmax.xlane.f32.xlu1 %v8452_v58 }
0x31ec   :  { %9116 = vmax.xlane.f32.xlu1 %v9115_v53 }
0x323c   :  { %v7967_v61 = vpop.xlane.xlu1 %7966 }
0x3240   :  { %v8054_v2 = vpop.xlane.xlu1 %8053 }
0x3241   :  { %13522 = vrcp.f32 %v8054_v2  ;;  %v8463_v2 = vmul.f32 %v15800_v48, %v14977_v38 }
0x3242   :  { %13524 = vrcp.f32 %v7967_v61 }
0x3244   :  { %v8060_v59 = vpop.permute.xlu1 %8059 }
0x3245   :  { %12624 = vmatpush3.msra.mxu1 %v8060_v59  ;;  %v8298_v59 = vmul.f32 %v15800_v48, %v14941_v29 }
0x3246   :  { %12628 = vmatprep.subr.mxu1 %v14339_v45 }
0x324b   :  { %v13523_v7 = vpop.eup %13522 }
0x324c   :  { %v8056_v10 = vmul.f32 %v13523_v7, %v13521_v18  ;;  %v13525_v31 = vpop.eup %13524  ;;  %v8720_v7 = vmul.f32 %v15807_v50, %v14916_v20 }
0x324d   :  { %v7969_v9 = vmul.f32 %v13525_v31, %v13519_v55 }
0x324e   :  { %12626 = vmatmul.mubr.msk.f32.vlgmr.msra.gmra.mrb[64].mxu1 %vm4504_vm6, %v8056_v10  ;;  %v8633_v10 = vmul.f32 %v15807_v50, %v14922_v22 }
0x324f   :  { %12629 = vmatpush3.msra.mxu1 %v15824_v6  ;;  %12630 = vmatprep.mubr.msk.f32.mxu1 %vm14338_vm1, %v14339_v45 }
0x3250   :  { %12633 = vmatprep.subr.mxu1 %v14339_v45 }
0x3256   :  { %12631 = vmatmul.mubr.msk.f32.vlgmr.msra.gmra.mrb[64].mxu1 %vm4504_vm6, %v7969_v9  ;;  %v8961_v9 = vmul.f32 %v15807_v50, %v14941_v29 }
0x3257   :  { %12634 = vmatpush3.xpose.msk.msra.mxu1 %vm732_vm3, %v15811_v23  ;;  %12635 = vmatprep.mubr.msk.f32.mxu1 %vm14338_vm1, %v14339_v45 }
0x3258   :  { %12638 = vmatprep.subr.mxu1 %v14339_v45 }
0x325a   :  { %12636 = vmatmul.mubr.msk.f32.vlgmr.msra.gmra.mrb[66].mxu1 %vm732_vm3, %v8212_v11  ;;  %v9126_v11 = vmul.f32 %v15807_v50, %v14977_v38 }
0x325b   :  { %12640 = vmatprep.mubr.msk.f32.mxu1 %vm14338_vm1, %v14339_v45 }
0x3275   :  { %v8454_v6 = vpop.xlane.xlu1 %8453 }
0x3276   :  { %v8455_v12 = vsub.f32 %v8451_v62, %v8454_v6 }
0x3278   :  { %v8456_v56 = vmul.f32 1.442695, %v8455_v12 }
0x3279   :  { %v9117_v31 = vpop.xlane.xlu1 %9116 }
0x327a   :  { %13526 = vpow2.f32 %v8456_v56  ;;  %v9118_v48 = vsub.f32 %v15875_v54, %v9117_v31 }
0x327c   :  { %v9119_v20 = vmul.f32 1.442695, %v9118_v48  ;;  %v9344_v48 = vld [vmem:[%s16358_s4 + $0x8] sm:$0xff] }
0x3284   :  { %v15897_v21 = vpop.eup %13526 }
0x3285   :  { %v8458_v23 = vsel %vm4504_vm6, %v15897_v21, 0.0 }
0x3286   :  { %8459 = vadd.xlane.f32.xlu1 %v8458_v23 }
0x3313   :  { %v8460_v56 = vpop.xlane.xlu1 %8459 }
0x332d   :  { %v8282_v30 = vpop.f32.mrb[66].mxu1 }
0x332e   :  { %v8286_v8 = vmul.f32 0.35355338, %v8282_v30  ;;  %v12637_v4 = vpop.f32.mrb[67].mxu1 }
0x3330   :  { %v8287_v3 = vsel %vm4504_vm6, %v8286_v8, -inf }
0x3331   :  { %8288 = vmax.xlane.f32.xlu0 %v8287_v3 }
0x3335   :  { %8710 = vmax.xlane.f32.xlu0 %v8709_v39 }
0x3339   :  { %8623 = vmax.xlane.f32.xlu0 %v8622_v41 }
0x333d   :  { %8951 = vmax.xlane.f32.xlu0 %v8950_v44 }
0x33be   :  { %v8289_v5 = vpop.xlane.xlu0 %8288 }
0x33bf   :  { %v8290_v32 = vsub.f32 %v8286_v8, %v8289_v5 }
0x33c1   :  { %v8291_v37 = vmul.f32 1.442695, %v8290_v32 }
0x33c2   :  { %v8711_v46 = vpop.xlane.xlu0 %8710 }
0x33c3   :  { %v8712_v34 = vsub.f32 %v8708_v14, %v8711_v46 }
0x33c5   :  { %v8713_v47 = vmul.f32 1.442695, %v8712_v34 }
0x33c6   :  { %v8624_v42 = vpop.xlane.xlu0 %8623 }
0x33c7   :  { %13528 = vpow2.f32 %v8713_v47  ;;  %v8625_v16 = vsub.f32 %v8621_v15, %v8624_v42 }
0x33c8   :  { %13530 = vpow2.f32 %v8291_v37 }
0x33c9   :  { %v8626_v1 = vmul.f32 1.442695, %v8625_v16 }
0x33ca   :  { %v8952_v17 = vpop.xlane.xlu0 %8951 }
0x33cb   :  { %13532 = vpow2.f32 %v8626_v1  ;;  %v8953_v43 = vsub.f32 %v8949_v25, %v8952_v17 }
0x33cd   :  { %v8954_v55 = vmul.f32 1.442695, %v8953_v43 }
0x33cf   :  { %13534 = vpow2.f32 %v8954_v55 }
0x33d0   :  { %13536 = vpow2.f32 %v9119_v20 }
0x33d1   :  { %v13529_v26 = vpop.eup %13528 }
0x33d2   :  { %v8715_v18 = vsel %vm4504_vm6, %v13529_v26, 0.0  ;;  %v13531_v51 = vpop.eup %13530 }
0x33d3   :  { %8716 = vadd.xlane.f32.xlu0 %v8715_v18  ;;  %v8293_v62 = vsel %vm4504_vm6, %v13531_v51, 0.0 }
0x33d5   :  { %v13533_v49 = vpop.eup %13532 }
0x33d6   :  { %v8628_v58 = vsel %vm4504_vm6, %v13533_v49, 0.0 }
0x33d7   :  { %8294 = vadd.xlane.f32.xlu0 %v8293_v62  ;;  %8629 = vadd.xlane.f32.xlu1 %v8628_v58  ;;  %v11611_v62 = vld [vmem:[#allocation15] ss:$0 sm:$0xff] }
0x33d9   :  { %v15910_v53 = vpop.eup %13534 }
0x33da   :  { %v8956_v61 = vsel %vm4504_vm6, %v15910_v53, 0.0  ;;  %v13537_v6 = vpop.eup %13536 }
0x33db   :  { %8957 = vadd.xlane.f32.xlu1 %v8956_v61  ;;  %v9121_v22 = vsel %vm4504_vm6, %v13537_v6, 0.0 }
0x33ec   :  { %8465 = vrot.lane.b32.xlu1 %v8463_v2, %s14341_s1 }
0x33ed   :  { %8300 = vrot.lane.b32.xlu0 %v8298_v59, %s14341_s1 }
0x33f1   :  { %8722 = vrot.lane.b32.xlu0 %v8720_v7, %s14341_s1 }
0x33f5   :  { %8799 = vrot.lane.b32.xlu0 %v8633_v10, %s14341_s1 }
0x33f9   :  { %8963 = vrot.lane.b32.xlu0 %v8961_v9, %s14341_s1  ;;  %v9343_v9 = vld [vmem:[%s16358_s4] sm:$0xff] }
0x33fd   :  { %9128 = vrot.lane.b32.xlu0 %v9126_v11, %s14341_s1  ;;  %s16357_s1 = sld [smem:[#allocation88_spill]]  ;;  %v13360_v11 = vpack.i.bf16 %v9344_v48, %v9343_v9 }
0x3403   :  { %v9205_v42 = vld [vmem:[%s16357_s1] sm:$0xff]  ;;  %v9206_v16 = vld [vmem:[%s16357_s1 + $0x8] sm:$0xff]  ;;  %v9207_v1 = vld [vmem:[%s16357_s1 + $0x10] sm:$0xff] }
0x3404   :  { %v13084_v17 = vpack.c.bf16 %v9206_v16, %v9205_v42  ;;  %v9208_v43 = vld [vmem:[%s16357_s1 + $0x18] sm:$0xff] }
0x3405   :  { %v13088_v55 = vpack.c.bf16 %v9208_v43, %v9207_v1  ;;  %v11614_v1 = vld [vmem:[#allocation7] ss:$0 sm:$0xff] }
0x3406   :  { %13085 = vmatprep.subr.bf16.mxu0 %v13084_v17 }
0x3407   :  { %13087 = vmatpush3.bf16.msra.mxu0 %v13084_v17 }
0x3408   :  { %13089 = vmatprep.subr.bf16.mxu0 %v13088_v55 }
0x340b   :  { %13091 = vmatpush3.bf16.msra.mxu0 %v13088_v55 }
0x340c   :  { %13100 = vmatprep.subr.bf16.mxu0 %v14337_v0 }
0x3410   :  { %9122 = vadd.xlane.f32.xlu1 %v9121_v22 }
0x3460   :  { %v8717_v12 = vpop.xlane.xlu0 %8716 }
0x3464   :  { %v8295_v23 = vpop.xlane.xlu0 %8294  ;;  %v8630_v29 = vpop.xlane.xlu1 %8629 }
0x3465   :  { %13538 = vrcp.f32 %v8295_v23 }
0x3466   :  { %13540 = vrcp.f32 %v8460_v56 }
0x3467   :  { %13542 = vrcp.f32 %v8717_v12 }
0x3468   :  { %v8301_v30 = vpop.permute.xlu0 %8300  ;;  %v8958_v54 = vpop.xlane.xlu1 %8957  ;;  %13544 = vrcp.f32 %v8630_v29 }
0x3469   :  { %12639 = vmatpush3.msra.mxu1 %v8301_v30  ;;  %13546 = vrcp.f32 %v8958_v54  ;;  %v9345_v54 = vld [vmem:[%s16358_s4 + $0x10] sm:$0xff] }
0x346a   :  { %12648 = vmatprep.subr.mxu1 %v14339_v45 }
0x346c   :  { %v8466_v8 = vpop.permute.xlu1 %8465  ;;  %v8723_v3 = vpop.permute.xlu0 %8722 }
0x346f   :  { %v13539_v38 = vpop.eup %13538 }
0x3470   :  { %v8297_v50 = vmul.f32 %v13539_v38, %v13531_v51  ;;  %v13541_v4 = vpop.eup %13540  ;;  %v8800_v25 = vpop.permute.xlu0 %8799  ;;  %v9346_v38 = vld [vmem:[%s16358_s4 + $0x18] sm:$0xff] }
0x3471   :  { %v8462_v14 = vmul.f32 %v13541_v4, %v15897_v21  ;;  %v13543_v15 = vpop.eup %13542 }
0x3472   :  { %12641 = vmatmul.mubr.msk.f32.vlgmr.msra.gmra.mrb[64].mxu1 %vm4504_vm6, %v8297_v50  ;;  %v8719_v39 = vmul.f32 %v13543_v15, %v13529_v26  ;;  %v13545_v21 = vpop.eup %13544  ;;  %v13365_v50 = vpack.i.bf16 %v9346_v38, %v9345_v54  ;;  %v13092_v15 = vpack.c.bf16 %v9344_v48, %v9343_v9 }
0x3473   :  { %12649 = vmatpush3.msra.mxu1 %v8466_v8  ;;  %12650 = vmatprep.mubr.msk.f32.mxu1 %vm14338_vm1, %v14339_v45  ;;  %v8632_v41 = vmul.f32 %v13545_v21, %v13533_v49  ;;  %v13547_v5 = vpop.eup %13546 }
0x3474   :  { %12663 = vmatprep.subr.mxu1 %v14339_v45  ;;  %v8964_v44 = vpop.permute.xlu0 %8963  ;;  %v8960_v32 = vmul.f32 %v13547_v5, %v15910_v53 }
0x3478   :  { %v9129_v46 = vpop.permute.xlu0 %9128 }
0x347a   :  { %12651 = vmatmul.mubr.msk.f32.vlgmr.msra.gmra.mrb[64].mxu1 %vm4504_vm6, %v8462_v14 }
0x347b   :  { %12664 = vmatpush3.msra.mxu1 %v8723_v3  ;;  %12665 = vmatprep.mubr.msk.f32.mxu1 %vm14338_vm1, %v14339_v45 }
0x347c   :  { %12668 = vmatprep.subr.mxu1 %v14339_v45 }
0x347e   :  { %12666 = vmatmul.mubr.msk.f32.vlgmr.msra.gmra.mrb[68].mxu1 %vm4504_vm6, %v8719_v39  ;;  %v13096_v39 = vpack.c.bf16 %v9346_v38, %v9345_v54 }
0x347f   :  { %12669 = vmatpush3.msra.mxu1 %v8800_v25  ;;  %12670 = vmatprep.mubr.msk.f32.mxu1 %vm14338_vm1, %v14339_v45  ;;  %v11616_v25 = vld [vmem:[%s16359_s30] ss:$0 sm:$0xff] }
0x3480   :  { %12678 = vmatprep.subr.mxu1 %v14339_v45 }
0x3486   :  { %12671 = vmatmul.mubr.msk.f32.vlgmr.msra.gmra.mrb[68].mxu1 %vm4504_vm6, %v8632_v41 }
0x3487   :  { %12679 = vmatpush3.msra.mxu1 %v8964_v44  ;;  %12680 = vmatprep.mubr.msk.f32.mxu1 %vm14338_vm1, %v14339_v45 }
0x3488   :  { %12688 = vmatprep.subr.mxu1 %v14339_v45 }
0x348e   :  { %12681 = vmatmul.mubr.msk.f32.vlgmr.msra.gmra.mrb[68].mxu1 %vm4504_vm6, %v8960_v32 }
0x348f   :  { %12689 = vmatpush3.msra.mxu1 %v9129_v46  ;;  %12690 = vmatprep.mubr.msk.f32.mxu1 %vm14338_vm1, %v14339_v45 }
0x3490   :  { %13093 = vmatprep.subr.bf16.mxu1 %v13092_v15 }
0x349d   :  { %v9123_v34 = vpop.xlane.xlu1 %9122 }
0x349e   :  { %13548 = vrcp.f32 %v9123_v34 }
0x34a8   :  { %v13549_v37 = vpop.eup %13548 }
0x34a9   :  { %v9125_v47 = vmul.f32 %v13549_v37, %v13537_v6 }
0x34ab   :  { %12691 = vmatmul.mubr.msk.f32.vlgmr.msra.gmra.mrb[68].mxu1 %vm4504_vm6, %v9125_v47 }
0x34ac   :  { %13095 = vmatpush3.bf16.msra.mxu1 %v13092_v15 }
0x34ad   :  { %13097 = vmatprep.subr.bf16.mxu1 %v13096_v39 }
0x34b0   :  { %13099 = vmatpush3.bf16.msra.mxu1 %v13096_v39 }
0x34b1   :  { %12726 = vmatprep.subr.mxu1 %v14339_v45 }
0x354d   :  { %v8537_v26 = vpop.f32.mrb[64].mxu1 }
0x354e   :  { %v12652_v18 = vpop.f32.mrb[65].mxu1  ;;  %12701 = vmatprep.mubr.msk.f32.mxu0 %vm732_vm3, %v8537_v26 }
0x354f   :  { %v11615_v18 = vld [vmem:[#allocation6] ss:$0 sm:$0xff] }
0x357e   :  { %v9200_v51 = vpop.f32.mrb[68].mxu1 }
0x357f   :  { %v12692_v49 = vpop.f32.mrb[69].mxu1  ;;  %12702 = vmatmul.mubr.msk.f32.vlgmr.msra.gmra.mrb[66].mxu0 %vm732_vm3, %v9200_v51 }
0x3580   :  { %12723 = vmatprep.mubr.msk.f32.mxu0 %vm14338_vm1, %v14339_v45 }
0x3652   :  { %v12703_v58 = vpop.f32.mrb[66].mxu0 }
0x3653   :  { %v9294_v53 = vadd.f32 %v12703_v58, %v11611_v62  ;;  %v9288_v61 = vpop.f32.mrb[67].mxu0 }
0x3654   :  { %v9289_v2 = vadd.f32 %v11611_v62, %v9288_v61 }
0x3655   :  { %v9298_v59 = vadd.f32 %v9294_v53, %v15792_v40 }
0x3656   :  { %v9297_v7 = vadd.f32 %v9289_v2, %v15790_v52 }
0x3657   :  { %v9302_v10 = vsel %vm732_vm3, %v9298_v59, 0.0 }
0x3658   :  { %9303 = vadd.xlane.f32.xlu1 %v9302_v10  ;;  %v9299_v31 = vsel %vm732_vm3, %v9297_v7, 0.0 }
0x3659   :  { %9300 = vadd.xlane.f32.xlu0 %v9299_v31 }
0x366f   :  { %13361 = vrot.lane.b32.xlu0 %v13360_v11, %s14340_s3 }
0x36e5   :  { %v9304_v20 = vpop.xlane.xlu1 %9303 }
0x36e6   :  { %v9306_v6 = vmul.f32 0.03125, %v9304_v20  ;;  %v9301_v22 = vpop.xlane.xlu0 %9300 }
0x36e7   :  { %v9305_v12 = vmul.f32 0.03125, %v9301_v22 }
0x36e8   :  { %v9308_v40 = vsub.f32 %v9298_v59, %v9306_v6 }
0x36e9   :  { %v9307_v56 = vsub.f32 %v9297_v7, %v9305_v12 }
0x36ea   :  { %v9310_v52 = vmul.f32 %v9308_v40, %v9308_v40  ;;  %v13362_v8 = vpop.permute.xlu0 %13361 }
0x36eb   :  { %v9309_v29 = vmul.f32 %v9307_v56, %v9307_v56  ;;  %v13364_v4 = vunpack.i.h.bf16 %v13362_v8  ;;  %v13363_v14 = vunpack.i.l.bf16 %v13362_v8 }
0x36ec   :  { %v9314_v23 = vsel %vm732_vm3, %v9310_v52, 0.0 }
0x36ed   :  { %9315 = vadd.xlane.f32.xlu1 %v9314_v23  ;;  %v9311_v30 = vsel %vm732_vm3, %v9309_v29, 0.0  ;;  %v13101_v3 = vpack.c.bf16 %v13364_v4, %v13363_v14 }
0x36ef   :  { %13102 = vmatpush3.bf16.msra.mxu0 %v13101_v3 }
0x36f0   :  { %13103 = vmatprep.subr.bf16.mxu0 %v14337_v0 }
0x36f1   :  { %9312 = vadd.xlane.f32.xlu1 %v9311_v30 }
0x3702   :  { %13366 = vrot.lane.b32.xlu1 %v13365_v50, %s14340_s3 }
0x3706   :  { %9451 = vrot.lane.b32.xlu1 %v11616_v25, %s14340_s3 }
0x377a   :  { %v9316_v21 = vpop.xlane.xlu1 %9315 }
0x377b   :  { %v9318_v41 = vmul.f32 0.03125, %v9316_v21 }
0x377d   :  { %v9320_v44 = vadd.f32 1e-05, %v9318_v41 }
0x377e   :  { %v9313_v5 = vpop.xlane.xlu1 %9312 }
0x377f   :  { %13550 = vrsqrt.f32 %v9320_v44  ;;  %v9317_v32 = vmul.f32 0.03125, %v9313_v5 }
0x3781   :  { %v9319_v46 = vadd.f32 1e-05, %v9317_v32 }
0x3782   :  { %v13367_v34 = vpop.permute.xlu1 %13366 }
0x3783   :  { %13552 = vrsqrt.f32 %v9319_v46  ;;  %v13369_v0 = vunpack.i.h.bf16 %v13367_v34  ;;  %v13368_v37 = vunpack.i.l.bf16 %v13367_v34 }
0x3785   :  { %v13104_v47 = vpack.c.bf16 %v13369_v0, %v13368_v37 }
0x3787   :  { %13105 = vmatpush3.bf16.msra.mxu0 %v13104_v47 }
0x3788   :  { %12731 = vmatprep.subr.mxu0 %v14339_v45 }
0x3789   :  { %v13551_v42 = vpop.eup %13550 }
0x378a   :  { %12724 = vmatmul.mubr.msk.f32.vlgmr.msra.gmra.mrb[68].mxu0 %vm732_vm3, %v15543_v13  ;;  %v9324_v16 = vmul.f32 %v13551_v42, %v9308_v40  ;;  %v9452_v13 = vpop.permute.xlu1 %9451 }
0x378b   :  { %12733 = vmatprep.mubr.msk.f32.mxu0 %vm14338_vm1, %v14339_v45 }
0x378c   :  { %v9333_v55 = vmul.f32 %v11614_v1, %v9324_v16 }
0x378d   :  { %v13553_v17 = vpop.eup %13552 }
0x378e   :  { %v9323_v43 = vmul.f32 %v13553_v17, %v9307_v56  ;;  %v15989_v49 = vadd.f32 %v11615_v18, %v9333_v55 }
0x3790   :  { %v9332_v26 = vmul.f32 %v11614_v1, %v9323_v43 }
0x3792   :  { %v15987_v51 = vadd.f32 %v11615_v18, %v9332_v26 }
0x3794   :  { %12712 = vmatprep.mubr.msk.f32.mxu1 %vm732_vm3, %v15987_v51 }
0x3795   :  { %12713 = vmatmul.mubr.msk.f32.vlgmr.msra.gmra.mrb[70].mxu1 %vm732_vm3, %v15989_v49 }
0x3796   :  { %12728 = vmatprep.mubr.msk.f32.mxu1 %vm14338_vm1, %v14339_v45 }
0x385d   :  { %v9520_v62 = vpop.f32.mrb[68].mxu0 }
0x385e   :  { %v15997_v58 = vadd.f32 %v9520_v62, %v9452_v13  ;;  %v12725_v53 = vpop.f32.mrb[69].mxu0 }
0x3860   :  { %12727 = vmatpush3.xpose.msk.msra.mxu1 %vm732_vm3, %v15997_v58  ;;  %12732 = vmatpush3.xpose.msk.msra.mxu0 %vm732_vm3, %v15997_v58  ;;  %v10190_v11 = vrot.slane %v15997_v58, 4  ;;  %v16062_v42 = vmul.f32 %v13354_v28, %v15997_v58  ;;  %v16069_v16 = vmul.f32 %v13353_v19, %v15997_v58  ;;  %v16077_v28 = vmul.f32 %v13358_v36, %v15997_v58 }
0x3861   :  { %12746 = vmatprep.subr.mxu0 %v14339_v45  ;;  %12736 = vmatprep.subr.mxu1 %v14339_v45 }
0x3868   :  { %v12714_v61 = vpop.f32.mrb[70].mxu1 }
0x3869   :  { %v9426_v2 = vpop.f32.mrb[71].mxu1  ;;  %v9432_v9 = vadd.f32 %v12714_v61, %v11616_v25 }
0x386a   :  { %v9427_v59 = vadd.f32 %v11616_v25, %v9426_v2 }
0x386b   :  { %v10189_v20 = vmul.f32 %v14879_v60, %v9432_v9  ;;  %v10278_v6 = vmul.f32 %v14891_v63, %v9432_v9 }
0x386c   :  { %v9524_v7 = vmul.f32 %v14879_v60, %v9427_v59  ;;  %v9614_v10 = vmul.f32 %v14891_v63, %v9427_v59  ;;  %v9857_v31 = vmul.f32 %v14935_v24, %v9427_v59  ;;  %v10023_v48 = vmul.f32 %v14953_v33, %v9427_v59 }
0x386d   :  { %v10520_v60 = vmul.f32 %v14935_v24, %v9432_v9  ;;  %v10685_v63 = vmul.f32 %v14953_v33, %v9432_v9 }
0x386e   :  { %12729 = vmatmul.mubr.msk.f32.vlgmr.msra.gmra.mrb[72].mxu1 %vm732_vm3, %v9524_v7  ;;  %12734 = vmatmul.mubr.msk.f32.vlgmr.msra.gmra.mrb[70].mxu0 %vm732_vm3, %v9614_v10 }
0x386f   :  { %12747 = vmatpush3.xpose.msk.msra.mxu0 %vm732_vm3, %v15997_v58  ;;  %12748 = vmatprep.mubr.msk.f32.mxu0 %vm14338_vm1, %v14339_v45 }
0x3870   :  { %12756 = vmatprep.subr.mxu0 %v14339_v45  ;;  %12738 = vmatprep.mubr.msk.f32.mxu1 %vm14338_vm1, %v14339_v45 }
0x3872   :  { %12749 = vmatmul.mubr.msk.f32.vlgmr.msra.gmra.mrb[72].mxu0 %vm732_vm3, %v9857_v31 }
0x3873   :  { %12757 = vmatpush3.xpose.msk.msra.mxu0 %vm732_vm3, %v15997_v58  ;;  %12758 = vmatprep.mubr.msk.f32.mxu0 %vm14338_vm1, %v14339_v45 }
0x3874   :  { %12766 = vmatprep.subr.mxu0 %v14339_v45 }
0x3876   :  { %12759 = vmatmul.mubr.msk.f32.vlgmr.msra.gmra.mrb[74].mxu0 %vm732_vm3, %v10023_v48 }
0x3877   :  { %12767 = vmatpush3.xpose.msk.msra.mxu0 %vm732_vm3, %v10190_v11  ;;  %12768 = vmatprep.mubr.msk.f32.mxu0 %vm14338_vm1, %v14339_v45 }
0x3878   :  { %12771 = vmatprep.subr.mxu0 %v14339_v45 }
0x387a   :  { %12769 = vmatmul.mubr.msk.f32.vlgmr.msra.gmra.mrb[76].mxu0 %vm732_vm3, %v10189_v20 }
0x387b   :  { %12772 = vmatpush3.xpose.msk.msra.mxu0 %vm732_vm3, %v10190_v11  ;;  %12773 = vmatprep.mubr.msk.f32.mxu0 %vm14338_vm1, %v14339_v45 }
0x387c   :  { %12786 = vmatprep.subr.mxu0 %v14339_v45 }
0x387e   :  { %12774 = vmatmul.mubr.msk.f32.vlgmr.msra.gmra.mrb[78].mxu0 %vm732_vm3, %v10278_v6 }
0x387f   :  { %12787 = vmatpush3.xpose.msk.msra.mxu0 %vm732_vm3, %v10190_v11  ;;  %12788 = vmatprep.mubr.msk.f32.mxu0 %vm14338_vm1, %v14339_v45 }
0x3880   :  { %12796 = vmatprep.subr.mxu0 %v14339_v45 }
0x3882   :  { %12789 = vmatmul.mubr.msk.f32.vlgmr.msra.gmra.mrb[80].mxu0 %vm732_vm3, %v10520_v60 }
0x3883   :  { %12797 = vmatpush3.xpose.msk.msra.mxu0 %vm732_vm3, %v10190_v11  ;;  %12798 = vmatprep.mubr.msk.f32.mxu0 %vm14338_vm1, %v14339_v45 }
0x3886   :  { %12799 = vmatmul.mubr.msk.f32.vlgmr.msra.gmra.mrb[82].mxu0 %vm732_vm3, %v10685_v63 }
0x3941   :  { %v9597_v22 = vpop.f32.mrb[72].mxu1  ;;  %v9684_v12 = vpop.f32.mrb[70].mxu0 }
0x3942   :  { %v9601_v40 = vmul.f32 0.35355338, %v9597_v22  ;;  %v9688_v56 = vmul.f32 0.35355338, %v9684_v12  ;;  %v12730_v52 = vpop.f32.mrb[73].mxu1  ;;  %v12735_v23 = vpop.f32.mrb[71].mxu0 }
0x3944   :  { %v9689_v24 = vsel %vm1007_vm14, %v9688_v56, -inf  ;;  %v9602_v29 = vsel %vm1007_vm14, %v9601_v40, -inf }
0x3945   :  { %9690 = vmax.xlane.f32.xlu1 %v9689_v24  ;;  %v9927_v30 = vpop.f32.mrb[72].mxu0  ;;  %9603 = vmax.xlane.f32.xlu0 %v9602_v29 }
0x3946   :  { %v9931_v54 = vmul.f32 0.35355338, %v9927_v30  ;;  %v12750_v38 = vpop.f32.mrb[73].mxu0  ;;  %v10109_v30 = vmul.f32 %v13359_v57, %v15997_v58  ;;  %v10442_v58 = vrot.slane %v16062_v42, 4 }
0x3948   :  { %v9932_v50 = vsel %vm1007_vm14, %v9931_v54, -inf }
0x3949   :  { %v10093_v33 = vpop.f32.mrb[74].mxu0  ;;  %9933 = vmax.xlane.f32.xlu0 %v9932_v50 }
0x394a   :  { %v10097_v8 = vmul.f32 0.35355338, %v10093_v33  ;;  %v12760_v4 = vpop.f32.mrb[75].mxu0 }
0x394c   :  { %v10098_v14 = vsel %vm1007_vm14, %v10097_v8, -inf }
0x394d   :  { %v10262_v3 = vpop.f32.mrb[76].mxu0  ;;  %10099 = vmax.xlane.f32.xlu0 %v10098_v14 }
0x394e   :  { %v16053_v15 = vmul.f32 0.35355338, %v10262_v3  ;;  %v12770_v39 = vpop.f32.mrb[77].mxu0 }
0x3950   :  { %v10267_v25 = vsel %vm1007_vm14, %v16053_v15, -inf }
0x3951   :  { %v10348_v21 = vpop.f32.mrb[78].mxu0  ;;  %10268 = vmax.xlane.f32.xlu0 %v10267_v25  ;;  %v10771_v25 = vrot.slane %v10109_v30, 4 }
0x3952   :  { %v10352_v41 = vmul.f32 0.35355338, %v10348_v21  ;;  %v12775_v44 = vpop.f32.mrb[79].mxu0  ;;  %v10364_v21 = vrot.slane %v16069_v16, 4 }
0x3954   :  { %v10353_v5 = vsel %vm1007_vm14, %v10352_v41, -inf }
0x3955   :  { %10354 = vmax.xlane.f32.xlu1 %v10353_v5  ;;  %v10590_v32 = vpop.f32.mrb[80].mxu0 }
0x3956   :  { %v10594_v46 = vmul.f32 0.35355338, %v10590_v32  ;;  %v12790_v34 = vpop.f32.mrb[81].mxu0 }
0x3958   :  { %v10595_v0 = vsel %vm1007_vm14, %v10594_v46, -inf }
0x3959   :  { %10596 = vmax.xlane.f32.xlu1 %v10595_v0  ;;  %v10755_v37 = vpop.f32.mrb[82].mxu0 }
0x395a   :  { %v12800_v47 = vpop.f32.mrb[83].mxu0  ;;  %v10759_v1 = vmul.f32 0.35355338, %v10755_v37 }
0x395c   :  { %v10760_v17 = vsel %vm1007_vm14, %v10759_v1, -inf }
0x3967   :  { %9780 = vrot.lane.b32.xlu0 %v16062_v42, %s14340_s3 }
0x396a   :  { %9702 = vrot.lane.b32.xlu1 %v16069_v16, %s14340_s3 }
0x3986   :  { %10761 = vmax.xlane.f32.xlu0 %v10760_v17 }
0x399c   :  { %9945 = vrot.lane.b32.xlu0 %v16077_v28, %s14340_s3 }
0x39d2   :  { %v9691_v43 = vpop.xlane.xlu1 %9690  ;;  %v9604_v55 = vpop.xlane.xlu0 %9603 }
0x39d3   :  { %v9692_v27 = vsub.f32 %v9688_v56, %v9691_v43  ;;  %v9605_v19 = vsub.f32 %v9601_v40, %v9604_v55 }
0x39d5   :  { %v9693_v26 = vmul.f32 1.442695, %v9692_v27  ;;  %v9606_v18 = vmul.f32 1.442695, %v9605_v19 }
0x39d6   :  { %v9934_v13 = vpop.xlane.xlu0 %9933 }
0x39d7   :  { %13554 = vpow2.f32 %v9693_v26  ;;  %v9935_v62 = vsub.f32 %v9931_v54, %v9934_v13 }
0x39d8   :  { %13556 = vpow2.f32 %v9606_v18 }
0x39d9   :  { %v9936_v53 = vmul.f32 1.442695, %v9935_v62 }
0x39da   :  { %v10100_v61 = vpop.xlane.xlu0 %10099 }
0x39db   :  { %13558 = vpow2.f32 %v9936_v53  ;;  %v10101_v2 = vsub.f32 %v10097_v8, %v10100_v61 }
0x39dd   :  { %v10102_v59 = vmul.f32 1.442695, %v10101_v2 }
0x39de   :  { %v10269_v54 = vpop.xlane.xlu0 %10268 }
0x39df   :  { %13560 = vpow2.f32 %v10102_v59  ;;  %v10270_v38 = vsub.f32 %v16053_v15, %v10269_v54  ;;  %v10606_v15 = vrot.slane %v16077_v28, 4 }
0x39e1   :  { %v13555_v36 = vpop.eup %13554  ;;  %v10271_v50 = vmul.f32 1.442695, %v10270_v38 }
0x39e2   :  { %v16081_v7 = vpop.eup %13556  ;;  %v10355_v10 = vpop.xlane.xlu1 %10354  ;;  %v9695_v31 = vsel %vm1007_vm14, %v13555_v36, 0.0 }
0x39e3   :  { %v10356_v9 = vsub.f32 %v10352_v41, %v10355_v10  ;;  %9696 = vadd.xlane.f32.xlu1 %v9695_v31  ;;  %v9608_v48 = vsel %vm1007_vm14, %v16081_v7, 0.0  ;;  %v9781_v33 = vpop.permute.xlu0 %9780 }
0x39e4   :  { %9609 = vadd.xlane.f32.xlu0 %v9608_v48 }
0x39e5   :  { %v16086_v11 = vpop.eup %13558  ;;  %v10357_v20 = vmul.f32 1.442695, %v10356_v9 }
0x39e6   :  { %v10597_v6 = vpop.xlane.xlu1 %10596  ;;  %v9938_v60 = vsel %vm1007_vm14, %v16086_v11, 0.0 }
0x39e7   :  { %13562 = vpow2.f32 %v10357_v20  ;;  %v10598_v63 = vsub.f32 %v10594_v46, %v10597_v6  ;;  %9939 = vadd.xlane.f32.xlu1 %v9938_v60 }
0x39e9   :  { %v16090_v22 = vpop.eup %13560  ;;  %v10599_v12 = vmul.f32 1.442695, %v10598_v63 }
0x39ea   :  { %v9703_v40 = vpop.permute.xlu1 %9702  ;;  %v10104_v56 = vsel %vm1007_vm14, %v16090_v22, 0.0 }
0x39eb   :  { %13564 = vpow2.f32 %v10599_v12  ;;  %12737 = vmatpush3.msk.msra.mxu1 %vm718_vm2, %v9703_v40  ;;  %10105 = vadd.xlane.f32.xlu0 %v10104_v56  ;;  %v11652_v40 = vld [vmem:[%s16361_s2] ss:$0 sm:$0xff] }
0x39ec   :  { %12741 = vmatprep.subr.mxu1 %v14339_v45  ;;  %13566 = vpow2.f32 %v10271_v50 }
0x39f1   :  { %v16096_v52 = vpop.eup %13562 }
0x39f2   :  { %v10359_v23 = vsel %vm1007_vm14, %v16096_v52, 0.0 }
0x39f3   :  { %10360 = vadd.xlane.f32.xlu0 %v10359_v23 }
0x39f5   :  { %v16100_v24 = vpop.eup %13564 }
0x39f6   :  { %v10601_v29 = vsel %vm1007_vm14, %v16100_v24, 0.0  ;;  %v16109_v3 = vpop.eup %13566 }
0x39f7   :  { %10602 = vadd.xlane.f32.xlu0 %v10601_v29  ;;  %v10273_v39 = vsel %vm1007_vm14, %v16109_v3, 0.0 }
0x39f8   :  { %10111 = vrot.lane.b32.xlu1 %v10109_v30, %s14340_s3 }
0x3a13   :  { %v10762_v8 = vpop.xlane.xlu0 %10761 }
0x3a14   :  { %v10763_v4 = vsub.f32 %v10759_v1, %v10762_v8 }
0x3a16   :  { %v10764_v14 = vmul.f32 1.442695, %v10763_v4 }
0x3a17   :  { %v9946_v41 = vpop.permute.xlu0 %9945 }
0x3a18   :  { %13568 = vpow2.f32 %v10764_v14 }
0x3a1c   :  { %10274 = vadd.xlane.f32.xlu1 %v10273_v39 }
0x3a22   :  { %v16113_v35 = vpop.eup %13568 }
0x3a23   :  { %v10766_v57 = vsel %vm1007_vm14, %v16113_v35, 0.0 }
0x3a24   :  { %10767 = vadd.xlane.f32.xlu0 %v10766_v57  ;;  %v10988_v57 = vld [vmem:[%s16362_s13] sm:$0xff] }
0x3a2d   :  { %10443 = vrot.lane.b32.xlu1 %v10442_v58, %s14340_s3  ;;  %v10989_v58 = vld [vmem:[%s16362_s13 + $0x8] sm:$0xff] }
0x3a31   :  { %10607 = vrot.lane.b32.xlu1 %v10606_v15, %s14340_s3  ;;  %v10990_v15 = vld [vmem:[%s16362_s13 + $0x10] sm:$0xff] }
0x3a35   :  { %10772 = vrot.lane.b32.xlu1 %v10771_v25, %s14340_s3  ;;  %v13114_v25 = vpack.c.bf16 %v10989_v58, %v10988_v57 }
0x3a3a   :  { %10365 = vrot.lane.b32.xlu0 %v10364_v21, %s14340_s3  ;;  %s16360_s3 = sld [smem:[#allocation80_spill]]  ;;  %v10991_v21 = vld [vmem:[%s16362_s13 + $0x18] sm:$0xff] }
0x3a40   :  { %v10850_v9 = vld [vmem:[%s16360_s3] sm:$0xff]  ;;  %v10851_v48 = vld [vmem:[%s16360_s3 + $0x8] sm:$0xff]  ;;  %v10853_v6 = vld [vmem:[%s16360_s3 + $0x18] sm:$0xff] }
0x3a41   :  { %v13106_v20 = vpack.c.bf16 %v10851_v48, %v10850_v9 }
0x3a43   :  { %13107 = vmatprep.subr.bf16.mxu0 %v13106_v20 }
0x3a44   :  { %13109 = vmatpush3.bf16.msra.mxu0 %v13106_v20 }
0x3a70   :  { %v9697_v44 = vpop.xlane.xlu1 %9696 }
0x3a71   :  { %13570 = vrcp.f32 %v9697_v44  ;;  %v9610_v5 = vpop.xlane.xlu0 %9609  ;;  %v11082_v44 = vld [vmem:[%s16363_s0] sm:$0xff] }
0x3a72   :  { %13572 = vrcp.f32 %v9610_v5  ;;  %v11083_v5 = vld [vmem:[%s16363_s0 + $0x8] sm:$0xff] }
0x3a74   :  { %v9940_v34 = vpop.xlane.xlu1 %9939 }
0x3a75   :  { %13574 = vrcp.f32 %v9940_v34  ;;  %v11085_v34 = vld [vmem:[%s16363_s0 + $0x18] sm:$0xff] }
0x3a78   :  { %v10106_v47 = vpop.xlane.xlu0 %10105  ;;  %v10112_v1 = vpop.permute.xlu1 %10111 }
0x3a79   :  { %13576 = vrcp.f32 %v10106_v47  ;;  %v11087_v47 = vld [vmem:[%s16363_s0 + $0x28] sm:$0xff] }
0x3a7b   :  { %v13571_v32 = vpop.eup %13570 }
0x3a7c   :  { %v9699_v46 = vmul.f32 %v13571_v32, %v13555_v36  ;;  %v13573_v0 = vpop.eup %13572  ;;  %v11084_v32 = vld [vmem:[%s16363_s0 + $0x10] sm:$0xff] }
0x3a7d   :  { %v9612_v37 = vmul.f32 %v13573_v0, %v16081_v7  ;;  %v13126_v0 = vpack.c.bf16 %v11085_v34, %v11084_v32  ;;  %v11226_v32 = vld [vmem:[%s16364_s7] sm:$0xff]  ;;  %v11228_v34 = vld [vmem:[%s16364_s7 + $0x10] sm:$0xff] }
0x3a7e   :  { %12739 = vmatmul.mubr.msk.f32.vlgmr.msra.gmra.mrb[74].mxu1 %vm1007_vm14, %v9699_v46  ;;  %v13122_v46 = vpack.c.bf16 %v11083_v5, %v11082_v44 }
0x3a7f   :  { %12742 = vmatpush3.msk.msra.mxu1 %vm718_vm2, %v9781_v33  ;;  %12743 = vmatprep.mubr.msk.f32.mxu1 %vm14338_vm1, %v14339_v45  ;;  %v13575_v42 = vpop.eup %13574 }
0x3a80   :  { %12751 = vmatprep.subr.mxu1 %v14339_v45  ;;  %v9942_v16 = vmul.f32 %v13575_v42, %v16086_v11  ;;  %v10361_v43 = vpop.xlane.xlu0 %10360  ;;  %v10852_v11 = vld [vmem:[%s16360_s3 + $0x10] sm:$0xff] }
0x3a81   :  { %13578 = vrcp.f32 %v10361_v43  ;;  %v13110_v60 = vpack.c.bf16 %v10853_v6, %v10852_v11  ;;  %v11091_v43 = vld [vmem:[%s16363_s0 + $0x48] sm:$0xff] }
0x3a82   :  { %v11656_v6 = vld [vmem:[#allocation9] ss:$0 sm:$0xff] }
0x3a83   :  { %v13577_v17 = vpop.eup %13576  ;;  %13111 = vmatprep.subr.bf16.mxu0 %v13110_v60 }
0x3a84   :  { %v10108_v28 = vmul.f32 %v13577_v17, %v16090_v22  ;;  %v10603_v55 = vpop.xlane.xlu0 %10602  ;;  %13113 = vmatpush3.bf16.msra.mxu0 %v13110_v60 }
0x3a85   :  { %13123 = vmatprep.subr.bf16.mxu0 %v13122_v46 }
0x3a86   :  { %12744 = vmatmul.mubr.msk.f32.vlgmr.msra.gmra.mrb[74].mxu1 %vm1007_vm14, %v9612_v37  ;;  %v11086_v37 = vld [vmem:[%s16363_s0 + $0x20] sm:$0xff] }
0x3a87   :  { %12752 = vmatpush3.msk.msra.mxu1 %vm718_vm2, %v9946_v41  ;;  %12753 = vmatprep.mubr.msk.f32.mxu1 %vm14338_vm1, %v14339_v45  ;;  %v13118_v41 = vpack.c.bf16 %v10991_v21, %v10990_v15  ;;  %v13130_v42 = vpack.c.bf16 %v11087_v47, %v11086_v37  ;;  %v11229_v37 = vld [vmem:[%s16364_s7 + $0x18] sm:$0xff] }
0x3a88   :  { %12761 = vmatprep.subr.mxu1 %v14339_v45  ;;  %v13158_v47 = vpack.c.bf16 %v11229_v37, %v11228_v34 }
0x3a8b   :  { %v13579_v26 = vpop.eup %13578 }
0x3a8c   :  { %v10363_v18 = vmul.f32 %v13579_v26, %v16096_v52 }
0x3a8e   :  { %12754 = vmatmul.mubr.msk.f32.vlgmr.msra.gmra.mrb[74].mxu1 %vm1007_vm14, %v9942_v16  ;;  %v11088_v16 = vld [vmem:[%s16363_s0 + $0x30] sm:$0xff] }
0x3a8f   :  { %12762 = vmatpush3.msk.msra.mxu1 %vm718_vm2, %v10112_v1  ;;  %12763 = vmatprep.mubr.msk.f32.mxu1 %vm14338_vm1, %v14339_v45  ;;  %v11089_v1 = vld [vmem:[%s16363_s0 + $0x38] sm:$0xff] }
0x3a90   :  { %12776 = vmatprep.subr.mxu1 %v14339_v45  ;;  %v13134_v17 = vpack.c.bf16 %v11089_v1, %v11088_v16 }
0x3a96   :  { %12764 = vmatmul.mubr.msk.f32.vlgmr.msra.gmra.mrb[74].mxu1 %vm1007_vm14, %v10108_v28  ;;  %v11090_v28 = vld [vmem:[%s16363_s0 + $0x40] sm:$0xff] }
0x3a97   :  { %12778 = vmatprep.mubr.msk.f32.mxu1 %vm14338_vm1, %v14339_v45 }
0x3aa9   :  { %v10275_v27 = vpop.xlane.xlu1 %10274 }
0x3aaa   :  { %13580 = vrcp.f32 %v10275_v27  ;;  %v11092_v27 = vld [vmem:[%s16363_s0 + $0x50] sm:$0xff] }
0x3aab   :  { %13582 = vrcp.f32 %v10603_v55  ;;  %v13138_v55 = vpack.c.bf16 %v11091_v43, %v11090_v28 }
0x3aad   :  { %v10444_v62 = vpop.permute.xlu1 %10443 }
0x3ab1   :  { %v10768_v19 = vpop.xlane.xlu0 %10767  ;;  %v10608_v2 = vpop.permute.xlu1 %10607 }
0x3ab2   :  { %13584 = vrcp.f32 %v10768_v19  ;;  %v11093_v19 = vld [vmem:[%s16363_s0 + $0x58] sm:$0xff] }
0x3ab3   :  { %v13142_v26 = vpack.c.bf16 %v11093_v19, %v11092_v27  ;;  %v11661_v27 = vld [vmem:[#allocation13] ss:$0 sm:$0xff] }
0x3ab4   :  { %v13581_v53 = vpop.eup %13580 }
0x3ab5   :  { %v10366_v13 = vpop.permute.xlu0 %10365  ;;  %v10277_v61 = vmul.f32 %v13581_v53, %v16109_v3  ;;  %v13583_v59 = vpop.eup %13582 }
0x3ab6   :  { %12777 = vmatpush3.msk.msra.mxu1 %vm718_vm2, %v10366_v13  ;;  %v10605_v36 = vmul.f32 %v13583_v59, %v16100_v24  ;;  %v10773_v7 = vpop.permute.xlu1 %10772  ;;  %v11095_v13 = vld [vmem:[%s16363_s0 + $0x68] sm:$0xff] }
0x3ab7   :  { %12779 = vmatmul.mubr.msk.f32.vlgmr.msra.gmra.mrb[76].mxu1 %vm1007_vm14, %v10363_v18  ;;  %12781 = vmatprep.subr.mxu1 %v14339_v45  ;;  %v11094_v18 = vld [vmem:[%s16363_s0 + $0x60] sm:$0xff] }
0x3ab8   :  { %12782 = vmatpush3.msk.msra.mxu1 %vm718_vm2, %v10444_v62  ;;  %12783 = vmatprep.mubr.msk.f32.mxu1 %vm14338_vm1, %v14339_v45  ;;  %v13146_v62 = vpack.c.bf16 %v11095_v13, %v11094_v18 }
0x3ab9   :  { %12791 = vmatprep.subr.mxu1 %v14339_v45 }
0x3abc   :  { %v13585_v10 = vpop.eup %13584 }
0x3abd   :  { %v10770_v31 = vmul.f32 %v13585_v10, %v16113_v35 }
0x3abf   :  { %12784 = vmatmul.mubr.msk.f32.vlgmr.msra.gmra.mrb[76].mxu1 %vm1007_vm14, %v10277_v61 }
0x3ac0   :  { %12792 = vmatpush3.msk.msra.mxu1 %vm718_vm2, %v10608_v2  ;;  %12793 = vmatprep.mubr.msk.f32.mxu1 %vm14338_vm1, %v14339_v45 }
0x3ac1   :  { %12801 = vmatprep.subr.mxu1 %v14339_v45 }
0x3ac7   :  { %12794 = vmatmul.mubr.msk.f32.vlgmr.msra.gmra.mrb[76].mxu1 %vm1007_vm14, %v10605_v36 }
0x3ac8   :  { %12802 = vmatpush3.msk.msra.mxu1 %vm718_vm2, %v10773_v7  ;;  %12803 = vmatprep.mubr.msk.f32.mxu1 %vm14338_vm1, %v14339_v45  ;;  %vm11318_vm1 = vcmask 252928  }
0x3ac9   :  { %13115 = vmatprep.subr.bf16.mxu1 %v13114_v25 }
0x3acf   :  { %12804 = vmatmul.mubr.msk.f32.vlgmr.msra.gmra.mrb[76].mxu1 %vm1007_vm14, %v10770_v31  ;;  %v11655_v31 = vld [vmem:[#allocation10] ss:$0 sm:$0xff] }
0x3ad0   :  { %13117 = vmatpush3.bf16.msra.mxu1 %v13114_v25 }
0x3ad1   :  { %13119 = vmatprep.subr.bf16.mxu1 %v13118_v41 }
0x3ad4   :  { %13121 = vmatpush3.bf16.msra.mxu1 %v13118_v41 }
0x3b69   :  { %v10184_v63 = vpop.f32.mrb[74].mxu1 }
0x3b6a   :  { %v12765_v22 = vpop.f32.mrb[75].mxu1  ;;  %12814 = vmatprep.mubr.msk.f32.mxu0 %vm732_vm3, %v10184_v63 }
0x3ba2   :  { %v10845_v45 = vpop.f32.mrb[76].mxu1 }
0x3ba3   :  { %v12805_v12 = vpop.f32.mrb[77].mxu1  ;;  %12815 = vmatmul.mubr.msk.f32.vlgmr.msra.gmra.mrb[84].mxu0 %vm732_vm3, %v10845_v45  ;;  %v11096_v45 = vld [vmem:[%s16363_s0 + $0x70] sm:$0xff] }
0x3ba4   :  { %13125 = vmatpush3.bf16.msra.mxu0 %v13122_v46  ;;  %v11097_v12 = vld [vmem:[%s16363_s0 + $0x78] sm:$0xff]  ;;  %v11227_v46 = vld [vmem:[%s16364_s7 + $0x8] sm:$0xff] }
0x3ba5   :  { %13127 = vmatprep.subr.bf16.mxu0 %v13126_v0 }
0x3ba8   :  { %13129 = vmatpush3.bf16.msra.mxu0 %v13126_v0  ;;  %v13154_v0 = vpack.c.bf16 %v11227_v46, %v11226_v32 }
0x3ba9   :  { %13131 = vmatprep.subr.bf16.mxu0 %v13130_v42 }
0x3baa   :  { %13155 = vmatprep.subr.bf16.mxu1 %v13154_v0 }
0x3bac   :  { %13133 = vmatpush3.bf16.msra.mxu0 %v13130_v42 }
0x3bad   :  { %13135 = vmatprep.subr.bf16.mxu0 %v13134_v17 }
0x3bb0   :  { %13137 = vmatpush3.bf16.msra.mxu0 %v13134_v17 }
0x3bb1   :  { %13139 = vmatprep.subr.bf16.mxu0 %v13138_v55 }
0x3bb4   :  { %13141 = vmatpush3.bf16.msra.mxu0 %v13138_v55 }
0x3bb5   :  { %13143 = vmatprep.subr.bf16.mxu0 %v13142_v26 }
0x3bb8   :  { %13145 = vmatpush3.bf16.msra.mxu0 %v13142_v26 }
0x3bb9   :  { %13147 = vmatprep.subr.bf16.mxu0 %v13146_v62 }
0x3bbc   :  { %13149 = vmatpush3.bf16.msra.mxu0 %v13146_v62  ;;  %v11662_v62 = vld [vmem:[#allocation12] ss:$0 sm:$0xff] }
0x3c76   :  { %v12816_v56 = vpop.f32.mrb[84].mxu0 }
0x3c77   :  { %v10939_v52 = vadd.f32 %v12816_v56, %v11652_v40  ;;  %v10933_v23 = vpop.f32.mrb[85].mxu0  ;;  %v11657_v56 = vld [vmem:[#allocation2] ss:$0 sm:$0xff] }
0x3c78   :  { %v10934_v24 = vadd.f32 %v11652_v40, %v10933_v23  ;;  %v13150_v40 = vpack.c.bf16 %v11097_v12, %v11096_v45 }
0x3c79   :  { %v10943_v29 = vadd.f32 %v10939_v52, %v15989_v49 }
0x3c7a   :  { %v10942_v30 = vadd.f32 %v10934_v24, %v15987_v51  ;;  %13151 = vmatprep.subr.bf16.mxu0 %v13150_v40 }
0x3c7b   :  { %v10947_v54 = vsel %vm732_vm3, %v10943_v29, 0.0  ;;  %13153 = vmatpush3.bf16.msra.mxu0 %v13150_v40 }
0x3c7c   :  { %10948 = vadd.xlane.f32.xlu0 %v10947_v54  ;;  %v10944_v38 = vsel %vm732_vm3, %v10942_v30, 0.0 }
0x3c7d   :  { %10945 = vadd.xlane.f32.xlu1 %v10944_v38  ;;  %v11660_v38 = vld [vmem:[#allocation4] ss:$0 sm:$0xff] }
0x3d09   :  { %v10949_v50 = vpop.xlane.xlu0 %10948 }
0x3d0a   :  { %v10951_v33 = vmul.f32 0.03125, %v10949_v50  ;;  %v10946_v8 = vpop.xlane.xlu1 %10945 }
0x3d0b   :  { %v10950_v4 = vmul.f32 0.03125, %v10946_v8 }
0x3d0c   :  { %v16177_v14 = vsub.f32 %v10943_v29, %v10951_v33 }
0x3d0d   :  { %v16179_v3 = vsub.f32 %v10942_v30, %v10950_v4 }
0x3d0e   :  { %v10955_v51 = vmul.f32 %v16177_v14, %v16177_v14 }
0x3d0f   :  { %v10954_v49 = vmul.f32 %v16179_v3, %v16179_v3 }
0x3d10   :  { %v10959_v39 = vsel %vm732_vm3, %v10955_v51, 0.0 }
0x3d11   :  { %10960 = vadd.xlane.f32.xlu0 %v10959_v39  ;;  %v10956_v35 = vsel %vm732_vm3, %v10954_v49, 0.0 }
0x3d12   :  { %10957 = vadd.xlane.f32.xlu1 %v10956_v35 }
0x3d9e   :  { %v10961_v53 = vpop.xlane.xlu0 %10960 }
0x3d9f   :  { %v10963_v61 = vmul.f32 0.03125, %v10961_v53  ;;  %v10958_v2 = vpop.xlane.xlu1 %10957 }
0x3da0   :  { %v10962_v59 = vmul.f32 0.03125, %v10958_v2 }
0x3da1   :  { %v10965_v36 = vadd.f32 1e-05, %v10963_v61 }
0x3da2   :  { %v10964_v7 = vadd.f32 1e-05, %v10962_v59  ;;  %v11663_v59 = vld [vmem:[#allocation43] ss:$0 sm:$0xff] }
0x3da3   :  { %13586 = vrsqrt.f32 %v10965_v36 }
0x3da4   :  { %13588 = vrsqrt.f32 %v10964_v7 }
0x3dad   :  { %v13587_v10 = vpop.eup %13586 }
0x3dae   :  { %v13589_v9 = vpop.eup %13588  ;;  %v10969_v48 = vmul.f32 %v13587_v10, %v16177_v14 }
0x3daf   :  { %v10968_v11 = vmul.f32 %v13589_v9, %v16179_v3 }
0x3db0   :  { %v10978_v20 = vmul.f32 %v11655_v31, %v10969_v48 }
0x3db1   :  { %v10977_v60 = vmul.f32 %v11655_v31, %v10968_v11 }
0x3db2   :  { %v10987_v22 = vadd.f32 %v11656_v6, %v10978_v20 }
0x3db3   :  { %v10986_v63 = vadd.f32 %v11656_v6, %v10977_v60 }
0x3db5   :  { %12825 = vmatprep.mubr.msk.f32.mxu1 %vm732_vm3, %v10986_v63 }
0x3db6   :  { %12826 = vmatmul.mubr.msk.f32.vlgmr.msra.gmra.mrb[78].mxu1 %vm732_vm3, %v10987_v22 }
0x3db7   :  { %13157 = vmatpush3.bf16.msra.mxu1 %v13154_v0 }
0x3db8   :  { %13159 = vmatprep.subr.bf16.mxu1 %v13158_v47 }
0x3dbb   :  { %13161 = vmatpush3.bf16.msra.mxu1 %v13158_v47 }
0x3e89   :  { %v12827_v52 = vpop.f32.mrb[78].mxu1 }
0x3e8a   :  { %v11077_v23 = vadd.f32 %v12827_v52, %v11657_v56  ;;  %v11071_v24 = vpop.f32.mrb[79].mxu1 }
0x3e8b   :  { %v11072_v29 = vadd.f32 %v11657_v56, %v11071_v24 }
0x3e8c   :  { %v11081_v54 = vmax.f32 %v11077_v23, 0.0 }
0x3e8d   :  { %v11080_v30 = vmax.f32 %v11072_v29, 0.0 }
0x3e8f   :  { %12860 = vmatprep.mubr.f32.mxu0 %v11080_v30 }
0x3e90   :  { %12861 = vmatmul.mubr.f32.vlgmr.msra.gmra.mrb[86].mxu0 %v11081_v54 }
0x3f63   :  { %v12862_v50 = vpop.f32.mrb[86].mxu0 }
0x3f64   :  { %v11177_v33 = vadd.f32 %v12862_v50, %v11660_v38  ;;  %v11171_v8 = vpop.f32.mrb[87].mxu0 }
0x3f65   :  { %v11172_v4 = vadd.f32 %v11660_v38, %v11171_v8 }
0x3f66   :  { %v11181_v14 = vadd.f32 %v11177_v33, %v10987_v22 }
0x3f67   :  { %v11180_v3 = vadd.f32 %v11172_v4, %v10986_v63 }
0x3f68   :  { %v11185_v51 = vsel %vm732_vm3, %v11181_v14, 0.0 }
0x3f69   :  { %11186 = vadd.xlane.f32.xlu0 %v11185_v51  ;;  %v11182_v49 = vsel %vm732_vm3, %v11180_v3, 0.0 }
0x3f6a   :  { %11183 = vadd.xlane.f32.xlu1 %v11182_v49 }
0x3ff6   :  { %v11187_v39 = vpop.xlane.xlu0 %11186 }
0x3ff7   :  { %v11189_v35 = vmul.f32 0.03125, %v11187_v39  ;;  %v11184_v57 = vpop.xlane.xlu1 %11183 }
0x3ff8   :  { %v11188_v58 = vmul.f32 0.03125, %v11184_v57 }
0x3ff9   :  { %v11191_v15 = vsub.f32 %v11181_v14, %v11189_v35 }
0x3ffa   :  { %v11190_v25 = vsub.f32 %v11180_v3, %v11188_v58 }
0x3ffb   :  { %v11193_v21 = vmul.f32 %v11191_v15, %v11191_v15 }
0x3ffc   :  { %v11192_v41 = vmul.f32 %v11190_v25, %v11190_v25 }
0x3ffd   :  { %v11197_v44 = vsel %vm732_vm3, %v11193_v21, 0.0 }
0x3ffe   :  { %11198 = vadd.xlane.f32.xlu0 %v11197_v44  ;;  %v11194_v5 = vsel %vm732_vm3, %v11192_v41, 0.0 }
0x3fff   :  { %11195 = vadd.xlane.f32.xlu1 %v11194_v5 }
0x408b   :  { %v11199_v42 = vpop.xlane.xlu0 %11198 }
0x408c   :  { %v11201_v16 = vmul.f32 0.03125, %v11199_v42  ;;  %v11196_v1 = vpop.xlane.xlu1 %11195 }
0x408d   :  { %v11200_v17 = vmul.f32 0.03125, %v11196_v1 }
0x408e   :  { %v11203_v28 = vadd.f32 1e-05, %v11201_v16 }
0x408f   :  { %v11202_v43 = vadd.f32 1e-05, %v11200_v17 }
0x4090   :  { %13590 = vrsqrt.f32 %v11203_v28 }
0x4091   :  { %13592 = vrsqrt.f32 %v11202_v43 }
0x409a   :  { %v13591_v55 = vpop.eup %13590 }
0x409b   :  { %v13593_v19 = vpop.eup %13592  ;;  %v11207_v26 = vmul.f32 %v13591_v55, %v11191_v15 }
0x409c   :  { %v11206_v18 = vmul.f32 %v13593_v19, %v11190_v25 }
0x409d   :  { %v11216_v13 = vmul.f32 %v11661_v27, %v11207_v26 }
0x409e   :  { %v11215_v53 = vmul.f32 %v11661_v27, %v11206_v18 }
0x409f   :  { %v11225_v2 = vadd.f32 %v11662_v62, %v11216_v13 }
0x40a0   :  { %v11224_v61 = vadd.f32 %v11662_v62, %v11215_v53 }
0x40a2   :  { %12871 = vmatprep.mubr.msk.f32.mxu1 %vm732_vm3, %v11224_v61 }
0x40a3   :  { %12872 = vmatmul.mubr.msk.f32.vlgmr.msra.gmra.mrb[80].mxu1 %vm732_vm3, %v11225_v2 }
0x4176   :  { %v12873_v36 = vpop.f32.mrb[80].mxu1 }
0x4177   :  { %v11315_v7 = vadd.f32 %v12873_v36, %v11663_v59  ;;  %v11309_v10 = vpop.f32.mrb[81].mxu1 }
0x4178   :  { %v11310_v31 = vadd.f32 %v11663_v59, %v11309_v10 }
0x4179   :  { %11320 = vst.msk [vmem:[%s14697_s24 + $0x8] sm:$0xff] %vm11318_vm1, %v11315_v7 }
0x417a   :  { %11319 = vst.msk [vmem:[%s14697_s24] sm:$0xff] %vm11318_vm1, %v11310_v31 }
0x417b   :  { %11325 = vsyncpa [#allocation3], 1 }
0x417c   :  { %11326 = vsyncpa [#allocation5], 1 }
0x417d   :  { %11327 = vsyncpa [#allocation8], 1 }
0x417e   :  { %11328 = vsyncpa [#allocation11], 1 }
0x417f   :  { %11329 = vsyncpa [#allocation14], 1 }
0x4180   :  { %11330 = vsyncpa [#allocation17], 1 }
0x4181   :  { %11331 = vsyncpa [#allocation20], 1 }
0x4182   :  { %11332 = vsyncpa [#allocation23], 1 }
0x4183   :  { %11333 = vsyncpa [#allocation26], 1 }
0x4184   :  { %11334 = vsyncpa [#allocation29], 1 }
0x4185   :  { %11335 = vsyncpa [#allocation32], 1 }
0x4186   :  { %11336 = vsyncpa [#allocation35], 1 }
0x4187   :  { %11337 = vsyncpa [#allocation38], 1 }
0x4188   :  { %11338 = vsyncpa [#allocation41], 1 }
0x4189   :  { %11339 = vsyncpa [#allocation44], 1 }

</bundles_post_ra>
